<compile_context>
chip_gen: v7x
topology: tpu7x:2x2x1
jax: 0.10.0
libtpu: 0.0.40
codegen_flags: <defaults>
</compile_context>

<pallas_src>
import math

import jax
import jax.numpy as jnp
from jax.experimental import pallas as pl
from jax.experimental.pallas import tpu as pltpu

LEAKY_SLOPE = 0.01   # torch.nn.LeakyReLU default
LN_EPS = 1e-5        # torch.nn.LayerNorm default


def _leaky(x):
    return jnp.where(x >= 0, x, LEAKY_SLOPE * x)


# ----------------------------------------------------------------------------
# Fused stride-1 segment kernel (channel-change + resblocks, all in VMEM)
#
# The activation lives on a flattened, zero-padded (Hp x Wp) "frame" with extra
# top/bottom margin rows so every 3x3 tap is a static in-bounds row slice.
# ----------------------------------------------------------------------------
def _make_segment_kernel(op_meta, r0, margin, cin0, n_ops):
    def kernel(*refs):
        x_ref = refs[0]
        mask_ref = refs[1]
        o_ref = refs[2 + 2 * n_ops]
        buf_ref = refs[2 + 2 * n_ops + 1]

        mask = mask_ref[...]                                  # (R0, 1) f32
        buf_ref[...] = jnp.zeros_like(buf_ref)
        buf_ref[:, :cin0] = x_ref[...]                        # embed input frame

        resid = None
        for k, op in enumerate(op_meta):
            w_ref = refs[2 + 2 * k]                           # (T, cin, cout) bf16
            b_ref = refs[3 + 2 * k]                           # (1, cout)      f32
            cin, cout = op["cin"], op["cout"]

            if op["save_resid"]:
                resid = buf_ref[margin:margin + r0, :cin]     # block input (value)

            acc = jnp.zeros((r0, cout), jnp.float32)
            for t, off in enumerate(op["offsets"]):
                a = buf_ref[margin + off:margin + off + r0, :cin]
                if op["pre_leaky"]:
                    a = _leaky(a)                             # leaky(0)=0 -> padding ok
                acc = acc + jnp.dot(a.astype(jnp.bfloat16), w_ref[t],
                                    preferred_element_type=jnp.float32)
            y = (acc + b_ref[...]) * mask                     # zero the frame border
            if op["add_resid"]:
                y = y + resid
            buf_ref[margin:margin + r0, :cout] = y            # margins stay zero

        o_ref[...] = buf_ref[...]
    return kernel


def segment_pallas(x, layers):
    """Run a list of stride-1 layers (channel_change / resblock) as one kernel."""
    N, H, W, cin0 = x.shape
    Hp, Wp = H + 2, W + 2
    R0 = Hp * Wp
    M = ((Wp + 1 + 7) // 8) * 8            # margin rows (>= Wp+1, sublane aligned)
    RT = R0 + 2 * M

    op_meta, op_args = [], []
    cur_c = cin0
    for layer in layers:
        if layer["kind"] == "channel_change":
            w, b = layer["w"], layer["b"]                      # (1,1,cin,cout)
            cin, cout = w.shape[2], w.shape[3]
            op_meta.append(dict(offsets=(0,), cin=cin, cout=cout,
                                pre_leaky=False, save_resid=False, add_resid=False))
            op_args += [w.reshape(1, cin, cout).astype(jnp.bfloat16),
                        b.reshape(1, cout).astype(jnp.float32)]
            cur_c = cout
        else:  # resblock: t = x + convN(leaky(...conv1(leaky(x))))
            convs = layer["convs"]
            nconv = len(convs)
            for li, (w, b) in enumerate(convs):
                kh, kw, cin, cout = w.shape
                offs = tuple((di - kh // 2) * Wp + (dj - kw // 2)
                             for di in range(kh) for dj in range(kw))
                op_meta.append(dict(offsets=offs, cin=cin, cout=cout,
                                    pre_leaky=True, save_resid=(li == 0),
                                    add_resid=(li == nconv - 1)))
                op_args += [w.reshape(kh * kw, cin, cout).astype(jnp.bfloat16),
                            b.reshape(1, cout).astype(jnp.float32)]
            cur_c = cout

    cmax = max([cin0] + [op["cout"] for op in op_meta])
    cout_seg = cur_c
    n_ops = len(op_meta)

    # Build the input frame: zero-pad spatially by 1, flatten, add margin rows.
    xf = jnp.pad(x, ((0, 0), (1, 1), (1, 1), (0, 0))).reshape(N, R0, cin0)
    xf = jnp.pad(xf, ((0, 0), (M, M), (0, 0)))

    ii = jnp.arange(Hp)[:, None]
    jj = jnp.arange(Wp)[None, :]
    mask = ((ii >= 1) & (ii <= Hp - 2) & (jj >= 1) & (jj <= Wp - 2))
    mask = mask.astype(jnp.float32).reshape(R0, 1)

    in_specs = [pl.BlockSpec((None, RT, cin0), lambda n: (n, 0, 0)),
                pl.BlockSpec((R0, 1), lambda n: (0, 0))]
    for op in op_meta:
        T = len(op["offsets"])
        in_specs.append(pl.BlockSpec((T, op["cin"], op["cout"]),
                                     lambda n: (0, 0, 0)))
        in_specs.append(pl.BlockSpec((1, op["cout"]), lambda n: (0, 0)))

    out = pl.pallas_call(
        _make_segment_kernel(op_meta, R0, M, cin0, n_ops),
        out_shape=jax.ShapeDtypeStruct((N, RT, cmax), jnp.float32),
        grid=(N,),
        in_specs=in_specs,
        out_specs=pl.BlockSpec((None, RT, cmax), lambda n: (n, 0, 0)),
        scratch_shapes=[pltpu.VMEM((RT, cmax), jnp.float32)],
        compiler_params=pltpu.CompilerParams(dimension_semantics=("parallel",)),
    )(xf, mask, *op_args)

    out = out[:, M:M + R0, :cout_seg].reshape(N, Hp, Wp, cout_seg)
    return out[:, 1:-1, 1:-1, :]


# ----------------------------------------------------------------------------
# Strided conv (stem / downsample) = space-to-depth phase split (JAX glue, pure
# layout) + fused Pallas "valid conv" kernel with an in-kernel tap loop.
# ----------------------------------------------------------------------------
def _make_valid_conv_kernel(offsets, nrout, cout, post_leaky):
    def kernel(x_ref, w_ref, b_ref, o_ref):
        acc = jnp.zeros((nrout, cout), jnp.float32)
        for t, off in enumerate(offsets):
            a = x_ref[off:off + nrout, :]
            acc = acc + jnp.dot(a.astype(jnp.bfloat16), w_ref[t],
                                preferred_element_type=jnp.float32)
        y = acc + b_ref[...]
        if post_leaky:
            y = _leaky(y)
        o_ref[...] = y
    return kernel


def conv_strided_pallas(x, w, b, *, stride, padding, post_leaky=False):
    N, H, W, Cin = x.shape
    kh, kw, _, Cout = w.shape
    s, p = stride, padding
    OH = (H + 2 * p - kh) // s + 1
    OW = (W + 2 * p - kw) // s + 1

    # pad + space-to-depth phase split (no data amplification)
    xp = jnp.pad(x, ((0, 0), (p, p), (p, p), (0, 0)))
    Hp, Wp = H + 2 * p, W + 2 * p
    Hp2 = -(-Hp // s) * s
    Wp2 = -(-Wp // s) * s
    xp = jnp.pad(xp, ((0, 0), (0, Hp2 - Hp), (0, Wp2 - Wp), (0, 0)))
    Hs, Ws = Hp2 // s, Wp2 // s
    Cp = s * s * Cin
    xs = xp.reshape(N, Hs, s, Ws, s, Cin).transpose(0, 1, 3, 2, 4, 5)
    xs = xs.reshape(N, Hs * Ws, Cp)

    # phase-split weights: (QI*QJ, s*s*Cin, Cout)
    QI = -(-kh // s)
    QJ = -(-kw // s)
    wp = jnp.zeros((QI, QJ, s, s, Cin, Cout), w.dtype)
    for i in range(kh):
        for j in range(kw):
            wp = wp.at[i // s, j // s, i % s, j % s].set(w[i, j])
    wp = wp.reshape(QI * QJ, Cp, Cout).astype(jnp.bfloat16)

    offsets = tuple(qi * Ws + qj for qi in range(QI) for qj in range(QJ))
    NRin = Hs * Ws
    NRout = (OH - 1) * Ws + OW            # compact slab holding all valid outputs

    out = pl.pallas_call(
        _make_valid_conv_kernel(offsets, NRout, Cout, post_leaky),
        out_shape=jax.ShapeDtypeStruct((N, NRout, Cout), jnp.float32),
        grid=(N,),
        in_specs=[pl.BlockSpec((None, NRin, Cp), lambda n: (n, 0, 0)),
                  pl.BlockSpec((QI * QJ, Cp, Cout), lambda n: (0, 0, 0)),
                  pl.BlockSpec((1, Cout), lambda n: (0, 0))],
        out_specs=pl.BlockSpec((None, NRout, Cout), lambda n: (n, 0, 0)),
        compiler_params=pltpu.CompilerParams(dimension_semantics=("parallel",)),
    )(xs, wp, b.reshape(1, Cout).astype(jnp.float32))

    out = jnp.pad(out, ((0, 0), (0, OH * Ws - NRout), (0, 0)))
    out = out.reshape(N, OH, Ws, Cout)[:, :, :OW, :]
    return out


# ----------------------------------------------------------------------------
# Fused VAE head kernel:
#   LeakyReLU -> Linear -> LeakyReLU -> LayerNorm -> mean/logvar -> sigma/KL/z
# ----------------------------------------------------------------------------
def _head_kernel(h_ref, w1_ref, b1_ref, g_ref, beta_ref, wm_ref, bm_ref,
                 wv_ref, bv_ref, eps_ref,
                 z_ref, kl_ref, mean_ref, logvar_ref, sigma_ref):
    h = _leaky(h_ref[...].astype(jnp.float32))                      # LeakyReLU
    y = jnp.dot(h.astype(jnp.bfloat16), w1_ref[...],
                preferred_element_type=jnp.float32) + b1_ref[...]
    y = _leaky(y)                                                   # LeakyReLU
    mu = jnp.mean(y, axis=-1, keepdims=True)                        # LayerNorm (f32)
    var = jnp.mean(jnp.square(y - mu), axis=-1, keepdims=True)
    y = (y - mu) * jax.lax.rsqrt(var + LN_EPS) * g_ref[...] + beta_ref[...]

    yb = y.astype(jnp.bfloat16)
    mean = jnp.dot(yb, wm_ref[...], preferred_element_type=jnp.float32) + bm_ref[...]
    logvar = jnp.dot(yb, wv_ref[...], preferred_element_type=jnp.float32) + bv_ref[...]
    sigma = jnp.exp(0.5 * logvar)
    # KL(N(mean, sigma) || N(0, 1)) = 0.5*(mean^2 + exp(logvar) - 1 - logvar)
    kl = 0.5 * (jnp.square(mean) + jnp.exp(logvar) - 1.0 - logvar)
    z = mean + sigma * eps_ref[...]                                 # rsample

    z_ref[...] = z
    kl_ref[...] = jnp.sum(kl, axis=-1, keepdims=True)
    mean_ref[...] = mean
    logvar_ref[...] = logvar
    sigma_ref[...] = sigma


def head_pallas(flat, p, eps):
    N = flat.shape[0]
    Hd = p["fc_w"].shape[1]
    L = p["mean_w"].shape[1]
    out_shapes = (
        jax.ShapeDtypeStruct((N, L), jnp.float32),   # z
        jax.ShapeDtypeStruct((N, 1), jnp.float32),   # kl (summed over latent)
        jax.ShapeDtypeStruct((N, L), jnp.float32),   # mean
        jax.ShapeDtypeStruct((N, L), jnp.float32),   # logvar
        jax.ShapeDtypeStruct((N, L), jnp.float32),   # sigma
    )
    return pl.pallas_call(_head_kernel, out_shape=out_shapes)(
        flat,
        p["fc_w"].astype(jnp.bfloat16), p["fc_b"].reshape(1, Hd),
        p["ln_gamma"].reshape(1, Hd), p["ln_beta"].reshape(1, Hd),
        p["mean_w"].astype(jnp.bfloat16), p["mean_b"].reshape(1, L),
        p["logvar_w"].astype(jnp.bfloat16), p["logvar_b"].reshape(1, L), eps)


# ----------------------------------------------------------------------------
# Parameter construction (deterministic, in-script)
# ----------------------------------------------------------------------------
def _uniform(key, shape, fan_in):
    bound = 1.0 / math.sqrt(fan_in)
    return jax.random.uniform(key, shape, jnp.float32, -bound, bound)


def _init_conv(key, kh, kw, cin, cout):
    k1, k2 = jax.random.split(key)
    fan_in = kh * kw * cin
    return _uniform(k1, (kh, kw, cin, cout), fan_in), _uniform(k2, (cout,), fan_in)


def _init_linear(key, fin, fout):
    k1, k2 = jax.random.split(key)
    return _uniform(k1, (fin, fout), fin), _uniform(k2, (fout,), fin)


def build_encoder_params(key, *, channel_size_per_layer, layers_per_block_per_layer,
                         latent_size, width, height, num_layers_per_resolution,
                         mlp_hidden_size, channel_size, input_channels, downsample):
    keys = iter(jax.random.split(key, 128))
    params = {}
    # stem: Conv2d(input_channels, channel_size, 5, padding=2, stride=2)
    params["conv1_w"], params["conv1_b"] = _init_conv(next(keys), 5, 5,
                                                      input_channels, channel_size)
    # reconstructed residual stack (see TODO(synk) at top of file)
    stack = []
    stack_downsample = downsample - 1
    in_ch = channel_size
    block_idx = 0
    for res_idx, n_blocks in enumerate(num_layers_per_resolution):
        for _ in range(n_blocks):
            out_ch = channel_size_per_layer[block_idx]
            if out_ch != in_ch:
                w, b = _init_conv(next(keys), 1, 1, in_ch, out_ch)
                stack.append(dict(kind="channel_change", w=w, b=b))
                in_ch = out_ch
            convs = [_init_conv(next(keys), 3, 3, out_ch, out_ch)
                     for _ in range(layers_per_block_per_layer[block_idx])]
            stack.append(dict(kind="resblock", convs=convs))
            block_idx += 1
        if res_idx < stack_downsample:
            w, b = _init_conv(next(keys), 3, 3, in_ch, in_ch)
            stack.append(dict(kind="downsample", w=w, b=b))
    params["stack"] = stack

    inner_w = width // (2 ** downsample)
    inner_h = height // (2 ** downsample)
    mlp_input = channel_size_per_layer[-1] * inner_w * inner_h
    params["fc_w"], params["fc_b"] = _init_linear(next(keys), mlp_input, mlp_hidden_size)
    params["ln_gamma"] = jnp.ones((mlp_hidden_size,), jnp.float32)
    params["ln_beta"] = jnp.zeros((mlp_hidden_size,), jnp.float32)
    params["mean_w"], params["mean_b"] = _init_linear(next(keys), mlp_hidden_size,
                                                      latent_size)
    # torch.nn.init.normal_(logvar.weight, std=0.01); zeros_(logvar.bias)
    params["logvar_w"] = 0.01 * jax.random.normal(next(keys),
                                                  (mlp_hidden_size, latent_size),
                                                  jnp.float32)
    params["logvar_b"] = jnp.zeros((latent_size,), jnp.float32)
    return params


# ----------------------------------------------------------------------------
# Forward pass
# ----------------------------------------------------------------------------
def encoder_forward(params, x, eps):
    # x: (N, H, W, Cin)  NHWC
    h = conv_strided_pallas(x, params["conv1_w"], params["conv1_b"],
                            stride=2, padding=2, post_leaky=True)   # Conv + LeakyReLU

    pending = []
    for layer in params["stack"]:
        if layer["kind"] == "downsample":
            if pending:
                h = segment_pallas(h, pending)                      # fused segment
                pending = []
            h = conv_strided_pallas(h, layer["w"], layer["b"],
                                    stride=2, padding=1, post_leaky=False)
        else:
            pending.append(layer)
    if pending:
        h = segment_pallas(h, pending)

    flat = h.reshape(h.shape[0], -1)   # nn.Flatten (NHWC ordering; see layout note)
    z, kl, mean, logvar, sigma = head_pallas(flat, params, eps)
    return {"z": z, "kl": kl.reshape(-1), "q_mean": mean,
            "q_logvar": logvar, "q_sigma": sigma}


# ----------------------------------------------------------------------------
if __name__ == "__main__":
    cfg = dict(
        channel_size_per_layer=[8, 16],
        layers_per_block_per_layer=[2, 2],
        latent_size=16,
        width=16, height=16,
        num_layers_per_resolution=[1, 1],
        mlp_hidden_size=32,
        channel_size=8,
        input_channels=3,
        downsample=2,
    )
    key = jax.random.PRNGKey(0)
    pkey, xkey, ekey = jax.random.split(key, 3)
    params = build_encoder_params(pkey, **cfg)

    x = jax.random.normal(xkey, (2, cfg["height"], cfg["width"], cfg["input_channels"]),
                          jnp.float32)                 # layout: NHWC
    eps = jax.random.normal(ekey, (2, cfg["latent_size"]), jnp.float32)

    fwd = jax.jit(lambda xx, ee: encoder_forward(params, xx, ee))
    out = fwd(x, eps)
    out = jax.block_until_ready(out)

    assert out["z"].shape == (2, cfg["latent_size"])
    assert out["kl"].shape == (2,)
    assert out["q_mean"].shape == (2, cfg["latent_size"])
    assert out["q_sigma"].shape == (2, cfg["latent_size"])
    assert bool(jnp.all(out["kl"] >= -1e-5))
    assert all(bool(jnp.all(jnp.isfinite(v))) for v in out.values())
    print("KERNEL_OK")
</pallas_src>

<mosaic_0001>
module attributes {stable_mosaic.version = 11 : i64} {
  func.func @kernel(%arg0: i32, %arg1: memref<1x100x12xf32, #tpu.memory_space<vmem>>, %arg2: memref<9x12x8xbf16, #tpu.memory_space<vmem>>, %arg3: memref<1x8xf32, #tpu.memory_space<vmem>>, %arg4: memref<1x78x8xf32, #tpu.memory_space<vmem>>) attributes {dimension_semantics = [#tpu.dimension_semantics<parallel>], iteration_bounds = array<i64: 2>, scalar_prefetch = 0 : i64, scratch_operands = 0 : i64, tpu.core_type = #tpu.core_type<tc>, window_params = [{transform_indices = @transform_0, window_bounds = array<i64: 1, 100, 12>}, {pipeline_mode = #tpu.pipeline_mode<synchronous>, transform_indices = @transform_1, window_bounds = array<i64: 9, 12, 8>}, {pipeline_mode = #tpu.pipeline_mode<synchronous>, transform_indices = @transform_2, window_bounds = array<i64: 1, 8>}, {transform_indices = @transform_3, window_bounds = array<i64: 1, 78, 8>}]} {
    %cst = arith.constant 0.000000e+00 : f32
    %0 = vector.broadcast %cst : f32 to vector<78x8xf32>
    %c0 = arith.constant 0 : index
    %c0_0 = arith.constant 0 : index
    %c0_1 = arith.constant 0 : index
    %1 = vector.load %arg1[%c0, %c0_0, %c0_1] : memref<1x100x12xf32, #tpu.memory_space<vmem>>, vector<1x78x12xf32>
    %2 = vector.shape_cast %1 : vector<1x78x12xf32> to vector<78x12xf32>
    %3 = arith.truncf %2 : vector<78x12xf32> to vector<78x12xbf16>
    %c0_2 = arith.constant 0 : index
    %c0_3 = arith.constant 0 : index
    %c0_4 = arith.constant 0 : index
    %4 = vector.load %arg2[%c0_2, %c0_3, %c0_4] : memref<9x12x8xbf16, #tpu.memory_space<vmem>>, vector<1x12x8xbf16>
    %5 = vector.shape_cast %4 : vector<1x12x8xbf16> to vector<12x8xbf16>
    %cst_5 = arith.constant dense<0.000000e+00> : vector<78x8xf32>
    %6 = tpu.matmul %3, %5, %cst_5 {dimension_numbers = #tpu.dot_dimension_numbers<[1], [0], [0], [1], [0, 0, 1, 1], [], []>} : vector<78x12xbf16>, vector<12x8xbf16>, vector<78x8xf32> -> vector<78x8xf32>
    %7 = arith.addf %0, %6 : vector<78x8xf32>
    %c0_6 = arith.constant 0 : index
    %c1 = arith.constant 1 : index
    %c0_7 = arith.constant 0 : index
    %8 = vector.load %arg1[%c0_6, %c1, %c0_7] : memref<1x100x12xf32, #tpu.memory_space<vmem>>, vector<1x78x12xf32>
    %9 = vector.shape_cast %8 : vector<1x78x12xf32> to vector<78x12xf32>
    %10 = arith.truncf %9 : vector<78x12xf32> to vector<78x12xbf16>
    %c1_8 = arith.constant 1 : index
    %c0_9 = arith.constant 0 : index
    %c0_10 = arith.constant 0 : index
    %11 = vector.load %arg2[%c1_8, %c0_9, %c0_10] : memref<9x12x8xbf16, #tpu.memory_space<vmem>>, vector<1x12x8xbf16>
    %12 = vector.shape_cast %11 : vector<1x12x8xbf16> to vector<12x8xbf16>
    %cst_11 = arith.constant dense<0.000000e+00> : vector<78x8xf32>
    %13 = tpu.matmul %10, %12, %cst_11 {dimension_numbers = #tpu.dot_dimension_numbers<[1], [0], [0], [1], [0, 0, 1, 1], [], []>} : vector<78x12xbf16>, vector<12x8xbf16>, vector<78x8xf32> -> vector<78x8xf32>
    %14 = arith.addf %7, %13 : vector<78x8xf32>
    %c0_12 = arith.constant 0 : index
    %c2 = arith.constant 2 : index
    %c0_13 = arith.constant 0 : index
    %15 = vector.load %arg1[%c0_12, %c2, %c0_13] : memref<1x100x12xf32, #tpu.memory_space<vmem>>, vector<1x78x12xf32>
    %16 = vector.shape_cast %15 : vector<1x78x12xf32> to vector<78x12xf32>
    %17 = arith.truncf %16 : vector<78x12xf32> to vector<78x12xbf16>
    %c2_14 = arith.constant 2 : index
    %c0_15 = arith.constant 0 : index
    %c0_16 = arith.constant 0 : index
    %18 = vector.load %arg2[%c2_14, %c0_15, %c0_16] : memref<9x12x8xbf16, #tpu.memory_space<vmem>>, vector<1x12x8xbf16>
    %19 = vector.shape_cast %18 : vector<1x12x8xbf16> to vector<12x8xbf16>
    %cst_17 = arith.constant dense<0.000000e+00> : vector<78x8xf32>
    %20 = tpu.matmul %17, %19, %cst_17 {dimension_numbers = #tpu.dot_dimension_numbers<[1], [0], [0], [1], [0, 0, 1, 1], [], []>} : vector<78x12xbf16>, vector<12x8xbf16>, vector<78x8xf32> -> vector<78x8xf32>
    %21 = arith.addf %14, %20 : vector<78x8xf32>
    %c0_18 = arith.constant 0 : index
    %c10 = arith.constant 10 : index
    %c0_19 = arith.constant 0 : index
    %22 = vector.load %arg1[%c0_18, %c10, %c0_19] : memref<1x100x12xf32, #tpu.memory_space<vmem>>, vector<1x78x12xf32>
    %23 = vector.shape_cast %22 : vector<1x78x12xf32> to vector<78x12xf32>
    %24 = arith.truncf %23 : vector<78x12xf32> to vector<78x12xbf16>
    %c3 = arith.constant 3 : index
    %c0_20 = arith.constant 0 : index
    %c0_21 = arith.constant 0 : index
    %25 = vector.load %arg2[%c3, %c0_20, %c0_21] : memref<9x12x8xbf16, #tpu.memory_space<vmem>>, vector<1x12x8xbf16>
    %26 = vector.shape_cast %25 : vector<1x12x8xbf16> to vector<12x8xbf16>
    %cst_22 = arith.constant dense<0.000000e+00> : vector<78x8xf32>
    %27 = tpu.matmul %24, %26, %cst_22 {dimension_numbers = #tpu.dot_dimension_numbers<[1], [0], [0], [1], [0, 0, 1, 1], [], []>} : vector<78x12xbf16>, vector<12x8xbf16>, vector<78x8xf32> -> vector<78x8xf32>
    %28 = arith.addf %21, %27 : vector<78x8xf32>
    %c0_23 = arith.constant 0 : index
    %c11 = arith.constant 11 : index
    %c0_24 = arith.constant 0 : index
    %29 = vector.load %arg1[%c0_23, %c11, %c0_24] : memref<1x100x12xf32, #tpu.memory_space<vmem>>, vector<1x78x12xf32>
    %30 = vector.shape_cast %29 : vector<1x78x12xf32> to vector<78x12xf32>
    %31 = arith.truncf %30 : vector<78x12xf32> to vector<78x12xbf16>
    %c4 = arith.constant 4 : index
    %c0_25 = arith.constant 0 : index
    %c0_26 = arith.constant 0 : index
    %32 = vector.load %arg2[%c4, %c0_25, %c0_26] : memref<9x12x8xbf16, #tpu.memory_space<vmem>>, vector<1x12x8xbf16>
    %33 = vector.shape_cast %32 : vector<1x12x8xbf16> to vector<12x8xbf16>
    %cst_27 = arith.constant dense<0.000000e+00> : vector<78x8xf32>
    %34 = tpu.matmul %31, %33, %cst_27 {dimension_numbers = #tpu.dot_dimension_numbers<[1], [0], [0], [1], [0, 0, 1, 1], [], []>} : vector<78x12xbf16>, vector<12x8xbf16>, vector<78x8xf32> -> vector<78x8xf32>
    %35 = arith.addf %28, %34 : vector<78x8xf32>
    %c0_28 = arith.constant 0 : index
    %c12 = arith.constant 12 : index
    %c0_29 = arith.constant 0 : index
    %36 = vector.load %arg1[%c0_28, %c12, %c0_29] : memref<1x100x12xf32, #tpu.memory_space<vmem>>, vector<1x78x12xf32>
    %37 = vector.shape_cast %36 : vector<1x78x12xf32> to vector<78x12xf32>
    %38 = arith.truncf %37 : vector<78x12xf32> to vector<78x12xbf16>
    %c5 = arith.constant 5 : index
    %c0_30 = arith.constant 0 : index
    %c0_31 = arith.constant 0 : index
    %39 = vector.load %arg2[%c5, %c0_30, %c0_31] : memref<9x12x8xbf16, #tpu.memory_space<vmem>>, vector<1x12x8xbf16>
    %40 = vector.shape_cast %39 : vector<1x12x8xbf16> to vector<12x8xbf16>
    %cst_32 = arith.constant dense<0.000000e+00> : vector<78x8xf32>
    %41 = tpu.matmul %38, %40, %cst_32 {dimension_numbers = #tpu.dot_dimension_numbers<[1], [0], [0], [1], [0, 0, 1, 1], [], []>} : vector<78x12xbf16>, vector<12x8xbf16>, vector<78x8xf32> -> vector<78x8xf32>
    %42 = arith.addf %35, %41 : vector<78x8xf32>
    %c0_33 = arith.constant 0 : index
    %c20 = arith.constant 20 : index
    %c0_34 = arith.constant 0 : index
    %43 = vector.load %arg1[%c0_33, %c20, %c0_34] : memref<1x100x12xf32, #tpu.memory_space<vmem>>, vector<1x78x12xf32>
    %44 = vector.shape_cast %43 : vector<1x78x12xf32> to vector<78x12xf32>
    %45 = arith.truncf %44 : vector<78x12xf32> to vector<78x12xbf16>
    %c6 = arith.constant 6 : index
    %c0_35 = arith.constant 0 : index
    %c0_36 = arith.constant 0 : index
    %46 = vector.load %arg2[%c6, %c0_35, %c0_36] : memref<9x12x8xbf16, #tpu.memory_space<vmem>>, vector<1x12x8xbf16>
    %47 = vector.shape_cast %46 : vector<1x12x8xbf16> to vector<12x8xbf16>
    %cst_37 = arith.constant dense<0.000000e+00> : vector<78x8xf32>
    %48 = tpu.matmul %45, %47, %cst_37 {dimension_numbers = #tpu.dot_dimension_numbers<[1], [0], [0], [1], [0, 0, 1, 1], [], []>} : vector<78x12xbf16>, vector<12x8xbf16>, vector<78x8xf32> -> vector<78x8xf32>
    %49 = arith.addf %42, %48 : vector<78x8xf32>
    %c0_38 = arith.constant 0 : index
    %c21 = arith.constant 21 : index
    %c0_39 = arith.constant 0 : index
    %50 = vector.load %arg1[%c0_38, %c21, %c0_39] : memref<1x100x12xf32, #tpu.memory_space<vmem>>, vector<1x78x12xf32>
    %51 = vector.shape_cast %50 : vector<1x78x12xf32> to vector<78x12xf32>
    %52 = arith.truncf %51 : vector<78x12xf32> to vector<78x12xbf16>
    %c7 = arith.constant 7 : index
    %c0_40 = arith.constant 0 : index
    %c0_41 = arith.constant 0 : index
    %53 = vector.load %arg2[%c7, %c0_40, %c0_41] : memref<9x12x8xbf16, #tpu.memory_space<vmem>>, vector<1x12x8xbf16>
    %54 = vector.shape_cast %53 : vector<1x12x8xbf16> to vector<12x8xbf16>
    %cst_42 = arith.constant dense<0.000000e+00> : vector<78x8xf32>
    %55 = tpu.matmul %52, %54, %cst_42 {dimension_numbers = #tpu.dot_dimension_numbers<[1], [0], [0], [1], [0, 0, 1, 1], [], []>} : vector<78x12xbf16>, vector<12x8xbf16>, vector<78x8xf32> -> vector<78x8xf32>
    %56 = arith.addf %49, %55 : vector<78x8xf32>
    %c0_43 = arith.constant 0 : index
    %c22 = arith.constant 22 : index
    %c0_44 = arith.constant 0 : index
    %57 = vector.load %arg1[%c0_43, %c22, %c0_44] : memref<1x100x12xf32, #tpu.memory_space<vmem>>, vector<1x78x12xf32>
    %58 = vector.shape_cast %57 : vector<1x78x12xf32> to vector<78x12xf32>
    %59 = arith.truncf %58 : vector<78x12xf32> to vector<78x12xbf16>
    %c8 = arith.constant 8 : index
    %c0_45 = arith.constant 0 : index
    %c0_46 = arith.constant 0 : index
    %60 = vector.load %arg2[%c8, %c0_45, %c0_46] : memref<9x12x8xbf16, #tpu.memory_space<vmem>>, vector<1x12x8xbf16>
    %61 = vector.shape_cast %60 : vector<1x12x8xbf16> to vector<12x8xbf16>
    %cst_47 = arith.constant dense<0.000000e+00> : vector<78x8xf32>
    %62 = tpu.matmul %59, %61, %cst_47 {dimension_numbers = #tpu.dot_dimension_numbers<[1], [0], [0], [1], [0, 0, 1, 1], [], []>} : vector<78x12xbf16>, vector<12x8xbf16>, vector<78x8xf32> -> vector<78x8xf32>
    %63 = arith.addf %56, %62 : vector<78x8xf32>
    %c0_48 = arith.constant 0 : index
    %c0_49 = arith.constant 0 : index
    %64 = vector.load %arg3[%c0_48, %c0_49] : memref<1x8xf32, #tpu.memory_space<vmem>>, vector<1x8xf32>
    %65 = vector.broadcast %64 : vector<1x8xf32> to vector<78x8xf32>
    %66 = arith.addf %63, %65 : vector<78x8xf32>
    %cst_50 = arith.constant 0.000000e+00 : f32
    %67 = vector.broadcast %cst_50 : f32 to vector<78x8xf32>
    %68 = arith.cmpf oge, %66, %67 : vector<78x8xf32>
    %cst_51 = arith.constant 0.00999999977 : f32
    %69 = vector.broadcast %cst_51 : f32 to vector<78x8xf32>
    %70 = arith.mulf %69, %66 : vector<78x8xf32>
    %71 = arith.select %68, %66, %70 : vector<78x8xi1>, vector<78x8xf32>
    %c0_52 = arith.constant 0 : index
    %c0_53 = arith.constant 0 : index
    %c0_54 = arith.constant 0 : index
    %72 = vector.load %arg4[%c0_52, %c0_53, %c0_54] : memref<1x78x8xf32, #tpu.memory_space<vmem>>, vector<1x78x8xf32>
    %73 = vector.shape_cast %72 : vector<1x78x8xf32> to vector<78x8xf32>
    %74 = vector.shape_cast %71 : vector<78x8xf32> to vector<1x78x8xf32>
    tpu.vector_store %arg4[%c0_52, %c0_53, %c0_54], %74 {strides = array<i32>} : memref<1x78x8xf32, #tpu.memory_space<vmem>>, vector<1x78x8xf32>,
    return
  }
  func.func @transform_0(%arg0: i32) -> (i32, i32, i32) {
    %c0_i32 = arith.constant 0 : i32
    %c0_i32_0 = arith.constant 0 : i32
    %c0_i32_1 = arith.constant 0 : i32
    return %arg0, %c0_i32, %c0_i32_0 : i32, i32, i32
  }
  func.func @transform_1(%arg0: i32) -> (i32, i32, i32) {
    %c0_i32 = arith.constant 0 : i32
    %c0_i32_0 = arith.constant 0 : i32
    %c0_i32_1 = arith.constant 0 : i32
    %c0_i32_2 = arith.constant 0 : i32
    return %c0_i32, %c0_i32_0, %c0_i32_1 : i32, i32, i32
  }
  func.func @transform_2(%arg0: i32) -> (i32, i32) {
    %c0_i32 = arith.constant 0 : i32
    %c0_i32_0 = arith.constant 0 : i32
    %c0_i32_1 = arith.constant 0 : i32
    return %c0_i32, %c0_i32_0 : i32, i32
  }
  func.func @transform_3(%arg0: i32) -> (i32, i32, i32) {
    %c0_i32 = arith.constant 0 : i32
    %c0_i32_0 = arith.constant 0 : i32
    %c0_i32_1 = arith.constant 0 : i32
    return %arg0, %c0_i32, %c0_i32_0 : i32, i32, i32
  }
}

module attributes {stable_mosaic.version = 11 : i64} {
  func.func @kernel(%arg0: i32, %arg1: memref<1x132x8xf32, #tpu.memory_space<vmem>>, %arg2: memref<100x1xf32, #tpu.memory_space<vmem>>, %arg3: memref<9x8x8xbf16, #tpu.memory_space<vmem>>, %arg4: memref<1x8xf32, #tpu.memory_space<vmem>>, %arg5: memref<9x8x8xbf16, #tpu.memory_space<vmem>>, %arg6: memref<1x8xf32, #tpu.memory_space<vmem>>, %arg7: memref<1x132x8xf32, #tpu.memory_space<vmem>>, %arg8: memref<132x8xf32, #tpu.memory_space<vmem>>) attributes {dimension_semantics = [#tpu.dimension_semantics<parallel>], iteration_bounds = array<i64: 2>, scalar_prefetch = 0 : i64, scratch_operands = 1 : i64, tpu.core_type = #tpu.core_type<tc>, window_params = [{transform_indices = @transform_0, window_bounds = array<i64: 1, 132, 8>}, {pipeline_mode = #tpu.pipeline_mode<synchronous>, transform_indices = @transform_1, window_bounds = array<i64: 100, 1>}, {pipeline_mode = #tpu.pipeline_mode<synchronous>, transform_indices = @transform_2, window_bounds = array<i64: 9, 8, 8>}, {pipeline_mode = #tpu.pipeline_mode<synchronous>, transform_indices = @transform_3, window_bounds = array<i64: 1, 8>}, {pipeline_mode = #tpu.pipeline_mode<synchronous>, transform_indices = @transform_4, window_bounds = array<i64: 9, 8, 8>}, {pipeline_mode = #tpu.pipeline_mode<synchronous>, transform_indices = @transform_5, window_bounds = array<i64: 1, 8>}, {transform_indices = @transform_6, window_bounds = array<i64: 1, 132, 8>}]} {
    %c0 = arith.constant 0 : index
    %c0_0 = arith.constant 0 : index
    %0 = vector.load %arg2[%c0, %c0_0] : memref<100x1xf32, #tpu.memory_space<vmem>>, vector<100x1xf32>
    %cst = arith.constant 0.000000e+00 : f32
    %1 = vector.broadcast %cst : f32 to vector<132x8xf32>
    %c0_1 = arith.constant 0 : index
    %c0_2 = arith.constant 0 : index
    %2 = vector.load %arg8[%c0_1, %c0_2] : memref<132x8xf32, #tpu.memory_space<vmem>>, vector<132x8xf32>
    tpu.vector_store %arg8[%c0_1, %c0_2], %1 {strides = array<i32>} : memref<132x8xf32, #tpu.memory_space<vmem>>, vector<132x8xf32>,
    %c0_3 = arith.constant 0 : index
    %c0_4 = arith.constant 0 : index
    %c0_5 = arith.constant 0 : index
    %3 = vector.load %arg1[%c0_3, %c0_4, %c0_5] : memref<1x132x8xf32, #tpu.memory_space<vmem>>, vector<1x132x8xf32>
    %4 = vector.shape_cast %3 : vector<1x132x8xf32> to vector<132x8xf32>
    %c0_6 = arith.constant 0 : index
    %c0_7 = arith.constant 0 : index
    %5 = vector.load %arg8[%c0_6, %c0_7] : memref<132x8xf32, #tpu.memory_space<vmem>>, vector<132x8xf32>
    tpu.vector_store %arg8[%c0_6, %c0_7], %4 {strides = array<i32>} : memref<132x8xf32, #tpu.memory_space<vmem>>, vector<132x8xf32>,
    %c16 = arith.constant 16 : index
    %c0_8 = arith.constant 0 : index
    %6 = vector.load %arg8[%c16, %c0_8] : memref<132x8xf32, #tpu.memory_space<vmem>>, vector<100x8xf32>
    %cst_9 = arith.constant 0.000000e+00 : f32
    %7 = vector.broadcast %cst_9 : f32 to vector<100x8xf32>
    %c5 = arith.constant 5 : index
    %c0_10 = arith.constant 0 : index
    %8 = vector.load %arg8[%c5, %c0_10] : memref<132x8xf32, #tpu.memory_space<vmem>>, vector<100x8xf32>
    %cst_11 = arith.constant 0.000000e+00 : f32
    %9 = vector.broadcast %cst_11 : f32 to vector<100x8xf32>
    %10 = arith.cmpf oge, %8, %9 : vector<100x8xf32>
    %cst_12 = arith.constant 0.00999999977 : f32
    %11 = vector.broadcast %cst_12 : f32 to vector<100x8xf32>
    %12 = arith.mulf %11, %8 : vector<100x8xf32>
    %13 = arith.select %10, %8, %12 : vector<100x8xi1>, vector<100x8xf32>
    %14 = arith.truncf %13 : vector<100x8xf32> to vector<100x8xbf16>
    %c0_13 = arith.constant 0 : index
    %c0_14 = arith.constant 0 : index
    %c0_15 = arith.constant 0 : index
    %15 = vector.load %arg3[%c0_13, %c0_14, %c0_15] : memref<9x8x8xbf16, #tpu.memory_space<vmem>>, vector<1x8x8xbf16>
    %16 = vector.shape_cast %15 : vector<1x8x8xbf16> to vector<8x8xbf16>
    %cst_16 = arith.constant dense<0.000000e+00> : vector<100x8xf32>
    %17 = tpu.matmul %14, %16, %cst_16 {dimension_numbers = #tpu.dot_dimension_numbers<[1], [0], [0], [1], [0, 0, 1, 1], [], []>} : vector<100x8xbf16>, vector<8x8xbf16>, vector<100x8xf32> -> vector<100x8xf32>
    %18 = arith.addf %7, %17 : vector<100x8xf32>
    %c6 = arith.constant 6 : index
    %c0_17 = arith.constant 0 : index
    %19 = vector.load %arg8[%c6, %c0_17] : memref<132x8xf32, #tpu.memory_space<vmem>>, vector<100x8xf32>
    %cst_18 = arith.constant 0.000000e+00 : f32
    %20 = vector.broadcast %cst_18 : f32 to vector<100x8xf32>
    %21 = arith.cmpf oge, %19, %20 : vector<100x8xf32>
    %cst_19 = arith.constant 0.00999999977 : f32
    %22 = vector.broadcast %cst_19 : f32 to vector<100x8xf32>
    %23 = arith.mulf %22, %19 : vector<100x8xf32>
    %24 = arith.select %21, %19, %23 : vector<100x8xi1>, vector<100x8xf32>
    %25 = arith.truncf %24 : vector<100x8xf32> to vector<100x8xbf16>
    %c1 = arith.constant 1 : index
    %c0_20 = arith.constant 0 : index
    %c0_21 = arith.constant 0 : index
    %26 = vector.load %arg3[%c1, %c0_20, %c0_21] : memref<9x8x8xbf16, #tpu.memory_space<vmem>>, vector<1x8x8xbf16>
    %27 = vector.shape_cast %26 : vector<1x8x8xbf16> to vector<8x8xbf16>
    %cst_22 = arith.constant dense<0.000000e+00> : vector<100x8xf32>
    %28 = tpu.matmul %25, %27, %cst_22 {dimension_numbers = #tpu.dot_dimension_numbers<[1], [0], [0], [1], [0, 0, 1, 1], [], []>} : vector<100x8xbf16>, vector<8x8xbf16>, vector<100x8xf32> -> vector<100x8xf32>
    %29 = arith.addf %18, %28 : vector<100x8xf32>
    %c7 = arith.constant 7 : index
    %c0_23 = arith.constant 0 : index
    %30 = vector.load %arg8[%c7, %c0_23] : memref<132x8xf32, #tpu.memory_space<vmem>>, vector<100x8xf32>
    %cst_24 = arith.constant 0.000000e+00 : f32
    %31 = vector.broadcast %cst_24 : f32 to vector<100x8xf32>
    %32 = arith.cmpf oge, %30, %31 : vector<100x8xf32>
    %cst_25 = arith.constant 0.00999999977 : f32
    %33 = vector.broadcast %cst_25 : f32 to vector<100x8xf32>
    %34 = arith.mulf %33, %30 : vector<100x8xf32>
    %35 = arith.select %32, %30, %34 : vector<100x8xi1>, vector<100x8xf32>
    %36 = arith.truncf %35 : vector<100x8xf32> to vector<100x8xbf16>
    %c2 = arith.constant 2 : index
    %c0_26 = arith.constant 0 : index
    %c0_27 = arith.constant 0 : index
    %37 = vector.load %arg3[%c2, %c0_26, %c0_27] : memref<9x8x8xbf16, #tpu.memory_space<vmem>>, vector<1x8x8xbf16>
    %38 = vector.shape_cast %37 : vector<1x8x8xbf16> to vector<8x8xbf16>
    %cst_28 = arith.constant dense<0.000000e+00> : vector<100x8xf32>
    %39 = tpu.matmul %36, %38, %cst_28 {dimension_numbers = #tpu.dot_dimension_numbers<[1], [0], [0], [1], [0, 0, 1, 1], [], []>} : vector<100x8xbf16>, vector<8x8xbf16>, vector<100x8xf32> -> vector<100x8xf32>
    %40 = arith.addf %29, %39 : vector<100x8xf32>
    %c15 = arith.constant 15 : index
    %c0_29 = arith.constant 0 : index
    %41 = vector.load %arg8[%c15, %c0_29] : memref<132x8xf32, #tpu.memory_space<vmem>>, vector<100x8xf32>
    %cst_30 = arith.constant 0.000000e+00 : f32
    %42 = vector.broadcast %cst_30 : f32 to vector<100x8xf32>
    %43 = arith.cmpf oge, %41, %42 : vector<100x8xf32>
    %cst_31 = arith.constant 0.00999999977 : f32
    %44 = vector.broadcast %cst_31 : f32 to vector<100x8xf32>
    %45 = arith.mulf %44, %41 : vector<100x8xf32>
    %46 = arith.select %43, %41, %45 : vector<100x8xi1>, vector<100x8xf32>
    %47 = arith.truncf %46 : vector<100x8xf32> to vector<100x8xbf16>
    %c3 = arith.constant 3 : index
    %c0_32 = arith.constant 0 : index
    %c0_33 = arith.constant 0 : index
    %48 = vector.load %arg3[%c3, %c0_32, %c0_33] : memref<9x8x8xbf16, #tpu.memory_space<vmem>>, vector<1x8x8xbf16>
    %49 = vector.shape_cast %48 : vector<1x8x8xbf16> to vector<8x8xbf16>
    %cst_34 = arith.constant dense<0.000000e+00> : vector<100x8xf32>
    %50 = tpu.matmul %47, %49, %cst_34 {dimension_numbers = #tpu.dot_dimension_numbers<[1], [0], [0], [1], [0, 0, 1, 1], [], []>} : vector<100x8xbf16>, vector<8x8xbf16>, vector<100x8xf32> -> vector<100x8xf32>
    %51 = arith.addf %40, %50 : vector<100x8xf32>
    %c16_35 = arith.constant 16 : index
    %c0_36 = arith.constant 0 : index
    %52 = vector.load %arg8[%c16_35, %c0_36] : memref<132x8xf32, #tpu.memory_space<vmem>>, vector<100x8xf32>
    %cst_37 = arith.constant 0.000000e+00 : f32
    %53 = vector.broadcast %cst_37 : f32 to vector<100x8xf32>
    %54 = arith.cmpf oge, %52, %53 : vector<100x8xf32>
    %cst_38 = arith.constant 0.00999999977 : f32
    %55 = vector.broadcast %cst_38 : f32 to vector<100x8xf32>
    %56 = arith.mulf %55, %52 : vector<100x8xf32>
    %57 = arith.select %54, %52, %56 : vector<100x8xi1>, vector<100x8xf32>
    %58 = arith.truncf %57 : vector<100x8xf32> to vector<100x8xbf16>
    %c4 = arith.constant 4 : index
    %c0_39 = arith.constant 0 : index
    %c0_40 = arith.constant 0 : index
    %59 = vector.load %arg3[%c4, %c0_39, %c0_40] : memref<9x8x8xbf16, #tpu.memory_space<vmem>>, vector<1x8x8xbf16>
    %60 = vector.shape_cast %59 : vector<1x8x8xbf16> to vector<8x8xbf16>
    %cst_41 = arith.constant dense<0.000000e+00> : vector<100x8xf32>
    %61 = tpu.matmul %58, %60, %cst_41 {dimension_numbers = #tpu.dot_dimension_numbers<[1], [0], [0], [1], [0, 0, 1, 1], [], []>} : vector<100x8xbf16>, vector<8x8xbf16>, vector<100x8xf32> -> vector<100x8xf32>
    %62 = arith.addf %51, %61 : vector<100x8xf32>
    %c17 = arith.constant 17 : index
    %c0_42 = arith.constant 0 : index
    %63 = vector.load %arg8[%c17, %c0_42] : memref<132x8xf32, #tpu.memory_space<vmem>>, vector<100x8xf32>
    %cst_43 = arith.constant 0.000000e+00 : f32
    %64 = vector.broadcast %cst_43 : f32 to vector<100x8xf32>
    %65 = arith.cmpf oge, %63, %64 : vector<100x8xf32>
    %cst_44 = arith.constant 0.00999999977 : f32
    %66 = vector.broadcast %cst_44 : f32 to vector<100x8xf32>
    %67 = arith.mulf %66, %63 : vector<100x8xf32>
    %68 = arith.select %65, %63, %67 : vector<100x8xi1>, vector<100x8xf32>
    %69 = arith.truncf %68 : vector<100x8xf32> to vector<100x8xbf16>
    %c5_45 = arith.constant 5 : index
    %c0_46 = arith.constant 0 : index
    %c0_47 = arith.constant 0 : index
    %70 = vector.load %arg3[%c5_45, %c0_46, %c0_47] : memref<9x8x8xbf16, #tpu.memory_space<vmem>>, vector<1x8x8xbf16>
    %71 = vector.shape_cast %70 : vector<1x8x8xbf16> to vector<8x8xbf16>
    %cst_48 = arith.constant dense<0.000000e+00> : vector<100x8xf32>
    %72 = tpu.matmul %69, %71, %cst_48 {dimension_numbers = #tpu.dot_dimension_numbers<[1], [0], [0], [1], [0, 0, 1, 1], [], []>} : vector<100x8xbf16>, vector<8x8xbf16>, vector<100x8xf32> -> vector<100x8xf32>
    %73 = arith.addf %62, %72 : vector<100x8xf32>
    %c25 = arith.constant 25 : index
    %c0_49 = arith.constant 0 : index
    %74 = vector.load %arg8[%c25, %c0_49] : memref<132x8xf32, #tpu.memory_space<vmem>>, vector<100x8xf32>
    %cst_50 = arith.constant 0.000000e+00 : f32
    %75 = vector.broadcast %cst_50 : f32 to vector<100x8xf32>
    %76 = arith.cmpf oge, %74, %75 : vector<100x8xf32>
    %cst_51 = arith.constant 0.00999999977 : f32
    %77 = vector.broadcast %cst_51 : f32 to vector<100x8xf32>
    %78 = arith.mulf %77, %74 : vector<100x8xf32>
    %79 = arith.select %76, %74, %78 : vector<100x8xi1>, vector<100x8xf32>
    %80 = arith.truncf %79 : vector<100x8xf32> to vector<100x8xbf16>
    %c6_52 = arith.constant 6 : index
    %c0_53 = arith.constant 0 : index
    %c0_54 = arith.constant 0 : index
    %81 = vector.load %arg3[%c6_52, %c0_53, %c0_54] : memref<9x8x8xbf16, #tpu.memory_space<vmem>>, vector<1x8x8xbf16>
    %82 = vector.shape_cast %81 : vector<1x8x8xbf16> to vector<8x8xbf16>
    %cst_55 = arith.constant dense<0.000000e+00> : vector<100x8xf32>
    %83 = tpu.matmul %80, %82, %cst_55 {dimension_numbers = #tpu.dot_dimension_numbers<[1], [0], [0], [1], [0, 0, 1, 1], [], []>} : vector<100x8xbf16>, vector<8x8xbf16>, vector<100x8xf32> -> vector<100x8xf32>
    %84 = arith.addf %73, %83 : vector<100x8xf32>
    %c26 = arith.constant 26 : index
    %c0_56 = arith.constant 0 : index
    %85 = vector.load %arg8[%c26, %c0_56] : memref<132x8xf32, #tpu.memory_space<vmem>>, vector<100x8xf32>
    %cst_57 = arith.constant 0.000000e+00 : f32
    %86 = vector.broadcast %cst_57 : f32 to vector<100x8xf32>
    %87 = arith.cmpf oge, %85, %86 : vector<100x8xf32>
    %cst_58 = arith.constant 0.00999999977 : f32
    %88 = vector.broadcast %cst_58 : f32 to vector<100x8xf32>
    %89 = arith.mulf %88, %85 : vector<100x8xf32>
    %90 = arith.select %87, %85, %89 : vector<100x8xi1>, vector<100x8xf32>
    %91 = arith.truncf %90 : vector<100x8xf32> to vector<100x8xbf16>
    %c7_59 = arith.constant 7 : index
    %c0_60 = arith.constant 0 : index
    %c0_61 = arith.constant 0 : index
    %92 = vector.load %arg3[%c7_59, %c0_60, %c0_61] : memref<9x8x8xbf16, #tpu.memory_space<vmem>>, vector<1x8x8xbf16>
    %93 = vector.shape_cast %92 : vector<1x8x8xbf16> to vector<8x8xbf16>
    %cst_62 = arith.constant dense<0.000000e+00> : vector<100x8xf32>
    %94 = tpu.matmul %91, %93, %cst_62 {dimension_numbers = #tpu.dot_dimension_numbers<[1], [0], [0], [1], [0, 0, 1, 1], [], []>} : vector<100x8xbf16>, vector<8x8xbf16>, vector<100x8xf32> -> vector<100x8xf32>
    %95 = arith.addf %84, %94 : vector<100x8xf32>
    %c27 = arith.constant 27 : index
    %c0_63 = arith.constant 0 : index
    %96 = vector.load %arg8[%c27, %c0_63] : memref<132x8xf32, #tpu.memory_space<vmem>>, vector<100x8xf32>
    %cst_64 = arith.constant 0.000000e+00 : f32
    %97 = vector.broadcast %cst_64 : f32 to vector<100x8xf32>
    %98 = arith.cmpf oge, %96, %97 : vector<100x8xf32>
    %cst_65 = arith.constant 0.00999999977 : f32
    %99 = vector.broadcast %cst_65 : f32 to vector<100x8xf32>
    %100 = arith.mulf %99, %96 : vector<100x8xf32>
    %101 = arith.select %98, %96, %100 : vector<100x8xi1>, vector<100x8xf32>
    %102 = arith.truncf %101 : vector<100x8xf32> to vector<100x8xbf16>
    %c8 = arith.constant 8 : index
    %c0_66 = arith.constant 0 : index
    %c0_67 = arith.constant 0 : index
    %103 = vector.load %arg3[%c8, %c0_66, %c0_67] : memref<9x8x8xbf16, #tpu.memory_space<vmem>>, vector<1x8x8xbf16>
    %104 = vector.shape_cast %103 : vector<1x8x8xbf16> to vector<8x8xbf16>
    %cst_68 = arith.constant dense<0.000000e+00> : vector<100x8xf32>
    %105 = tpu.matmul %102, %104, %cst_68 {dimension_numbers = #tpu.dot_dimension_numbers<[1], [0], [0], [1], [0, 0, 1, 1], [], []>} : vector<100x8xbf16>, vector<8x8xbf16>, vector<100x8xf32> -> vector<100x8xf32>
    %106 = arith.addf %95, %105 : vector<100x8xf32>
    %c0_69 = arith.constant 0 : index
    %c0_70 = arith.constant 0 : index
    %107 = vector.load %arg4[%c0_69, %c0_70] : memref<1x8xf32, #tpu.memory_space<vmem>>, vector<1x8xf32>
    %108 = vector.broadcast %107 : vector<1x8xf32> to vector<100x8xf32>
    %109 = arith.addf %106, %108 : vector<100x8xf32>
    %110 = vector.broadcast %0 : vector<100x1xf32> to vector<100x8xf32>
    %111 = arith.mulf %109, %110 : vector<100x8xf32>
    %c16_71 = arith.constant 16 : index
    %c0_72 = arith.constant 0 : index
    %112 = vector.load %arg8[%c16_71, %c0_72] : memref<132x8xf32, #tpu.memory_space<vmem>>, vector<100x8xf32>
    tpu.vector_store %arg8[%c16_71, %c0_72], %111 {strides = array<i32>} : memref<132x8xf32, #tpu.memory_space<vmem>>, vector<100x8xf32>,
    %cst_73 = arith.constant 0.000000e+00 : f32
    %113 = vector.broadcast %cst_73 : f32 to vector<100x8xf32>
    %c5_74 = arith.constant 5 : index
    %c0_75 = arith.constant 0 : index
    %114 = vector.load %arg8[%c5_74, %c0_75] : memref<132x8xf32, #tpu.memory_space<vmem>>, vector<100x8xf32>
    %cst_76 = arith.constant 0.000000e+00 : f32
    %115 = vector.broadcast %cst_76 : f32 to vector<100x8xf32>
    %116 = arith.cmpf oge, %114, %115 : vector<100x8xf32>
    %cst_77 = arith.constant 0.00999999977 : f32
    %117 = vector.broadcast %cst_77 : f32 to vector<100x8xf32>
    %118 = arith.mulf %117, %114 : vector<100x8xf32>
    %119 = arith.select %116, %114, %118 : vector<100x8xi1>, vector<100x8xf32>
    %120 = arith.truncf %119 : vector<100x8xf32> to vector<100x8xbf16>
    %c0_78 = arith.constant 0 : index
    %c0_79 = arith.constant 0 : index
    %c0_80 = arith.constant 0 : index
    %121 = vector.load %arg5[%c0_78, %c0_79, %c0_80] : memref<9x8x8xbf16, #tpu.memory_space<vmem>>, vector<1x8x8xbf16>
    %122 = vector.shape_cast %121 : vector<1x8x8xbf16> to vector<8x8xbf16>
    %cst_81 = arith.constant dense<0.000000e+00> : vector<100x8xf32>
    %123 = tpu.matmul %120, %122, %cst_81 {dimension_numbers = #tpu.dot_dimension_numbers<[1], [0], [0], [1], [0, 0, 1, 1], [], []>} : vector<100x8xbf16>, vector<8x8xbf16>, vector<100x8xf32> -> vector<100x8xf32>
    %124 = arith.addf %113, %123 : vector<100x8xf32>
    %c6_82 = arith.constant 6 : index
    %c0_83 = arith.constant 0 : index
    %125 = vector.load %arg8[%c6_82, %c0_83] : memref<132x8xf32, #tpu.memory_space<vmem>>, vector<100x8xf32>
    %cst_84 = arith.constant 0.000000e+00 : f32
    %126 = vector.broadcast %cst_84 : f32 to vector<100x8xf32>
    %127 = arith.cmpf oge, %125, %126 : vector<100x8xf32>
    %cst_85 = arith.constant 0.00999999977 : f32
    %128 = vector.broadcast %cst_85 : f32 to vector<100x8xf32>
    %129 = arith.mulf %128, %125 : vector<100x8xf32>
    %130 = arith.select %127, %125, %129 : vector<100x8xi1>, vector<100x8xf32>
    %131 = arith.truncf %130 : vector<100x8xf32> to vector<100x8xbf16>
    %c1_86 = arith.constant 1 : index
    %c0_87 = arith.constant 0 : index
    %c0_88 = arith.constant 0 : index
    %132 = vector.load %arg5[%c1_86, %c0_87, %c0_88] : memref<9x8x8xbf16, #tpu.memory_space<vmem>>, vector<1x8x8xbf16>
    %133 = vector.shape_cast %132 : vector<1x8x8xbf16> to vector<8x8xbf16>
    %cst_89 = arith.constant dense<0.000000e+00> : vector<100x8xf32>
    %134 = tpu.matmul %131, %133, %cst_89 {dimension_numbers = #tpu.dot_dimension_numbers<[1], [0], [0], [1], [0, 0, 1, 1], [], []>} : vector<100x8xbf16>, vector<8x8xbf16>, vector<100x8xf32> -> vector<100x8xf32>
    %135 = arith.addf %124, %134 : vector<100x8xf32>
    %c7_90 = arith.constant 7 : index
    %c0_91 = arith.constant 0 : index
    %136 = vector.load %arg8[%c7_90, %c0_91] : memref<132x8xf32, #tpu.memory_space<vmem>>, vector<100x8xf32>
    %cst_92 = arith.constant 0.000000e+00 : f32
    %137 = vector.broadcast %cst_92 : f32 to vector<100x8xf32>
    %138 = arith.cmpf oge, %136, %137 : vector<100x8xf32>
    %cst_93 = arith.constant 0.00999999977 : f32
    %139 = vector.broadcast %cst_93 : f32 to vector<100x8xf32>
    %140 = arith.mulf %139, %136 : vector<100x8xf32>
    %141 = arith.select %138, %136, %140 : vector<100x8xi1>, vector<100x8xf32>
    %142 = arith.truncf %141 : vector<100x8xf32> to vector<100x8xbf16>
    %c2_94 = arith.constant 2 : index
    %c0_95 = arith.constant 0 : index
    %c0_96 = arith.constant 0 : index
    %143 = vector.load %arg5[%c2_94, %c0_95, %c0_96] : memref<9x8x8xbf16, #tpu.memory_space<vmem>>, vector<1x8x8xbf16>
    %144 = vector.shape_cast %143 : vector<1x8x8xbf16> to vector<8x8xbf16>
    %cst_97 = arith.constant dense<0.000000e+00> : vector<100x8xf32>
    %145 = tpu.matmul %142, %144, %cst_97 {dimension_numbers = #tpu.dot_dimension_numbers<[1], [0], [0], [1], [0, 0, 1, 1], [], []>} : vector<100x8xbf16>, vector<8x8xbf16>, vector<100x8xf32> -> vector<100x8xf32>
    %146 = arith.addf %135, %145 : vector<100x8xf32>
    %c15_98 = arith.constant 15 : index
    %c0_99 = arith.constant 0 : index
    %147 = vector.load %arg8[%c15_98, %c0_99] : memref<132x8xf32, #tpu.memory_space<vmem>>, vector<100x8xf32>
    %cst_100 = arith.constant 0.000000e+00 : f32
    %148 = vector.broadcast %cst_100 : f32 to vector<100x8xf32>
    %149 = arith.cmpf oge, %147, %148 : vector<100x8xf32>
    %cst_101 = arith.constant 0.00999999977 : f32
    %150 = vector.broadcast %cst_101 : f32 to vector<100x8xf32>
    %151 = arith.mulf %150, %147 : vector<100x8xf32>
    %152 = arith.select %149, %147, %151 : vector<100x8xi1>, vector<100x8xf32>
    %153 = arith.truncf %152 : vector<100x8xf32> to vector<100x8xbf16>
    %c3_102 = arith.constant 3 : index
    %c0_103 = arith.constant 0 : index
    %c0_104 = arith.constant 0 : index
    %154 = vector.load %arg5[%c3_102, %c0_103, %c0_104] : memref<9x8x8xbf16, #tpu.memory_space<vmem>>, vector<1x8x8xbf16>
    %155 = vector.shape_cast %154 : vector<1x8x8xbf16> to vector<8x8xbf16>
    %cst_105 = arith.constant dense<0.000000e+00> : vector<100x8xf32>
    %156 = tpu.matmul %153, %155, %cst_105 {dimension_numbers = #tpu.dot_dimension_numbers<[1], [0], [0], [1], [0, 0, 1, 1], [], []>} : vector<100x8xbf16>, vector<8x8xbf16>, vector<100x8xf32> -> vector<100x8xf32>
    %157 = arith.addf %146, %156 : vector<100x8xf32>
    %c16_106 = arith.constant 16 : index
    %c0_107 = arith.constant 0 : index
    %158 = vector.load %arg8[%c16_106, %c0_107] : memref<132x8xf32, #tpu.memory_space<vmem>>, vector<100x8xf32>
    %cst_108 = arith.constant 0.000000e+00 : f32
    %159 = vector.broadcast %cst_108 : f32 to vector<100x8xf32>
    %160 = arith.cmpf oge, %158, %159 : vector<100x8xf32>
    %cst_109 = arith.constant 0.00999999977 : f32
    %161 = vector.broadcast %cst_109 : f32 to vector<100x8xf32>
    %162 = arith.mulf %161, %158 : vector<100x8xf32>
    %163 = arith.select %160, %158, %162 : vector<100x8xi1>, vector<100x8xf32>
    %164 = arith.truncf %163 : vector<100x8xf32> to vector<100x8xbf16>
    %c4_110 = arith.constant 4 : index
    %c0_111 = arith.constant 0 : index
    %c0_112 = arith.constant 0 : index
    %165 = vector.load %arg5[%c4_110, %c0_111, %c0_112] : memref<9x8x8xbf16, #tpu.memory_space<vmem>>, vector<1x8x8xbf16>
    %166 = vector.shape_cast %165 : vector<1x8x8xbf16> to vector<8x8xbf16>
    %cst_113 = arith.constant dense<0.000000e+00> : vector<100x8xf32>
    %167 = tpu.matmul %164, %166, %cst_113 {dimension_numbers = #tpu.dot_dimension_numbers<[1], [0], [0], [1], [0, 0, 1, 1], [], []>} : vector<100x8xbf16>, vector<8x8xbf16>, vector<100x8xf32> -> vector<100x8xf32>
    %168 = arith.addf %157, %167 : vector<100x8xf32>
    %c17_114 = arith.constant 17 : index
    %c0_115 = arith.constant 0 : index
    %169 = vector.load %arg8[%c17_114, %c0_115] : memref<132x8xf32, #tpu.memory_space<vmem>>, vector<100x8xf32>
    %cst_116 = arith.constant 0.000000e+00 : f32
    %170 = vector.broadcast %cst_116 : f32 to vector<100x8xf32>
    %171 = arith.cmpf oge, %169, %170 : vector<100x8xf32>
    %cst_117 = arith.constant 0.00999999977 : f32
    %172 = vector.broadcast %cst_117 : f32 to vector<100x8xf32>
    %173 = arith.mulf %172, %169 : vector<100x8xf32>
    %174 = arith.select %171, %169, %173 : vector<100x8xi1>, vector<100x8xf32>
    %175 = arith.truncf %174 : vector<100x8xf32> to vector<100x8xbf16>
    %c5_118 = arith.constant 5 : index
    %c0_119 = arith.constant 0 : index
    %c0_120 = arith.constant 0 : index
    %176 = vector.load %arg5[%c5_118, %c0_119, %c0_120] : memref<9x8x8xbf16, #tpu.memory_space<vmem>>, vector<1x8x8xbf16>
    %177 = vector.shape_cast %176 : vector<1x8x8xbf16> to vector<8x8xbf16>
    %cst_121 = arith.constant dense<0.000000e+00> : vector<100x8xf32>
    %178 = tpu.matmul %175, %177, %cst_121 {dimension_numbers = #tpu.dot_dimension_numbers<[1], [0], [0], [1], [0, 0, 1, 1], [], []>} : vector<100x8xbf16>, vector<8x8xbf16>, vector<100x8xf32> -> vector<100x8xf32>
    %179 = arith.addf %168, %178 : vector<100x8xf32>
    %c25_122 = arith.constant 25 : index
    %c0_123 = arith.constant 0 : index
    %180 = vector.load %arg8[%c25_122, %c0_123] : memref<132x8xf32, #tpu.memory_space<vmem>>, vector<100x8xf32>
    %cst_124 = arith.constant 0.000000e+00 : f32
    %181 = vector.broadcast %cst_124 : f32 to vector<100x8xf32>
    %182 = arith.cmpf oge, %180, %181 : vector<100x8xf32>
    %cst_125 = arith.constant 0.00999999977 : f32
    %183 = vector.broadcast %cst_125 : f32 to vector<100x8xf32>
    %184 = arith.mulf %183, %180 : vector<100x8xf32>
    %185 = arith.select %182, %180, %184 : vector<100x8xi1>, vector<100x8xf32>
    %186 = arith.truncf %185 : vector<100x8xf32> to vector<100x8xbf16>
    %c6_126 = arith.constant 6 : index
    %c0_127 = arith.constant 0 : index
    %c0_128 = arith.constant 0 : index
    %187 = vector.load %arg5[%c6_126, %c0_127, %c0_128] : memref<9x8x8xbf16, #tpu.memory_space<vmem>>, vector<1x8x8xbf16>
    %188 = vector.shape_cast %187 : vector<1x8x8xbf16> to vector<8x8xbf16>
    %cst_129 = arith.constant dense<0.000000e+00> : vector<100x8xf32>
    %189 = tpu.matmul %186, %188, %cst_129 {dimension_numbers = #tpu.dot_dimension_numbers<[1], [0], [0], [1], [0, 0, 1, 1], [], []>} : vector<100x8xbf16>, vector<8x8xbf16>, vector<100x8xf32> -> vector<100x8xf32>
    %190 = arith.addf %179, %189 : vector<100x8xf32>
    %c26_130 = arith.constant 26 : index
    %c0_131 = arith.constant 0 : index
    %191 = vector.load %arg8[%c26_130, %c0_131] : memref<132x8xf32, #tpu.memory_space<vmem>>, vector<100x8xf32>
    %cst_132 = arith.constant 0.000000e+00 : f32
    %192 = vector.broadcast %cst_132 : f32 to vector<100x8xf32>
    %193 = arith.cmpf oge, %191, %192 : vector<100x8xf32>
    %cst_133 = arith.constant 0.00999999977 : f32
    %194 = vector.broadcast %cst_133 : f32 to vector<100x8xf32>
    %195 = arith.mulf %194, %191 : vector<100x8xf32>
    %196 = arith.select %193, %191, %195 : vector<100x8xi1>, vector<100x8xf32>
    %197 = arith.truncf %196 : vector<100x8xf32> to vector<100x8xbf16>
    %c7_134 = arith.constant 7 : index
    %c0_135 = arith.constant 0 : index
    %c0_136 = arith.constant 0 : index
    %198 = vector.load %arg5[%c7_134, %c0_135, %c0_136] : memref<9x8x8xbf16, #tpu.memory_space<vmem>>, vector<1x8x8xbf16>
    %199 = vector.shape_cast %198 : vector<1x8x8xbf16> to vector<8x8xbf16>
    %cst_137 = arith.constant dense<0.000000e+00> : vector<100x8xf32>
    %200 = tpu.matmul %197, %199, %cst_137 {dimension_numbers = #tpu.dot_dimension_numbers<[1], [0], [0], [1], [0, 0, 1, 1], [], []>} : vector<100x8xbf16>, vector<8x8xbf16>, vector<100x8xf32> -> vector<100x8xf32>
    %201 = arith.addf %190, %200 : vector<100x8xf32>
    %c27_138 = arith.constant 27 : index
    %c0_139 = arith.constant 0 : index
    %202 = vector.load %arg8[%c27_138, %c0_139] : memref<132x8xf32, #tpu.memory_space<vmem>>, vector<100x8xf32>
    %cst_140 = arith.constant 0.000000e+00 : f32
    %203 = vector.broadcast %cst_140 : f32 to vector<100x8xf32>
    %204 = arith.cmpf oge, %202, %203 : vector<100x8xf32>
    %cst_141 = arith.constant 0.00999999977 : f32
    %205 = vector.broadcast %cst_141 : f32 to vector<100x8xf32>
    %206 = arith.mulf %205, %202 : vector<100x8xf32>
    %207 = arith.select %204, %202, %206 : vector<100x8xi1>, vector<100x8xf32>
    %208 = arith.truncf %207 : vector<100x8xf32> to vector<100x8xbf16>
    %c8_142 = arith.constant 8 : index
    %c0_143 = arith.constant 0 : index
    %c0_144 = arith.constant 0 : index
    %209 = vector.load %arg5[%c8_142, %c0_143, %c0_144] : memref<9x8x8xbf16, #tpu.memory_space<vmem>>, vector<1x8x8xbf16>
    %210 = vector.shape_cast %209 : vector<1x8x8xbf16> to vector<8x8xbf16>
    %cst_145 = arith.constant dense<0.000000e+00> : vector<100x8xf32>
    %211 = tpu.matmul %208, %210, %cst_145 {dimension_numbers = #tpu.dot_dimension_numbers<[1], [0], [0], [1], [0, 0, 1, 1], [], []>} : vector<100x8xbf16>, vector<8x8xbf16>, vector<100x8xf32> -> vector<100x8xf32>
    %212 = arith.addf %201, %211 : vector<100x8xf32>
    %c0_146 = arith.constant 0 : index
    %c0_147 = arith.constant 0 : index
    %213 = vector.load %arg6[%c0_146, %c0_147] : memref<1x8xf32, #tpu.memory_space<vmem>>, vector<1x8xf32>
    %214 = vector.broadcast %213 : vector<1x8xf32> to vector<100x8xf32>
    %215 = arith.addf %212, %214 : vector<100x8xf32>
    %216 = vector.broadcast %0 : vector<100x1xf32> to vector<100x8xf32>
    %217 = arith.mulf %215, %216 : vector<100x8xf32>
    %218 = arith.addf %217, %6 : vector<100x8xf32>
    %c16_148 = arith.constant 16 : index
    %c0_149 = arith.constant 0 : index
    %219 = vector.load %arg8[%c16_148, %c0_149] : memref<132x8xf32, #tpu.memory_space<vmem>>, vector<100x8xf32>
    tpu.vector_store %arg8[%c16_148, %c0_149], %218 {strides = array<i32>} : memref<132x8xf32, #tpu.memory_space<vmem>>, vector<100x8xf32>,
    %c0_150 = arith.constant 0 : index
    %c0_151 = arith.constant 0 : index
    %220 = vector.load %arg8[%c0_150, %c0_151] : memref<132x8xf32, #tpu.memory_space<vmem>>, vector<132x8xf32>
    %c0_152 = arith.constant 0 : index
    %c0_153 = arith.constant 0 : index
    %c0_154 = arith.constant 0 : index
    %221 = vector.load %arg7[%c0_152, %c0_153, %c0_154] : memref<1x132x8xf32, #tpu.memory_space<vmem>>, vector<1x132x8xf32>
    %222 = vector.shape_cast %221 : vector<1x132x8xf32> to vector<132x8xf32>
    %223 = vector.shape_cast %220 : vector<132x8xf32> to vector<1x132x8xf32>
    tpu.vector_store %arg7[%c0_152, %c0_153, %c0_154], %223 {strides = array<i32>} : memref<1x132x8xf32, #tpu.memory_space<vmem>>, vector<1x132x8xf32>,
    return
  }
  func.func @transform_0(%arg0: i32) -> (i32, i32, i32) {
    %c0_i32 = arith.constant 0 : i32
    %c0_i32_0 = arith.constant 0 : i32
    %c0_i32_1 = arith.constant 0 : i32
    return %arg0, %c0_i32, %c0_i32_0 : i32, i32, i32
  }
  func.func @transform_1(%arg0: i32) -> (i32, i32) {
    %c0_i32 = arith.constant 0 : i32
    %c0_i32_0 = arith.constant 0 : i32
    %c0_i32_1 = arith.constant 0 : i32
    return %c0_i32, %c0_i32_0 : i32, i32
  }
  func.func @transform_2(%arg0: i32) -> (i32, i32, i32) {
    %c0_i32 = arith.constant 0 : i32
    %c0_i32_0 = arith.constant 0 : i32
    %c0_i32_1 = arith.constant 0 : i32
    %c0_i32_2 = arith.constant 0 : i32
    return %c0_i32, %c0_i32_0, %c0_i32_1 : i32, i32, i32
  }
  func.func @transform_3(%arg0: i32) -> (i32, i32) {
    %c0_i32 = arith.constant 0 : i32
    %c0_i32_0 = arith.constant 0 : i32
    %c0_i32_1 = arith.constant 0 : i32
    return %c0_i32, %c0_i32_0 : i32, i32
  }
  func.func @transform_4(%arg0: i32) -> (i32, i32, i32) {
    %c0_i32 = arith.constant 0 : i32
    %c0_i32_0 = arith.constant 0 : i32
    %c0_i32_1 = arith.constant 0 : i32
    %c0_i32_2 = arith.constant 0 : i32
    return %c0_i32, %c0_i32_0, %c0_i32_1 : i32, i32, i32
  }
  func.func @transform_5(%arg0: i32) -> (i32, i32) {
    %c0_i32 = arith.constant 0 : i32
    %c0_i32_0 = arith.constant 0 : i32
    %c0_i32_1 = arith.constant 0 : i32
    return %c0_i32, %c0_i32_0 : i32, i32
  }
  func.func @transform_6(%arg0: i32) -> (i32, i32, i32) {
    %c0_i32 = arith.constant 0 : i32
    %c0_i32_0 = arith.constant 0 : i32
    %c0_i32_1 = arith.constant 0 : i32
    return %arg0, %c0_i32, %c0_i32_0 : i32, i32, i32
  }
}

module attributes {stable_mosaic.version = 11 : i64} {
  func.func @kernel(%arg0: i32, %arg1: memref<1x25x32xf32, #tpu.memory_space<vmem>>, %arg2: memref<4x32x8xbf16, #tpu.memory_space<vmem>>, %arg3: memref<1x8xf32, #tpu.memory_space<vmem>>, %arg4: memref<1x19x8xf32, #tpu.memory_space<vmem>>) attributes {dimension_semantics = [#tpu.dimension_semantics<parallel>], iteration_bounds = array<i64: 2>, scalar_prefetch = 0 : i64, scratch_operands = 0 : i64, tpu.core_type = #tpu.core_type<tc>, window_params = [{transform_indices = @transform_0, window_bounds = array<i64: 1, 25, 32>}, {pipeline_mode = #tpu.pipeline_mode<synchronous>, transform_indices = @transform_1, window_bounds = array<i64: 4, 32, 8>}, {pipeline_mode = #tpu.pipeline_mode<synchronous>, transform_indices = @transform_2, window_bounds = array<i64: 1, 8>}, {transform_indices = @transform_3, window_bounds = array<i64: 1, 19, 8>}]} {
    %cst = arith.constant 0.000000e+00 : f32
    %0 = vector.broadcast %cst : f32 to vector<19x8xf32>
    %c0 = arith.constant 0 : index
    %c0_0 = arith.constant 0 : index
    %c0_1 = arith.constant 0 : index
    %1 = vector.load %arg1[%c0, %c0_0, %c0_1] : memref<1x25x32xf32, #tpu.memory_space<vmem>>, vector<1x19x32xf32>
    %2 = vector.shape_cast %1 : vector<1x19x32xf32> to vector<19x32xf32>
    %3 = arith.truncf %2 : vector<19x32xf32> to vector<19x32xbf16>
    %c0_2 = arith.constant 0 : index
    %c0_3 = arith.constant 0 : index
    %c0_4 = arith.constant 0 : index
    %4 = vector.load %arg2[%c0_2, %c0_3, %c0_4] : memref<4x32x8xbf16, #tpu.memory_space<vmem>>, vector<1x32x8xbf16>
    %5 = vector.shape_cast %4 : vector<1x32x8xbf16> to vector<32x8xbf16>
    %cst_5 = arith.constant dense<0.000000e+00> : vector<19x8xf32>
    %6 = tpu.matmul %3, %5, %cst_5 {dimension_numbers = #tpu.dot_dimension_numbers<[1], [0], [0], [1], [0, 0, 1, 1], [], []>} : vector<19x32xbf16>, vector<32x8xbf16>, vector<19x8xf32> -> vector<19x8xf32>
    %7 = arith.addf %0, %6 : vector<19x8xf32>
    %c0_6 = arith.constant 0 : index
    %c1 = arith.constant 1 : index
    %c0_7 = arith.constant 0 : index
    %8 = vector.load %arg1[%c0_6, %c1, %c0_7] : memref<1x25x32xf32, #tpu.memory_space<vmem>>, vector<1x19x32xf32>
    %9 = vector.shape_cast %8 : vector<1x19x32xf32> to vector<19x32xf32>
    %10 = arith.truncf %9 : vector<19x32xf32> to vector<19x32xbf16>
    %c1_8 = arith.constant 1 : index
    %c0_9 = arith.constant 0 : index
    %c0_10 = arith.constant 0 : index
    %11 = vector.load %arg2[%c1_8, %c0_9, %c0_10] : memref<4x32x8xbf16, #tpu.memory_space<vmem>>, vector<1x32x8xbf16>
    %12 = vector.shape_cast %11 : vector<1x32x8xbf16> to vector<32x8xbf16>
    %cst_11 = arith.constant dense<0.000000e+00> : vector<19x8xf32>
    %13 = tpu.matmul %10, %12, %cst_11 {dimension_numbers = #tpu.dot_dimension_numbers<[1], [0], [0], [1], [0, 0, 1, 1], [], []>} : vector<19x32xbf16>, vector<32x8xbf16>, vector<19x8xf32> -> vector<19x8xf32>
    %14 = arith.addf %7, %13 : vector<19x8xf32>
    %c0_12 = arith.constant 0 : index
    %c5 = arith.constant 5 : index
    %c0_13 = arith.constant 0 : index
    %15 = vector.load %arg1[%c0_12, %c5, %c0_13] : memref<1x25x32xf32, #tpu.memory_space<vmem>>, vector<1x19x32xf32>
    %16 = vector.shape_cast %15 : vector<1x19x32xf32> to vector<19x32xf32>
    %17 = arith.truncf %16 : vector<19x32xf32> to vector<19x32xbf16>
    %c2 = arith.constant 2 : index
    %c0_14 = arith.constant 0 : index
    %c0_15 = arith.constant 0 : index
    %18 = vector.load %arg2[%c2, %c0_14, %c0_15] : memref<4x32x8xbf16, #tpu.memory_space<vmem>>, vector<1x32x8xbf16>
    %19 = vector.shape_cast %18 : vector<1x32x8xbf16> to vector<32x8xbf16>
    %cst_16 = arith.constant dense<0.000000e+00> : vector<19x8xf32>
    %20 = tpu.matmul %17, %19, %cst_16 {dimension_numbers = #tpu.dot_dimension_numbers<[1], [0], [0], [1], [0, 0, 1, 1], [], []>} : vector<19x32xbf16>, vector<32x8xbf16>, vector<19x8xf32> -> vector<19x8xf32>
    %21 = arith.addf %14, %20 : vector<19x8xf32>
    %c0_17 = arith.constant 0 : index
    %c6 = arith.constant 6 : index
    %c0_18 = arith.constant 0 : index
    %22 = vector.load %arg1[%c0_17, %c6, %c0_18] : memref<1x25x32xf32, #tpu.memory_space<vmem>>, vector<1x19x32xf32>
    %23 = vector.shape_cast %22 : vector<1x19x32xf32> to vector<19x32xf32>
    %24 = arith.truncf %23 : vector<19x32xf32> to vector<19x32xbf16>
    %c3 = arith.constant 3 : index
    %c0_19 = arith.constant 0 : index
    %c0_20 = arith.constant 0 : index
    %25 = vector.load %arg2[%c3, %c0_19, %c0_20] : memref<4x32x8xbf16, #tpu.memory_space<vmem>>, vector<1x32x8xbf16>
    %26 = vector.shape_cast %25 : vector<1x32x8xbf16> to vector<32x8xbf16>
    %cst_21 = arith.constant dense<0.000000e+00> : vector<19x8xf32>
    %27 = tpu.matmul %24, %26, %cst_21 {dimension_numbers = #tpu.dot_dimension_numbers<[1], [0], [0], [1], [0, 0, 1, 1], [], []>} : vector<19x32xbf16>, vector<32x8xbf16>, vector<19x8xf32> -> vector<19x8xf32>
    %28 = arith.addf %21, %27 : vector<19x8xf32>
    %c0_22 = arith.constant 0 : index
    %c0_23 = arith.constant 0 : index
    %29 = vector.load %arg3[%c0_22, %c0_23] : memref<1x8xf32, #tpu.memory_space<vmem>>, vector<1x8xf32>
    %30 = vector.broadcast %29 : vector<1x8xf32> to vector<19x8xf32>
    %31 = arith.addf %28, %30 : vector<19x8xf32>
    %c0_24 = arith.constant 0 : index
    %c0_25 = arith.constant 0 : index
    %c0_26 = arith.constant 0 : index
    %32 = vector.load %arg4[%c0_24, %c0_25, %c0_26] : memref<1x19x8xf32, #tpu.memory_space<vmem>>, vector<1x19x8xf32>
    %33 = vector.shape_cast %32 : vector<1x19x8xf32> to vector<19x8xf32>
    %34 = vector.shape_cast %31 : vector<19x8xf32> to vector<1x19x8xf32>
    tpu.vector_store %arg4[%c0_24, %c0_25, %c0_26], %34 {strides = array<i32>} : memref<1x19x8xf32, #tpu.memory_space<vmem>>, vector<1x19x8xf32>,
    return
  }
  func.func @transform_0(%arg0: i32) -> (i32, i32, i32) {
    %c0_i32 = arith.constant 0 : i32
    %c0_i32_0 = arith.constant 0 : i32
    %c0_i32_1 = arith.constant 0 : i32
    return %arg0, %c0_i32, %c0_i32_0 : i32, i32, i32
  }
  func.func @transform_1(%arg0: i32) -> (i32, i32, i32) {
    %c0_i32 = arith.constant 0 : i32
    %c0_i32_0 = arith.constant 0 : i32
    %c0_i32_1 = arith.constant 0 : i32
    %c0_i32_2 = arith.constant 0 : i32
    return %c0_i32, %c0_i32_0, %c0_i32_1 : i32, i32, i32
  }
  func.func @transform_2(%arg0: i32) -> (i32, i32) {
    %c0_i32 = arith.constant 0 : i32
    %c0_i32_0 = arith.constant 0 : i32
    %c0_i32_1 = arith.constant 0 : i32
    return %c0_i32, %c0_i32_0 : i32, i32
  }
  func.func @transform_3(%arg0: i32) -> (i32, i32, i32) {
    %c0_i32 = arith.constant 0 : i32
    %c0_i32_0 = arith.constant 0 : i32
    %c0_i32_1 = arith.constant 0 : i32
    return %arg0, %c0_i32, %c0_i32_0 : i32, i32, i32
  }
}

module attributes {stable_mosaic.version = 11 : i64} {
  func.func @kernel(%arg0: i32, %arg1: memref<1x52x8xf32, #tpu.memory_space<vmem>>, %arg2: memref<36x1xf32, #tpu.memory_space<vmem>>, %arg3: memref<1x8x16xbf16, #tpu.memory_space<vmem>>, %arg4: memref<1x16xf32, #tpu.memory_space<vmem>>, %arg5: memref<9x16x16xbf16, #tpu.memory_space<vmem>>, %arg6: memref<1x16xf32, #tpu.memory_space<vmem>>, %arg7: memref<9x16x16xbf16, #tpu.memory_space<vmem>>, %arg8: memref<1x16xf32, #tpu.memory_space<vmem>>, %arg9: memref<1x52x16xf32, #tpu.memory_space<vmem>>, %arg10: memref<52x16xf32, #tpu.memory_space<vmem>>) attributes {dimension_semantics = [#tpu.dimension_semantics<parallel>], iteration_bounds = array<i64: 2>, scalar_prefetch = 0 : i64, scratch_operands = 1 : i64, tpu.core_type = #tpu.core_type<tc>, window_params = [{transform_indices = @transform_0, window_bounds = array<i64: 1, 52, 8>}, {pipeline_mode = #tpu.pipeline_mode<synchronous>, transform_indices = @transform_1, window_bounds = array<i64: 36, 1>}, {pipeline_mode = #tpu.pipeline_mode<synchronous>, transform_indices = @transform_2, window_bounds = array<i64: 1, 8, 16>}, {pipeline_mode = #tpu.pipeline_mode<synchronous>, transform_indices = @transform_3, window_bounds = array<i64: 1, 16>}, {pipeline_mode = #tpu.pipeline_mode<synchronous>, transform_indices = @transform_4, window_bounds = array<i64: 9, 16, 16>}, {pipeline_mode = #tpu.pipeline_mode<synchronous>, transform_indices = @transform_5, window_bounds = array<i64: 1, 16>}, {pipeline_mode = #tpu.pipeline_mode<synchronous>, transform_indices = @transform_6, window_bounds = array<i64: 9, 16, 16>}, {pipeline_mode = #tpu.pipeline_mode<synchronous>, transform_indices = @transform_7, window_bounds = array<i64: 1, 16>}, {transform_indices = @transform_8, window_bounds = array<i64: 1, 52, 16>}]} {
    %c0 = arith.constant 0 : index
    %c0_0 = arith.constant 0 : index
    %0 = vector.load %arg2[%c0, %c0_0] : memref<36x1xf32, #tpu.memory_space<vmem>>, vector<36x1xf32>
    %cst = arith.constant 0.000000e+00 : f32
    %1 = vector.broadcast %cst : f32 to vector<52x16xf32>
    %c0_1 = arith.constant 0 : index
    %c0_2 = arith.constant 0 : index
    %2 = vector.load %arg10[%c0_1, %c0_2] : memref<52x16xf32, #tpu.memory_space<vmem>>, vector<52x16xf32>
    tpu.vector_store %arg10[%c0_1, %c0_2], %1 {strides = array<i32>} : memref<52x16xf32, #tpu.memory_space<vmem>>, vector<52x16xf32>,
    %c0_3 = arith.constant 0 : index
    %c0_4 = arith.constant 0 : index
    %c0_5 = arith.constant 0 : index
    %3 = vector.load %arg1[%c0_3, %c0_4, %c0_5] : memref<1x52x8xf32, #tpu.memory_space<vmem>>, vector<1x52x8xf32>
    %4 = vector.shape_cast %3 : vector<1x52x8xf32> to vector<52x8xf32>
    %c0_6 = arith.constant 0 : index
    %c0_7 = arith.constant 0 : index
    %5 = vector.load %arg10[%c0_6, %c0_7] : memref<52x16xf32, #tpu.memory_space<vmem>>, vector<52x8xf32>
    tpu.vector_store %arg10[%c0_6, %c0_7], %4 {strides = array<i32>} : memref<52x16xf32, #tpu.memory_space<vmem>>, vector<52x8xf32>,
    %cst_8 = arith.constant 0.000000e+00 : f32
    %6 = vector.broadcast %cst_8 : f32 to vector<36x16xf32>
    %c8 = arith.constant 8 : index
    %c0_9 = arith.constant 0 : index
    %7 = vector.load %arg10[%c8, %c0_9] : memref<52x16xf32, #tpu.memory_space<vmem>>, vector<36x8xf32>
    %8 = arith.truncf %7 : vector<36x8xf32> to vector<36x8xbf16>
    %c0_10 = arith.constant 0 : index
    %c0_11 = arith.constant 0 : index
    %c0_12 = arith.constant 0 : index
    %9 = vector.load %arg3[%c0_10, %c0_11, %c0_12] : memref<1x8x16xbf16, #tpu.memory_space<vmem>>, vector<1x8x16xbf16>
    %10 = vector.shape_cast %9 : vector<1x8x16xbf16> to vector<8x16xbf16>
    %cst_13 = arith.constant dense<0.000000e+00> : vector<36x16xf32>
    %11 = tpu.matmul %8, %10, %cst_13 {dimension_numbers = #tpu.dot_dimension_numbers<[1], [0], [0], [1], [0, 0, 1, 1], [], []>} : vector<36x8xbf16>, vector<8x16xbf16>, vector<36x16xf32> -> vector<36x16xf32>
    %12 = arith.addf %6, %11 : vector<36x16xf32>
    %c0_14 = arith.constant 0 : index
    %c0_15 = arith.constant 0 : index
    %13 = vector.load %arg4[%c0_14, %c0_15] : memref<1x16xf32, #tpu.memory_space<vmem>>, vector<1x16xf32>
    %14 = vector.broadcast %13 : vector<1x16xf32> to vector<36x16xf32>
    %15 = arith.addf %12, %14 : vector<36x16xf32>
    %16 = vector.broadcast %0 : vector<36x1xf32> to vector<36x16xf32>
    %17 = arith.mulf %15, %16 : vector<36x16xf32>
    %c8_16 = arith.constant 8 : index
    %c0_17 = arith.constant 0 : index
    %18 = vector.load %arg10[%c8_16, %c0_17] : memref<52x16xf32, #tpu.memory_space<vmem>>, vector<36x16xf32>
    tpu.vector_store %arg10[%c8_16, %c0_17], %17 {strides = array<i32>} : memref<52x16xf32, #tpu.memory_space<vmem>>, vector<36x16xf32>,
    %c8_18 = arith.constant 8 : index
    %c0_19 = arith.constant 0 : index
    %19 = vector.load %arg10[%c8_18, %c0_19] : memref<52x16xf32, #tpu.memory_space<vmem>>, vector<36x16xf32>
    %cst_20 = arith.constant 0.000000e+00 : f32
    %20 = vector.broadcast %cst_20 : f32 to vector<36x16xf32>
    %c1 = arith.constant 1 : index
    %c0_21 = arith.constant 0 : index
    %21 = vector.load %arg10[%c1, %c0_21] : memref<52x16xf32, #tpu.memory_space<vmem>>, vector<36x16xf32>
    %cst_22 = arith.constant 0.000000e+00 : f32
    %22 = vector.broadcast %cst_22 : f32 to vector<36x16xf32>
    %23 = arith.cmpf oge, %21, %22 : vector<36x16xf32>
    %cst_23 = arith.constant 0.00999999977 : f32
    %24 = vector.broadcast %cst_23 : f32 to vector<36x16xf32>
    %25 = arith.mulf %24, %21 : vector<36x16xf32>
    %26 = arith.select %23, %21, %25 : vector<36x16xi1>, vector<36x16xf32>
    %27 = arith.truncf %26 : vector<36x16xf32> to vector<36x16xbf16>
    %c0_24 = arith.constant 0 : index
    %c0_25 = arith.constant 0 : index
    %c0_26 = arith.constant 0 : index
    %28 = vector.load %arg5[%c0_24, %c0_25, %c0_26] : memref<9x16x16xbf16, #tpu.memory_space<vmem>>, vector<1x16x16xbf16>
    %29 = vector.shape_cast %28 : vector<1x16x16xbf16> to vector<16x16xbf16>
    %cst_27 = arith.constant dense<0.000000e+00> : vector<36x16xf32>
    %30 = tpu.matmul %27, %29, %cst_27 {dimension_numbers = #tpu.dot_dimension_numbers<[1], [0], [0], [1], [0, 0, 1, 1], [], []>} : vector<36x16xbf16>, vector<16x16xbf16>, vector<36x16xf32> -> vector<36x16xf32>
    %31 = arith.addf %20, %30 : vector<36x16xf32>
    %c2 = arith.constant 2 : index
    %c0_28 = arith.constant 0 : index
    %32 = vector.load %arg10[%c2, %c0_28] : memref<52x16xf32, #tpu.memory_space<vmem>>, vector<36x16xf32>
    %cst_29 = arith.constant 0.000000e+00 : f32
    %33 = vector.broadcast %cst_29 : f32 to vector<36x16xf32>
    %34 = arith.cmpf oge, %32, %33 : vector<36x16xf32>
    %cst_30 = arith.constant 0.00999999977 : f32
    %35 = vector.broadcast %cst_30 : f32 to vector<36x16xf32>
    %36 = arith.mulf %35, %32 : vector<36x16xf32>
    %37 = arith.select %34, %32, %36 : vector<36x16xi1>, vector<36x16xf32>
    %38 = arith.truncf %37 : vector<36x16xf32> to vector<36x16xbf16>
    %c1_31 = arith.constant 1 : index
    %c0_32 = arith.constant 0 : index
    %c0_33 = arith.constant 0 : index
    %39 = vector.load %arg5[%c1_31, %c0_32, %c0_33] : memref<9x16x16xbf16, #tpu.memory_space<vmem>>, vector<1x16x16xbf16>
    %40 = vector.shape_cast %39 : vector<1x16x16xbf16> to vector<16x16xbf16>
    %cst_34 = arith.constant dense<0.000000e+00> : vector<36x16xf32>
    %41 = tpu.matmul %38, %40, %cst_34 {dimension_numbers = #tpu.dot_dimension_numbers<[1], [0], [0], [1], [0, 0, 1, 1], [], []>} : vector<36x16xbf16>, vector<16x16xbf16>, vector<36x16xf32> -> vector<36x16xf32>
    %42 = arith.addf %31, %41 : vector<36x16xf32>
    %c3 = arith.constant 3 : index
    %c0_35 = arith.constant 0 : index
    %43 = vector.load %arg10[%c3, %c0_35] : memref<52x16xf32, #tpu.memory_space<vmem>>, vector<36x16xf32>
    %cst_36 = arith.constant 0.000000e+00 : f32
    %44 = vector.broadcast %cst_36 : f32 to vector<36x16xf32>
    %45 = arith.cmpf oge, %43, %44 : vector<36x16xf32>
    %cst_37 = arith.constant 0.00999999977 : f32
    %46 = vector.broadcast %cst_37 : f32 to vector<36x16xf32>
    %47 = arith.mulf %46, %43 : vector<36x16xf32>
    %48 = arith.select %45, %43, %47 : vector<36x16xi1>, vector<36x16xf32>
    %49 = arith.truncf %48 : vector<36x16xf32> to vector<36x16xbf16>
    %c2_38 = arith.constant 2 : index
    %c0_39 = arith.constant 0 : index
    %c0_40 = arith.constant 0 : index
    %50 = vector.load %arg5[%c2_38, %c0_39, %c0_40] : memref<9x16x16xbf16, #tpu.memory_space<vmem>>, vector<1x16x16xbf16>
    %51 = vector.shape_cast %50 : vector<1x16x16xbf16> to vector<16x16xbf16>
    %cst_41 = arith.constant dense<0.000000e+00> : vector<36x16xf32>
    %52 = tpu.matmul %49, %51, %cst_41 {dimension_numbers = #tpu.dot_dimension_numbers<[1], [0], [0], [1], [0, 0, 1, 1], [], []>} : vector<36x16xbf16>, vector<16x16xbf16>, vector<36x16xf32> -> vector<36x16xf32>
    %53 = arith.addf %42, %52 : vector<36x16xf32>
    %c7 = arith.constant 7 : index
    %c0_42 = arith.constant 0 : index
    %54 = vector.load %arg10[%c7, %c0_42] : memref<52x16xf32, #tpu.memory_space<vmem>>, vector<36x16xf32>
    %cst_43 = arith.constant 0.000000e+00 : f32
    %55 = vector.broadcast %cst_43 : f32 to vector<36x16xf32>
    %56 = arith.cmpf oge, %54, %55 : vector<36x16xf32>
    %cst_44 = arith.constant 0.00999999977 : f32
    %57 = vector.broadcast %cst_44 : f32 to vector<36x16xf32>
    %58 = arith.mulf %57, %54 : vector<36x16xf32>
    %59 = arith.select %56, %54, %58 : vector<36x16xi1>, vector<36x16xf32>
    %60 = arith.truncf %59 : vector<36x16xf32> to vector<36x16xbf16>
    %c3_45 = arith.constant 3 : index
    %c0_46 = arith.constant 0 : index
    %c0_47 = arith.constant 0 : index
    %61 = vector.load %arg5[%c3_45, %c0_46, %c0_47] : memref<9x16x16xbf16, #tpu.memory_space<vmem>>, vector<1x16x16xbf16>
    %62 = vector.shape_cast %61 : vector<1x16x16xbf16> to vector<16x16xbf16>
    %cst_48 = arith.constant dense<0.000000e+00> : vector<36x16xf32>
    %63 = tpu.matmul %60, %62, %cst_48 {dimension_numbers = #tpu.dot_dimension_numbers<[1], [0], [0], [1], [0, 0, 1, 1], [], []>} : vector<36x16xbf16>, vector<16x16xbf16>, vector<36x16xf32> -> vector<36x16xf32>
    %64 = arith.addf %53, %63 : vector<36x16xf32>
    %c8_49 = arith.constant 8 : index
    %c0_50 = arith.constant 0 : index
    %65 = vector.load %arg10[%c8_49, %c0_50] : memref<52x16xf32, #tpu.memory_space<vmem>>, vector<36x16xf32>
    %cst_51 = arith.constant 0.000000e+00 : f32
    %66 = vector.broadcast %cst_51 : f32 to vector<36x16xf32>
    %67 = arith.cmpf oge, %65, %66 : vector<36x16xf32>
    %cst_52 = arith.constant 0.00999999977 : f32
    %68 = vector.broadcast %cst_52 : f32 to vector<36x16xf32>
    %69 = arith.mulf %68, %65 : vector<36x16xf32>
    %70 = arith.select %67, %65, %69 : vector<36x16xi1>, vector<36x16xf32>
    %71 = arith.truncf %70 : vector<36x16xf32> to vector<36x16xbf16>
    %c4 = arith.constant 4 : index
    %c0_53 = arith.constant 0 : index
    %c0_54 = arith.constant 0 : index
    %72 = vector.load %arg5[%c4, %c0_53, %c0_54] : memref<9x16x16xbf16, #tpu.memory_space<vmem>>, vector<1x16x16xbf16>
    %73 = vector.shape_cast %72 : vector<1x16x16xbf16> to vector<16x16xbf16>
    %cst_55 = arith.constant dense<0.000000e+00> : vector<36x16xf32>
    %74 = tpu.matmul %71, %73, %cst_55 {dimension_numbers = #tpu.dot_dimension_numbers<[1], [0], [0], [1], [0, 0, 1, 1], [], []>} : vector<36x16xbf16>, vector<16x16xbf16>, vector<36x16xf32> -> vector<36x16xf32>
    %75 = arith.addf %64, %74 : vector<36x16xf32>
    %c9 = arith.constant 9 : index
    %c0_56 = arith.constant 0 : index
    %76 = vector.load %arg10[%c9, %c0_56] : memref<52x16xf32, #tpu.memory_space<vmem>>, vector<36x16xf32>
    %cst_57 = arith.constant 0.000000e+00 : f32
    %77 = vector.broadcast %cst_57 : f32 to vector<36x16xf32>
    %78 = arith.cmpf oge, %76, %77 : vector<36x16xf32>
    %cst_58 = arith.constant 0.00999999977 : f32
    %79 = vector.broadcast %cst_58 : f32 to vector<36x16xf32>
    %80 = arith.mulf %79, %76 : vector<36x16xf32>
    %81 = arith.select %78, %76, %80 : vector<36x16xi1>, vector<36x16xf32>
    %82 = arith.truncf %81 : vector<36x16xf32> to vector<36x16xbf16>
    %c5 = arith.constant 5 : index
    %c0_59 = arith.constant 0 : index
    %c0_60 = arith.constant 0 : index
    %83 = vector.load %arg5[%c5, %c0_59, %c0_60] : memref<9x16x16xbf16, #tpu.memory_space<vmem>>, vector<1x16x16xbf16>
    %84 = vector.shape_cast %83 : vector<1x16x16xbf16> to vector<16x16xbf16>
    %cst_61 = arith.constant dense<0.000000e+00> : vector<36x16xf32>
    %85 = tpu.matmul %82, %84, %cst_61 {dimension_numbers = #tpu.dot_dimension_numbers<[1], [0], [0], [1], [0, 0, 1, 1], [], []>} : vector<36x16xbf16>, vector<16x16xbf16>, vector<36x16xf32> -> vector<36x16xf32>
    %86 = arith.addf %75, %85 : vector<36x16xf32>
    %c13 = arith.constant 13 : index
    %c0_62 = arith.constant 0 : index
    %87 = vector.load %arg10[%c13, %c0_62] : memref<52x16xf32, #tpu.memory_space<vmem>>, vector<36x16xf32>
    %cst_63 = arith.constant 0.000000e+00 : f32
    %88 = vector.broadcast %cst_63 : f32 to vector<36x16xf32>
    %89 = arith.cmpf oge, %87, %88 : vector<36x16xf32>
    %cst_64 = arith.constant 0.00999999977 : f32
    %90 = vector.broadcast %cst_64 : f32 to vector<36x16xf32>
    %91 = arith.mulf %90, %87 : vector<36x16xf32>
    %92 = arith.select %89, %87, %91 : vector<36x16xi1>, vector<36x16xf32>
    %93 = arith.truncf %92 : vector<36x16xf32> to vector<36x16xbf16>
    %c6 = arith.constant 6 : index
    %c0_65 = arith.constant 0 : index
    %c0_66 = arith.constant 0 : index
    %94 = vector.load %arg5[%c6, %c0_65, %c0_66] : memref<9x16x16xbf16, #tpu.memory_space<vmem>>, vector<1x16x16xbf16>
    %95 = vector.shape_cast %94 : vector<1x16x16xbf16> to vector<16x16xbf16>
    %cst_67 = arith.constant dense<0.000000e+00> : vector<36x16xf32>
    %96 = tpu.matmul %93, %95, %cst_67 {dimension_numbers = #tpu.dot_dimension_numbers<[1], [0], [0], [1], [0, 0, 1, 1], [], []>} : vector<36x16xbf16>, vector<16x16xbf16>, vector<36x16xf32> -> vector<36x16xf32>
    %97 = arith.addf %86, %96 : vector<36x16xf32>
    %c14 = arith.constant 14 : index
    %c0_68 = arith.constant 0 : index
    %98 = vector.load %arg10[%c14, %c0_68] : memref<52x16xf32, #tpu.memory_space<vmem>>, vector<36x16xf32>
    %cst_69 = arith.constant 0.000000e+00 : f32
    %99 = vector.broadcast %cst_69 : f32 to vector<36x16xf32>
    %100 = arith.cmpf oge, %98, %99 : vector<36x16xf32>
    %cst_70 = arith.constant 0.00999999977 : f32
    %101 = vector.broadcast %cst_70 : f32 to vector<36x16xf32>
    %102 = arith.mulf %101, %98 : vector<36x16xf32>
    %103 = arith.select %100, %98, %102 : vector<36x16xi1>, vector<36x16xf32>
    %104 = arith.truncf %103 : vector<36x16xf32> to vector<36x16xbf16>
    %c7_71 = arith.constant 7 : index
    %c0_72 = arith.constant 0 : index
    %c0_73 = arith.constant 0 : index
    %105 = vector.load %arg5[%c7_71, %c0_72, %c0_73] : memref<9x16x16xbf16, #tpu.memory_space<vmem>>, vector<1x16x16xbf16>
    %106 = vector.shape_cast %105 : vector<1x16x16xbf16> to vector<16x16xbf16>
    %cst_74 = arith.constant dense<0.000000e+00> : vector<36x16xf32>
    %107 = tpu.matmul %104, %106, %cst_74 {dimension_numbers = #tpu.dot_dimension_numbers<[1], [0], [0], [1], [0, 0, 1, 1], [], []>} : vector<36x16xbf16>, vector<16x16xbf16>, vector<36x16xf32> -> vector<36x16xf32>
    %108 = arith.addf %97, %107 : vector<36x16xf32>
    %c15 = arith.constant 15 : index
    %c0_75 = arith.constant 0 : index
    %109 = vector.load %arg10[%c15, %c0_75] : memref<52x16xf32, #tpu.memory_space<vmem>>, vector<36x16xf32>
    %cst_76 = arith.constant 0.000000e+00 : f32
    %110 = vector.broadcast %cst_76 : f32 to vector<36x16xf32>
    %111 = arith.cmpf oge, %109, %110 : vector<36x16xf32>
    %cst_77 = arith.constant 0.00999999977 : f32
    %112 = vector.broadcast %cst_77 : f32 to vector<36x16xf32>
    %113 = arith.mulf %112, %109 : vector<36x16xf32>
    %114 = arith.select %111, %109, %113 : vector<36x16xi1>, vector<36x16xf32>
    %115 = arith.truncf %114 : vector<36x16xf32> to vector<36x16xbf16>
    %c8_78 = arith.constant 8 : index
    %c0_79 = arith.constant 0 : index
    %c0_80 = arith.constant 0 : index
    %116 = vector.load %arg5[%c8_78, %c0_79, %c0_80] : memref<9x16x16xbf16, #tpu.memory_space<vmem>>, vector<1x16x16xbf16>
    %117 = vector.shape_cast %116 : vector<1x16x16xbf16> to vector<16x16xbf16>
    %cst_81 = arith.constant dense<0.000000e+00> : vector<36x16xf32>
    %118 = tpu.matmul %115, %117, %cst_81 {dimension_numbers = #tpu.dot_dimension_numbers<[1], [0], [0], [1], [0, 0, 1, 1], [], []>} : vector<36x16xbf16>, vector<16x16xbf16>, vector<36x16xf32> -> vector<36x16xf32>
    %119 = arith.addf %108, %118 : vector<36x16xf32>
    %c0_82 = arith.constant 0 : index
    %c0_83 = arith.constant 0 : index
    %120 = vector.load %arg6[%c0_82, %c0_83] : memref<1x16xf32, #tpu.memory_space<vmem>>, vector<1x16xf32>
    %121 = vector.broadcast %120 : vector<1x16xf32> to vector<36x16xf32>
    %122 = arith.addf %119, %121 : vector<36x16xf32>
    %123 = vector.broadcast %0 : vector<36x1xf32> to vector<36x16xf32>
    %124 = arith.mulf %122, %123 : vector<36x16xf32>
    %c8_84 = arith.constant 8 : index
    %c0_85 = arith.constant 0 : index
    %125 = vector.load %arg10[%c8_84, %c0_85] : memref<52x16xf32, #tpu.memory_space<vmem>>, vector<36x16xf32>
    tpu.vector_store %arg10[%c8_84, %c0_85], %124 {strides = array<i32>} : memref<52x16xf32, #tpu.memory_space<vmem>>, vector<36x16xf32>,
    %cst_86 = arith.constant 0.000000e+00 : f32
    %126 = vector.broadcast %cst_86 : f32 to vector<36x16xf32>
    %c1_87 = arith.constant 1 : index
    %c0_88 = arith.constant 0 : index
    %127 = vector.load %arg10[%c1_87, %c0_88] : memref<52x16xf32, #tpu.memory_space<vmem>>, vector<36x16xf32>
    %cst_89 = arith.constant 0.000000e+00 : f32
    %128 = vector.broadcast %cst_89 : f32 to vector<36x16xf32>
    %129 = arith.cmpf oge, %127, %128 : vector<36x16xf32>
    %cst_90 = arith.constant 0.00999999977 : f32
    %130 = vector.broadcast %cst_90 : f32 to vector<36x16xf32>
    %131 = arith.mulf %130, %127 : vector<36x16xf32>
    %132 = arith.select %129, %127, %131 : vector<36x16xi1>, vector<36x16xf32>
    %133 = arith.truncf %132 : vector<36x16xf32> to vector<36x16xbf16>
    %c0_91 = arith.constant 0 : index
    %c0_92 = arith.constant 0 : index
    %c0_93 = arith.constant 0 : index
    %134 = vector.load %arg7[%c0_91, %c0_92, %c0_93] : memref<9x16x16xbf16, #tpu.memory_space<vmem>>, vector<1x16x16xbf16>
    %135 = vector.shape_cast %134 : vector<1x16x16xbf16> to vector<16x16xbf16>
    %cst_94 = arith.constant dense<0.000000e+00> : vector<36x16xf32>
    %136 = tpu.matmul %133, %135, %cst_94 {dimension_numbers = #tpu.dot_dimension_numbers<[1], [0], [0], [1], [0, 0, 1, 1], [], []>} : vector<36x16xbf16>, vector<16x16xbf16>, vector<36x16xf32> -> vector<36x16xf32>
    %137 = arith.addf %126, %136 : vector<36x16xf32>
    %c2_95 = arith.constant 2 : index
    %c0_96 = arith.constant 0 : index
    %138 = vector.load %arg10[%c2_95, %c0_96] : memref<52x16xf32, #tpu.memory_space<vmem>>, vector<36x16xf32>
    %cst_97 = arith.constant 0.000000e+00 : f32
    %139 = vector.broadcast %cst_97 : f32 to vector<36x16xf32>
    %140 = arith.cmpf oge, %138, %139 : vector<36x16xf32>
    %cst_98 = arith.constant 0.00999999977 : f32
    %141 = vector.broadcast %cst_98 : f32 to vector<36x16xf32>
    %142 = arith.mulf %141, %138 : vector<36x16xf32>
    %143 = arith.select %140, %138, %142 : vector<36x16xi1>, vector<36x16xf32>
    %144 = arith.truncf %143 : vector<36x16xf32> to vector<36x16xbf16>
    %c1_99 = arith.constant 1 : index
    %c0_100 = arith.constant 0 : index
    %c0_101 = arith.constant 0 : index
    %145 = vector.load %arg7[%c1_99, %c0_100, %c0_101] : memref<9x16x16xbf16, #tpu.memory_space<vmem>>, vector<1x16x16xbf16>
    %146 = vector.shape_cast %145 : vector<1x16x16xbf16> to vector<16x16xbf16>
    %cst_102 = arith.constant dense<0.000000e+00> : vector<36x16xf32>
    %147 = tpu.matmul %144, %146, %cst_102 {dimension_numbers = #tpu.dot_dimension_numbers<[1], [0], [0], [1], [0, 0, 1, 1], [], []>} : vector<36x16xbf16>, vector<16x16xbf16>, vector<36x16xf32> -> vector<36x16xf32>
    %148 = arith.addf %137, %147 : vector<36x16xf32>
    %c3_103 = arith.constant 3 : index
    %c0_104 = arith.constant 0 : index
    %149 = vector.load %arg10[%c3_103, %c0_104] : memref<52x16xf32, #tpu.memory_space<vmem>>, vector<36x16xf32>
    %cst_105 = arith.constant 0.000000e+00 : f32
    %150 = vector.broadcast %cst_105 : f32 to vector<36x16xf32>
    %151 = arith.cmpf oge, %149, %150 : vector<36x16xf32>
    %cst_106 = arith.constant 0.00999999977 : f32
    %152 = vector.broadcast %cst_106 : f32 to vector<36x16xf32>
    %153 = arith.mulf %152, %149 : vector<36x16xf32>
    %154 = arith.select %151, %149, %153 : vector<36x16xi1>, vector<36x16xf32>
    %155 = arith.truncf %154 : vector<36x16xf32> to vector<36x16xbf16>
    %c2_107 = arith.constant 2 : index
    %c0_108 = arith.constant 0 : index
    %c0_109 = arith.constant 0 : index
    %156 = vector.load %arg7[%c2_107, %c0_108, %c0_109] : memref<9x16x16xbf16, #tpu.memory_space<vmem>>, vector<1x16x16xbf16>
    %157 = vector.shape_cast %156 : vector<1x16x16xbf16> to vector<16x16xbf16>
    %cst_110 = arith.constant dense<0.000000e+00> : vector<36x16xf32>
    %158 = tpu.matmul %155, %157, %cst_110 {dimension_numbers = #tpu.dot_dimension_numbers<[1], [0], [0], [1], [0, 0, 1, 1], [], []>} : vector<36x16xbf16>, vector<16x16xbf16>, vector<36x16xf32> -> vector<36x16xf32>
    %159 = arith.addf %148, %158 : vector<36x16xf32>
    %c7_111 = arith.constant 7 : index
    %c0_112 = arith.constant 0 : index
    %160 = vector.load %arg10[%c7_111, %c0_112] : memref<52x16xf32, #tpu.memory_space<vmem>>, vector<36x16xf32>
    %cst_113 = arith.constant 0.000000e+00 : f32
    %161 = vector.broadcast %cst_113 : f32 to vector<36x16xf32>
    %162 = arith.cmpf oge, %160, %161 : vector<36x16xf32>
    %cst_114 = arith.constant 0.00999999977 : f32
    %163 = vector.broadcast %cst_114 : f32 to vector<36x16xf32>
    %164 = arith.mulf %163, %160 : vector<36x16xf32>
    %165 = arith.select %162, %160, %164 : vector<36x16xi1>, vector<36x16xf32>
    %166 = arith.truncf %165 : vector<36x16xf32> to vector<36x16xbf16>
    %c3_115 = arith.constant 3 : index
    %c0_116 = arith.constant 0 : index
    %c0_117 = arith.constant 0 : index
    %167 = vector.load %arg7[%c3_115, %c0_116, %c0_117] : memref<9x16x16xbf16, #tpu.memory_space<vmem>>, vector<1x16x16xbf16>
    %168 = vector.shape_cast %167 : vector<1x16x16xbf16> to vector<16x16xbf16>
    %cst_118 = arith.constant dense<0.000000e+00> : vector<36x16xf32>
    %169 = tpu.matmul %166, %168, %cst_118 {dimension_numbers = #tpu.dot_dimension_numbers<[1], [0], [0], [1], [0, 0, 1, 1], [], []>} : vector<36x16xbf16>, vector<16x16xbf16>, vector<36x16xf32> -> vector<36x16xf32>
    %170 = arith.addf %159, %169 : vector<36x16xf32>
    %c8_119 = arith.constant 8 : index
    %c0_120 = arith.constant 0 : index
    %171 = vector.load %arg10[%c8_119, %c0_120] : memref<52x16xf32, #tpu.memory_space<vmem>>, vector<36x16xf32>
    %cst_121 = arith.constant 0.000000e+00 : f32
    %172 = vector.broadcast %cst_121 : f32 to vector<36x16xf32>
    %173 = arith.cmpf oge, %171, %172 : vector<36x16xf32>
    %cst_122 = arith.constant 0.00999999977 : f32
    %174 = vector.broadcast %cst_122 : f32 to vector<36x16xf32>
    %175 = arith.mulf %174, %171 : vector<36x16xf32>
    %176 = arith.select %173, %171, %175 : vector<36x16xi1>, vector<36x16xf32>
    %177 = arith.truncf %176 : vector<36x16xf32> to vector<36x16xbf16>
    %c4_123 = arith.constant 4 : index
    %c0_124 = arith.constant 0 : index
    %c0_125 = arith.constant 0 : index
    %178 = vector.load %arg7[%c4_123, %c0_124, %c0_125] : memref<9x16x16xbf16, #tpu.memory_space<vmem>>, vector<1x16x16xbf16>
    %179 = vector.shape_cast %178 : vector<1x16x16xbf16> to vector<16x16xbf16>
    %cst_126 = arith.constant dense<0.000000e+00> : vector<36x16xf32>
    %180 = tpu.matmul %177, %179, %cst_126 {dimension_numbers = #tpu.dot_dimension_numbers<[1], [0], [0], [1], [0, 0, 1, 1], [], []>} : vector<36x16xbf16>, vector<16x16xbf16>, vector<36x16xf32> -> vector<36x16xf32>
    %181 = arith.addf %170, %180 : vector<36x16xf32>
    %c9_127 = arith.constant 9 : index
    %c0_128 = arith.constant 0 : index
    %182 = vector.load %arg10[%c9_127, %c0_128] : memref<52x16xf32, #tpu.memory_space<vmem>>, vector<36x16xf32>
    %cst_129 = arith.constant 0.000000e+00 : f32
    %183 = vector.broadcast %cst_129 : f32 to vector<36x16xf32>
    %184 = arith.cmpf oge, %182, %183 : vector<36x16xf32>
    %cst_130 = arith.constant 0.00999999977 : f32
    %185 = vector.broadcast %cst_130 : f32 to vector<36x16xf32>
    %186 = arith.mulf %185, %182 : vector<36x16xf32>
    %187 = arith.select %184, %182, %186 : vector<36x16xi1>, vector<36x16xf32>
    %188 = arith.truncf %187 : vector<36x16xf32> to vector<36x16xbf16>
    %c5_131 = arith.constant 5 : index
    %c0_132 = arith.constant 0 : index
    %c0_133 = arith.constant 0 : index
    %189 = vector.load %arg7[%c5_131, %c0_132, %c0_133] : memref<9x16x16xbf16, #tpu.memory_space<vmem>>, vector<1x16x16xbf16>
    %190 = vector.shape_cast %189 : vector<1x16x16xbf16> to vector<16x16xbf16>
    %cst_134 = arith.constant dense<0.000000e+00> : vector<36x16xf32>
    %191 = tpu.matmul %188, %190, %cst_134 {dimension_numbers = #tpu.dot_dimension_numbers<[1], [0], [0], [1], [0, 0, 1, 1], [], []>} : vector<36x16xbf16>, vector<16x16xbf16>, vector<36x16xf32> -> vector<36x16xf32>
    %192 = arith.addf %181, %191 : vector<36x16xf32>
    %c13_135 = arith.constant 13 : index
    %c0_136 = arith.constant 0 : index
    %193 = vector.load %arg10[%c13_135, %c0_136] : memref<52x16xf32, #tpu.memory_space<vmem>>, vector<36x16xf32>
    %cst_137 = arith.constant 0.000000e+00 : f32
    %194 = vector.broadcast %cst_137 : f32 to vector<36x16xf32>
    %195 = arith.cmpf oge, %193, %194 : vector<36x16xf32>
    %cst_138 = arith.constant 0.00999999977 : f32
    %196 = vector.broadcast %cst_138 : f32 to vector<36x16xf32>
    %197 = arith.mulf %196, %193 : vector<36x16xf32>
    %198 = arith.select %195, %193, %197 : vector<36x16xi1>, vector<36x16xf32>
    %199 = arith.truncf %198 : vector<36x16xf32> to vector<36x16xbf16>
    %c6_139 = arith.constant 6 : index
    %c0_140 = arith.constant 0 : index
    %c0_141 = arith.constant 0 : index
    %200 = vector.load %arg7[%c6_139, %c0_140, %c0_141] : memref<9x16x16xbf16, #tpu.memory_space<vmem>>, vector<1x16x16xbf16>
    %201 = vector.shape_cast %200 : vector<1x16x16xbf16> to vector<16x16xbf16>
    %cst_142 = arith.constant dense<0.000000e+00> : vector<36x16xf32>
    %202 = tpu.matmul %199, %201, %cst_142 {dimension_numbers = #tpu.dot_dimension_numbers<[1], [0], [0], [1], [0, 0, 1, 1], [], []>} : vector<36x16xbf16>, vector<16x16xbf16>, vector<36x16xf32> -> vector<36x16xf32>
    %203 = arith.addf %192, %202 : vector<36x16xf32>
    %c14_143 = arith.constant 14 : index
    %c0_144 = arith.constant 0 : index
    %204 = vector.load %arg10[%c14_143, %c0_144] : memref<52x16xf32, #tpu.memory_space<vmem>>, vector<36x16xf32>
    %cst_145 = arith.constant 0.000000e+00 : f32
    %205 = vector.broadcast %cst_145 : f32 to vector<36x16xf32>
    %206 = arith.cmpf oge, %204, %205 : vector<36x16xf32>
    %cst_146 = arith.constant 0.00999999977 : f32
    %207 = vector.broadcast %cst_146 : f32 to vector<36x16xf32>
    %208 = arith.mulf %207, %204 : vector<36x16xf32>
    %209 = arith.select %206, %204, %208 : vector<36x16xi1>, vector<36x16xf32>
    %210 = arith.truncf %209 : vector<36x16xf32> to vector<36x16xbf16>
    %c7_147 = arith.constant 7 : index
    %c0_148 = arith.constant 0 : index
    %c0_149 = arith.constant 0 : index
    %211 = vector.load %arg7[%c7_147, %c0_148, %c0_149] : memref<9x16x16xbf16, #tpu.memory_space<vmem>>, vector<1x16x16xbf16>
    %212 = vector.shape_cast %211 : vector<1x16x16xbf16> to vector<16x16xbf16>
    %cst_150 = arith.constant dense<0.000000e+00> : vector<36x16xf32>
    %213 = tpu.matmul %210, %212, %cst_150 {dimension_numbers = #tpu.dot_dimension_numbers<[1], [0], [0], [1], [0, 0, 1, 1], [], []>} : vector<36x16xbf16>, vector<16x16xbf16>, vector<36x16xf32> -> vector<36x16xf32>
    %214 = arith.addf %203, %213 : vector<36x16xf32>
    %c15_151 = arith.constant 15 : index
    %c0_152 = arith.constant 0 : index
    %215 = vector.load %arg10[%c15_151, %c0_152] : memref<52x16xf32, #tpu.memory_space<vmem>>, vector<36x16xf32>
    %cst_153 = arith.constant 0.000000e+00 : f32
    %216 = vector.broadcast %cst_153 : f32 to vector<36x16xf32>
    %217 = arith.cmpf oge, %215, %216 : vector<36x16xf32>
    %cst_154 = arith.constant 0.00999999977 : f32
    %218 = vector.broadcast %cst_154 : f32 to vector<36x16xf32>
    %219 = arith.mulf %218, %215 : vector<36x16xf32>
    %220 = arith.select %217, %215, %219 : vector<36x16xi1>, vector<36x16xf32>
    %221 = arith.truncf %220 : vector<36x16xf32> to vector<36x16xbf16>
    %c8_155 = arith.constant 8 : index
    %c0_156 = arith.constant 0 : index
    %c0_157 = arith.constant 0 : index
    %222 = vector.load %arg7[%c8_155, %c0_156, %c0_157] : memref<9x16x16xbf16, #tpu.memory_space<vmem>>, vector<1x16x16xbf16>
    %223 = vector.shape_cast %222 : vector<1x16x16xbf16> to vector<16x16xbf16>
    %cst_158 = arith.constant dense<0.000000e+00> : vector<36x16xf32>
    %224 = tpu.matmul %221, %223, %cst_158 {dimension_numbers = #tpu.dot_dimension_numbers<[1], [0], [0], [1], [0, 0, 1, 1], [], []>} : vector<36x16xbf16>, vector<16x16xbf16>, vector<36x16xf32> -> vector<36x16xf32>
    %225 = arith.addf %214, %224 : vector<36x16xf32>
    %c0_159 = arith.constant 0 : index
    %c0_160 = arith.constant 0 : index
    %226 = vector.load %arg8[%c0_159, %c0_160] : memref<1x16xf32, #tpu.memory_space<vmem>>, vector<1x16xf32>
    %227 = vector.broadcast %226 : vector<1x16xf32> to vector<36x16xf32>
    %228 = arith.addf %225, %227 : vector<36x16xf32>
    %229 = vector.broadcast %0 : vector<36x1xf32> to vector<36x16xf32>
    %230 = arith.mulf %228, %229 : vector<36x16xf32>
    %231 = arith.addf %230, %19 : vector<36x16xf32>
    %c8_161 = arith.constant 8 : index
    %c0_162 = arith.constant 0 : index
    %232 = vector.load %arg10[%c8_161, %c0_162] : memref<52x16xf32, #tpu.memory_space<vmem>>, vector<36x16xf32>
    tpu.vector_store %arg10[%c8_161, %c0_162], %231 {strides = array<i32>} : memref<52x16xf32, #tpu.memory_space<vmem>>, vector<36x16xf32>,
    %c0_163 = arith.constant 0 : index
    %c0_164 = arith.constant 0 : index
    %233 = vector.load %arg10[%c0_163, %c0_164] : memref<52x16xf32, #tpu.memory_space<vmem>>, vector<52x16xf32>
    %c0_165 = arith.constant 0 : index
    %c0_166 = arith.constant 0 : index
    %c0_167 = arith.constant 0 : index
    %234 = vector.load %arg9[%c0_165, %c0_166, %c0_167] : memref<1x52x16xf32, #tpu.memory_space<vmem>>, vector<1x52x16xf32>
    %235 = vector.shape_cast %234 : vector<1x52x16xf32> to vector<52x16xf32>
    %236 = vector.shape_cast %233 : vector<52x16xf32> to vector<1x52x16xf32>
    tpu.vector_store %arg9[%c0_165, %c0_166, %c0_167], %236 {strides = array<i32>} : memref<1x52x16xf32, #tpu.memory_space<vmem>>, vector<1x52x16xf32>,
    return
  }
  func.func @transform_0(%arg0: i32) -> (i32, i32, i32) {
    %c0_i32 = arith.constant 0 : i32
    %c0_i32_0 = arith.constant 0 : i32
    %c0_i32_1 = arith.constant 0 : i32
    return %arg0, %c0_i32, %c0_i32_0 : i32, i32, i32
  }
  func.func @transform_1(%arg0: i32) -> (i32, i32) {
    %c0_i32 = arith.constant 0 : i32
    %c0_i32_0 = arith.constant 0 : i32
    %c0_i32_1 = arith.constant 0 : i32
    return %c0_i32, %c0_i32_0 : i32, i32
  }
  func.func @transform_2(%arg0: i32) -> (i32, i32, i32) {
    %c0_i32 = arith.constant 0 : i32
    %c0_i32_0 = arith.constant 0 : i32
    %c0_i32_1 = arith.constant 0 : i32
    %c0_i32_2 = arith.constant 0 : i32
    return %c0_i32, %c0_i32_0, %c0_i32_1 : i32, i32, i32
  }
  func.func @transform_3(%arg0: i32) -> (i32, i32) {
    %c0_i32 = arith.constant 0 : i32
    %c0_i32_0 = arith.constant 0 : i32
    %c0_i32_1 = arith.constant 0 : i32
    return %c0_i32, %c0_i32_0 : i32, i32
  }
  func.func @transform_4(%arg0: i32) -> (i32, i32, i32) {
    %c0_i32 = arith.constant 0 : i32
    %c0_i32_0 = arith.constant 0 : i32
    %c0_i32_1 = arith.constant 0 : i32
    %c0_i32_2 = arith.constant 0 : i32
    return %c0_i32, %c0_i32_0, %c0_i32_1 : i32, i32, i32
  }
  func.func @transform_5(%arg0: i32) -> (i32, i32) {
    %c0_i32 = arith.constant 0 : i32
    %c0_i32_0 = arith.constant 0 : i32
    %c0_i32_1 = arith.constant 0 : i32
    return %c0_i32, %c0_i32_0 : i32, i32
  }
  func.func @transform_6(%arg0: i32) -> (i32, i32, i32) {
    %c0_i32 = arith.constant 0 : i32
    %c0_i32_0 = arith.constant 0 : i32
    %c0_i32_1 = arith.constant 0 : i32
    %c0_i32_2 = arith.constant 0 : i32
    return %c0_i32, %c0_i32_0, %c0_i32_1 : i32, i32, i32
  }
  func.func @transform_7(%arg0: i32) -> (i32, i32) {
    %c0_i32 = arith.constant 0 : i32
    %c0_i32_0 = arith.constant 0 : i32
    %c0_i32_1 = arith.constant 0 : i32
    return %c0_i32, %c0_i32_0 : i32, i32
  }
  func.func @transform_8(%arg0: i32) -> (i32, i32, i32) {
    %c0_i32 = arith.constant 0 : i32
    %c0_i32_0 = arith.constant 0 : i32
    %c0_i32_1 = arith.constant 0 : i32
    return %arg0, %c0_i32, %c0_i32_0 : i32, i32, i32
  }
}

module attributes {stable_mosaic.version = 11 : i64} {
  func.func @_head_kernel(%arg0: memref<2x256xf32, #tpu.memory_space<vmem>>, %arg1: memref<256x32xbf16, #tpu.memory_space<vmem>>, %arg2: memref<1x32xf32, #tpu.memory_space<vmem>>, %arg3: memref<1x32xf32, #tpu.memory_space<vmem>>, %arg4: memref<1x32xf32, #tpu.memory_space<vmem>>, %arg5: memref<32x16xbf16, #tpu.memory_space<vmem>>, %arg6: memref<1x16xf32, #tpu.memory_space<vmem>>, %arg7: memref<32x16xbf16, #tpu.memory_space<vmem>>, %arg8: memref<1x16xf32, #tpu.memory_space<vmem>>, %arg9: memref<2x16xf32, #tpu.memory_space<vmem>>, %arg10: memref<2x16xf32, #tpu.memory_space<vmem>>, %arg11: memref<2x1xf32, #tpu.memory_space<vmem>>, %arg12: memref<2x16xf32, #tpu.memory_space<vmem>>, %arg13: memref<2x16xf32, #tpu.memory_space<vmem>>, %arg14: memref<2x16xf32, #tpu.memory_space<vmem>>) attributes {dimension_semantics = [], scalar_prefetch = 0 : i64, scratch_operands = 0 : i64, tpu.core_type = #tpu.core_type<tc>} {
    %c0 = arith.constant 0 : index
    %c0_0 = arith.constant 0 : index
    %0 = vector.load %arg0[%c0, %c0_0] : memref<2x256xf32, #tpu.memory_space<vmem>>, vector<2x256xf32>
    %cst = arith.constant 0.000000e+00 : f32
    %1 = vector.broadcast %cst : f32 to vector<2x256xf32>
    %2 = arith.cmpf oge, %0, %1 : vector<2x256xf32>
    %cst_1 = arith.constant 0.00999999977 : f32
    %3 = vector.broadcast %cst_1 : f32 to vector<2x256xf32>
    %4 = arith.mulf %3, %0 : vector<2x256xf32>
    %5 = arith.select %2, %0, %4 : vector<2x256xi1>, vector<2x256xf32>
    %6 = arith.truncf %5 : vector<2x256xf32> to vector<2x256xbf16>
    %c0_2 = arith.constant 0 : index
    %c0_3 = arith.constant 0 : index
    %7 = vector.load %arg1[%c0_2, %c0_3] : memref<256x32xbf16, #tpu.memory_space<vmem>>, vector<256x32xbf16>
    %cst_4 = arith.constant dense<0.000000e+00> : vector<2x32xf32>
    %8 = tpu.matmul %6, %7, %cst_4 {dimension_numbers = #tpu.dot_dimension_numbers<[1], [0], [0], [1], [0, 0, 1, 1], [], []>} : vector<2x256xbf16>, vector<256x32xbf16>, vector<2x32xf32> -> vector<2x32xf32>
    %c0_5 = arith.constant 0 : index
    %c0_6 = arith.constant 0 : index
    %9 = vector.load %arg2[%c0_5, %c0_6] : memref<1x32xf32, #tpu.memory_space<vmem>>, vector<1x32xf32>
    %10 = vector.broadcast %9 : vector<1x32xf32> to vector<2x32xf32>
    %11 = arith.addf %8, %10 : vector<2x32xf32>
    %cst_7 = arith.constant 0.000000e+00 : f32
    %12 = vector.broadcast %cst_7 : f32 to vector<2x32xf32>
    %13 = arith.cmpf oge, %11, %12 : vector<2x32xf32>
    %cst_8 = arith.constant 0.00999999977 : f32
    %14 = vector.broadcast %cst_8 : f32 to vector<2x32xf32>
    %15 = arith.mulf %14, %11 : vector<2x32xf32>
    %16 = arith.select %13, %11, %15 : vector<2x32xi1>, vector<2x32xf32>
    %cst_9 = arith.constant dense<0.000000e+00> : vector<2xf32>
    %17 = vector.multi_reduction <add>, %16, %cst_9 [1] : vector<2x32xf32> to vector<2xf32>
    %18 = vector.shape_cast %17 : vector<2xf32> to vector<2x1xf32>
    %cst_10 = arith.constant 3.200000e+01 : f32
    %19 = vector.broadcast %cst_10 : f32 to vector<2x1xf32>
    %20 = arith.divf %18, %19 : vector<2x1xf32>
    %21 = vector.broadcast %20 : vector<2x1xf32> to vector<2x32xf32>
    %22 = arith.subf %16, %21 : vector<2x32xf32>
    %23 = arith.mulf %22, %22 : vector<2x32xf32>
    %cst_11 = arith.constant dense<0.000000e+00> : vector<2xf32>
    %24 = vector.multi_reduction <add>, %23, %cst_11 [1] : vector<2x32xf32> to vector<2xf32>
    %25 = vector.shape_cast %24 : vector<2xf32> to vector<2x1xf32>
    %cst_12 = arith.constant 3.200000e+01 : f32
    %26 = vector.broadcast %cst_12 : f32 to vector<2x1xf32>
    %27 = arith.divf %25, %26 : vector<2x1xf32>
    %28 = vector.broadcast %20 : vector<2x1xf32> to vector<2x32xf32>
    %29 = arith.subf %16, %28 : vector<2x32xf32>
    %cst_13 = arith.constant 9.99999974E-6 : f32
    %30 = vector.broadcast %cst_13 : f32 to vector<2x1xf32>
    %31 = arith.addf %27, %30 : vector<2x1xf32>
    %32 = math.rsqrt %31 : vector<2x1xf32>
    %33 = vector.broadcast %32 : vector<2x1xf32> to vector<2x32xf32>
    %34 = arith.mulf %29, %33 : vector<2x32xf32>
    %c0_14 = arith.constant 0 : index
    %c0_15 = arith.constant 0 : index
    %35 = vector.load %arg3[%c0_14, %c0_15] : memref<1x32xf32, #tpu.memory_space<vmem>>, vector<1x32xf32>
    %36 = vector.broadcast %35 : vector<1x32xf32> to vector<2x32xf32>
    %37 = arith.mulf %34, %36 : vector<2x32xf32>
    %c0_16 = arith.constant 0 : index
    %c0_17 = arith.constant 0 : index
    %38 = vector.load %arg4[%c0_16, %c0_17] : memref<1x32xf32, #tpu.memory_space<vmem>>, vector<1x32xf32>
    %39 = vector.broadcast %38 : vector<1x32xf32> to vector<2x32xf32>
    %40 = arith.addf %37, %39 : vector<2x32xf32>
    %41 = arith.truncf %40 : vector<2x32xf32> to vector<2x32xbf16>
    %c0_18 = arith.constant 0 : index
    %c0_19 = arith.constant 0 : index
    %42 = vector.load %arg5[%c0_18, %c0_19] : memref<32x16xbf16, #tpu.memory_space<vmem>>, vector<32x16xbf16>
    %cst_20 = arith.constant dense<0.000000e+00> : vector<2x16xf32>
    %43 = tpu.matmul %41, %42, %cst_20 {dimension_numbers = #tpu.dot_dimension_numbers<[1], [0], [0], [1], [0, 0, 1, 1], [], []>} : vector<2x32xbf16>, vector<32x16xbf16>, vector<2x16xf32> -> vector<2x16xf32>
    %c0_21 = arith.constant 0 : index
    %c0_22 = arith.constant 0 : index
    %44 = vector.load %arg6[%c0_21, %c0_22] : memref<1x16xf32, #tpu.memory_space<vmem>>, vector<1x16xf32>
    %45 = vector.broadcast %44 : vector<1x16xf32> to vector<2x16xf32>
    %46 = arith.addf %43, %45 : vector<2x16xf32>
    %c0_23 = arith.constant 0 : index
    %c0_24 = arith.constant 0 : index
    %47 = vector.load %arg7[%c0_23, %c0_24] : memref<32x16xbf16, #tpu.memory_space<vmem>>, vector<32x16xbf16>
    %cst_25 = arith.constant dense<0.000000e+00> : vector<2x16xf32>
    %48 = tpu.matmul %41, %47, %cst_25 {dimension_numbers = #tpu.dot_dimension_numbers<[1], [0], [0], [1], [0, 0, 1, 1], [], []>} : vector<2x32xbf16>, vector<32x16xbf16>, vector<2x16xf32> -> vector<2x16xf32>
    %c0_26 = arith.constant 0 : index
    %c0_27 = arith.constant 0 : index
    %49 = vector.load %arg8[%c0_26, %c0_27] : memref<1x16xf32, #tpu.memory_space<vmem>>, vector<1x16xf32>
    %50 = vector.broadcast %49 : vector<1x16xf32> to vector<2x16xf32>
    %51 = arith.addf %48, %50 : vector<2x16xf32>
    %cst_28 = arith.constant 5.000000e-01 : f32
    %52 = vector.broadcast %cst_28 : f32 to vector<2x16xf32>
    %53 = arith.mulf %52, %51 : vector<2x16xf32>
    %54 = math.exp %53 : vector<2x16xf32>
    %55 = arith.mulf %46, %46 : vector<2x16xf32>
    %56 = math.exp %51 : vector<2x16xf32>
    %57 = arith.addf %55, %56 : vector<2x16xf32>
    %cst_29 = arith.constant 1.000000e+00 : f32
    %58 = vector.broadcast %cst_29 : f32 to vector<2x16xf32>
    %59 = arith.subf %57, %58 : vector<2x16xf32>
    %60 = arith.subf %59, %51 : vector<2x16xf32>
    %cst_30 = arith.constant 5.000000e-01 : f32
    %61 = vector.broadcast %cst_30 : f32 to vector<2x16xf32>
    %62 = arith.mulf %61, %60 : vector<2x16xf32>
    %c0_31 = arith.constant 0 : index
    %c0_32 = arith.constant 0 : index
    %63 = vector.load %arg9[%c0_31, %c0_32] : memref<2x16xf32, #tpu.memory_space<vmem>>, vector<2x16xf32>
    %64 = arith.mulf %54, %63 : vector<2x16xf32>
    %65 = arith.addf %46, %64 : vector<2x16xf32>
    %c0_33 = arith.constant 0 : index
    %c0_34 = arith.constant 0 : index
    %66 = vector.load %arg10[%c0_33, %c0_34] : memref<2x16xf32, #tpu.memory_space<vmem>>, vector<2x16xf32>
    tpu.vector_store %arg10[%c0_33, %c0_34], %65 {strides = array<i32>} : memref<2x16xf32, #tpu.memory_space<vmem>>, vector<2x16xf32>,
    %cst_35 = arith.constant dense<0.000000e+00> : vector<2xf32>
    %67 = vector.multi_reduction <add>, %62, %cst_35 [1] : vector<2x16xf32> to vector<2xf32>
    %68 = vector.shape_cast %67 : vector<2xf32> to vector<2x1xf32>
    %c0_36 = arith.constant 0 : index
    %c0_37 = arith.constant 0 : index
    %69 = vector.load %arg11[%c0_36, %c0_37] : memref<2x1xf32, #tpu.memory_space<vmem>>, vector<2x1xf32>
    tpu.vector_store %arg11[%c0_36, %c0_37], %68 {strides = array<i32>} : memref<2x1xf32, #tpu.memory_space<vmem>>, vector<2x1xf32>,
    %c0_38 = arith.constant 0 : index
    %c0_39 = arith.constant 0 : index
    %70 = vector.load %arg12[%c0_38, %c0_39] : memref<2x16xf32, #tpu.memory_space<vmem>>, vector<2x16xf32>
    tpu.vector_store %arg12[%c0_38, %c0_39], %46 {strides = array<i32>} : memref<2x16xf32, #tpu.memory_space<vmem>>, vector<2x16xf32>,
    %c0_40 = arith.constant 0 : index
    %c0_41 = arith.constant 0 : index
    %71 = vector.load %arg13[%c0_40, %c0_41] : memref<2x16xf32, #tpu.memory_space<vmem>>, vector<2x16xf32>
    tpu.vector_store %arg13[%c0_40, %c0_41], %51 {strides = array<i32>} : memref<2x16xf32, #tpu.memory_space<vmem>>, vector<2x16xf32>,
    %c0_42 = arith.constant 0 : index
    %c0_43 = arith.constant 0 : index
    %72 = vector.load %arg14[%c0_42, %c0_43] : memref<2x16xf32, #tpu.memory_space<vmem>>, vector<2x16xf32>
    tpu.vector_store %arg14[%c0_42, %c0_43], %54 {strides = array<i32>} : memref<2x16xf32, #tpu.memory_space<vmem>>, vector<2x16xf32>,
    return
  }
}

</mosaic_0001>

<bundles_post_ra>
// kernel: _lambda_.5
= control target key start
LH: loop header
LB: loop body
LE: loop exit
PB: predicated region body
PF: predicated region fallthrough
CT: control target
= control target key end

     0   :  { %s1768_s12 = smov 0   ;;  %s2100_s0 = inlined_call_operand.vmem [shape: f32[2,100,12], index: 0, kind: input, shape index: {}]   ;;  %s2101_s1 = inlined_call_operand.vmem [shape: bf16[9,12,8], index: 1, kind: input, shape index: {}]   ;;  %s2102_s2 = inlined_call_operand.vmem [shape: f32[1,8], index: 2, kind: input, shape index: {}]   ;;  %s2103_s3 = inlined_call_operand.vmem [shape: f32[2,78,8], index: 3, kind: output, shape index: {}]  }
   0x1 LB: > { %s1383_s13 = sadd.s32 4294967295, %s1744_s12   ;;  %p1387_p0 = scmp.ge.s32.totalorder %s1744_s12, 1  ;;  %s1744_s12 = sphi %s1768_s12, %s13_s12  }
   0x2   : > { %p137_p1 = scmp.lt.s32.totalorder %s1744_s12, 3 }
   0x4   : > { %p138_p2 = pnand %p1387_p0, %p137_p1 }
   0x5   : > { %vm228_vm0 = vcmask (!%p138_p2), 1045504   ;;  %v1746_v0 = vmov (!%p138_p2), 0.0   ;;  %v1729_v1 = vld [vmem:[%s2101_s1 + $0x8] sm:$0x3f] (!%p138_p2)   ;;  %p161_p3 = scmp.lt.s32.totalorder (!%p138_p2), %s1383_s13, 1  ;;  %vm1747_vm1 = vmmov (!%p138_p2), 0  }
   0x6   : > { %141 = sbr.rel (%p138_p2) target bundleno = 418 (0x1a2), region = 32  ;;  %1517 = vmatprep.subr.bf16.mxu0 (!%p138_p2), %v1746_v0  ;;  %1715 = vmatprep.subr.bf16.mxu1 (!%p138_p2), %v1746_v0  ;;  %v230_v2 = vsel (!%p138_p2), %vm228_vm0, %v1729_v1, 0  ;;  %v1730_v3 = vld [vmem:[%s2101_s1 + $0x10] sm:$0x3f] (!%p138_p2)   ;;  %v1731_v4 = vld [vmem:[%s2101_s1] sm:$0x3f] (!%p138_p2)  }
   0x7   : > { %1519 = vmatprep.mubr.msk.bf16.mxu0 (!%p138_p2), %vm1747_vm1, %v1746_v0  ;;  %1531 = vmatprep.mubr.msk.bf16.mxu1 (!%p138_p2), %vm1747_vm1, %v1746_v0  ;;  %vm212_vm2 = vcmask (!%p138_p2), 97280   ;;  %v440_v10 = vsel (!%p138_p2), %vm228_vm0, %v1730_v3, 0  ;;  %v326_v12 = vsel (!%p138_p2), %vm228_vm0, %v1731_v4, 0  ;;  %v1732_v23 = vld [vmem:[%s2101_s1 + $0x18] sm:$0x3f] (!%p138_p2)   ;;  %vm1316_vm4 = vcmask (!%p138_p2), 64512  }
   0x8   : > { %1518 = vmatpush3.bf16.msra.mxu0 (!%p138_p2), %v230_v2  ;;  %1716 = vmatpush3.bf16.msra.mxu1 (!%p138_p2), %v230_v2  ;;  %v564_v26 = vsel (!%p138_p2), %vm228_vm0, %v1732_v23, 0  ;;  %v1733_v31 = vld [vmem:[%s2101_s1 + $0x20] sm:$0x3f] (!%p138_p2)   ;;  %v1734_v55 = vld [vmem:[%s2101_s1 + $0x28] sm:$0x3f] (!%p138_p2)   ;;  %vm1326_vm14 = vcmask (!%p138_p2), 62464  }
   0x9   : > { %1561 = vmatprep.subr.bf16.mxu0 (!%p138_p2), %v1746_v0  ;;  %1539 = vmatprep.subr.bf16.mxu1 (!%p138_p2), %v1746_v0  ;;  %v688_v34 = vsel (!%p138_p2), %vm228_vm0, %v1733_v31, 0  ;;  %v812_v58 = vsel (!%p138_p2), %vm228_vm0, %v1734_v55, 0  ;;  %v1735_v61 = vld [vmem:[%s2101_s1 + $0x30] sm:$0x3f] (!%p138_p2)  }
   0xa   : > { %v936_v1 = vsel (!%p138_p2), %vm228_vm0, %v1735_v61, 0 }
   0xd   : > { %s2105_s13 = smov (!%p161_p3, %s1383_s13), 1 }
   0xe   : > { %s1717_s16 = smul.u32 104, %s2105_s13 }
   0xf   : > { %s1718_s11 = smul.u32 80, %s2105_s13 }
  0x10   : > { %s1800_s23 = scalar_lea.vmem %s2100_s0, %s1717_s16 }
  0x11   : > { %v189_v5 = vld [vmem:[%s1800_s23 + $0x1] sm:$0xff]  ;;  %v190_v6 = vld [vmem:[%s1800_s23 + $0x9] sm:$0xff]  ;;  %v195_v7 = vld [vmem:[%s1800_s23 + $0x31] sm:$0xff]  ;;  %s2061_s16 = scalar_lea.vmem %s2103_s3, %s1718_s11 }
  0x12   : > { %v199_v8 = vpack.c.bf16 %v190_v6, %v189_v5  ;;  %v196_v9 = vld [vmem:[%s1800_s23 + $0x39] sm:$0xff]  ;;  %v191_v13 = vld [vmem:[%s1800_s23 + $0x11] sm:$0xff]  ;;  %v197_v15 = vld [vmem:[%s1800_s23 + $0x41] sm:$0xff] }
  0x13   : > { %v202_v11 = vpack.c.bf16 %v196_v9, %v195_v7  ;;  %v192_v14 = vld [vmem:[%s1800_s23 + $0x19] sm:$0xff]  ;;  %v198_v16 = vld [vmem:[%s1800_s23 + $0x49] sm:$0x3f]  ;;  %v193_v19 = vld [vmem:[%s1800_s23 + $0x21] sm:$0xff] }
  0x14   : > { %1520 = vmatmul.mubr.msk.bf16.vlgmr.msra.gmra.mrb[0].mxu0 %vm212_vm2, %v199_v8  ;;  %v200_v17 = vpack.c.bf16 %v192_v14, %v191_v13  ;;  %v203_v18 = vpack.c.bf16 %v198_v16, %v197_v15  ;;  %v194_v20 = vld [vmem:[%s1800_s23 + $0x29] sm:$0xff]  ;;  %v172_v21 = vld [vmem:[%s1800_s23] sm:$0xff]  ;;  %v175_v30 = vld [vmem:[%s1800_s23 + $0x18] sm:$0xff] }
  0x15   : > { %1532 = vmatmul.mubr.msk.bf16.vlgmr.msra.gmra.mrb[0].mxu1 %vm212_vm2, %v202_v11  ;;  %1562 = vmatpush3.bf16.msra.mxu0 %v440_v10  ;;  %v173_v22 = vld [vmem:[%s1800_s23 + $0x8] sm:$0xff]  ;;  %v201_v24 = vpack.c.bf16 %v194_v20, %v193_v19  ;;  %v174_v29 = vld [vmem:[%s1800_s23 + $0x10] sm:$0xff]  ;;  %v404_v36 = vld [vmem:[%s1800_s23 + $0x1a] sm:$0xff] }
  0x16   : > { %1540 = vmatpush3.bf16.msra.mxu1 %v326_v12  ;;  %1523 = vmatprep.mubr.msk.bf16.mxu0 %vm1747_vm1, %v1746_v0  ;;  %v182_v25 = vpack.c.bf16 %v173_v22, %v172_v21  ;;  %v401_v27 = vld [vmem:[%s1800_s23 + $0x2] sm:$0xff]  ;;  %v402_v28 = vld [vmem:[%s1800_s23 + $0xa] sm:$0xff]  ;;  %v183_v33 = vpack.c.bf16 %v175_v30, %v174_v29  ;;  %v403_v35 = vld [vmem:[%s1800_s23 + $0x12] sm:$0xff] }
  0x17   : > { %1535 = vmatprep.mubr.msk.bf16.mxu1 %vm1747_vm1, %v1746_v0  ;;  %1583 = vmatprep.subr.bf16.mxu1 %v1746_v0  ;;  %v411_v32 = vpack.c.bf16 %v402_v28, %v401_v27  ;;  %v176_v37 = vld [vmem:[%s1800_s23 + $0x20] sm:$0xff]  ;;  %v177_v38 = vld [vmem:[%s1800_s23 + $0x28] sm:$0xff]  ;;  %v412_v39 = vpack.c.bf16 %v404_v36, %v403_v35  ;;  %v178_v43 = vld [vmem:[%s1800_s23 + $0x30] sm:$0xff]  ;;  %v535_v57 = vpack.c.bf16 %v403_v35, %v402_v28 }
  0x18   : > { %1605 = vmatprep.subr.bf16.mxu0 %v1746_v0  ;;  %v184_v40 = vpack.c.bf16 %v177_v38, %v176_v37  ;;  %v405_v41 = vld [vmem:[%s1800_s23 + $0x22] sm:$0xff]  ;;  %v406_v42 = vld [vmem:[%s1800_s23 + $0x2a] sm:$0xff]  ;;  %v179_v44 = vld [vmem:[%s1800_s23 + $0x38] sm:$0xff] }
  0x19   : > { %v413_v45 = vpack.c.bf16 %v406_v42, %v405_v41  ;;  %v185_v46 = vpack.c.bf16 %v179_v44, %v178_v43  ;;  %v407_v47 = vld [vmem:[%s1800_s23 + $0x32] sm:$0xff]  ;;  %v408_v48 = vld [vmem:[%s1800_s23 + $0x3a] sm:$0xff]  ;;  %v181_v50 = vld [vmem:[%s1800_s23 + $0x48] sm:$0x3f]  ;;  %v536_v63 = vpack.c.bf16 %v405_v41, %v404_v36 }
  0x1a   : > { %v180_v49 = vld [vmem:[%s1800_s23 + $0x40] sm:$0xff]  ;;  %v414_v51 = vpack.c.bf16 %v408_v48, %v407_v47  ;;  %v410_v54 = vld [vmem:[%s1800_s23 + $0x4a] sm:$0x3f]  ;;  %v650_v60 = vld [vmem:[%s1800_s23 + $0x13] sm:$0xff]  ;;  %v537_v5 = vpack.c.bf16 %v407_v47, %v406_v42 }
  0x1b   : > { %v186_v52 = vpack.c.bf16 %v181_v50, %v180_v49  ;;  %v409_v53 = vld [vmem:[%s1800_s23 + $0x42] sm:$0xff]  ;;  %v649_v59 = vld [vmem:[%s1800_s23 + $0xb] sm:$0xff]  ;;  %v654_v7 = vld [vmem:[%s1800_s23 + $0x33] sm:$0xff] }
  0x1c   : > { %1524 = vmatmul.mubr.msk.bf16.gmra.mrb[4].mxu0 %vm212_vm2, %v200_v17  ;;  %v415_v56 = vpack.c.bf16 %v410_v54, %v409_v53  ;;  %v659_v62 = vpack.c.bf16 %v650_v60, %v649_v59  ;;  %v651_v2 = vld [vmem:[%s1800_s23 + $0x1b] sm:$0xff]  ;;  %v652_v3 = vld [vmem:[%s1800_s23 + $0x23] sm:$0xff]  ;;  %v653_v6 = vld [vmem:[%s1800_s23 + $0x2b] sm:$0xff]  ;;  %v538_v9 = vpack.c.bf16 %v409_v53, %v408_v48 }
  0x1d   : > { %1536 = vmatmul.mubr.msk.bf16.gmra.mrb[4].mxu1 %vm212_vm2, %v203_v18  ;;  %1527 = vmatprep.mubr.msk.bf16.mxu0 %vm1747_vm1, %v1746_v0  ;;  %v660_v4 = vpack.c.bf16 %v652_v3, %v651_v2  ;;  %v661_v8 = vpack.c.bf16 %v654_v7, %v653_v6  ;;  %v655_v10 = vld [vmem:[%s1800_s23 + $0x3b] sm:$0xff]  ;;  %v656_v11 = vld [vmem:[%s1800_s23 + $0x43] sm:$0xff]  ;;  %v534_v13 = vld [vmem:[%s1800_s23 + $0x52] sm:$0x3f] }
  0x1e   : > { %1541 = vmatprep.mubr.msk.bf16.mxu1 %vm1747_vm1, %v1746_v0  ;;  %v533_v12 = vld [vmem:[%s1800_s23 + $0x4a] sm:$0xff]  ;;  %v662_v14 = vpack.c.bf16 %v656_v11, %v655_v10  ;;  %v658_v17 = vld [vmem:[%s1800_s23 + $0x53] sm:$0x3f]  ;;  %v906_v43 = vld [vmem:[%s1800_s23 + $0x5c] sm:$0x3f] }
  0x1f   : > { %v539_v15 = vpack.c.bf16 %v534_v13, %v533_v12  ;;  %v657_v16 = vld [vmem:[%s1800_s23 + $0x4b] sm:$0xff]  ;;  %v774_v19 = vld [vmem:[%s1800_s23 + $0x14] sm:$0xff]  ;;  %v1146_v49 = vld [vmem:[%s1800_s23 + $0x1e] sm:$0xff] }
  0x20   : > { %v773_v18 = vld [vmem:[%s1800_s23 + $0xc] sm:$0xff]  ;;  %v1736_v20 = vld [vmem:[%s2101_s1 + $0x38] sm:$0x3f]   ;;  %v663_v21 = vpack.c.bf16 %v658_v17, %v657_v16  ;;  %v780_v35 = vld [vmem:[%s1800_s23 + $0x44] sm:$0xff] }
  0x21   : > { %v783_v22 = vpack.c.bf16 %v774_v19, %v773_v18  ;;  %v1060_v23 = vsel %vm228_vm0, %v1736_v20, 0  ;;  %v777_v30 = vld [vmem:[%s1800_s23 + $0x2c] sm:$0xff]  ;;  %v778_v31 = vld [vmem:[%s1800_s23 + $0x34] sm:$0xff]  ;;  %v1150_v61 = vld [vmem:[%s1800_s23 + $0x3e] sm:$0xff] }
  0x22   : > { %v781_v38 = vld [vmem:[%s1800_s23 + $0x4c] sm:$0xff]  ;;  %v905_v42 = vld [vmem:[%s1800_s23 + $0x54] sm:$0xff]  ;;  %v1030_v6 = vld [vmem:[%s1800_s23 + $0x5d] sm:$0x3f] }
  0x23   : > { %v1021_v44 = vld [vmem:[%s1800_s23 + $0x15] sm:$0xff]  ;;  %v1023_v50 = vld [vmem:[%s1800_s23 + $0x25] sm:$0xff]  ;;  %v1154_v10 = vld [vmem:[%s1800_s23 + $0x5e] sm:$0x3f] }
  0x24   : > { %1528 = vmatmul.mubr.msk.bf16.gmra.mrb[8].mxu0 %vm212_vm2, %v201_v24  ;;  %v775_v24 = vld [vmem:[%s1800_s23 + $0x1c] sm:$0xff]  ;;  %v1147_v54 = vld [vmem:[%s1800_s23 + $0x26] sm:$0xff]  ;;  %v1148_v55 = vld [vmem:[%s1800_s23 + $0x2e] sm:$0xff] }
  0x25   : > { %1542 = vmatmul.mubr.msk.bf16.vlgmr.msra.gmra.mrb[8].mxu1 %vm212_vm2, %v182_v25  ;;  %1563 = vmatprep.mubr.msk.bf16.mxu0 %vm1747_vm1, %v1746_v0  ;;  %v776_v25 = vld [vmem:[%s1800_s23 + $0x24] sm:$0xff]  ;;  %v907_v27 = vpack.c.bf16 %v775_v24, %v774_v19  ;;  %v1145_v48 = vld [vmem:[%s1800_s23 + $0x16] sm:$0xff] }
  0x26   : > { %1584 = vmatpush3.bf16.msra.mxu1 %v564_v26  ;;  %1545 = vmatprep.mubr.msk.bf16.mxu1 %vm1747_vm1, %v1746_v0  ;;  %v1737_v26 = vld [vmem:[%s2101_s1 + $0x40] sm:$0x3f]   ;;  %v784_v28 = vpack.c.bf16 %v776_v25, %v775_v24  ;;  %v1149_v60 = vld [vmem:[%s1800_s23 + $0x36] sm:$0xff]  ;;  %v1151_v3 = vld [vmem:[%s1800_s23 + $0x46] sm:$0xff] }
  0x27   : > { %1627 = vmatprep.subr.bf16.mxu1 %v1746_v0  ;;  %v1184_v29 = vsel %vm228_vm0, %v1737_v26, 0 }
  0x2c   : > { %1564 = vmatmul.mubr.msk.bf16.vlgmr.msra.gmra.mrb[12].mxu0 %vm212_vm2, %v411_v32  ;;  %v908_v32 = vpack.c.bf16 %v777_v30, %v776_v25 }
  0x2d   : > { %1546 = vmatmul.mubr.msk.bf16.gmra.mrb[12].mxu1 %vm212_vm2, %v183_v33  ;;  %1606 = vmatpush3.bf16.msra.mxu0 %v688_v34  ;;  %v785_v33 = vpack.c.bf16 %v778_v31, %v777_v30  ;;  %v779_v34 = vld [vmem:[%s1800_s23 + $0x3c] sm:$0xff] }
  0x2e   : > { %1549 = vmatprep.mubr.msk.bf16.mxu1 %vm1747_vm1, %v1746_v0  ;;  %1567 = vmatprep.mubr.msk.bf16.mxu0 %vm1747_vm1, %v1746_v0  ;;  %v909_v36 = vpack.c.bf16 %v779_v34, %v778_v31  ;;  %v786_v37 = vpack.c.bf16 %v780_v35, %v779_v34 }
  0x2f   : > { %1649 = vmatprep.subr.bf16.mxu0 %v1746_v0 }
  0x34   : > { %1568 = vmatmul.mubr.msk.bf16.gmra.mrb[16].mxu0 %vm212_vm2, %v412_v39  ;;  %v782_v39 = vld [vmem:[%s1800_s23 + $0x54] sm:$0x3f] }
  0x35   : > { %1550 = vmatmul.mubr.msk.bf16.gmra.mrb[16].mxu1 %vm212_vm2, %v184_v40  ;;  %1571 = vmatprep.mubr.msk.bf16.mxu0 %vm1747_vm1, %v1746_v0  ;;  %v910_v40 = vpack.c.bf16 %v781_v38, %v780_v35  ;;  %v787_v41 = vpack.c.bf16 %v782_v39, %v781_v38 }
  0x36   : > { %1553 = vmatprep.mubr.msk.bf16.mxu1 %vm1747_vm1, %v1746_v0 }
  0x3c   : > { %1572 = vmatmul.mubr.msk.bf16.gmra.mrb[20].mxu0 %vm212_vm2, %v413_v45  ;;  %v1022_v45 = vld [vmem:[%s1800_s23 + $0x1d] sm:$0xff] }
  0x3d   : > { %1554 = vmatmul.mubr.msk.bf16.gmra.mrb[20].mxu1 %vm212_vm2, %v185_v46  ;;  %1575 = vmatprep.mubr.msk.bf16.mxu0 %vm1747_vm1, %v1746_v0  ;;  %v911_v46 = vpack.c.bf16 %v906_v43, %v905_v42  ;;  %v1031_v47 = vpack.c.bf16 %v1022_v45, %v1021_v44 }
  0x3e   : > { %1557 = vmatprep.mubr.msk.bf16.mxu1 %vm1747_vm1, %v1746_v0 }
  0x44   : > { %1576 = vmatmul.mubr.msk.bf16.gmra.mrb[24].mxu0 %vm212_vm2, %v414_v51  ;;  %v1024_v51 = vld [vmem:[%s1800_s23 + $0x2d] sm:$0xff] }
  0x45   : > { %1558 = vmatmul.mubr.msk.bf16.gmra.mrb[24].mxu1 %vm212_vm2, %v186_v52  ;;  %1579 = vmatprep.mubr.msk.bf16.mxu0 %vm1747_vm1, %v1746_v0  ;;  %v1155_v52 = vpack.c.bf16 %v1146_v49, %v1145_v48  ;;  %v1032_v53 = vpack.c.bf16 %v1024_v51, %v1023_v50 }
  0x46   : > { %1585 = vmatprep.mubr.msk.bf16.mxu1 %vm1747_vm1, %v1746_v0 }
  0x4c   : > { %1580 = vmatmul.mubr.msk.bf16.gmra.mrb[28].mxu0 %vm212_vm2, %v415_v56  ;;  %v1025_v56 = vld [vmem:[%s1800_s23 + $0x35] sm:$0xff] }
  0x4d   : > { %1586 = vmatmul.mubr.msk.bf16.vlgmr.msra.gmra.mrb[28].mxu1 %vm212_vm2, %v535_v57  ;;  %1607 = vmatprep.mubr.msk.bf16.mxu0 %vm1747_vm1, %v1746_v0  ;;  %v1026_v57 = vld [vmem:[%s1800_s23 + $0x3d] sm:$0xff] }
  0x4e   : > { %1628 = vmatpush3.bf16.msra.mxu1 %v812_v58  ;;  %1589 = vmatprep.mubr.msk.bf16.mxu1 %vm1747_vm1, %v1746_v0  ;;  %v1156_v58 = vpack.c.bf16 %v1148_v55, %v1147_v54  ;;  %v1033_v59 = vpack.c.bf16 %v1026_v57, %v1025_v56 }
  0x4f   : > { %1671 = vmatprep.subr.bf16.mxu1 %v1746_v0 }
  0x54   : > { %1608 = vmatmul.mubr.msk.bf16.vlgmr.msra.gmra.mrb[32].mxu0 %vm212_vm2, %v659_v62  ;;  %v1027_v62 = vld [vmem:[%s1800_s23 + $0x45] sm:$0xff] }
  0x55   : > { %1590 = vmatmul.mubr.msk.bf16.gmra.mrb[32].mxu1 %vm212_vm2, %v536_v63  ;;  %1650 = vmatpush3.bf16.msra.mxu0 %v936_v1  ;;  %v1028_v63 = vld [vmem:[%s1800_s23 + $0x4d] sm:$0xff]  ;;  %v1157_v1 = vpack.c.bf16 %v1150_v61, %v1149_v60 }
  0x56   : > { %1593 = vmatprep.mubr.msk.bf16.mxu1 %vm1747_vm1, %v1746_v0  ;;  %1611 = vmatprep.mubr.msk.bf16.mxu0 %vm1747_vm1, %v1746_v0  ;;  %v1034_v2 = vpack.c.bf16 %v1028_v63, %v1027_v62 }
  0x57   : > { %1693 = vmatprep.subr.bf16.mxu0 %v1746_v0 }
  0x5c   : > { %1612 = vmatmul.mubr.msk.bf16.gmra.mrb[36].mxu0 %vm212_vm2, %v660_v4  ;;  %v1152_v4 = vld [vmem:[%s1800_s23 + $0x4e] sm:$0xff] }
  0x5d   : > { %1594 = vmatmul.mubr.msk.bf16.gmra.mrb[36].mxu1 %vm212_vm2, %v537_v5  ;;  %1615 = vmatprep.mubr.msk.bf16.mxu0 %vm1747_vm1, %v1746_v0  ;;  %v1029_v5 = vld [vmem:[%s1800_s23 + $0x55] sm:$0xff]  ;;  %v1158_v7 = vpack.c.bf16 %v1152_v4, %v1151_v3 }
  0x5e   : > { %1597 = vmatprep.mubr.msk.bf16.mxu1 %vm1747_vm1, %v1746_v0 }
  0x64   : > { %1616 = vmatmul.mubr.msk.bf16.gmra.mrb[40].mxu0 %vm212_vm2, %v661_v8  ;;  %v1035_v8 = vpack.c.bf16 %v1030_v6, %v1029_v5 }
  0x65   : > { %1598 = vmatmul.mubr.msk.bf16.gmra.mrb[40].mxu1 %vm212_vm2, %v538_v9  ;;  %1619 = vmatprep.mubr.msk.bf16.mxu0 %vm1747_vm1, %v1746_v0  ;;  %v1153_v9 = vld [vmem:[%s1800_s23 + $0x56] sm:$0xff] }
  0x66   : > { %1601 = vmatprep.mubr.msk.bf16.mxu1 %vm1747_vm1, %v1746_v0  ;;  %v1159_v11 = vpack.c.bf16 %v1154_v10, %v1153_v9 }
  0x6c   : > { %1620 = vmatmul.mubr.msk.bf16.gmra.mrb[44].mxu0 %vm212_vm2, %v662_v14 }
  0x6d   : > { %1602 = vmatmul.mubr.msk.bf16.gmra.mrb[44].mxu1 %vm212_vm2, %v539_v15  ;;  %1623 = vmatprep.mubr.msk.bf16.mxu0 %vm1747_vm1, %v1746_v0 }
  0x6e   : > { %1629 = vmatprep.mubr.msk.bf16.mxu1 %vm1747_vm1, %v1746_v0 }
  0x74   : > { %1624 = vmatmul.mubr.msk.bf16.gmra.mrb[48].mxu0 %vm212_vm2, %v663_v21 }
  0x75   : > { %1630 = vmatmul.mubr.msk.bf16.vlgmr.msra.gmra.mrb[48].mxu1 %vm212_vm2, %v783_v22  ;;  %1651 = vmatprep.mubr.msk.bf16.mxu0 %vm1747_vm1, %v1746_v0 }
  0x76   : > { %1672 = vmatpush3.bf16.msra.mxu1 %v1060_v23  ;;  %1633 = vmatprep.mubr.msk.bf16.mxu1 %vm1747_vm1, %v1746_v0 }
  0x7c   : > { %1652 = vmatmul.mubr.msk.bf16.vlgmr.msra.gmra.mrb[52].mxu0 %vm212_vm2, %v907_v27 }
  0x7d   : > { %1634 = vmatmul.mubr.msk.bf16.gmra.mrb[52].mxu1 %vm212_vm2, %v784_v28  ;;  %1694 = vmatpush3.bf16.msra.mxu0 %v1184_v29 }
  0x7e   : > { %1637 = vmatprep.mubr.msk.bf16.mxu1 %vm1747_vm1, %v1746_v0  ;;  %1655 = vmatprep.mubr.msk.bf16.mxu0 %vm1747_vm1, %v1746_v0 }
  0x84   : > { %1656 = vmatmul.mubr.msk.bf16.gmra.mrb[56].mxu0 %vm212_vm2, %v908_v32 }
  0x85   : > { %1638 = vmatmul.mubr.msk.bf16.gmra.mrb[56].mxu1 %vm212_vm2, %v785_v33  ;;  %1659 = vmatprep.mubr.msk.bf16.mxu0 %vm1747_vm1, %v1746_v0 }
  0x86   : > { %1641 = vmatprep.mubr.msk.bf16.mxu1 %vm1747_vm1, %v1746_v0 }
  0x8c   : > { %1660 = vmatmul.mubr.msk.bf16.gmra.mrb[60].mxu0 %vm212_vm2, %v909_v36 }
  0x8d   : > { %1642 = vmatmul.mubr.msk.bf16.gmra.mrb[60].mxu1 %vm212_vm2, %v786_v37  ;;  %1663 = vmatprep.mubr.msk.bf16.mxu0 %vm1747_vm1, %v1746_v0 }
  0x8e   : > { %1645 = vmatprep.mubr.msk.bf16.mxu1 %vm1747_vm1, %v1746_v0 }
  0x94   : > { %1664 = vmatmul.mubr.msk.bf16.gmra.mrb[64].mxu0 %vm212_vm2, %v910_v40 }
  0x95   : > { %1646 = vmatmul.mubr.msk.bf16.gmra.mrb[64].mxu1 %vm212_vm2, %v787_v41  ;;  %1667 = vmatprep.mubr.msk.bf16.mxu0 %vm1747_vm1, %v1746_v0 }
  0x96   : > { %1673 = vmatprep.mubr.msk.bf16.mxu1 %vm1747_vm1, %v1746_v0 }
  0x9c   : > { %1668 = vmatmul.mubr.msk.bf16.gmra.mrb[68].mxu0 %vm212_vm2, %v911_v46 }
  0x9d   : > { %1674 = vmatmul.mubr.msk.bf16.vlgmr.msra.gmra.mrb[68].mxu1 %vm212_vm2, %v1031_v47  ;;  %1695 = vmatprep.mubr.msk.bf16.mxu0 %vm1747_vm1, %v1746_v0 }
  0x9e   : > { %1677 = vmatprep.mubr.msk.bf16.mxu1 %vm1747_vm1, %v1746_v0 }
  0xa4   : > { %1696 = vmatmul.mubr.msk.bf16.vlgmr.msra.gmra.mrb[72].mxu0 %vm212_vm2, %v1155_v52 }
  0xa5   : > { %1678 = vmatmul.mubr.msk.bf16.gmra.mrb[72].mxu1 %vm212_vm2, %v1032_v53  ;;  %1699 = vmatprep.mubr.msk.bf16.mxu0 %vm1747_vm1, %v1746_v0 }
  0xa6   : > { %1681 = vmatprep.mubr.msk.bf16.mxu1 %vm1747_vm1, %v1746_v0 }
  0xac   : > { %1700 = vmatmul.mubr.msk.bf16.gmra.mrb[76].mxu0 %vm212_vm2, %v1156_v58 }
  0xad   : > { %1682 = vmatmul.mubr.msk.bf16.gmra.mrb[76].mxu1 %vm212_vm2, %v1033_v59  ;;  %1703 = vmatprep.mubr.msk.bf16.mxu0 %vm1747_vm1, %v1746_v0 }
  0xae   : > { %1685 = vmatprep.mubr.msk.bf16.mxu1 %vm1747_vm1, %v1746_v0 }
  0xb4   : > { %1704 = vmatmul.mubr.msk.bf16.gmra.mrb[80].mxu0 %vm212_vm2, %v1157_v1 }
  0xb5   : > { %1686 = vmatmul.mubr.msk.bf16.gmra.mrb[80].mxu1 %vm212_vm2, %v1034_v2  ;;  %1707 = vmatprep.mubr.msk.bf16.mxu0 %vm1747_vm1, %v1746_v0 }
  0xb6   : > { %1689 = vmatprep.mubr.msk.bf16.mxu1 %vm1747_vm1, %v1746_v0 }
  0xbc   : > { %1708 = vmatmul.mubr.msk.bf16.gmra.mrb[84].mxu0 %vm212_vm2, %v1158_v7 }
  0xbd   : > { %1690 = vmatmul.mubr.msk.bf16.gmra.mrb[84].mxu1 %vm212_vm2, %v1035_v8  ;;  %1711 = vmatprep.mubr.msk.bf16.mxu0 %vm1747_vm1, %v1746_v0 }
  0xc4   : > { %1712 = vmatmul.mubr.msk.bf16.gmra.mrb[88].mxu0 %vm212_vm2, %v1159_v11 }
  0xe7   : > { %v266_v12 = vpop.f32.mrb[0].mxu0 }
  0xe8   : > { %v1521_v13 = vpop.f32.mrb[1].mxu0  ;;  %v290_v14 = vpop.f32.mrb[0].mxu1 }
  0xe9   : > { %v269_v15 = vpop.f32.mrb[2].mxu0  ;;  %v1533_v16 = vpop.f32.mrb[1].mxu1 }
  0xea   : > { %v1522_v17 = vpop.f32.mrb[3].mxu0  ;;  %v293_v18 = vpop.f32.mrb[2].mxu1 }
  0xeb   : > { %v1534_v19 = vpop.f32.mrb[3].mxu1 }
  0xef   : > { %v274_v20 = vpop.f32.mrb[4].mxu0 }
  0xf0   : > { %v1525_v21 = vpop.f32.mrb[5].mxu0  ;;  %v298_v22 = vpop.f32.mrb[4].mxu1 }
  0xf1   : > { %v277_v23 = vpop.f32.mrb[6].mxu0  ;;  %v1537_v24 = vpop.f32.mrb[5].mxu1 }
  0xf2   : > { %v1526_v25 = vpop.f32.mrb[7].mxu0  ;;  %v301_v0 = vpop.f32.mrb[6].mxu1 }
  0xf3   : > { %v1538_v26 = vpop.f32.mrb[7].mxu1 }
  0xf7   : > { %v282_v27 = vpop.f32.mrb[8].mxu0 }
  0xf8   : > { %v362_v28 = vpop.f32.mrb[8].mxu1  ;;  %v1529_v29 = vpop.f32.mrb[9].mxu0 }
  0xf9   : > { %v363_v30 = vadd.f32 %v362_v28, %v266_v12  ;;  %v1543_v31 = vpop.f32.mrb[9].mxu1  ;;  %v285_v32 = vpop.f32.mrb[10].mxu0 }
  0xfa   : > { %v365_v33 = vpop.f32.mrb[10].mxu1  ;;  %v1530_v34 = vpop.f32.mrb[11].mxu0 }
  0xfb   : > { %v366_v35 = vadd.f32 %v365_v33, %v269_v15  ;;  %v1544_v36 = vpop.f32.mrb[11].mxu1 }
  0xff   : > { %v476_v37 = vpop.f32.mrb[12].mxu0 }
 0x100   : > { %v370_v38 = vpop.f32.mrb[12].mxu1  ;;  %v515_v39 = vadd.f32 %v476_v37, %v363_v30  ;;  %v1565_v40 = vpop.f32.mrb[13].mxu0 }
 0x101   : > { %v371_v41 = vadd.f32 %v370_v38, %v274_v20  ;;  %v1547_v42 = vpop.f32.mrb[13].mxu1  ;;  %v479_v43 = vpop.f32.mrb[14].mxu0 }
 0x102   : > { %v373_v44 = vpop.f32.mrb[14].mxu1  ;;  %v516_v45 = vadd.f32 %v479_v43, %v366_v35  ;;  %v1566_v46 = vpop.f32.mrb[15].mxu0 }
 0x103   : > { %v374_v47 = vadd.f32 %v373_v44, %v277_v23  ;;  %v1548_v48 = vpop.f32.mrb[15].mxu1 }
 0x107   : > { %v484_v49 = vpop.f32.mrb[16].mxu0 }
 0x108   : > { %v378_v50 = vpop.f32.mrb[16].mxu1  ;;  %v517_v51 = vadd.f32 %v484_v49, %v371_v41  ;;  %v1569_v52 = vpop.f32.mrb[17].mxu0 }
 0x109   : > { %v379_v53 = vadd.f32 %v378_v50, %v282_v27  ;;  %v1551_v54 = vpop.f32.mrb[17].mxu1  ;;  %v487_v55 = vpop.f32.mrb[18].mxu0 }
 0x10a   : > { %v381_v56 = vpop.f32.mrb[18].mxu1  ;;  %v518_v57 = vadd.f32 %v487_v55, %v374_v47  ;;  %v1570_v58 = vpop.f32.mrb[19].mxu0 }
 0x10b   : > { %v382_v59 = vadd.f32 %v381_v56, %v285_v32  ;;  %v1552_v60 = vpop.f32.mrb[19].mxu1 }
 0x10f   : > { %v492_v61 = vpop.f32.mrb[20].mxu0 }
 0x110   : > { %v386_v62 = vpop.f32.mrb[20].mxu1  ;;  %v519_v63 = vadd.f32 %v492_v61, %v379_v53  ;;  %v1573_v1 = vpop.f32.mrb[21].mxu0 }
 0x111   : > { %v387_v2 = vadd.f32 %v386_v62, %v290_v14  ;;  %v1555_v3 = vpop.f32.mrb[21].mxu1  ;;  %v495_v4 = vpop.f32.mrb[22].mxu0 }
 0x112   : > { %v389_v5 = vpop.f32.mrb[22].mxu1  ;;  %v520_v6 = vadd.f32 %v495_v4, %v382_v59  ;;  %v1574_v7 = vpop.f32.mrb[23].mxu0 }
 0x113   : > { %v390_v8 = vadd.f32 %v389_v5, %v293_v18  ;;  %v1556_v9 = vpop.f32.mrb[23].mxu1 }
 0x117   : > { %v500_v10 = vpop.f32.mrb[24].mxu0 }
 0x118   : > { %v394_v11 = vpop.f32.mrb[24].mxu1  ;;  %v521_v12 = vadd.f32 %v500_v10, %v387_v2  ;;  %v1577_v13 = vpop.f32.mrb[25].mxu0 }
 0x119   : > { %v395_v15 = vadd.f32 %v394_v11, %v298_v22  ;;  %v1559_v16 = vpop.f32.mrb[25].mxu1  ;;  %v503_v17 = vpop.f32.mrb[26].mxu0 }
 0x11a   : > { %v397_v19 = vpop.f32.mrb[26].mxu1  ;;  %v522_v20 = vadd.f32 %v503_v17, %v390_v8  ;;  %v1578_v21 = vpop.f32.mrb[27].mxu0 }
 0x11b   : > { %v398_v23 = vadd.f32 %v397_v19, %v301_v0  ;;  %v1560_v24 = vpop.f32.mrb[27].mxu1 }
 0x11f   : > { %v508_v14 = vpop.f32.mrb[28].mxu0 }
 0x120   : > { %v523_v25 = vadd.f32 %v508_v14, %v395_v15  ;;  %v600_v26 = vpop.f32.mrb[28].mxu1  ;;  %v1581_v27 = vpop.f32.mrb[29].mxu0 }
 0x121   : > { %v639_v28 = vadd.f32 %v600_v26, %v515_v39  ;;  %v1587_v29 = vpop.f32.mrb[29].mxu1  ;;  %v511_v18 = vpop.f32.mrb[30].mxu0 }
 0x122   : > { %v524_v30 = vadd.f32 %v511_v18, %v398_v23  ;;  %v603_v31 = vpop.f32.mrb[30].mxu1  ;;  %v1582_v32 = vpop.f32.mrb[31].mxu0 }
 0x123   : > { %v640_v33 = vadd.f32 %v603_v31, %v516_v45  ;;  %v1588_v34 = vpop.f32.mrb[31].mxu1 }
 0x127   : > { %v724_v22 = vpop.f32.mrb[32].mxu0 }
 0x128   : > { %v608_v35 = vpop.f32.mrb[32].mxu1  ;;  %v763_v36 = vadd.f32 %v724_v22, %v639_v28  ;;  %v1609_v37 = vpop.f32.mrb[33].mxu0 }
 0x129   : > { %v641_v38 = vadd.f32 %v608_v35, %v517_v51  ;;  %v1591_v40 = vpop.f32.mrb[33].mxu1  ;;  %v727_v0 = vpop.f32.mrb[34].mxu0 }
 0x12a   : > { %v611_v41 = vpop.f32.mrb[34].mxu1  ;;  %v764_v42 = vadd.f32 %v727_v0, %v640_v33  ;;  %v1610_v43 = vpop.f32.mrb[35].mxu0 }
 0x12b   : > { %v642_v44 = vadd.f32 %v611_v41, %v518_v57  ;;  %v1592_v46 = vpop.f32.mrb[35].mxu1 }
 0x12f   : > { %v732_v39 = vpop.f32.mrb[36].mxu0 }
 0x130   : > { %v616_v47 = vpop.f32.mrb[36].mxu1  ;;  %v765_v48 = vadd.f32 %v732_v39, %v641_v38  ;;  %v1613_v49 = vpop.f32.mrb[37].mxu0 }
 0x131   : > { %v643_v50 = vadd.f32 %v616_v47, %v519_v63  ;;  %v1595_v52 = vpop.f32.mrb[37].mxu1  ;;  %v735_v45 = vpop.f32.mrb[38].mxu0 }
 0x132   : > { %v619_v53 = vpop.f32.mrb[38].mxu1  ;;  %v766_v54 = vadd.f32 %v735_v45, %v642_v44  ;;  %v1614_v55 = vpop.f32.mrb[39].mxu0 }
 0x133   : > { %v644_v56 = vadd.f32 %v619_v53, %v520_v6  ;;  %v1596_v58 = vpop.f32.mrb[39].mxu1 }
 0x137   : > { %v740_v51 = vpop.f32.mrb[40].mxu0 }
 0x138   : > { %v624_v59 = vpop.f32.mrb[40].mxu1  ;;  %v767_v60 = vadd.f32 %v740_v51, %v643_v50  ;;  %v1617_v61 = vpop.f32.mrb[41].mxu0 }
 0x139   : > { %v645_v62 = vadd.f32 %v624_v59, %v521_v12  ;;  %v1599_v1 = vpop.f32.mrb[41].mxu1  ;;  %v743_v57 = vpop.f32.mrb[42].mxu0 }
 0x13a   : > { %v627_v2 = vpop.f32.mrb[42].mxu1  ;;  %v768_v3 = vadd.f32 %v743_v57, %v644_v56  ;;  %v1618_v4 = vpop.f32.mrb[43].mxu0 }
 0x13b   : > { %v646_v5 = vadd.f32 %v627_v2, %v522_v20  ;;  %v1600_v7 = vpop.f32.mrb[43].mxu1 }
 0x13f   : > { %v748_v63 = vpop.f32.mrb[44].mxu0 }
 0x140   : > { %v632_v8 = vpop.f32.mrb[44].mxu1  ;;  %v769_v9 = vadd.f32 %v748_v63, %v645_v62  ;;  %v1621_v10 = vpop.f32.mrb[45].mxu0 }
 0x141   : > { %v647_v11 = vadd.f32 %v632_v8, %v523_v25  ;;  %v1603_v13 = vpop.f32.mrb[45].mxu1  ;;  %v751_v6 = vpop.f32.mrb[46].mxu0 }
 0x142   : > { %v635_v15 = vpop.f32.mrb[46].mxu1  ;;  %v770_v16 = vadd.f32 %v751_v6, %v646_v5  ;;  %v1622_v17 = vpop.f32.mrb[47].mxu0 }
 0x143   : > { %v648_v19 = vadd.f32 %v635_v15, %v524_v30  ;;  %v1604_v21 = vpop.f32.mrb[47].mxu1 }
 0x147   : > { %v756_v12 = vpop.f32.mrb[48].mxu0 }
 0x148   : > { %v771_v23 = vadd.f32 %v756_v12, %v647_v11  ;;  %v848_v24 = vpop.f32.mrb[48].mxu1  ;;  %v1625_v14 = vpop.f32.mrb[49].mxu0 }
 0x149   : > { %v887_v26 = vadd.f32 %v848_v24, %v763_v36  ;;  %v1631_v27 = vpop.f32.mrb[49].mxu1  ;;  %v759_v20 = vpop.f32.mrb[50].mxu0 }
 0x14a   : > { %v772_v28 = vadd.f32 %v759_v20, %v648_v19  ;;  %v851_v29 = vpop.f32.mrb[50].mxu1  ;;  %v1626_v18 = vpop.f32.mrb[51].mxu0 }
 0x14b   : > { %v888_v31 = vadd.f32 %v851_v29, %v764_v42  ;;  %v1632_v32 = vpop.f32.mrb[51].mxu1 }
 0x14f   : > { %v972_v25 = vpop.f32.mrb[52].mxu0 }
 0x150   : > { %v856_v33 = vpop.f32.mrb[52].mxu1  ;;  %v1011_v34 = vadd.f32 %v972_v25, %v887_v26  ;;  %v1653_v22 = vpop.f32.mrb[53].mxu0 }
 0x151   : > { %v889_v35 = vadd.f32 %v856_v33, %v765_v48  ;;  %v1635_v37 = vpop.f32.mrb[53].mxu1  ;;  %v975_v30 = vpop.f32.mrb[54].mxu0 }
 0x152   : > { %v859_v38 = vpop.f32.mrb[54].mxu1  ;;  %v1012_v40 = vadd.f32 %v975_v30, %v888_v31  ;;  %v1654_v0 = vpop.f32.mrb[55].mxu0 }
 0x153   : > { %v890_v41 = vadd.f32 %v859_v38, %v766_v54  ;;  %v1636_v43 = vpop.f32.mrb[55].mxu1 }
 0x157   : > { %v980_v36 = vpop.f32.mrb[56].mxu0 }
 0x158   : > { %v864_v44 = vpop.f32.mrb[56].mxu1  ;;  %v1013_v46 = vadd.f32 %v980_v36, %v889_v35  ;;  %v1657_v39 = vpop.f32.mrb[57].mxu0 }
 0x159   : > { %v891_v47 = vadd.f32 %v864_v44, %v767_v60  ;;  %v1639_v49 = vpop.f32.mrb[57].mxu1  ;;  %v983_v42 = vpop.f32.mrb[58].mxu0 }
 0x15a   : > { %v867_v50 = vpop.f32.mrb[58].mxu1  ;;  %v1014_v52 = vadd.f32 %v983_v42, %v890_v41  ;;  %v1658_v45 = vpop.f32.mrb[59].mxu0 }
 0x15b   : > { %v892_v53 = vadd.f32 %v867_v50, %v768_v3  ;;  %v1640_v55 = vpop.f32.mrb[59].mxu1 }
 0x15f   : > { %v988_v48 = vpop.f32.mrb[60].mxu0 }
 0x160   : > { %v872_v56 = vpop.f32.mrb[60].mxu1  ;;  %v2039_v58 = vadd.f32 %v988_v48, %v891_v47  ;;  %v1661_v51 = vpop.f32.mrb[61].mxu0 }
 0x161   : > { %v893_v59 = vadd.f32 %v872_v56, %v769_v9  ;;  %v1643_v54 = vpop.f32.mrb[61].mxu1  ;;  %v991_v61 = vpop.f32.mrb[62].mxu0 }
 0x162   : > { %v875_v62 = vpop.f32.mrb[62].mxu1  ;;  %v2041_v1 = vadd.f32 %v991_v61, %v892_v53  ;;  %v1662_v57 = vpop.f32.mrb[63].mxu0 }
 0x163   : > { %v894_v60 = vadd.f32 %v875_v62, %v770_v16  ;;  %v1644_v2 = vpop.f32.mrb[63].mxu1 }
 0x167   : > { %v996_v4 = vpop.f32.mrb[64].mxu0 }
 0x168   : > { %v880_v5 = vpop.f32.mrb[64].mxu1  ;;  %v2043_v7 = vadd.f32 %v996_v4, %v893_v59  ;;  %v1665_v3 = vpop.f32.mrb[65].mxu0 }
 0x169   : > { %v895_v63 = vadd.f32 %v880_v5, %v771_v23  ;;  %v1647_v8 = vpop.f32.mrb[65].mxu1  ;;  %v999_v10 = vpop.f32.mrb[66].mxu0 }
 0x16a   : > { %v883_v11 = vpop.f32.mrb[66].mxu1  ;;  %v2045_v13 = vadd.f32 %v999_v10, %v894_v60  ;;  %v1666_v9 = vpop.f32.mrb[67].mxu0 }
 0x16b   : > { %v896_v6 = vadd.f32 %v883_v11, %v772_v28  ;;  %v1648_v15 = vpop.f32.mrb[67].mxu1  ;;  %v2054_v28 = vld [vmem:[%s2102_s2] ss:$0 sm:$0xff] }
 0x16f   : > { %v1004_v17 = vpop.f32.mrb[68].mxu0 }
 0x170   : > { %v2047_v19 = vadd.f32 %v1004_v17, %v895_v63  ;;  %v1096_v16 = vpop.f32.mrb[68].mxu1  ;;  %v1669_v21 = vpop.f32.mrb[69].mxu0 }
 0x171   : > { %v1135_v12 = vadd.f32 %v1096_v16, %v1011_v34  ;;  %v1675_v24 = vpop.f32.mrb[69].mxu1  ;;  %v1007_v14 = vpop.f32.mrb[70].mxu0 }
 0x172   : > { %v2049_v26 = vadd.f32 %v1007_v14, %v896_v6  ;;  %v1099_v23 = vpop.f32.mrb[70].mxu1  ;;  %v1670_v27 = vpop.f32.mrb[71].mxu0 }
 0x173   : > { %v1136_v20 = vadd.f32 %v1099_v23, %v1012_v40  ;;  %v1676_v29 = vpop.f32.mrb[71].mxu1 }
 0x177   : > { %v1220_v18 = vpop.f32.mrb[72].mxu0 }
 0x178   : > { %v1104_v31 = vpop.f32.mrb[72].mxu1  ;;  %v1259_v32 = vadd.f32 %v1220_v18, %v1135_v12  ;;  %v1697_v25 = vpop.f32.mrb[73].mxu0 }
 0x179   : > { %v1137_v33 = vadd.f32 %v1104_v31, %v1013_v46  ;;  %v1679_v34 = vpop.f32.mrb[73].mxu1  ;;  %v1223_v22 = vpop.f32.mrb[74].mxu0 }
 0x17a   : > { %v1276_v35 = vadd.f32 %v2054_v28, %v1259_v32  ;;  %v1107_v37 = vpop.f32.mrb[74].mxu1  ;;  %v1260_v30 = vadd.f32 %v1223_v22, %v1136_v20  ;;  %v1698_v38 = vpop.f32.mrb[75].mxu0 }
 0x17b   : > { %v1138_v40 = vadd.f32 %v1107_v37, %v1014_v52  ;;  %v1680_v0 = vpop.f32.mrb[75].mxu1 }
 0x17c   : > { %vm1286_vm3 = vcmp.ge.f32.partialorder %v1276_v35, 0.0  ;;  %v1296_v41 = vmul.f32 0.01, %v1276_v35  ;;  %v1277_v43 = vadd.f32 %v2054_v28, %v1260_v30 }
 0x17e   : > { %v1306_v36 = vsel %vm1286_vm3, %v1276_v35, %v1296_v41  ;;  %vm1287_vm5 = vcmp.ge.f32.partialorder %v1277_v43, 0.0  ;;  %v1297_v44 = vmul.f32 0.01, %v1277_v43 }
 0x17f   : > { %1317 = vst.msk [vmem:[%s2061_s16] sm:$0xff] %vm1316_vm4, %v1306_v36  ;;  %v1228_v46 = vpop.f32.mrb[76].mxu0 }
 0x180   : > { %v1307_v39 = vsel %vm1287_vm5, %v1277_v43, %v1297_v44  ;;  %v1112_v47 = vpop.f32.mrb[76].mxu1  ;;  %v1261_v49 = vadd.f32 %v1228_v46, %v1137_v33  ;;  %v1701_v42 = vpop.f32.mrb[77].mxu0 }
 0x181   : > { %1318 = vst.msk [vmem:[%s2061_s16 + $0x8] sm:$0xff] %vm1316_vm4, %v1307_v39  ;;  %v1139_v50 = vadd.f32 %v1112_v47, %v2039_v58  ;;  %v1683_v52 = vpop.f32.mrb[77].mxu1  ;;  %v1231_v45 = vpop.f32.mrb[78].mxu0 }
 0x182   : > { %v1278_v53 = vadd.f32 %v2054_v28, %v1261_v49  ;;  %v1115_v55 = vpop.f32.mrb[78].mxu1  ;;  %v1262_v48 = vadd.f32 %v1231_v45, %v1138_v40  ;;  %v1702_v56 = vpop.f32.mrb[79].mxu0 }
 0x183   : > { %v1140_v51 = vadd.f32 %v1115_v55, %v2041_v1  ;;  %v1684_v59 = vpop.f32.mrb[79].mxu1 }
 0x184   : > { %vm1288_vm6 = vcmp.ge.f32.partialorder %v1278_v53, 0.0  ;;  %v1298_v54 = vmul.f32 0.01, %v1278_v53  ;;  %v1279_v61 = vadd.f32 %v2054_v28, %v1262_v48 }
 0x186   : > { %v1308_v62 = vsel %vm1288_vm6, %v1278_v53, %v1298_v54  ;;  %vm1289_vm7 = vcmp.ge.f32.partialorder %v1279_v61, 0.0  ;;  %v1299_v57 = vmul.f32 0.01, %v1279_v61 }
 0x187   : > { %1319 = vst.msk [vmem:[%s2061_s16 + $0x10] sm:$0xff] %vm1316_vm4, %v1308_v62  ;;  %v1236_v58 = vpop.f32.mrb[80].mxu0 }
 0x188   : > { %v1309_v60 = vsel %vm1289_vm7, %v1279_v61, %v1299_v57  ;;  %v1120_v2 = vpop.f32.mrb[80].mxu1  ;;  %v1263_v4 = vadd.f32 %v1236_v58, %v1139_v50  ;;  %v1705_v5 = vpop.f32.mrb[81].mxu0 }
 0x189   : > { %1320 = vst.msk [vmem:[%s2061_s16 + $0x18] sm:$0xff] %vm1316_vm4, %v1309_v60  ;;  %v1141_v1 = vadd.f32 %v1120_v2, %v2043_v7  ;;  %v1687_v3 = vpop.f32.mrb[81].mxu1  ;;  %v1239_v63 = vpop.f32.mrb[82].mxu0 }
 0x18a   : > { %v1280_v8 = vadd.f32 %v2054_v28, %v1263_v4  ;;  %v1123_v10 = vpop.f32.mrb[82].mxu1  ;;  %v1264_v11 = vadd.f32 %v1239_v63, %v1140_v51  ;;  %v1706_v9 = vpop.f32.mrb[83].mxu0 }
 0x18b   : > { %v1142_v6 = vadd.f32 %v1123_v10, %v2045_v13  ;;  %v1688_v15 = vpop.f32.mrb[83].mxu1 }
 0x18c   : > { %vm1290_vm8 = vcmp.ge.f32.partialorder %v1280_v8, 0.0  ;;  %v1300_v17 = vmul.f32 0.01, %v1280_v8  ;;  %v1281_v16 = vadd.f32 %v2054_v28, %v1264_v11 }
 0x18e   : > { %v1310_v21 = vsel %vm1290_vm8, %v1280_v8, %v1300_v17  ;;  %vm1291_vm9 = vcmp.ge.f32.partialorder %v1281_v16, 0.0  ;;  %v1301_v12 = vmul.f32 0.01, %v1281_v16 }
 0x18f   : > { %1321 = vst.msk [vmem:[%s2061_s16 + $0x20] sm:$0xff] %vm1316_vm4, %v1310_v21  ;;  %v1244_v7 = vpop.f32.mrb[84].mxu0 }
 0x190   : > { %v1311_v24 = vsel %vm1291_vm9, %v1281_v16, %v1301_v12  ;;  %v1128_v14 = vpop.f32.mrb[84].mxu1  ;;  %v1265_v23 = vadd.f32 %v1244_v7, %v1141_v1  ;;  %v1709_v27 = vpop.f32.mrb[85].mxu0 }
 0x191   : > { %1322 = vst.msk [vmem:[%s2061_s16 + $0x28] sm:$0xff] %vm1316_vm4, %v1311_v24  ;;  %v1143_v13 = vadd.f32 %v1128_v14, %v2047_v19  ;;  %v1691_v20 = vpop.f32.mrb[85].mxu1  ;;  %v1247_v29 = vpop.f32.mrb[86].mxu0 }
 0x192   : > { %v1282_v18 = vadd.f32 %v2054_v28, %v1265_v23  ;;  %v1131_v31 = vpop.f32.mrb[86].mxu1  ;;  %v1266_v32 = vadd.f32 %v1247_v29, %v1142_v6  ;;  %v1710_v25 = vpop.f32.mrb[87].mxu0 }
 0x193   : > { %v1144_v33 = vadd.f32 %v1131_v31, %v2049_v26  ;;  %v1692_v34 = vpop.f32.mrb[87].mxu1 }
 0x194   : > { %vm1292_vm10 = vcmp.ge.f32.partialorder %v1282_v18, 0.0  ;;  %v1302_v22 = vmul.f32 0.01, %v1282_v18  ;;  %v1283_v35 = vadd.f32 %v2054_v28, %v1266_v32 }
 0x196   : > { %v1312_v37 = vsel %vm1292_vm10, %v1282_v18, %v1302_v22  ;;  %vm1293_vm11 = vcmp.ge.f32.partialorder %v1283_v35, 0.0  ;;  %v1303_v30 = vmul.f32 0.01, %v1283_v35 }
 0x197   : > { %1323 = vst.msk [vmem:[%s2061_s16 + $0x30] sm:$0xff] %vm1316_vm4, %v1312_v37  ;;  %v1252_v19 = vpop.f32.mrb[88].mxu0 }
 0x198   : > { %v1313_v38 = vsel %vm1293_vm11, %v1283_v35, %v1303_v30  ;;  %v1267_v40 = vadd.f32 %v1252_v19, %v1143_v13  ;;  %v1713_v0 = vpop.f32.mrb[89].mxu0 }
 0x199   : > { %1324 = vst.msk [vmem:[%s2061_s16 + $0x38] sm:$0xff] %vm1316_vm4, %v1313_v38  ;;  %v1255_v41 = vpop.f32.mrb[90].mxu0 }
 0x19a   : > { %v1284_v26 = vadd.f32 %v2054_v28, %v1267_v40  ;;  %v1268_v43 = vadd.f32 %v1255_v41, %v1144_v33  ;;  %v1714_v36 = vpop.f32.mrb[91].mxu0 }
 0x19c   : > { %vm1294_vm12 = vcmp.ge.f32.partialorder %v1284_v26, 0.0  ;;  %v1304_v44 = vmul.f32 0.01, %v1284_v26  ;;  %v1285_v46 = vadd.f32 %v2054_v28, %v1268_v43 }
 0x19e   : > { %v1314_v39 = vsel %vm1294_vm12, %v1284_v26, %v1304_v44  ;;  %vm1295_vm13 = vcmp.ge.f32.partialorder %v1285_v46, 0.0  ;;  %v1305_v47 = vmul.f32 0.01, %v1285_v46 }
 0x19f   : > { %1325 = vst.msk [vmem:[%s2061_s16 + $0x40] sm:$0xff] %vm1316_vm4, %v1314_v39 }
 0x1a0   : > { %v1315_v49 = vsel %vm1295_vm13, %v1285_v46, %v1305_v47 }
 0x1a1   : > { %1327 = vst.msk [vmem:[%s2061_s16 + $0x48] sm:$0x3f] %vm1326_vm14, %v1315_v49 }
 0x1a2 PF: > { %s13_s12 = sadd.s32 1, %s1744_s12  }
 0x1a3   : > { %p10_p4 = scmp.ge.s32.totalorder %s13_s12, 4  }
 0x1a5   :  { %12 = sbr.rel (!%p10_p4) target bundleno = 1 (0x1), region = 70 }

// kernel: _lambda_.7
= control target key start
LH: loop header
LB: loop body
LE: loop exit
PB: predicated region body
PF: predicated region fallthrough
CT: control target
= control target key end

     0   :  { %s685_s12 = smov 0   ;;  %s755_s0 = inlined_call_operand.vmem [shape: f32[2,25,32], index: 0, kind: input, shape index: {}]   ;;  %s756_s1 = inlined_call_operand.vmem [shape: bf16[4,32,8], index: 1, kind: input, shape index: {}]   ;;  %s757_s2 = inlined_call_operand.vmem [shape: f32[1,8], index: 2, kind: input, shape index: {}]   ;;  %s758_s3 = inlined_call_operand.vmem [shape: f32[2,19,8], index: 3, kind: output, shape index: {}]  }
   0x1 LB: > { %s552_s13 = sadd.s32 4294967295, %s663_s12   ;;  %p556_p0 = scmp.ge.s32.totalorder %s663_s12, 1  ;;  %s663_s12 = sphi %s685_s12, %s13_s12  }
   0x2   : > { %p137_p1 = scmp.lt.s32.totalorder %s663_s12, 3 }
   0x4   : > { %p138_p2 = pnand %p556_p0, %p137_p1 }
   0x5   : > { %v649_v0 = vld [vmem:[%s756_s1 + $0x10] sm:$0xff] (!%p138_p2)   ;;  %p161_p3 = scmp.lt.s32.totalorder (!%p138_p2), %s552_s13, 1  ;;  %v650_v1 = vld [vmem:[%s756_s1] sm:$0xff] (!%p138_p2)   ;;  %v651_v2 = vld [vmem:[%s756_s1 + $0x18] sm:$0xff] (!%p138_p2)   ;;  %vm203_vm0 = vcmask (!%p138_p2), 261120   ;;  %vm495_vm1 = vcmask (!%p138_p2), 59392  }
   0x6   : > { %141 = sbr.rel (%p138_p2) target bundleno = 250 (0xfa), region = 32  ;;  %608 = vmatprep.subr.bf16.mxu0 (!%p138_p2), %v649_v0  ;;  %616 = vmatprep.subr.bf16.mxu1 (!%p138_p2), %v650_v1  ;;  %v652_v3 = vld [vmem:[%s756_s1 + $0x8] sm:$0xff] (!%p138_p2)   ;;  %v653_v4 = vld [vmem:[%s756_s1 + $0x20] sm:$0xff] (!%p138_p2)   ;;  %v654_v5 = vld [vmem:[%s756_s1 + $0x30] sm:$0xff] (!%p138_p2)   ;;  %vm492_vm2 = vcmask (!%p138_p2), 64512  }
   0x7   : > { %609 = vmatpush3.bf16.msra.mxu0 (!%p138_p2), %v649_v0  ;;  %617 = vmatpush3.bf16.msra.mxu1 (!%p138_p2), %v650_v1  ;;  %v655_v16 = vld [vmem:[%s756_s1 + $0x28] sm:$0xff] (!%p138_p2)   ;;  %v656_v17 = vld [vmem:[%s756_s1 + $0x38] sm:$0xff] (!%p138_p2)   ;;  %v588_v43 = vld [vmem:[%s757_s2] ss:$0 sm:$0xff] (!%p138_p2) }
   0x8   : > { %610 = vmatprep.subr.bf16.mxu0 (!%p138_p2), %v651_v2  ;;  %618 = vmatprep.subr.bf16.mxu1 (!%p138_p2), %v652_v3 }
   0xb   : > { %611 = vmatpush3.bf16.msra.mxu0 (!%p138_p2), %v651_v2  ;;  %619 = vmatpush3.bf16.msra.mxu1 (!%p138_p2), %v652_v3 }
   0xc   : > { %624 = vmatprep.subr.bf16.mxu0 (!%p138_p2), %v653_v4  ;;  %632 = vmatprep.subr.bf16.mxu1 (!%p138_p2), %v654_v5 }
   0xd   : > { %s760_s13 = smov (!%p161_p3, %s552_s13), 1 }
   0xe   : > { %s591_s22 = sshll.u32 %s760_s13, 5  ;;  %s640_s7 = smul.u32 24, %s760_s13 }
   0xf   : > { %s714_s27 = scalar_lea.vmem %s755_s0, %s591_s22 }
  0x10   : > { %v181_v6 = vld [vmem:[%s714_s27 + $0x1] sm:$0xff]  ;;  %v182_v7 = vld [vmem:[%s714_s27 + $0x9] sm:$0xff]  ;;  %v183_v11 = vld [vmem:[%s714_s27 + $0x11] sm:$0x7]  ;;  %s170_s14 = scalar_lea.vmem %s758_s3, %s640_s7 }
  0x11   : > { %v172_v8 = vld [vmem:[%s714_s27] sm:$0xff]  ;;  %v184_v9 = vpack.c.bf16 %v182_v7, %v181_v6  ;;  %v173_v10 = vld [vmem:[%s714_s27 + $0x8] sm:$0xff]  ;;  %v174_v12 = vld [vmem:[%s714_s27 + $0x10] sm:$0x7]  ;;  %v185_v14 = vpack.c.bf16 %v183_v11, %v183_v11 }
  0x12   : > { %v175_v13 = vpack.c.bf16 %v173_v10, %v172_v8  ;;  %v176_v15 = vpack.c.bf16 %v174_v12, %v174_v12  ;;  %v324_v18 = vld [vmem:[%s714_s27 + $0x5] sm:$0xff]  ;;  %v325_v19 = vld [vmem:[%s714_s27 + $0xd] sm:$0xff]  ;;  %v326_v23 = vld [vmem:[%s714_s27 + $0x15] sm:$0x7] }
  0x13   : > { %612 = vmatprep.mubr.msk.bf16.mxu0 %vm203_vm0, %v184_v9  ;;  %v403_v20 = vld [vmem:[%s714_s27 + $0x6] sm:$0xff]  ;;  %v327_v21 = vpack.c.bf16 %v325_v19, %v324_v18  ;;  %v404_v22 = vld [vmem:[%s714_s27 + $0xe] sm:$0xff]  ;;  %v405_v25 = vld [vmem:[%s714_s27 + $0x16] sm:$0x7]  ;;  %v328_v26 = vpack.c.bf16 %v326_v23, %v326_v23 }
  0x14   : > { %620 = vmatprep.mubr.msk.bf16.mxu1 %vm203_vm0, %v175_v13  ;;  %613 = vmatmul.mubr.msk.bf16.vlgmr.msra.gmra.mrb[0].mxu0 %vm203_vm0, %v185_v14  ;;  %v406_v24 = vpack.c.bf16 %v404_v22, %v403_v20  ;;  %v407_v27 = vpack.c.bf16 %v405_v25, %v405_v25 }
  0x15   : > { %621 = vmatmul.mubr.msk.bf16.vlgmr.msra.gmra.mrb[0].mxu1 %vm203_vm0, %v176_v15  ;;  %625 = vmatpush3.bf16.msra.mxu0 %v653_v4 }
  0x16   : > { %633 = vmatpush3.bf16.msra.mxu1 %v654_v5  ;;  %626 = vmatprep.subr.bf16.mxu0 %v655_v16 }
  0x17   : > { %634 = vmatprep.subr.bf16.mxu1 %v656_v17  ;;  %628 = vmatprep.mubr.msk.bf16.mxu0 %vm203_vm0, %v327_v21 }
  0x18   : > { %636 = vmatprep.mubr.msk.bf16.mxu1 %vm203_vm0, %v406_v24 }
  0x19   : > { %627 = vmatpush3.bf16.msra.mxu0 %v655_v16 }
  0x1a   : > { %635 = vmatpush3.bf16.msra.mxu1 %v656_v17 }
  0x1c   : > { %629 = vmatmul.mubr.msk.bf16.vlgmr.msra.gmra.mrb[4].mxu0 %vm203_vm0, %v328_v26 }
  0x1d   : > { %637 = vmatmul.mubr.msk.bf16.vlgmr.msra.gmra.mrb[4].mxu1 %vm203_vm0, %v407_v27 }
  0xe7   : > { %v614_v28 = vpop.f32.mrb[0].mxu0 }
  0xe8   : > { %v622_v29 = vpop.f32.mrb[0].mxu1  ;;  %v244_v30 = vpop.f32.mrb[1].mxu0 }
  0xe9   : > { %v319_v31 = vadd.f32 %v622_v29, %v614_v28  ;;  %v310_v32 = vpop.f32.mrb[1].mxu1  ;;  %v615_v33 = vpop.f32.mrb[2].mxu0 }
  0xea   : > { %v311_v34 = vadd.f32 %v310_v32, %v244_v30  ;;  %v623_v35 = vpop.f32.mrb[2].mxu1  ;;  %v247_v36 = vpop.f32.mrb[3].mxu0 }
  0xeb   : > { %v313_v37 = vpop.f32.mrb[3].mxu1 }
  0xec   : > { %v314_v38 = vadd.f32 %v313_v37, %v247_v36 }
  0xef   : > { %v630_v39 = vpop.f32.mrb[4].mxu0 }
  0xf0   : > { %v402_v40 = vadd.f32 %v630_v39, %v319_v31  ;;  %v638_v41 = vpop.f32.mrb[4].mxu1  ;;  %v386_v42 = vpop.f32.mrb[5].mxu0 }
  0xf1   : > { %v400_v44 = vadd.f32 %v386_v42, %v311_v34  ;;  %v465_v45 = vpop.f32.mrb[5].mxu1  ;;  %v631_v46 = vpop.f32.mrb[6].mxu0 }
  0xf2   : > { %v481_v47 = vadd.f32 %v638_v41, %v402_v40  ;;  %v639_v48 = vpop.f32.mrb[6].mxu1  ;;  %v389_v49 = vpop.f32.mrb[7].mxu0 }
  0xf3   : > { %v479_v50 = vadd.f32 %v465_v45, %v400_v44  ;;  %v401_v51 = vadd.f32 %v389_v49, %v314_v38  ;;  %v468_v52 = vpop.f32.mrb[7].mxu1 }
  0xf4   : > { %v491_v53 = vadd.f32 %v588_v43, %v481_v47 }
  0xf5   : > { %v489_v54 = vadd.f32 %v588_v43, %v479_v50  ;;  %v480_v55 = vadd.f32 %v468_v52, %v401_v51 }
  0xf6   : > { %496 = vst.msk [vmem:[%s170_s14 + $0x10] sm:$0x7] %vm495_vm1, %v491_v53 }
  0xf7   : > { %493 = vst.msk [vmem:[%s170_s14] sm:$0xff] %vm492_vm2, %v489_v54  ;;  %v490_v56 = vadd.f32 %v588_v43, %v480_v55 }
  0xf9   : > { %494 = vst.msk [vmem:[%s170_s14 + $0x8] sm:$0xff] %vm492_vm2, %v490_v56 }
  0xfa PF: > { %s13_s12 = sadd.s32 1, %s663_s12  }
  0xfb   : > { %p10_p4 = scmp.ge.s32.totalorder %s13_s12, 4  }
  0xfd   :  { %12 = sbr.rel (!%p10_p4) target bundleno = 1 (0x1), region = 65 }

// kernel: _lambda_.8
= control target key start
LH: loop header
LB: loop body
LE: loop exit
PB: predicated region body
PF: predicated region fallthrough
CT: control target
= control target key end

     0   :  { %s2940_s27 = smov 0   ;;  %s3399_s0 = inlined_call_operand.vmem [shape: f32[2,52,8], index: 0, kind: input, shape index: {}]   ;;  %s3400_s1 = inlined_call_operand.vmem [shape: f32[36,1], index: 1, kind: input, shape index: {}]   ;;  %s3401_s2 = inlined_call_operand.vmem [shape: bf16[1,8,16], index: 2, kind: input, shape index: {}]   ;;  %s3402_s3 = inlined_call_operand.vmem [shape: f32[1,16], index: 3, kind: input, shape index: {}]   ;;  %s3403_s4 = inlined_call_operand.vmem [shape: bf16[9,16,16], index: 4, kind: input, shape index: {}]   ;;  %s3404_s5 = inlined_call_operand.vmem [shape: f32[1,16], index: 5, kind: input, shape index: {}]   ;;  %s3405_s6 = inlined_call_operand.vmem [shape: bf16[9,16,16], index: 6, kind: input, shape index: {}]   ;;  %s3406_s7 = inlined_call_operand.vmem [shape: f32[1,16], index: 7, kind: input, shape index: {}]   ;;  %s3407_s8 = inlined_call_operand.vmem [shape: f32[2,52,16], index: 8, kind: output, shape index: {}]  }
   0x1 LB: > { %s2389_s28 = sadd.s32 4294967295, %s2890_s27   ;;  %p2393_p0 = scmp.ge.s32.totalorder %s2890_s27, 1  ;;  %s2890_s27 = sphi %s2940_s27, %s18_s27  }
   0x2   : > { %p262_p1 = scmp.lt.s32.totalorder %s2890_s27, 3 }
   0x4   : > { %p263_p2 = pnand %p2393_p0, %p262_p1 }
   0x5   : > { %v345_v0 = vld [vmem:[%s3401_s2] sm:$0xf] (!%p263_p2)  ;;  %vm362_vm0 = vcmask (!%p263_p2), 1043456   ;;  %p296_p3 = scmp.lt.s32.totalorder (!%p263_p2), %s2389_s28, 1  ;;  %v2892_v1 = vmov (!%p263_p2), 0.0   ;;  %vm312_vm1 = vcmask (!%p263_p2), 130048  }
   0x6   : > { %266 = sbr.rel (%p263_p2) target bundleno = 931 (0x3a3), region = 52  ;;  %2584 = vmatprep.subr.bf16.mxu0 (!%p263_p2), %v2892_v1  ;;  %2850 = vmatprep.subr.bf16.mxu1 (!%p263_p2), %v2892_v1  ;;  %v364_v2 = vsel (!%p263_p2), %vm362_vm0, %v345_v0, 0  ;;  %313 = vst.msk [vmem:[#allocation2] sm:$0xff] (!%p263_p2), %vm312_vm1, %v2892_v1  ;;  %314 = vst.msk [vmem:[#allocation2 + $0x8] sm:$0xff] (!%p263_p2), %vm312_vm1, %v2892_v1  ;;  %vm328_vm2 = vcmask (!%p263_p2), 64512   ;;  %v307_v3 = vld [vmem:[%s3400_s1] sm:$0xff] (!%p263_p2) }
   0x7   : > { %2585 = vmatpush3.bf16.msra.mxu0 (!%p263_p2), %v364_v2  ;;  %2851 = vmatpush3.bf16.msra.mxu1 (!%p263_p2), %v364_v2  ;;  %315 = vst.msk [vmem:[#allocation2 + $0x10] sm:$0xff] (!%p263_p2), %vm312_vm1, %v2892_v1  ;;  %316 = vst.msk [vmem:[#allocation2 + $0x18] sm:$0xff] (!%p263_p2), %vm312_vm1, %v2892_v1  ;;  %v309_v4 = vld [vmem:[%s3400_s1 + $0x10] sm:$0xff] (!%p263_p2)  ;;  %vm2893_vm3 = vmmov (!%p263_p2), 0   ;;  %v2894_v5 = vmov (!%p263_p2), 0   ;;  %v308_v6 = vld [vmem:[%s3400_s1 + $0x8] sm:$0xff] (!%p263_p2) }
   0x8   : > { %317 = vst.msk [vmem:[#allocation2 + $0x20] sm:$0xff] (!%p263_p2), %vm312_vm1, %v2892_v1  ;;  %318 = vst.msk [vmem:[#allocation2 + $0x28] sm:$0xff] (!%p263_p2), %vm312_vm1, %v2892_v1  ;;  %2586 = vmatprep.mubr.msk.bf16.mxu0 (!%p263_p2), %vm2893_vm3, %v2892_v1  ;;  %2590 = vmatprep.mubr.msk.bf16.mxu1 (!%p263_p2), %vm2893_vm3, %v2892_v1  ;;  %v310_v7 = vld [vmem:[%s3400_s1 + $0x18] sm:$0xff] (!%p263_p2)  ;;  %v311_v14 = vld [vmem:[%s3400_s1 + $0x20] sm:$0xf] (!%p263_p2)  ;;  %vm319_vm4 = vcmask (!%p263_p2), 125952  }
   0x9   : > { %2864 = vset.pattern.permute.xlu0 (!%p263_p2), %v2894_v5  ;;  %2865 = vset.pattern.permute.xlu1 (!%p263_p2), %v2894_v5  ;;  %v2866_v23 = vld [vmem:[%s3403_s4 + $0x8] sm:$0xff] (!%p263_p2)   ;;  %vm335_vm5 = vcmask (!%p263_p2), 60416   ;;  %320 = vst.msk [vmem:[#allocation2 + $0x30] sm:$0xf] (!%p263_p2), %vm319_vm4, %v2892_v1  ;;  %v2867_v26 = vld [vmem:[%s3403_s4] sm:$0xff] (!%p263_p2)   ;;  %v2868_v5 = vld [vmem:[%s3403_s4 + $0x10] sm:$0xff] (!%p263_p2)  }
   0xa   : > { %424 = vperm.xlu0 (!%p263_p2), %2864, %v307_v3   ;;  %434 = vperm.xlu1 (!%p263_p2), %2865, %v309_v4   ;;  %v2396_v30 = vld [vmem:[%s3402_s3] ss:$0 sm:$0xff] (!%p263_p2) }
   0xb   : > { %2598 = vmatprep.subr.bf16.mxu1 (!%p263_p2), %v2892_v1  ;;  %2612 = vmatprep.subr.bf16.mxu0 (!%p263_p2), %v2892_v1 }
   0xd   : > { %s3409_s28 = smov (!%p296_p3, %s2389_s28), 1 }
   0xe   : > { %s2852_s13 = smul.u32 56, %s3409_s28  ;;  %429 = vperm.xlu0 %2864, %v308_v6   ;;  %439 = vperm.xlu1 %2865, %v310_v7  }
  0x10   : > { %s2989_s20 = scalar_lea.vmem %s3399_s0, %s2852_s13  ;;  %s3029_s29 = scalar_lea.vmem %s3407_s8, %s2852_s13 }
  0x11   : > { %v321_v8 = vld [vmem:[%s2989_s20] sm:$0xff]  ;;  %v322_v9 = vld [vmem:[%s2989_s20 + $0x8] sm:$0xff]  ;;  %v323_v10 = vld [vmem:[%s2989_s20 + $0x10] sm:$0xff] }
  0x12   : > { %v324_v11 = vld [vmem:[%s2989_s20 + $0x18] sm:$0xff]  ;;  %v325_v12 = vld [vmem:[%s2989_s20 + $0x20] sm:$0xff]  ;;  %v326_v13 = vld [vmem:[%s2989_s20 + $0x28] sm:$0xff]  ;;  %329 = vst.msk [vmem:[#allocation2] sm:$0xff] %vm328_vm2, %v321_v8  ;;  %444 = vperm.xlu0 %2864, %v311_v14  }
  0x13   : > { %330 = vst.msk [vmem:[#allocation2 + $0x8] sm:$0xff] %vm328_vm2, %v322_v9  ;;  %331 = vst.msk [vmem:[#allocation2 + $0x10] sm:$0xff] %vm328_vm2, %v323_v10  ;;  %v327_v24 = vld [vmem:[%s2989_s20 + $0x30] sm:$0xf]  ;;  %v2869_v14 = vld [vmem:[%s3403_s4 + $0x18] sm:$0xff]  }
  0x14   : > { %332 = vst.msk [vmem:[#allocation2 + $0x18] sm:$0xff] %vm328_vm2, %v324_v11  ;;  %333 = vst.msk [vmem:[#allocation2 + $0x20] sm:$0xff] %vm328_vm2, %v325_v12 }
  0x15   : > { %334 = vst.msk [vmem:[#allocation2 + $0x28] sm:$0xff] %vm328_vm2, %v326_v13 }
  0x16   : > { %336 = vst.msk [vmem:[#allocation2 + $0x30] sm:$0xf] %vm335_vm5, %v327_v24 }
  0x19   : > { %v2320_v25 = vld [vmem:[#allocation2] sm:$0xff] }
  0x1a   : > { %v337_v15 = vld [vmem:[#allocation2 + $0x8] sm:$0xff]  ;;  %v338_v16 = vld [vmem:[#allocation2 + $0x10] sm:$0xff]  ;;  %2327 = vst.msk [vmem:[%s3029_s29] sm:$0xff] %vm312_vm1, %v2320_v25 }
  0x1b   : > { %v342_v17 = vpack.c.bf16 %v338_v16, %v337_v15  ;;  %v339_v18 = vld [vmem:[#allocation2 + $0x18] sm:$0xff]  ;;  %v340_v19 = vld [vmem:[#allocation2 + $0x20] sm:$0xff] }
  0x1c   : > { %v343_v20 = vpack.c.bf16 %v340_v19, %v339_v18  ;;  %v341_v21 = vld [vmem:[#allocation2 + $0x28] sm:$0xf] }
  0x1d   : > { %2587 = vmatmul.mubr.msk.bf16.vlgmr.msra.gmra.mrb[0].mxu0 %vm328_vm2, %v342_v17  ;;  %v344_v22 = vpack.c.bf16 %v341_v21, %v341_v21  ;;  %v2326_v27 = vld [vmem:[#allocation2 + $0x30] sm:$0xf] }
  0x1e   : > { %2591 = vmatmul.mubr.msk.bf16.vlgmr.msra.gmra.mrb[0].mxu1 %vm328_vm2, %v343_v20  ;;  %2614 = vmatprep.mubr.msk.bf16.mxu0 %vm2893_vm3, %v2892_v1  ;;  %2333 = vst.msk [vmem:[%s3029_s29 + $0x30] sm:$0xf] %vm319_vm4, %v2326_v27 }
  0x1f   : > { %2594 = vmatprep.mubr.msk.bf16.mxu1 %vm2893_vm3, %v2892_v1  ;;  %2599 = vmatpush3.bf16.msra.mxu1 %v2866_v23 }
  0x20   : > { %2626 = vmatprep.subr.bf16.mxu1 %v2892_v1  ;;  %2613 = vmatpush3.bf16.msra.mxu0 %v2867_v26 }
  0x21   : > { %2640 = vmatprep.subr.bf16.mxu0 %v2892_v1 }
  0x26   : > { %2595 = vmatmul.mubr.msk.bf16.gmra.mrb[4].mxu1 %vm328_vm2, %v344_v22 }
  0x27   : > { %2600 = vmatprep.mubr.msk.bf16.mxu1 %vm2893_vm3, %v2892_v1 }
  0x89   : > { %v3039_v28 = vpop.permute.xlu1 %434  ;;  %v3041_v29 = vpop.permute.xlu0 %424 }
  0x8d   : > { %v3046_v32 = vpop.permute.xlu1 %439  ;;  %v3049_v43 = vpop.permute.xlu0 %429 }
  0x91   : > { %v3058_v52 = vpop.permute.xlu0 %444 }
  0xf0   : > { %v400_v31 = vpop.f32.mrb[0].mxu0 }
  0xf1   : > { %v401_v33 = vadd.f32 %v2396_v30, %v400_v31  ;;  %v408_v34 = vpop.f32.mrb[0].mxu1  ;;  %v2588_v35 = vpop.f32.mrb[1].mxu0 }
  0xf2   : > { %v409_v36 = vadd.f32 %v2396_v30, %v408_v34  ;;  %v2592_v37 = vpop.f32.mrb[1].mxu1  ;;  %v403_v38 = vpop.f32.mrb[2].mxu0 }
  0xf3   : > { %v447_v39 = vmul.f32 %v3041_v29, %v401_v33  ;;  %v404_v40 = vadd.f32 %v2396_v30, %v403_v38  ;;  %v411_v41 = vpop.f32.mrb[2].mxu1  ;;  %v2589_v42 = vpop.f32.mrb[3].mxu0 }
  0xf4   : > { %v449_v44 = vmul.f32 %v3039_v28, %v409_v36  ;;  %v412_v45 = vadd.f32 %v2396_v30, %v411_v41  ;;  %v2593_v46 = vpop.f32.mrb[3].mxu1 }
  0xf5   : > { %452 = vst.msk [vmem:[#allocation2 + $0x8] sm:$0xff] %vm312_vm1, %v447_v39  ;;  %v448_v47 = vmul.f32 %v3049_v43, %v404_v40 }
  0xf6   : > { %454 = vst.msk [vmem:[#allocation2 + $0x18] sm:$0xff] %vm312_vm1, %v449_v44  ;;  %v450_v48 = vmul.f32 %v3046_v32, %v412_v45 }
  0xf7   : > { %453 = vst.msk [vmem:[#allocation2 + $0x10] sm:$0xff] %vm312_vm1, %v448_v47 }
  0xf8   : > { %455 = vst.msk [vmem:[#allocation2 + $0x20] sm:$0xff] %vm312_vm1, %v450_v48  ;;  %v2870_v48 = vld [vmem:[%s3403_s4 + $0x20] sm:$0xff]  }
  0xf9   : > { %v416_v49 = vpop.f32.mrb[4].mxu1 }
  0xfa   : > { %v417_v50 = vadd.f32 %v2396_v30, %v416_v49  ;;  %v2596_v51 = vpop.f32.mrb[5].mxu1 }
  0xfb   : > { %v419_v53 = vpop.f32.mrb[6].mxu1 }
  0xfc   : > { %v451_v54 = vmul.f32 %v3058_v52, %v417_v50  ;;  %v487_v55 = vld [vmem:[#allocation2 + $0x2] sm:$0xff]  ;;  %v2597_v57 = vpop.f32.mrb[7].mxu1 }
  0xfd   : > { %v462_v56 = vld [vmem:[#allocation2 + $0x1] sm:$0xff]  ;;  %v497_v58 = vmul.f32 0.01, %v487_v55  ;;  %vm492_vm6 = vcmp.ge.f32.partialorder %v487_v55, 0.0 }
  0xfe   : > { %456 = vst.msk [vmem:[#allocation2 + $0x28] sm:$0xf] %vm319_vm4, %v451_v54  ;;  %v488_v59 = vld [vmem:[#allocation2 + $0xa] sm:$0xff]  ;;  %v472_v61 = vmul.f32 0.01, %v462_v56  ;;  %vm467_vm8 = vcmp.ge.f32.partialorder %v462_v56, 0.0 }
  0xff   : > { %v463_v60 = vld [vmem:[#allocation2 + $0x9] sm:$0xff]  ;;  %vm493_vm7 = vcmp.ge.f32.partialorder %v488_v59, 0.0  ;;  %v498_v62 = vmul.f32 0.01, %v488_v59  ;;  %v489_v0 = vld [vmem:[#allocation2 + $0x12] sm:$0xff]  ;;  %v490_v2 = vld [vmem:[#allocation2 + $0x1a] sm:$0xff]  ;;  %v502_v3 = vsel %vm492_vm6, %v487_v55, %v497_v58 }
 0x100   : > { %vm468_vm9 = vcmp.ge.f32.partialorder %v463_v60, 0.0  ;;  %v473_v63 = vmul.f32 0.01, %v463_v60  ;;  %v464_v6 = vld [vmem:[#allocation2 + $0x11] sm:$0xff]  ;;  %v465_v7 = vld [vmem:[#allocation2 + $0x19] sm:$0xff]  ;;  %v477_v9 = vsel %vm467_vm8, %v462_v56, %v472_v61  ;;  %vm494_vm10 = vcmp.ge.f32.partialorder %v489_v0, 0.0 }
 0x101   : > { %v503_v4 = vsel %vm493_vm7, %v488_v59, %v498_v62  ;;  %v499_v12 = vmul.f32 0.01, %v489_v0  ;;  %v500_v13 = vmul.f32 0.01, %v490_v2  ;;  %vm495_vm11 = vcmp.ge.f32.partialorder %v490_v2, 0.0  ;;  %v656_v31 = vld [vmem:[#allocation2 + $0xb] sm:$0xff] }
 0x102   : > { %v507_v8 = vpack.c.bf16 %v503_v4, %v502_v3  ;;  %v3065_v10 = vsel %vm468_vm9, %v463_v60, %v473_v63  ;;  %v474_v15 = vmul.f32 0.01, %v464_v6  ;;  %v475_v16 = vmul.f32 0.01, %v465_v7  ;;  %v491_v21 = vld [vmem:[#allocation2 + $0x22] sm:$0xf] }
 0x103   : > { %v482_v11 = vpack.c.bf16 %v3065_v10, %v477_v9  ;;  %vm469_vm12 = vcmp.ge.f32.partialorder %v464_v6, 0.0  ;;  %vm470_vm13 = vcmp.ge.f32.partialorder %v465_v7, 0.0  ;;  %v504_v17 = vsel %vm494_vm10, %v489_v0, %v499_v12  ;;  %v466_v22 = vld [vmem:[#allocation2 + $0x21] sm:$0xf]  ;;  %v758_v33 = vld [vmem:[#allocation2 + $0xf] sm:$0xff]  ;;  %v757_v38 = vld [vmem:[#allocation2 + $0x7] sm:$0xff] }
 0x104   : > { %2601 = vmatmul.mubr.msk.bf16.vlgmr.msra.gmra.mrb[8].mxu1 %vm312_vm1, %v507_v8  ;;  %v505_v18 = vsel %vm495_vm11, %v490_v2, %v500_v13  ;;  %v3078_v19 = vsel %vm469_vm12, %v464_v6, %v474_v15  ;;  %v3080_v20 = vsel %vm470_vm13, %v465_v7, %v475_v16  ;;  %v501_v25 = vmul.f32 0.01, %v491_v21  ;;  %v655_v35 = vld [vmem:[#allocation2 + $0x3] sm:$0xff]  ;;  %v657_v45 = vld [vmem:[#allocation2 + $0x13] sm:$0xff]  ;;  %v658_v46 = vld [vmem:[#allocation2 + $0x1b] sm:$0xff] }
 0x105   : > { %2615 = vmatmul.mubr.msk.bf16.vlgmr.msra.gmra.mrb[4].mxu0 %vm312_vm1, %v482_v11  ;;  %2627 = vmatpush3.bf16.msra.mxu1 %v2868_v5  ;;  %v508_v23 = vpack.c.bf16 %v505_v18, %v504_v17  ;;  %v483_v24 = vpack.c.bf16 %v3080_v20, %v3078_v19  ;;  %vm496_vm14 = vcmp.ge.f32.partialorder %v491_v21, 0.0  ;;  %v476_v26 = vmul.f32 0.01, %v466_v22  ;;  %v759_v49 = vld [vmem:[#allocation2 + $0x17] sm:$0xff]  ;;  %v760_v50 = vld [vmem:[#allocation2 + $0x1f] sm:$0xff]  ;;  %v2871_v57 = vld [vmem:[%s3403_s4 + $0x28] sm:$0xff]  }
 0x106   : > { %2604 = vmatprep.mubr.msk.bf16.mxu1 %vm2893_vm3, %v2892_v1  ;;  %2618 = vmatprep.mubr.msk.bf16.mxu0 %vm2893_vm3, %v2892_v1  ;;  %vm471_vm15 = vcmp.ge.f32.partialorder %v466_v22, 0.0  ;;  %v506_v27 = vsel %vm496_vm14, %v491_v21, %v501_v25  ;;  %v666_v37 = vmul.f32 0.01, %v656_v31  ;;  %vm661_vm0 = vcmp.ge.f32.partialorder %v656_v31, 0.0  ;;  %v659_v0 = vld [vmem:[#allocation2 + $0x23] sm:$0xf] }
 0x107   : > { %2641 = vmatpush3.bf16.msra.mxu0 %v2869_v14  ;;  %2654 = vmatprep.subr.bf16.mxu1 %v2892_v1  ;;  %v481_v30 = vsel %vm471_vm15, %v466_v22, %v476_v26  ;;  %v509_v34 = vpack.c.bf16 %v506_v27, %v506_v27  ;;  %v768_v39 = vmul.f32 0.01, %v758_v33  ;;  %v665_v40 = vmul.f32 0.01, %v655_v35  ;;  %v761_v2 = vld [vmem:[#allocation2 + $0x27] sm:$0xf] }
 0x108   : > { %2668 = vmatprep.subr.bf16.mxu0 %v2892_v1  ;;  %v484_v36 = vpack.c.bf16 %v481_v30, %v481_v30  ;;  %vm763_vm2 = vcmp.ge.f32.partialorder %v758_v33, 0.0  ;;  %vm660_vm5 = vcmp.ge.f32.partialorder %v655_v35, 0.0  ;;  %v767_v41 = vmul.f32 0.01, %v757_v38  ;;  %v3126_v9 = vld [vmem:[#allocation2 + $0x10] sm:$0xff]  ;;  %v3128_v12 = vld [vmem:[#allocation2 + $0x8] sm:$0xff] }
 0x109   : > { %v671_v42 = vsel %vm661_vm0, %v656_v31, %v666_v37  ;;  %vm762_vm6 = vcmp.ge.f32.partialorder %v757_v38, 0.0  ;;  %v3097_v44 = vsel %vm763_vm2, %v758_v33, %v768_v39  ;;  %v670_v47 = vsel %vm660_vm5, %v655_v35, %v665_v40  ;;  %v3141_v17 = vld [vmem:[#allocation2 + $0x18] sm:$0xff]  ;;  %v3143_v18 = vld [vmem:[#allocation2 + $0x20] sm:$0xff]  ;;  %v2872_v22 = vld [vmem:[%s3403_s4 + $0x30] sm:$0xff]  }
 0x10a   : > { %v675_v51 = vpack.c.bf16 %v671_v42, %v670_v47  ;;  %v772_v53 = vsel %vm762_vm6, %v757_v38, %v767_v41  ;;  %v667_v55 = vmul.f32 0.01, %v657_v45  ;;  %v668_v56 = vmul.f32 0.01, %v658_v46  ;;  %v2873_v30 = vld [vmem:[%s3403_s4 + $0x38] sm:$0xff]  }
 0x10b   : > { %v777_v54 = vpack.c.bf16 %v3097_v44, %v772_v53  ;;  %vm662_vm7 = vcmp.ge.f32.partialorder %v657_v45, 0.0  ;;  %vm663_vm8 = vcmp.ge.f32.partialorder %v658_v46, 0.0  ;;  %v769_v58 = vmul.f32 0.01, %v759_v49  ;;  %v960_v35 = vld [vmem:[#allocation2 + $0x29] sm:$0xf] }
 0x10c   : > { %2605 = vmatmul.mubr.msk.bf16.gmra.mrb[12].mxu1 %vm312_vm1, %v508_v23  ;;  %v770_v59 = vmul.f32 0.01, %v760_v50  ;;  %vm764_vm9 = vcmp.ge.f32.partialorder %v759_v49, 0.0  ;;  %vm765_vm10 = vcmp.ge.f32.partialorder %v760_v50, 0.0  ;;  %v672_v60 = vsel %vm662_vm7, %v657_v45, %v667_v55  ;;  %v959_v23 = vld [vmem:[#allocation2 + $0x21] sm:$0xff]  ;;  %v1059_v42 = vld [vmem:[#allocation2 + $0x15] sm:$0xff] }
 0x10d   : > { %2619 = vmatmul.mubr.msk.bf16.gmra.mrb[8].mxu0 %vm312_vm1, %v483_v24  ;;  %2608 = vmatprep.mubr.msk.bf16.mxu1 %vm2893_vm3, %v2892_v1  ;;  %v673_v61 = vsel %vm663_vm8, %v658_v46, %v668_v56  ;;  %v3113_v62 = vsel %vm764_vm9, %v759_v49, %v769_v58  ;;  %v669_v5 = vmul.f32 0.01, %v659_v0  ;;  %vm664_vm11 = vcmp.ge.f32.partialorder %v659_v0, 0.0  ;;  %v1160_v45 = vld [vmem:[#allocation2 + $0xe] sm:$0xff]  ;;  %v1161_v46 = vld [vmem:[#allocation2 + $0x16] sm:$0xff]  ;;  %v1061_v58 = vld [vmem:[#allocation2 + $0x25] sm:$0xff] }
 0x10e   : > { %2622 = vmatprep.mubr.msk.bf16.mxu0 %vm2893_vm3, %v2892_v1  ;;  %v3115_v63 = vsel %vm765_vm10, %v760_v50, %v770_v59  ;;  %v676_v3 = vpack.c.bf16 %v673_v61, %v672_v60  ;;  %v771_v6 = vmul.f32 0.01, %v761_v2  ;;  %vm766_vm12 = vcmp.ge.f32.partialorder %v761_v2, 0.0  ;;  %v2874_v59 = vld [vmem:[%s3403_s4 + $0x40] sm:$0xff]  }
 0x10f   : > { %v778_v4 = vpack.c.bf16 %v3115_v63, %v3113_v62  ;;  %v674_v7 = vsel %vm664_vm11, %v659_v0, %v669_v5  ;;  %v865_v14 = vmul.f32 0.01, %v3126_v9  ;;  %vm860_vm13 = vcmp.ge.f32.partialorder %v3126_v9, 0.0  ;;  %v1163_v60 = vld [vmem:[#allocation2 + $0x26] sm:$0xff]  ;;  %v1060_v0 = vld [vmem:[#allocation2 + $0x1d] sm:$0xff] }
 0x110   : > { %v776_v8 = vsel %vm766_vm12, %v761_v2, %v771_v6  ;;  %v677_v11 = vpack.c.bf16 %v674_v7, %v674_v7  ;;  %v864_v15 = vmul.f32 0.01, %v3128_v12  ;;  %vm859_vm14 = vcmp.ge.f32.partialorder %v3128_v12, 0.0 }
 0x111   : > { %v779_v13 = vpack.c.bf16 %v776_v8, %v776_v8  ;;  %v870_v16 = vsel %vm860_vm13, %v3126_v9, %v865_v14  ;;  %v976_v25 = vpack.c.bf16 %v3078_v19, %v3065_v10  ;;  %v866_v26 = vmul.f32 0.01, %v3141_v17  ;;  %v1062_v8 = vld [vmem:[#allocation2 + $0x2d] sm:$0xf] }
 0x112   : > { %v869_v21 = vsel %vm859_vm14, %v3128_v12, %v864_v15  ;;  %v867_v27 = vmul.f32 0.01, %v3143_v18  ;;  %vm861_vm15 = vcmp.ge.f32.partialorder %v3141_v17, 0.0  ;;  %vm862_vm0 = vcmp.ge.f32.partialorder %v3143_v18, 0.0 }
 0x113   : > { %v874_v24 = vpack.c.bf16 %v870_v16, %v869_v21  ;;  %v969_v31 = vmul.f32 0.01, %v959_v23  ;;  %vm964_vm2 = vcmp.ge.f32.partialorder %v959_v23, 0.0  ;;  %v871_v10 = vsel %vm861_vm15, %v3141_v17, %v866_v26 }
 0x114   : > { %2609 = vmatmul.mubr.msk.bf16.gmra.mrb[16].mxu1 %vm312_vm1, %v509_v34  ;;  %v872_v19 = vsel %vm862_vm0, %v3143_v18, %v867_v27  ;;  %v3167_v34 = vld [vmem:[#allocation2 + $0x28] sm:$0xf]  ;;  %v970_v39 = vmul.f32 0.01, %v960_v35  ;;  %vm965_vm6 = vcmp.ge.f32.partialorder %v960_v35, 0.0  ;;  %vm1064_vm8 = vcmp.ge.f32.partialorder %v1059_v42, 0.0 }
 0x115   : > { %2623 = vmatmul.mubr.msk.bf16.gmra.mrb[12].mxu0 %vm312_vm1, %v484_v36  ;;  %2628 = vmatprep.mubr.msk.bf16.mxu1 %vm2893_vm3, %v2892_v1  ;;  %v974_v33 = vsel %vm964_vm2, %v959_v23, %v969_v31  ;;  %v875_v36 = vpack.c.bf16 %v872_v19, %v871_v10  ;;  %v868_v38 = vmul.f32 0.01, %v3167_v34  ;;  %vm863_vm5 = vcmp.ge.f32.partialorder %v3167_v34, 0.0  ;;  %v1265_v31 = vld [vmem:[#allocation2 + $0x27] sm:$0xff] }
 0x116   : > { %2642 = vmatprep.mubr.msk.bf16.mxu0 %vm2893_vm3, %v2892_v1  ;;  %v977_v37 = vpack.c.bf16 %v974_v33, %v3080_v20  ;;  %v975_v41 = vsel %vm965_vm6, %v960_v35, %v970_v39  ;;  %v1058_v20 = vld [vmem:[#allocation2 + $0xd] sm:$0xff]  ;;  %v1069_v50 = vmul.f32 0.01, %v1059_v42  ;;  %v1171_v53 = vmul.f32 0.01, %v1161_v46 }
 0x117   : > { %v873_v40 = vsel %vm863_vm5, %v3167_v34, %v868_v38  ;;  %v1068_v49 = vmul.f32 0.01, %v1058_v20  ;;  %vm1063_vm7 = vcmp.ge.f32.partialorder %v1058_v20, 0.0  ;;  %vm1165_vm9 = vcmp.ge.f32.partialorder %v1160_v45, 0.0  ;;  %v1266_v33 = vld [vmem:[#allocation2 + $0x2f] sm:$0xf] }
 0x118   : > { %v876_v47 = vpack.c.bf16 %v873_v40, %v873_v40  ;;  %vm1166_vm10 = vcmp.ge.f32.partialorder %v1161_v46, 0.0  ;;  %v1074_v55 = vsel %vm1064_vm8, %v1059_v42, %v1069_v50  ;;  %vm1066_vm11 = vcmp.ge.f32.partialorder %v1061_v58, 0.0 }
 0x119   : > { %v1173_v5 = vmul.f32 0.01, %v1163_v60  ;;  %v1070_v6 = vmul.f32 0.01, %v1060_v0  ;;  %vm1168_vm12 = vcmp.ge.f32.partialorder %v1163_v60, 0.0  ;;  %vm1065_vm13 = vcmp.ge.f32.partialorder %v1060_v0, 0.0 }
 0x11a   : > { %v1072_v16 = vmul.f32 0.01, %v1062_v8  ;;  %vm1067_vm15 = vcmp.ge.f32.partialorder %v1062_v8, 0.0  ;;  %v1282_v10 = vpack.c.bf16 %v3113_v62, %v3097_v44  ;;  %v1275_v19 = vmul.f32 0.01, %v1265_v31  ;;  %v2875_v62 = vld [vmem:[%s3405_s6 + $0x8] sm:$0xff]  }
 0x11b   : > { %v1178_v14 = vsel %vm1168_vm12, %v1163_v60, %v1173_v5  ;;  %v1075_v15 = vsel %vm1065_vm13, %v1060_v0, %v1070_v6  ;;  %vm1270_vm2 = vcmp.ge.f32.partialorder %v1265_v31, 0.0  ;;  %vm1271_vm5 = vcmp.ge.f32.partialorder %v1266_v33, 0.0 }
 0x11c   : > { %2629 = vmatmul.mubr.msk.bf16.vlgmr.msra.gmra.mrb[20].mxu1 %vm312_vm1, %v675_v51  ;;  %v1170_v51 = vmul.f32 0.01, %v1160_v45  ;;  %v1280_v35 = vsel %vm1270_vm2, %v1265_v31, %v1275_v19 }
 0x11d   : > { %2643 = vmatmul.mubr.msk.bf16.vlgmr.msra.gmra.mrb[16].mxu0 %vm312_vm1, %v777_v54  ;;  %2655 = vmatpush3.bf16.msra.mxu1 %v2870_v48  ;;  %v978_v48 = vpack.c.bf16 %v975_v41, %v975_v41  ;;  %v1073_v54 = vsel %vm1063_vm7, %v1058_v20, %v1068_v49 }
 0x11e   : > { %2632 = vmatprep.mubr.msk.bf16.mxu1 %vm2893_vm3, %v2892_v1  ;;  %2646 = vmatprep.mubr.msk.bf16.mxu0 %vm2893_vm3, %v2892_v1  ;;  %v1175_v56 = vsel %vm1165_vm9, %v1160_v45, %v1170_v51  ;;  %v1078_v61 = vpack.c.bf16 %v1074_v55, %v1073_v54 }
 0x11f   : > { %2669 = vmatpush3.bf16.msra.mxu0 %v2871_v57  ;;  %2682 = vmatprep.subr.bf16.mxu1 %v2892_v1  ;;  %v1176_v57 = vsel %vm1166_vm10, %v1161_v46, %v1171_v53 }
 0x120   : > { %2696 = vmatprep.subr.bf16.mxu0 %v2892_v1  ;;  %v1180_v2 = vpack.c.bf16 %v1176_v57, %v1175_v56 }
 0x124   : > { %2633 = vmatmul.mubr.msk.bf16.gmra.mrb[24].mxu1 %vm312_vm1, %v676_v3  ;;  %v1071_v3 = vmul.f32 0.01, %v1061_v58 }
 0x125   : > { %2647 = vmatmul.mubr.msk.bf16.gmra.mrb[20].mxu0 %vm312_vm1, %v778_v4  ;;  %2636 = vmatprep.mubr.msk.bf16.mxu1 %vm2893_vm3, %v2892_v1  ;;  %v1162_v4 = vld [vmem:[#allocation2 + $0x1e] sm:$0xff] }
 0x126   : > { %2650 = vmatprep.mubr.msk.bf16.mxu0 %vm2893_vm3, %v2892_v1  ;;  %v1172_v7 = vmul.f32 0.01, %v1162_v4  ;;  %vm1167_vm14 = vcmp.ge.f32.partialorder %v1162_v4, 0.0 }
 0x12c   : > { %2637 = vmatmul.mubr.msk.bf16.gmra.mrb[28].mxu1 %vm312_vm1, %v677_v11  ;;  %v1076_v11 = vsel %vm1066_vm11, %v1061_v58, %v1071_v3 }
 0x12d   : > { %2651 = vmatmul.mubr.msk.bf16.gmra.mrb[24].mxu0 %vm312_vm1, %v779_v13  ;;  %2656 = vmatprep.mubr.msk.bf16.mxu1 %vm2893_vm3, %v2892_v1  ;;  %v1164_v13 = vld [vmem:[#allocation2 + $0x2e] sm:$0xf]  ;;  %v1079_v21 = vpack.c.bf16 %v1076_v11, %v1075_v15 }
 0x12e   : > { %2670 = vmatprep.mubr.msk.bf16.mxu0 %vm2893_vm3, %v2892_v1  ;;  %v1174_v23 = vmul.f32 0.01, %v1164_v13  ;;  %vm1169_vm0 = vcmp.ge.f32.partialorder %v1164_v13, 0.0 }
 0x130   : > { %v1179_v26 = vsel %vm1169_vm0, %v1164_v13, %v1174_v23 }
 0x134   : > { %2657 = vmatmul.mubr.msk.bf16.vlgmr.msra.gmra.mrb[32].mxu1 %vm312_vm1, %v874_v24 }
 0x135   : > { %2671 = vmatmul.mubr.msk.bf16.vlgmr.msra.gmra.mrb[28].mxu0 %vm312_vm1, %v976_v25  ;;  %2683 = vmatpush3.bf16.msra.mxu1 %v2872_v22  ;;  %v1177_v22 = vsel %vm1167_vm14, %v1162_v4, %v1172_v7  ;;  %v1077_v25 = vsel %vm1067_vm15, %v1062_v8, %v1072_v16 }
 0x136   : > { %2660 = vmatprep.mubr.msk.bf16.mxu1 %vm2893_vm3, %v2892_v1  ;;  %2674 = vmatprep.mubr.msk.bf16.mxu0 %vm2893_vm3, %v2892_v1  ;;  %v1181_v24 = vpack.c.bf16 %v1178_v14, %v1177_v22  ;;  %v1080_v27 = vpack.c.bf16 %v1077_v25, %v1077_v25 }
 0x137   : > { %2697 = vmatpush3.bf16.msra.mxu0 %v2873_v30  ;;  %2710 = vmatprep.subr.bf16.mxu1 %v2892_v1  ;;  %v1182_v30 = vpack.c.bf16 %v1179_v26, %v1179_v26 }
 0x138   : > { %2724 = vmatprep.subr.bf16.mxu0 %v2892_v1 }
 0x13c   : > { %2661 = vmatmul.mubr.msk.bf16.gmra.mrb[36].mxu1 %vm312_vm1, %v875_v36  ;;  %v1276_v36 = vmul.f32 0.01, %v1266_v33 }
 0x13d   : > { %2675 = vmatmul.mubr.msk.bf16.gmra.mrb[32].mxu0 %vm312_vm1, %v977_v37  ;;  %2664 = vmatprep.mubr.msk.bf16.mxu1 %vm2893_vm3, %v2892_v1  ;;  %v1283_v37 = vpack.c.bf16 %v1280_v35, %v3115_v63  ;;  %v2876_v63 = vld [vmem:[%s3405_s6] sm:$0xff]  }
 0x13e   : > { %2678 = vmatprep.mubr.msk.bf16.mxu0 %vm2893_vm3, %v2892_v1  ;;  %v1281_v38 = vsel %vm1271_vm5, %v1266_v33, %v1276_v36 }
 0x13f   : > { %v1284_v44 = vpack.c.bf16 %v1281_v38, %v1281_v38 }
 0x144   : > { %2665 = vmatmul.mubr.msk.bf16.gmra.mrb[40].mxu1 %vm312_vm1, %v876_v47 }
 0x145   : > { %2679 = vmatmul.mubr.msk.bf16.gmra.mrb[36].mxu0 %vm312_vm1, %v978_v48  ;;  %2684 = vmatprep.mubr.msk.bf16.mxu1 %vm2893_vm3, %v2892_v1 }
 0x146   : > { %2698 = vmatprep.mubr.msk.bf16.mxu0 %vm2893_vm3, %v2892_v1 }
 0x14c   : > { %2685 = vmatmul.mubr.msk.bf16.vlgmr.msra.gmra.mrb[44].mxu1 %vm312_vm1, %v1078_v61 }
 0x14d   : > { %2699 = vmatmul.mubr.msk.bf16.vlgmr.msra.gmra.mrb[40].mxu0 %vm312_vm1, %v1180_v2  ;;  %2711 = vmatpush3.bf16.msra.mxu1 %v2874_v59 }
 0x14e   : > { %2688 = vmatprep.mubr.msk.bf16.mxu1 %vm2893_vm3, %v2892_v1  ;;  %2702 = vmatprep.mubr.msk.bf16.mxu0 %vm2893_vm3, %v2892_v1 }
 0x14f   : > { %2738 = vmatprep.subr.bf16.mxu1 %v2892_v1  ;;  %2725 = vmatpush3.bf16.msra.mxu0 %v2875_v62 }
 0x150   : > { %2752 = vmatprep.subr.bf16.mxu0 %v2892_v1 }
 0x154   : > { %2689 = vmatmul.mubr.msk.bf16.gmra.mrb[48].mxu1 %vm312_vm1, %v1079_v21 }
 0x155   : > { %2703 = vmatmul.mubr.msk.bf16.gmra.mrb[44].mxu0 %vm312_vm1, %v1181_v24  ;;  %2692 = vmatprep.mubr.msk.bf16.mxu1 %vm2893_vm3, %v2892_v1 }
 0x156   : > { %2706 = vmatprep.mubr.msk.bf16.mxu0 %vm2893_vm3, %v2892_v1 }
 0x15c   : > { %2693 = vmatmul.mubr.msk.bf16.gmra.mrb[52].mxu1 %vm312_vm1, %v1080_v27 }
 0x15d   : > { %2707 = vmatmul.mubr.msk.bf16.gmra.mrb[48].mxu0 %vm312_vm1, %v1182_v30  ;;  %2712 = vmatprep.mubr.msk.bf16.mxu1 %vm2893_vm3, %v2892_v1 }
 0x15e   : > { %2726 = vmatprep.mubr.msk.bf16.mxu0 %vm2893_vm3, %v2892_v1 }
 0x164   : > { %2713 = vmatmul.mubr.msk.bf16.vlgmr.msra.gmra.mrb[56].mxu1 %vm312_vm1, %v1282_v10 }
 0x165   : > { %2716 = vmatprep.mubr.msk.bf16.mxu1 %vm2893_vm3, %v2892_v1  ;;  %2739 = vmatpush3.bf16.msra.mxu1 %v2876_v63 }
 0x166   : > { %2766 = vmatprep.subr.bf16.mxu1 %v2892_v1 }
 0x16c   : > { %2717 = vmatmul.mubr.msk.bf16.gmra.mrb[60].mxu1 %vm312_vm1, %v1283_v37 }
 0x16d   : > { %2720 = vmatprep.mubr.msk.bf16.mxu1 %vm2893_vm3, %v2892_v1 }
 0x174   : > { %2721 = vmatmul.mubr.msk.bf16.gmra.mrb[64].mxu1 %vm312_vm1, %v1284_v44 }
 0x175   : > { %2740 = vmatprep.mubr.msk.bf16.mxu1 %vm2893_vm3, %v2892_v1 }
 0x1d7   : > { %v562_v39 = vpop.f32.mrb[8].mxu1 }
 0x1d8   : > { %v633_v40 = vpop.f32.mrb[4].mxu0  ;;  %v2602_v41 = vpop.f32.mrb[9].mxu1 }
 0x1d9   : > { %v634_v20 = vadd.f32 %v633_v40, %v562_v39  ;;  %v2616_v42 = vpop.f32.mrb[5].mxu0  ;;  %v565_v45 = vpop.f32.mrb[10].mxu1 }
 0x1da   : > { %v636_v46 = vpop.f32.mrb[6].mxu0  ;;  %v2603_v47 = vpop.f32.mrb[11].mxu1 }
 0x1db   : > { %v637_v48 = vadd.f32 %v636_v46, %v565_v45  ;;  %v2617_v49 = vpop.f32.mrb[7].mxu0 }
 0x1df   : > { %v570_v50 = vpop.f32.mrb[12].mxu1 }
 0x1e0   : > { %v641_v51 = vpop.f32.mrb[8].mxu0  ;;  %v2606_v53 = vpop.f32.mrb[13].mxu1 }
 0x1e1   : > { %v642_v54 = vadd.f32 %v641_v51, %v570_v50  ;;  %v2620_v55 = vpop.f32.mrb[9].mxu0  ;;  %v573_v56 = vpop.f32.mrb[14].mxu1 }
 0x1e2   : > { %v644_v57 = vpop.f32.mrb[10].mxu0  ;;  %v2607_v58 = vpop.f32.mrb[15].mxu1 }
 0x1e3   : > { %v645_v59 = vadd.f32 %v644_v57, %v573_v56  ;;  %v2621_v60 = vpop.f32.mrb[11].mxu0 }
 0x1e7   : > { %v578_v61 = vpop.f32.mrb[16].mxu1 }
 0x1e8   : > { %v649_v0 = vpop.f32.mrb[12].mxu0  ;;  %v2610_v2 = vpop.f32.mrb[17].mxu1 }
 0x1e9   : > { %v650_v3 = vadd.f32 %v649_v0, %v578_v61  ;;  %v2624_v4 = vpop.f32.mrb[13].mxu0  ;;  %v581_v5 = vpop.f32.mrb[18].mxu1 }
 0x1ea   : > { %v652_v6 = vpop.f32.mrb[14].mxu0  ;;  %v2611_v7 = vpop.f32.mrb[19].mxu1 }
 0x1eb   : > { %v2625_v8 = vpop.f32.mrb[15].mxu0 }
 0x1ef   : > { %v730_v11 = vpop.f32.mrb[20].mxu1 }
 0x1f0   : > { %v752_v13 = vadd.f32 %v730_v11, %v634_v20  ;;  %v832_v14 = vpop.f32.mrb[16].mxu0  ;;  %v2630_v15 = vpop.f32.mrb[21].mxu1 }
 0x1f1   : > { %v2644_v16 = vpop.f32.mrb[17].mxu0  ;;  %v733_v21 = vpop.f32.mrb[22].mxu1 }
 0x1f2   : > { %v854_v22 = vadd.f32 %v832_v14, %v752_v13  ;;  %v753_v23 = vadd.f32 %v733_v21, %v637_v48  ;;  %v835_v24 = vpop.f32.mrb[18].mxu0  ;;  %v2631_v25 = vpop.f32.mrb[23].mxu1 }
 0x1f3   : > { %v2645_v26 = vpop.f32.mrb[19].mxu0 }
 0x1f4   : > { %v855_v27 = vadd.f32 %v835_v24, %v753_v23 }
 0x1f7   : > { %v738_v30 = vpop.f32.mrb[24].mxu1 }
 0x1f8   : > { %v754_v31 = vadd.f32 %v738_v30, %v642_v54  ;;  %v840_v10 = vpop.f32.mrb[20].mxu0  ;;  %v2634_v19 = vpop.f32.mrb[25].mxu1 }
 0x1f9   : > { %v2648_v33 = vpop.f32.mrb[21].mxu0  ;;  %v741_v35 = vpop.f32.mrb[26].mxu1 }
 0x1fa   : > { %v856_v36 = vadd.f32 %v840_v10, %v754_v31  ;;  %v755_v37 = vadd.f32 %v741_v35, %v645_v59  ;;  %v843_v38 = vpop.f32.mrb[22].mxu0  ;;  %v2635_v44 = vpop.f32.mrb[27].mxu1 }
 0x1fb   : > { %v2649_v62 = vpop.f32.mrb[23].mxu0 }
 0x1fc   : > { %v857_v63 = vadd.f32 %v843_v38, %v755_v37 }
 0x1ff   : > { %v746_v39 = vpop.f32.mrb[28].mxu1 }
 0x200   : > { %v756_v40 = vadd.f32 %v746_v39, %v650_v3  ;;  %v848_v41 = vpop.f32.mrb[24].mxu0  ;;  %v2638_v20 = vpop.f32.mrb[29].mxu1 }
 0x201   : > { %v2652_v42 = vpop.f32.mrb[25].mxu0  ;;  %v749_v45 = vpop.f32.mrb[30].mxu1 }
 0x202   : > { %v858_v46 = vadd.f32 %v848_v41, %v756_v40  ;;  %v851_v47 = vpop.f32.mrb[26].mxu0  ;;  %v2639_v48 = vpop.f32.mrb[31].mxu1 }
 0x203   : > { %v2653_v49 = vpop.f32.mrb[27].mxu0 }
 0x207   : > { %v929_v50 = vpop.f32.mrb[32].mxu1 }
 0x208   : > { %v951_v51 = vadd.f32 %v929_v50, %v854_v22  ;;  %v1031_v53 = vpop.f32.mrb[28].mxu0  ;;  %v2658_v54 = vpop.f32.mrb[33].mxu1 }
 0x209   : > { %v2672_v55 = vpop.f32.mrb[29].mxu0  ;;  %v932_v56 = vpop.f32.mrb[34].mxu1 }
 0x20a   : > { %v1053_v57 = vadd.f32 %v1031_v53, %v951_v51  ;;  %v952_v58 = vadd.f32 %v932_v56, %v855_v27  ;;  %v1034_v59 = vpop.f32.mrb[30].mxu0  ;;  %v2659_v60 = vpop.f32.mrb[35].mxu1 }
 0x20b   : > { %v2673_v61 = vpop.f32.mrb[31].mxu0 }
 0x20c   : > { %v1054_v0 = vadd.f32 %v1034_v59, %v952_v58 }
 0x20f   : > { %v937_v2 = vpop.f32.mrb[36].mxu1 }
 0x210   : > { %v953_v3 = vadd.f32 %v937_v2, %v856_v36  ;;  %v1039_v4 = vpop.f32.mrb[32].mxu0  ;;  %v2662_v5 = vpop.f32.mrb[37].mxu1 }
 0x211   : > { %v2676_v6 = vpop.f32.mrb[33].mxu0  ;;  %v940_v7 = vpop.f32.mrb[38].mxu1 }
 0x212   : > { %v1055_v8 = vadd.f32 %v1039_v4, %v953_v3  ;;  %v954_v11 = vadd.f32 %v940_v7, %v857_v63  ;;  %v1042_v13 = vpop.f32.mrb[34].mxu0  ;;  %v2663_v14 = vpop.f32.mrb[39].mxu1  ;;  %v2452_v6 = vld [vmem:[%s3404_s5] ss:$0 sm:$0xff] }
 0x213   : > { %v2677_v15 = vpop.f32.mrb[35].mxu0 }
 0x214   : > { %v1056_v16 = vadd.f32 %v1042_v13, %v954_v11 }
 0x217   : > { %v945_v21 = vpop.f32.mrb[40].mxu1 }
 0x218   : > { %v955_v22 = vadd.f32 %v945_v21, %v858_v46  ;;  %v1047_v23 = vpop.f32.mrb[36].mxu0  ;;  %v2666_v24 = vpop.f32.mrb[41].mxu1 }
 0x219   : > { %v2680_v25 = vpop.f32.mrb[37].mxu0  ;;  %v948_v26 = vpop.f32.mrb[42].mxu1 }
 0x21a   : > { %v1057_v27 = vadd.f32 %v1047_v23, %v955_v22  ;;  %v1050_v30 = vpop.f32.mrb[38].mxu0  ;;  %v2667_v31 = vpop.f32.mrb[43].mxu1 }
 0x21b   : > { %v2681_v10 = vpop.f32.mrb[39].mxu0 }
 0x21f   : > { %v1133_v19 = vpop.f32.mrb[44].mxu1 }
 0x220   : > { %v1155_v33 = vadd.f32 %v1133_v19, %v1053_v57  ;;  %v1235_v35 = vpop.f32.mrb[40].mxu0  ;;  %v2686_v36 = vpop.f32.mrb[45].mxu1 }
 0x221   : > { %v2700_v37 = vpop.f32.mrb[41].mxu0  ;;  %v1136_v38 = vpop.f32.mrb[46].mxu1 }
 0x222   : > { %v1257_v44 = vadd.f32 %v1235_v35, %v1155_v33  ;;  %v1156_v62 = vadd.f32 %v1136_v38, %v1054_v0  ;;  %v1238_v63 = vpop.f32.mrb[42].mxu0  ;;  %v2687_v39 = vpop.f32.mrb[47].mxu1 }
 0x223   : > { %v2701_v40 = vpop.f32.mrb[43].mxu0 }
 0x224   : > { %v1258_v41 = vadd.f32 %v1238_v63, %v1156_v62 }
 0x227   : > { %v1141_v20 = vpop.f32.mrb[48].mxu1 }
 0x228   : > { %v1157_v42 = vadd.f32 %v1141_v20, %v1055_v8  ;;  %v1243_v45 = vpop.f32.mrb[44].mxu0  ;;  %v2690_v46 = vpop.f32.mrb[49].mxu1 }
 0x229   : > { %v2704_v47 = vpop.f32.mrb[45].mxu0  ;;  %v1144_v48 = vpop.f32.mrb[50].mxu1 }
 0x22a   : > { %v1259_v49 = vadd.f32 %v1243_v45, %v1157_v42  ;;  %v1158_v50 = vadd.f32 %v1144_v48, %v1056_v16  ;;  %v1246_v51 = vpop.f32.mrb[46].mxu0  ;;  %v2691_v53 = vpop.f32.mrb[51].mxu1  ;;  %v2877_v48 = vld [vmem:[%s3405_s6 + $0x10] sm:$0xff]  }
 0x22b   : > { %v2705_v54 = vpop.f32.mrb[47].mxu0 }
 0x22c   : > { %v1260_v55 = vadd.f32 %v1246_v51, %v1158_v50 }
 0x22f   : > { %v1149_v56 = vpop.f32.mrb[52].mxu1 }
 0x230   : > { %v1159_v57 = vadd.f32 %v1149_v56, %v1057_v27  ;;  %v2694_v58 = vpop.f32.mrb[53].mxu1  ;;  %v1251_v59 = vpop.f32.mrb[48].mxu0  ;;  %v2878_v56 = vld [vmem:[%s3405_s6 + $0x18] sm:$0xff]  }
 0x231   : > { %v1152_v60 = vpop.f32.mrb[54].mxu1  ;;  %v2708_v61 = vpop.f32.mrb[49].mxu0 }
 0x232   : > { %v1261_v0 = vadd.f32 %v1251_v59, %v1159_v57  ;;  %v2695_v2 = vpop.f32.mrb[55].mxu1  ;;  %v1254_v3 = vpop.f32.mrb[50].mxu0 }
 0x233   : > { %v2709_v4 = vpop.f32.mrb[51].mxu0 }
 0x237   : > { %v1337_v5 = vpop.f32.mrb[56].mxu1 }
 0x238   : > { %v1359_v7 = vadd.f32 %v1337_v5, %v1257_v44  ;;  %v2714_v8 = vpop.f32.mrb[57].mxu1 }
 0x239   : > { %v1340_v11 = vpop.f32.mrb[58].mxu1 }
 0x23a   : > { %v1371_v13 = vadd.f32 %v2452_v6, %v1359_v7  ;;  %v1360_v14 = vadd.f32 %v1340_v11, %v1258_v41  ;;  %v2715_v15 = vpop.f32.mrb[59].mxu1 }
 0x23c   : > { %v1376_v16 = vmul.f32 %v1371_v13, %v3041_v29  ;;  %v1372_v21 = vadd.f32 %v2452_v6, %v1360_v14 }
 0x23e   : > { %1381 = vst.msk [vmem:[#allocation2 + $0x8] sm:$0xff] %vm312_vm1, %v1376_v16  ;;  %v1377_v22 = vmul.f32 %v1372_v21, %v3049_v43 }
 0x23f   : > { %v1345_v23 = vpop.f32.mrb[60].mxu1 }
 0x240   : > { %1382 = vst.msk [vmem:[#allocation2 + $0x10] sm:$0xff] %vm312_vm1, %v1377_v22  ;;  %v1361_v24 = vadd.f32 %v1345_v23, %v1259_v49  ;;  %v2718_v25 = vpop.f32.mrb[61].mxu1 }
 0x241   : > { %v1348_v26 = vpop.f32.mrb[62].mxu1 }
 0x242   : > { %v1373_v27 = vadd.f32 %v2452_v6, %v1361_v24  ;;  %v1362_v30 = vadd.f32 %v1348_v26, %v1260_v55  ;;  %v2719_v31 = vpop.f32.mrb[63].mxu1 }
 0x244   : > { %v1378_v10 = vmul.f32 %v1373_v27, %v3039_v28  ;;  %v1374_v19 = vadd.f32 %v2452_v6, %v1362_v30 }
 0x245   : > { %v1411_v33 = vld [vmem:[#allocation2 + $0x2] sm:$0xff] }
 0x246   : > { %v1386_v35 = vld [vmem:[#allocation2 + $0x1] sm:$0xff]  ;;  %1383 = vst.msk [vmem:[#allocation2 + $0x18] sm:$0xff] %vm312_vm1, %v1378_v10  ;;  %v1379_v36 = vmul.f32 %v1374_v19, %v3046_v32  ;;  %v1421_v37 = vmul.f32 0.01, %v1411_v33  ;;  %vm1416_vm6 = vcmp.ge.f32.partialorder %v1411_v33, 0.0 }
 0x247   : > { %v1353_v38 = vpop.f32.mrb[64].mxu1  ;;  %v1412_v44 = vld [vmem:[#allocation2 + $0xa] sm:$0xff]  ;;  %v1396_v63 = vmul.f32 0.01, %v1386_v35  ;;  %vm1391_vm8 = vcmp.ge.f32.partialorder %v1386_v35, 0.0 }
 0x248   : > { %v1387_v62 = vld [vmem:[#allocation2 + $0x9] sm:$0xff]  ;;  %1384 = vst.msk [vmem:[#allocation2 + $0x20] sm:$0xff] %vm312_vm1, %v1379_v36  ;;  %v1363_v39 = vadd.f32 %v1353_v38, %v1261_v0  ;;  %vm1417_vm7 = vcmp.ge.f32.partialorder %v1412_v44, 0.0  ;;  %v1422_v40 = vmul.f32 0.01, %v1412_v44  ;;  %v2722_v41 = vpop.f32.mrb[65].mxu1  ;;  %v1426_v46 = vsel %vm1416_vm6, %v1411_v33, %v1421_v37 }
 0x249   : > { %vm1392_vm9 = vcmp.ge.f32.partialorder %v1387_v62, 0.0  ;;  %v1397_v20 = vmul.f32 0.01, %v1387_v62  ;;  %v1356_v42 = vpop.f32.mrb[66].mxu1  ;;  %v1401_v51 = vsel %vm1391_vm8, %v1386_v35, %v1396_v63  ;;  %v1580_v23 = vld [vmem:[#allocation2 + $0xb] sm:$0xff]  ;;  %v1579_v26 = vld [vmem:[#allocation2 + $0x3] sm:$0xff] }
 0x24a   : > { %v1375_v45 = vadd.f32 %v2452_v6, %v1363_v39  ;;  %v1427_v47 = vsel %vm1417_vm7, %v1412_v44, %v1422_v40  ;;  %v2723_v49 = vpop.f32.mrb[67].mxu1  ;;  %v1682_v24 = vld [vmem:[#allocation2 + $0xf] sm:$0xff]  ;;  %v1590_v30 = vmul.f32 0.01, %v1580_v23  ;;  %v1681_v31 = vld [vmem:[#allocation2 + $0x7] sm:$0xff]  ;;  %vm1585_vm0 = vcmp.ge.f32.partialorder %v1580_v23, 0.0 }
 0x24b   : > { %v1431_v50 = vpack.c.bf16 %v1427_v47, %v1426_v46  ;;  %v3242_v53 = vsel %vm1392_vm9, %v1387_v62, %v1397_v20  ;;  %v1692_v10 = vmul.f32 0.01, %v1682_v24  ;;  %v1589_v19 = vmul.f32 0.01, %v1579_v26  ;;  %v2879_v44 = vld [vmem:[%s3405_s6 + $0x20] sm:$0xff]  }
 0x24c   : > { %v1380_v54 = vmul.f32 %v1375_v45, %v3058_v52  ;;  %v1406_v55 = vpack.c.bf16 %v3242_v53, %v1401_v51  ;;  %vm1687_vm2 = vcmp.ge.f32.partialorder %v1682_v24, 0.0  ;;  %vm1584_vm5 = vcmp.ge.f32.partialorder %v1579_v26, 0.0  ;;  %v2880_v45 = vld [vmem:[%s3405_s6 + $0x28] sm:$0xff]  }
 0x24d   : > { %2727 = vmatmul.mubr.msk.bf16.vlgmr.msra.gmra.mrb[52].mxu0 %vm312_vm1, %v1431_v50  ;;  %v1413_v57 = vld [vmem:[#allocation2 + $0x12] sm:$0xff]  ;;  %v1691_v33 = vmul.f32 0.01, %v1681_v31  ;;  %v1595_v35 = vsel %vm1585_vm0, %v1580_v23, %v1590_v30  ;;  %vm1686_vm6 = vcmp.ge.f32.partialorder %v1681_v31, 0.0  ;;  %v3276_v36 = vsel %vm1687_vm2, %v1682_v24, %v1692_v10 }
 0x24e   : > { %v1388_v58 = vld [vmem:[#allocation2 + $0x11] sm:$0xff]  ;;  %1385 = vst.msk [vmem:[#allocation2 + $0x28] sm:$0xf] %vm319_vm4, %v1380_v54  ;;  %2741 = vmatmul.mubr.msk.bf16.vlgmr.msra.gmra.mrb[68].mxu1 %vm312_vm1, %v1406_v55  ;;  %2753 = vmatpush3.bf16.msra.mxu0 %v2877_v48  ;;  %v1423_v59 = vmul.f32 0.01, %v1413_v57  ;;  %vm1418_vm10 = vcmp.ge.f32.partialorder %v1413_v57, 0.0  ;;  %v1594_v38 = vsel %vm1584_vm5, %v1579_v26, %v1589_v19 }
 0x24f   : > { %2730 = vmatprep.mubr.msk.bf16.mxu0 %vm2893_vm3, %v2892_v1  ;;  %2744 = vmatprep.mubr.msk.bf16.mxu1 %vm2893_vm3, %v2892_v1  ;;  %v1414_v60 = vld [vmem:[#allocation2 + $0x1a] sm:$0xff]  ;;  %v1398_v0 = vmul.f32 0.01, %v1388_v58  ;;  %vm1393_vm12 = vcmp.ge.f32.partialorder %v1388_v58, 0.0  ;;  %v1415_v4 = vld [vmem:[#allocation2 + $0x22] sm:$0xf]  ;;  %v1599_v63 = vpack.c.bf16 %v1595_v35, %v1594_v38  ;;  %v1696_v39 = vsel %vm1686_vm6, %v1681_v31, %v1691_v33 }
 0x250   : > { %v1389_v61 = vld [vmem:[#allocation2 + $0x19] sm:$0xff]  ;;  %vm1419_vm11 = vcmp.ge.f32.partialorder %v1414_v60, 0.0  ;;  %v1424_v2 = vmul.f32 0.01, %v1414_v60  ;;  %2767 = vmatpush3.bf16.msra.mxu1 %v2878_v56  ;;  %2780 = vmatprep.subr.bf16.mxu0 %v2892_v1  ;;  %v1428_v5 = vsel %vm1418_vm10, %v1413_v57, %v1423_v59  ;;  %v1390_v7 = vld [vmem:[#allocation2 + $0x21] sm:$0xf]  ;;  %v1701_v41 = vpack.c.bf16 %v3276_v36, %v1696_v39 }
 0x251   : > { %vm1394_vm13 = vcmp.ge.f32.partialorder %v1389_v61, 0.0  ;;  %v1399_v3 = vmul.f32 0.01, %v1389_v61  ;;  %2794 = vmatprep.subr.bf16.mxu1 %v2892_v1  ;;  %v3258_v11 = vsel %vm1393_vm12, %v1388_v58, %v1398_v0  ;;  %v1425_v15 = vmul.f32 0.01, %v1415_v4  ;;  %v1582_v37 = vld [vmem:[#allocation2 + $0x1b] sm:$0xff] }
 0x252   : > { %v1429_v6 = vsel %vm1419_vm11, %v1414_v60, %v1424_v2  ;;  %vm1420_vm14 = vcmp.ge.f32.partialorder %v1415_v4, 0.0  ;;  %v1400_v16 = vmul.f32 0.01, %v1390_v7  ;;  %vm1395_vm15 = vcmp.ge.f32.partialorder %v1390_v7, 0.0  ;;  %v1684_v62 = vld [vmem:[#allocation2 + $0x1f] sm:$0xff]  ;;  %v1581_v40 = vld [vmem:[#allocation2 + $0x13] sm:$0xff] }
 0x253   : > { %v1432_v8 = vpack.c.bf16 %v1429_v6, %v1428_v5  ;;  %v3260_v13 = vsel %vm1394_vm13, %v1389_v61, %v1399_v3  ;;  %v1430_v21 = vsel %vm1420_vm14, %v1415_v4, %v1425_v15  ;;  %v1592_v20 = vmul.f32 0.01, %v1582_v37  ;;  %v1683_v42 = vld [vmem:[#allocation2 + $0x17] sm:$0xff]  ;;  %v1583_v51 = vld [vmem:[#allocation2 + $0x23] sm:$0xf]  ;;  %v1783_v4 = vld [vmem:[#allocation2 + $0x8] sm:$0xff] }
 0x254   : > { %v1407_v14 = vpack.c.bf16 %v3260_v13, %v3258_v11  ;;  %v1405_v22 = vsel %vm1395_vm15, %v1390_v7, %v1400_v16  ;;  %v1433_v25 = vpack.c.bf16 %v1430_v21, %v1430_v21  ;;  %vm1587_vm7 = vcmp.ge.f32.partialorder %v1582_v37, 0.0  ;;  %v1784_v2 = vld [vmem:[#allocation2 + $0x10] sm:$0xff]  ;;  %v1785_v23 = vld [vmem:[#allocation2 + $0x18] sm:$0xff] }
 0x255   : > { %2731 = vmatmul.mubr.msk.bf16.gmra.mrb[56].mxu0 %vm312_vm1, %v1432_v8  ;;  %v1408_v27 = vpack.c.bf16 %v1405_v22, %v1405_v22  ;;  %v1694_v46 = vmul.f32 0.01, %v1684_v62  ;;  %v1591_v47 = vmul.f32 0.01, %v1581_v40  ;;  %vm1689_vm8 = vcmp.ge.f32.partialorder %v1684_v62, 0.0  ;;  %v2881_v16 = vld [vmem:[%s3405_s6 + $0x30] sm:$0xff]  }
 0x256   : > { %2745 = vmatmul.mubr.msk.bf16.gmra.mrb[72].mxu1 %vm312_vm1, %v1407_v14  ;;  %2734 = vmatprep.mubr.msk.bf16.mxu0 %vm2893_vm3, %v2892_v1  ;;  %vm1586_vm9 = vcmp.ge.f32.partialorder %v1581_v40, 0.0  ;;  %v1693_v48 = vmul.f32 0.01, %v1683_v42  ;;  %v1597_v49 = vsel %vm1587_vm7, %v1582_v37, %v1592_v20  ;;  %vm1688_vm10 = vcmp.ge.f32.partialorder %v1683_v42, 0.0  ;;  %v1685_v55 = vld [vmem:[#allocation2 + $0x27] sm:$0xf] }
 0x257   : > { %2748 = vmatprep.mubr.msk.bf16.mxu1 %vm2893_vm3, %v2892_v1  ;;  %v3292_v50 = vsel %vm1689_vm8, %v1684_v62, %v1694_v46  ;;  %v1596_v54 = vsel %vm1586_vm9, %v1581_v40, %v1591_v47  ;;  %v1593_v59 = vmul.f32 0.01, %v1583_v51  ;;  %vm1588_vm11 = vcmp.ge.f32.partialorder %v1583_v51, 0.0  ;;  %v1786_v14 = vld [vmem:[#allocation2 + $0x20] sm:$0xff]  ;;  %v2882_v26 = vld [vmem:[%s3405_s6 + $0x38] sm:$0xff]  }
 0x258   : > { %v1600_v56 = vpack.c.bf16 %v1597_v49, %v1596_v54  ;;  %v3295_v57 = vsel %vm1688_vm10, %v1683_v42, %v1693_v48  ;;  %v1695_v60 = vmul.f32 0.01, %v1685_v55  ;;  %vm1690_vm12 = vcmp.ge.f32.partialorder %v1685_v55, 0.0  ;;  %v1888_v21 = vld [vmem:[#allocation2 + $0x21] sm:$0xff]  ;;  %v1889_v19 = vld [vmem:[#allocation2 + $0x29] sm:$0xf] }
 0x259   : > { %v1702_v58 = vpack.c.bf16 %v3292_v50, %v3295_v57  ;;  %v1598_v61 = vsel %vm1588_vm11, %v1583_v51, %v1593_v59  ;;  %v1794_v6 = vmul.f32 0.01, %v1784_v2  ;;  %vm1789_vm13 = vcmp.ge.f32.partialorder %v1784_v2, 0.0  ;;  %v1787_v31 = vld [vmem:[#allocation2 + $0x28] sm:$0xf]  ;;  %v2090_v39 = vld [vmem:[#allocation2 + $0x16] sm:$0xff] }
 0x25a   : > { %v1700_v0 = vsel %vm1690_vm12, %v1685_v55, %v1695_v60  ;;  %v1601_v3 = vpack.c.bf16 %v1598_v61, %v1598_v61  ;;  %v1793_v7 = vmul.f32 0.01, %v1783_v4  ;;  %vm1788_vm14 = vcmp.ge.f32.partialorder %v1783_v4, 0.0  ;;  %v2089_v42 = vld [vmem:[#allocation2 + $0xe] sm:$0xff]  ;;  %v1990_v51 = vld [vmem:[#allocation2 + $0x25] sm:$0xff]  ;;  %v1989_v60 = vld [vmem:[#allocation2 + $0x1d] sm:$0xff] }
 0x25b   : > { %v1703_v5 = vpack.c.bf16 %v1700_v0, %v1700_v0  ;;  %v1799_v8 = vsel %vm1789_vm13, %v1784_v2, %v1794_v6  ;;  %v1905_v24 = vpack.c.bf16 %v3258_v11, %v3242_v53  ;;  %vm1791_vm15 = vcmp.ge.f32.partialorder %v1786_v14, 0.0  ;;  %v2883_v55 = vld [vmem:[%s3405_s6 + $0x40] sm:$0xff]   ;;  %v1991_v6 = vld [vmem:[#allocation2 + $0x2d] sm:$0xf] }
 0x25c   : > { %v1798_v15 = vsel %vm1788_vm14, %v1783_v4, %v1793_v7  ;;  %v1795_v30 = vmul.f32 0.01, %v1785_v23  ;;  %vm1893_vm0 = vcmp.ge.f32.partialorder %v1888_v21, 0.0  ;;  %vm1790_vm2 = vcmp.ge.f32.partialorder %v1785_v23, 0.0  ;;  %v2091_v2 = vld [vmem:[#allocation2 + $0x1e] sm:$0xff] }
 0x25d   : > { %2735 = vmatmul.mubr.msk.bf16.gmra.mrb[60].mxu0 %vm312_vm1, %v1433_v25  ;;  %v1803_v22 = vpack.c.bf16 %v1799_v8, %v1798_v15  ;;  %v1796_v25 = vmul.f32 0.01, %v1786_v14  ;;  %v1797_v37 = vmul.f32 0.01, %v1787_v31  ;;  %vm1792_vm5 = vcmp.ge.f32.partialorder %v1787_v31, 0.0 }
 0x25e   : > { %2749 = vmatmul.mubr.msk.bf16.gmra.mrb[76].mxu1 %vm312_vm1, %v1408_v27  ;;  %2754 = vmatprep.mubr.msk.bf16.mxu0 %vm2893_vm3, %v2892_v1  ;;  %v1898_v27 = vmul.f32 0.01, %v1888_v21  ;;  %v1800_v10 = vsel %vm1790_vm2, %v1785_v23, %v1795_v30  ;;  %v1899_v38 = vmul.f32 0.01, %v1889_v19  ;;  %vm1894_vm6 = vcmp.ge.f32.partialorder %v1889_v19, 0.0 }
 0x25f   : > { %2768 = vmatprep.mubr.msk.bf16.mxu1 %vm2893_vm3, %v2892_v1  ;;  %v1801_v53 = vsel %vm1791_vm15, %v1786_v14, %v1796_v25  ;;  %vm2095_vm8 = vcmp.ge.f32.partialorder %v2090_v39, 0.0  ;;  %v2099_v47 = vmul.f32 0.01, %v2089_v42  ;;  %vm2094_vm10 = vcmp.ge.f32.partialorder %v2089_v42, 0.0  ;;  %v2093_v8 = vld [vmem:[#allocation2 + $0x2e] sm:$0xf] }
 0x260   : > { %v1903_v11 = vsel %vm1893_vm0, %v1888_v21, %v1898_v27  ;;  %v1804_v33 = vpack.c.bf16 %v1801_v53, %v1800_v10  ;;  %v1904_v62 = vsel %vm1894_vm6, %v1889_v19, %v1899_v38  ;;  %v2000_v0 = vmul.f32 0.01, %v1990_v51  ;;  %v2194_v53 = vld [vmem:[#allocation2 + $0x27] sm:$0xff]  ;;  %v2195_v10 = vld [vmem:[#allocation2 + $0x2f] sm:$0xf] }
 0x261   : > { %v1906_v35 = vpack.c.bf16 %v1903_v11, %v3260_v13  ;;  %v1987_v13 = vld [vmem:[#allocation2 + $0xd] sm:$0xff]  ;;  %v2104_v59 = vsel %vm2094_vm10, %v2089_v42, %v2099_v47  ;;  %vm1995_vm11 = vcmp.ge.f32.partialorder %v1990_v51, 0.0  ;;  %v1999_v4 = vmul.f32 0.01, %v1989_v60 }
 0x262   : > { %v1997_v46 = vmul.f32 0.01, %v1987_v13  ;;  %vm1992_vm9 = vcmp.ge.f32.partialorder %v1987_v13, 0.0  ;;  %vm1994_vm13 = vcmp.ge.f32.partialorder %v1989_v60, 0.0  ;;  %v2005_v7 = vsel %vm1995_vm11, %v1990_v51, %v2000_v0 }
 0x263   : > { %vm2096_vm14 = vcmp.ge.f32.partialorder %v2091_v2, 0.0  ;;  %v2004_v15 = vsel %vm1994_vm13, %v1989_v60, %v1999_v4  ;;  %vm1996_vm15 = vcmp.ge.f32.partialorder %v1991_v6, 0.0  ;;  %v2103_v23 = vmul.f32 0.01, %v2093_v8 }
 0x264   : > { %v2002_v54 = vsel %vm1992_vm9, %v1987_v13, %v1997_v46  ;;  %v2008_v21 = vpack.c.bf16 %v2005_v7, %v2004_v15  ;;  %vm2098_vm0 = vcmp.ge.f32.partialorder %v2093_v8, 0.0  ;;  %v2211_v11 = vpack.c.bf16 %v3295_v57, %v3276_v36 }
 0x265   : > { %2755 = vmatmul.mubr.msk.bf16.vlgmr.msra.gmra.mrb[64].mxu0 %vm312_vm1, %v1599_v63  ;;  %v1988_v63 = vld [vmem:[#allocation2 + $0x15] sm:$0xff]  ;;  %vm2199_vm2 = vcmp.ge.f32.partialorder %v2194_v53, 0.0 }
 0x266   : > { %2769 = vmatmul.mubr.msk.bf16.vlgmr.msra.gmra.mrb[80].mxu1 %vm312_vm1, %v1701_v41  ;;  %2781 = vmatpush3.bf16.msra.mxu0 %v2879_v44  ;;  %v1802_v44 = vsel %vm1792_vm5, %v1787_v31, %v1797_v37  ;;  %v1907_v41 = vpack.c.bf16 %v1904_v62, %v1904_v62  ;;  %v1998_v20 = vmul.f32 0.01, %v1988_v63  ;;  %vm1993_vm7 = vcmp.ge.f32.partialorder %v1988_v63, 0.0 }
 0x267   : > { %2758 = vmatprep.mubr.msk.bf16.mxu0 %vm2893_vm3, %v2892_v1  ;;  %2772 = vmatprep.mubr.msk.bf16.mxu1 %vm2893_vm3, %v2892_v1  ;;  %v1805_v40 = vpack.c.bf16 %v1802_v44, %v1802_v44  ;;  %v2204_v31 = vmul.f32 0.01, %v2194_v53  ;;  %vm2200_vm5 = vcmp.ge.f32.partialorder %v2195_v10, 0.0 }
 0x268   : > { %2795 = vmatpush3.bf16.msra.mxu1 %v2880_v45  ;;  %2808 = vmatprep.subr.bf16.mxu0 %v2892_v1  ;;  %v2100_v45 = vmul.f32 0.01, %v2090_v39  ;;  %v2003_v48 = vsel %vm1993_vm7, %v1988_v63, %v1998_v20 }
 0x269   : > { %2822 = vmatprep.subr.bf16.mxu1 %v2892_v1  ;;  %v2209_v19 = vsel %vm2199_vm2, %v2194_v53, %v2204_v31 }
 0x26a   : > { %v2105_v49 = vsel %vm2095_vm8, %v2090_v39, %v2100_v45 }
 0x26b   : > { %v2109_v61 = vpack.c.bf16 %v2105_v49, %v2104_v59 }
 0x26d   : > { %2759 = vmatmul.mubr.msk.bf16.gmra.mrb[68].mxu0 %vm312_vm1, %v1600_v56  ;;  %v2092_v56 = vld [vmem:[#allocation2 + $0x26] sm:$0xff] }
 0x26e   : > { %2773 = vmatmul.mubr.msk.bf16.gmra.mrb[84].mxu1 %vm312_vm1, %v1702_v58  ;;  %2762 = vmatprep.mubr.msk.bf16.mxu0 %vm2893_vm3, %v2892_v1  ;;  %v2007_v58 = vpack.c.bf16 %v2003_v48, %v2002_v54  ;;  %vm2097_vm12 = vcmp.ge.f32.partialorder %v2092_v56, 0.0 }
 0x26f   : > { %2776 = vmatprep.mubr.msk.bf16.mxu1 %vm2893_vm3, %v2892_v1 }
 0x275   : > { %2763 = vmatmul.mubr.msk.bf16.gmra.mrb[72].mxu0 %vm312_vm1, %v1601_v3  ;;  %v2102_v3 = vmul.f32 0.01, %v2092_v56 }
 0x276   : > { %2777 = vmatmul.mubr.msk.bf16.gmra.mrb[88].mxu1 %vm312_vm1, %v1703_v5  ;;  %2782 = vmatprep.mubr.msk.bf16.mxu0 %vm2893_vm3, %v2892_v1  ;;  %v2101_v5 = vmul.f32 0.01, %v2091_v2 }
 0x277   : > { %2796 = vmatprep.mubr.msk.bf16.mxu1 %vm2893_vm3, %v2892_v1  ;;  %v2107_v14 = vsel %vm2097_vm12, %v2092_v56, %v2102_v3 }
 0x27d   : > { %2783 = vmatmul.mubr.msk.bf16.vlgmr.msra.gmra.mrb[76].mxu0 %vm312_vm1, %v1803_v22  ;;  %v2106_v22 = vsel %vm2096_vm14, %v2091_v2, %v2101_v5 }
 0x27e   : > { %2797 = vmatmul.mubr.msk.bf16.vlgmr.msra.gmra.mrb[92].mxu1 %vm312_vm1, %v1905_v24  ;;  %2809 = vmatpush3.bf16.msra.mxu0 %v2881_v16  ;;  %v2001_v16 = vmul.f32 0.01, %v1991_v6  ;;  %v2110_v24 = vpack.c.bf16 %v2107_v14, %v2106_v22 }
 0x27f   : > { %2786 = vmatprep.mubr.msk.bf16.mxu0 %vm2893_vm3, %v2892_v1  ;;  %2800 = vmatprep.mubr.msk.bf16.mxu1 %vm2893_vm3, %v2892_v1 }
 0x280   : > { %2823 = vmatpush3.bf16.msra.mxu1 %v2882_v26  ;;  %2836 = vmatprep.subr.bf16.mxu0 %v2892_v1  ;;  %v2006_v25 = vsel %vm1996_vm15, %v1991_v6, %v2001_v16  ;;  %v2108_v26 = vsel %vm2098_vm0, %v2093_v8, %v2103_v23 }
 0x281   : > { %v2009_v27 = vpack.c.bf16 %v2006_v25, %v2006_v25  ;;  %v2111_v30 = vpack.c.bf16 %v2108_v26, %v2108_v26 }
 0x285   : > { %2787 = vmatmul.mubr.msk.bf16.gmra.mrb[80].mxu0 %vm312_vm1, %v1804_v33  ;;  %v2205_v33 = vmul.f32 0.01, %v2195_v10 }
 0x286   : > { %2801 = vmatmul.mubr.msk.bf16.gmra.mrb[96].mxu1 %vm312_vm1, %v1906_v35  ;;  %2790 = vmatprep.mubr.msk.bf16.mxu0 %vm2893_vm3, %v2892_v1  ;;  %v2212_v35 = vpack.c.bf16 %v2209_v19, %v3292_v50 }
 0x287   : > { %2804 = vmatprep.mubr.msk.bf16.mxu1 %vm2893_vm3, %v2892_v1  ;;  %v2210_v37 = vsel %vm2200_vm5, %v2195_v10, %v2205_v33 }
 0x288   : > { %v2213_v36 = vpack.c.bf16 %v2210_v37, %v2210_v37 }
 0x28d   : > { %2791 = vmatmul.mubr.msk.bf16.gmra.mrb[84].mxu0 %vm312_vm1, %v1805_v40 }
 0x28e   : > { %2805 = vmatmul.mubr.msk.bf16.gmra.mrb[100].mxu1 %vm312_vm1, %v1907_v41  ;;  %2810 = vmatprep.mubr.msk.bf16.mxu0 %vm2893_vm3, %v2892_v1 }
 0x28f   : > { %2824 = vmatprep.mubr.msk.bf16.mxu1 %vm2893_vm3, %v2892_v1 }
 0x295   : > { %2811 = vmatmul.mubr.msk.bf16.vlgmr.msra.gmra.mrb[88].mxu0 %vm312_vm1, %v2007_v58 }
 0x296   : > { %2825 = vmatmul.mubr.msk.bf16.vlgmr.msra.gmra.mrb[104].mxu1 %vm312_vm1, %v2109_v61  ;;  %2837 = vmatpush3.bf16.msra.mxu0 %v2883_v55 }
 0x297   : > { %2814 = vmatprep.mubr.msk.bf16.mxu0 %vm2893_vm3, %v2892_v1  ;;  %2828 = vmatprep.mubr.msk.bf16.mxu1 %vm2893_vm3, %v2892_v1 }
 0x29d   : > { %2815 = vmatmul.mubr.msk.bf16.gmra.mrb[92].mxu0 %vm312_vm1, %v2008_v21 }
 0x29e   : > { %2829 = vmatmul.mubr.msk.bf16.gmra.mrb[108].mxu1 %vm312_vm1, %v2110_v24  ;;  %2818 = vmatprep.mubr.msk.bf16.mxu0 %vm2893_vm3, %v2892_v1 }
 0x29f   : > { %2832 = vmatprep.mubr.msk.bf16.mxu1 %vm2893_vm3, %v2892_v1 }
 0x2a5   : > { %2819 = vmatmul.mubr.msk.bf16.gmra.mrb[96].mxu0 %vm312_vm1, %v2009_v27 }
 0x2a6   : > { %2833 = vmatmul.mubr.msk.bf16.gmra.mrb[112].mxu1 %vm312_vm1, %v2111_v30  ;;  %2838 = vmatprep.mubr.msk.bf16.mxu0 %vm2893_vm3, %v2892_v1 }
 0x2ad   : > { %2839 = vmatmul.mubr.msk.bf16.vlgmr.msra.gmra.mrb[100].mxu0 %vm312_vm1, %v2211_v11 }
 0x2ae   : > { %2842 = vmatprep.mubr.msk.bf16.mxu0 %vm2893_vm3, %v2892_v1 }
 0x2b5   : > { %2843 = vmatmul.mubr.msk.bf16.gmra.mrb[104].mxu0 %vm312_vm1, %v2212_v35 }
 0x2b6   : > { %2846 = vmatprep.mubr.msk.bf16.mxu0 %vm2893_vm3, %v2892_v1 }
 0x2bd   : > { %2847 = vmatmul.mubr.msk.bf16.gmra.mrb[108].mxu0 %vm312_vm1, %v2213_v36 }
 0x320   : > { %v1486_v57 = vpop.f32.mrb[52].mxu0 }
 0x321   : > { %v1557_v38 = vpop.f32.mrb[68].mxu1  ;;  %v2728_v44 = vpop.f32.mrb[53].mxu0 }
 0x322   : > { %v1558_v62 = vadd.f32 %v1557_v38, %v1486_v57  ;;  %v2742_v63 = vpop.f32.mrb[69].mxu1  ;;  %v1489_v39 = vpop.f32.mrb[54].mxu0 }
 0x323   : > { %v1560_v40 = vpop.f32.mrb[70].mxu1  ;;  %v2729_v13 = vpop.f32.mrb[55].mxu0 }
 0x324   : > { %v1561_v41 = vadd.f32 %v1560_v40, %v1489_v39  ;;  %v2743_v50 = vpop.f32.mrb[71].mxu1 }
 0x328   : > { %v1494_v20 = vpop.f32.mrb[56].mxu0 }
 0x329   : > { %v1565_v42 = vpop.f32.mrb[72].mxu1  ;;  %v2732_v45 = vpop.f32.mrb[57].mxu0 }
 0x32a   : > { %v1566_v46 = vadd.f32 %v1565_v42, %v1494_v20  ;;  %v2746_v47 = vpop.f32.mrb[73].mxu1  ;;  %v1497_v1 = vpop.f32.mrb[58].mxu0 }
 0x32b   : > { %v1568_v48 = vpop.f32.mrb[74].mxu1  ;;  %v2733_v49 = vpop.f32.mrb[59].mxu0 }
 0x32c   : > { %v1569_v51 = vadd.f32 %v1568_v48, %v1497_v1  ;;  %v2747_v54 = vpop.f32.mrb[75].mxu1 }
 0x330   : > { %v1502_v55 = vpop.f32.mrb[60].mxu0 }
 0x331   : > { %v1573_v56 = vpop.f32.mrb[76].mxu1  ;;  %v2736_v58 = vpop.f32.mrb[61].mxu0 }
 0x332   : > { %v1574_v59 = vadd.f32 %v1573_v56, %v1502_v55  ;;  %v2750_v60 = vpop.f32.mrb[77].mxu1  ;;  %v1505_v61 = vpop.f32.mrb[62].mxu0 }
 0x333   : > { %v1576_v0 = vpop.f32.mrb[78].mxu1  ;;  %v2737_v2 = vpop.f32.mrb[63].mxu0 }
 0x334   : > { %v2751_v3 = vpop.f32.mrb[79].mxu1 }
 0x338   : > { %v1654_v4 = vpop.f32.mrb[64].mxu0 }
 0x339   : > { %v1676_v5 = vadd.f32 %v1654_v4, %v1558_v62  ;;  %v1756_v6 = vpop.f32.mrb[80].mxu1  ;;  %v2756_v7 = vpop.f32.mrb[65].mxu0 }
 0x33a   : > { %v2770_v8 = vpop.f32.mrb[81].mxu1  ;;  %v1657_v14 = vpop.f32.mrb[66].mxu0 }
 0x33b   : > { %v1778_v15 = vadd.f32 %v1756_v6, %v1676_v5  ;;  %v1677_v16 = vadd.f32 %v1657_v14, %v1561_v41  ;;  %v1759_v21 = vpop.f32.mrb[82].mxu1  ;;  %v2757_v22 = vpop.f32.mrb[67].mxu0 }
 0x33c   : > { %v2771_v23 = vpop.f32.mrb[83].mxu1 }
 0x33d   : > { %v1779_v24 = vadd.f32 %v1759_v21, %v1677_v16 }
 0x340   : > { %v1662_v25 = vpop.f32.mrb[68].mxu0 }
 0x341   : > { %v1678_v26 = vadd.f32 %v1662_v25, %v1566_v46  ;;  %v1764_v27 = vpop.f32.mrb[84].mxu1  ;;  %v2760_v30 = vpop.f32.mrb[69].mxu0 }
 0x342   : > { %v2774_v53 = vpop.f32.mrb[85].mxu1  ;;  %v1665_v11 = vpop.f32.mrb[70].mxu0 }
 0x343   : > { %v1780_v31 = vadd.f32 %v1764_v27, %v1678_v26  ;;  %v1679_v10 = vadd.f32 %v1665_v11, %v1569_v51  ;;  %v1767_v19 = vpop.f32.mrb[86].mxu1  ;;  %v2761_v33 = vpop.f32.mrb[71].mxu0 }
 0x344   : > { %v2775_v35 = vpop.f32.mrb[87].mxu1 }
 0x345   : > { %v1781_v37 = vadd.f32 %v1767_v19, %v1679_v10 }
 0x348   : > { %v1670_v36 = vpop.f32.mrb[72].mxu0 }
 0x349   : > { %v1680_v57 = vadd.f32 %v1670_v36, %v1574_v59  ;;  %v1772_v38 = vpop.f32.mrb[88].mxu1  ;;  %v2764_v44 = vpop.f32.mrb[73].mxu0 }
 0x34a   : > { %v2778_v62 = vpop.f32.mrb[89].mxu1  ;;  %v1673_v63 = vpop.f32.mrb[74].mxu0 }
 0x34b   : > { %v1782_v39 = vadd.f32 %v1772_v38, %v1680_v57  ;;  %v1775_v40 = vpop.f32.mrb[90].mxu1  ;;  %v2765_v13 = vpop.f32.mrb[75].mxu0 }
 0x34c   : > { %v2779_v41 = vpop.f32.mrb[91].mxu1 }
 0x350   : > { %v1858_v50 = vpop.f32.mrb[76].mxu0 }
 0x351   : > { %v1880_v20 = vadd.f32 %v1858_v50, %v1778_v15  ;;  %v1960_v42 = vpop.f32.mrb[92].mxu1  ;;  %v2784_v45 = vpop.f32.mrb[77].mxu0 }
 0x352   : > { %v2798_v46 = vpop.f32.mrb[93].mxu1  ;;  %v1861_v47 = vpop.f32.mrb[78].mxu0 }
 0x353   : > { %v1982_v1 = vadd.f32 %v1960_v42, %v1880_v20  ;;  %v1881_v48 = vadd.f32 %v1861_v47, %v1779_v24  ;;  %v1963_v49 = vpop.f32.mrb[94].mxu1  ;;  %v2785_v51 = vpop.f32.mrb[79].mxu0 }
 0x354   : > { %v2799_v54 = vpop.f32.mrb[95].mxu1 }
 0x355   : > { %v1983_v55 = vadd.f32 %v1963_v49, %v1881_v48 }
 0x358   : > { %v1866_v56 = vpop.f32.mrb[80].mxu0 }
 0x359   : > { %v1882_v58 = vadd.f32 %v1866_v56, %v1780_v31  ;;  %v1968_v59 = vpop.f32.mrb[96].mxu1  ;;  %v2788_v60 = vpop.f32.mrb[81].mxu0 }
 0x35a   : > { %v2802_v61 = vpop.f32.mrb[97].mxu1  ;;  %v1869_v0 = vpop.f32.mrb[82].mxu0  ;;  %v2505_v60 = vld [vmem:[%s3406_s7] ss:$0 sm:$0xff] }
 0x35b   : > { %v1984_v2 = vadd.f32 %v1968_v59, %v1882_v58  ;;  %v1883_v3 = vadd.f32 %v1869_v0, %v1781_v37  ;;  %v1971_v4 = vpop.f32.mrb[98].mxu1  ;;  %v2789_v5 = vpop.f32.mrb[83].mxu0 }
 0x35c   : > { %v2803_v6 = vpop.f32.mrb[99].mxu1 }
 0x35d   : > { %v1985_v7 = vadd.f32 %v1971_v4, %v1883_v3 }
 0x360   : > { %v1874_v8 = vpop.f32.mrb[84].mxu0 }
 0x361   : > { %v1884_v14 = vadd.f32 %v1874_v8, %v1782_v39  ;;  %v1976_v15 = vpop.f32.mrb[100].mxu1  ;;  %v2792_v16 = vpop.f32.mrb[85].mxu0 }
 0x362   : > { %v2806_v21 = vpop.f32.mrb[101].mxu1  ;;  %v1877_v22 = vpop.f32.mrb[86].mxu0 }
 0x363   : > { %v1986_v23 = vadd.f32 %v1976_v15, %v1884_v14  ;;  %v1979_v24 = vpop.f32.mrb[102].mxu1  ;;  %v2793_v25 = vpop.f32.mrb[87].mxu0 }
 0x364   : > { %v2807_v26 = vpop.f32.mrb[103].mxu1 }
 0x368   : > { %v2062_v27 = vpop.f32.mrb[88].mxu0 }
 0x369   : > { %v2084_v30 = vadd.f32 %v2062_v27, %v1982_v1  ;;  %v2164_v53 = vpop.f32.mrb[104].mxu1  ;;  %v2812_v11 = vpop.f32.mrb[89].mxu0 }
 0x36a   : > { %v2826_v31 = vpop.f32.mrb[105].mxu1  ;;  %v2065_v10 = vpop.f32.mrb[90].mxu0 }
 0x36b   : > { %v2186_v19 = vadd.f32 %v2164_v53, %v2084_v30  ;;  %v2085_v33 = vadd.f32 %v2065_v10, %v1983_v55  ;;  %v2167_v35 = vpop.f32.mrb[106].mxu1  ;;  %v2813_v37 = vpop.f32.mrb[91].mxu0 }
 0x36c   : > { %v2827_v36 = vpop.f32.mrb[107].mxu1 }
 0x36d   : > { %v2187_v57 = vadd.f32 %v2167_v35, %v2085_v33 }
 0x370   : > { %v2070_v38 = vpop.f32.mrb[92].mxu0 }
 0x371   : > { %v2086_v44 = vadd.f32 %v2070_v38, %v1984_v2  ;;  %v2172_v62 = vpop.f32.mrb[108].mxu1  ;;  %v2816_v63 = vpop.f32.mrb[93].mxu0 }
 0x372   : > { %v2830_v39 = vpop.f32.mrb[109].mxu1  ;;  %v2073_v40 = vpop.f32.mrb[94].mxu0 }
 0x373   : > { %v2188_v13 = vadd.f32 %v2172_v62, %v2086_v44  ;;  %v2087_v41 = vadd.f32 %v2073_v40, %v1985_v7  ;;  %v2175_v50 = vpop.f32.mrb[110].mxu1  ;;  %v2817_v20 = vpop.f32.mrb[95].mxu0 }
 0x374   : > { %v2831_v42 = vpop.f32.mrb[111].mxu1 }
 0x375   : > { %v2189_v45 = vadd.f32 %v2175_v50, %v2087_v41 }
 0x378   : > { %v2078_v46 = vpop.f32.mrb[96].mxu0 }
 0x379   : > { %v2088_v47 = vadd.f32 %v2078_v46, %v1986_v23  ;;  %v2820_v1 = vpop.f32.mrb[97].mxu0  ;;  %v2180_v48 = vpop.f32.mrb[112].mxu1 }
 0x37a   : > { %v2081_v49 = vpop.f32.mrb[98].mxu0  ;;  %v2834_v51 = vpop.f32.mrb[113].mxu1 }
 0x37b   : > { %v2190_v54 = vadd.f32 %v2180_v48, %v2088_v47  ;;  %v2821_v55 = vpop.f32.mrb[99].mxu0  ;;  %v2183_v56 = vpop.f32.mrb[114].mxu1 }
 0x37c   : > { %v2835_v58 = vpop.f32.mrb[115].mxu1 }
 0x380   : > { %v2266_v59 = vpop.f32.mrb[100].mxu0 }
 0x381   : > { %v2288_v61 = vadd.f32 %v2266_v59, %v2186_v19  ;;  %v2840_v0 = vpop.f32.mrb[101].mxu0 }
 0x382   : > { %v2269_v2 = vpop.f32.mrb[102].mxu0 }
 0x383   : > { %v2300_v3 = vadd.f32 %v2505_v60, %v2288_v61  ;;  %v2289_v4 = vadd.f32 %v2269_v2, %v2187_v57  ;;  %v2841_v5 = vpop.f32.mrb[103].mxu0 }
 0x385   : > { %v2305_v6 = vmul.f32 %v2300_v3, %v3041_v29  ;;  %v2301_v7 = vadd.f32 %v2505_v60, %v2289_v4 }
 0x387   : > { %v2310_v8 = vadd.f32 %v2305_v6, %v3128_v12  ;;  %v2306_v14 = vmul.f32 %v2301_v7, %v3049_v43 }
 0x388   : > { %v2274_v15 = vpop.f32.mrb[104].mxu0 }
 0x389   : > { %2315 = vst.msk [vmem:[#allocation2 + $0x8] sm:$0xff] %vm312_vm1, %v2310_v8  ;;  %v2311_v16 = vadd.f32 %v2306_v14, %v3126_v9  ;;  %v2290_v21 = vadd.f32 %v2274_v15, %v2188_v13  ;;  %v2844_v22 = vpop.f32.mrb[105].mxu0 }
 0x38a   : > { %v2277_v23 = vpop.f32.mrb[106].mxu0 }
 0x38b   : > { %2316 = vst.msk [vmem:[#allocation2 + $0x10] sm:$0xff] %vm312_vm1, %v2311_v16  ;;  %v2302_v24 = vadd.f32 %v2505_v60, %v2290_v21  ;;  %v2291_v25 = vadd.f32 %v2277_v23, %v2189_v45  ;;  %v2845_v29 = vpop.f32.mrb[107].mxu0 }
 0x38d   : > { %v2307_v26 = vmul.f32 %v2302_v24, %v3039_v28  ;;  %v2303_v12 = vadd.f32 %v2505_v60, %v2291_v25 }
 0x38f   : > { %v2312_v43 = vadd.f32 %v2307_v26, %v3141_v17  ;;  %v2308_v27 = vmul.f32 %v2303_v12, %v3046_v32 }
 0x390   : > { %v2321_v30 = vld [vmem:[#allocation2 + $0x8] sm:$0xff]  ;;  %v2282_v53 = vpop.f32.mrb[108].mxu0 }
 0x391   : > { %2328 = vst.msk [vmem:[%s3029_s29 + $0x8] sm:$0xff] %vm312_vm1, %v2321_v30  ;;  %2317 = vst.msk [vmem:[#allocation2 + $0x18] sm:$0xff] %vm312_vm1, %v2312_v43  ;;  %v2313_v9 = vadd.f32 %v2308_v27, %v3143_v18  ;;  %v2292_v11 = vadd.f32 %v2282_v53, %v2190_v54  ;;  %v2848_v31 = vpop.f32.mrb[109].mxu0 }
 0x392   : > { %v2322_v10 = vld [vmem:[#allocation2 + $0x10] sm:$0xff]  ;;  %v2285_v28 = vpop.f32.mrb[110].mxu0 }
 0x393   : > { %2329 = vst.msk [vmem:[%s3029_s29 + $0x10] sm:$0xff] %vm312_vm1, %v2322_v10  ;;  %2318 = vst.msk [vmem:[#allocation2 + $0x20] sm:$0xff] %vm312_vm1, %v2313_v9  ;;  %v2304_v32 = vadd.f32 %v2505_v60, %v2292_v11  ;;  %v2849_v17 = vpop.f32.mrb[111].mxu0 }
 0x395   : > { %v2309_v19 = vmul.f32 %v2304_v32, %v3058_v52 }
 0x397   : > { %v2314_v33 = vadd.f32 %v2309_v19, %v3167_v34 }
 0x398   : > { %v2323_v35 = vld [vmem:[#allocation2 + $0x18] sm:$0xff] }
 0x399   : > { %2330 = vst.msk [vmem:[%s3029_s29 + $0x18] sm:$0xff] %vm312_vm1, %v2323_v35 }
 0x39a   : > { %2319 = vst.msk [vmem:[#allocation2 + $0x28] sm:$0xf] %vm319_vm4, %v2314_v33  ;;  %v2324_v18 = vld [vmem:[#allocation2 + $0x20] sm:$0xff] }
 0x39b   : > { %2331 = vst.msk [vmem:[%s3029_s29 + $0x20] sm:$0xff] %vm312_vm1, %v2324_v18 }
 0x3a1   : > { %v2325_v37 = vld [vmem:[#allocation2 + $0x28] sm:$0xff] }
 0x3a2   : > { %2332 = vst.msk [vmem:[%s3029_s29 + $0x28] sm:$0xff] %vm312_vm1, %v2325_v37 }
 0x3a3 PF: > { %s18_s27 = sadd.s32 1, %s2890_s27  }
 0x3a4   : > { %p15_p4 = scmp.ge.s32.totalorder %s18_s27, 4  }
 0x3a6   :  { %17 = sbr.rel (!%p15_p4) target bundleno = 1 (0x1), region = 98 }

// kernel: _lambda_.9
= control target key start
LH: loop header
LB: loop body
LE: loop exit
PB: predicated region body
PF: predicated region fallthrough
CT: control target
= control target key end

     0   :  { %20 = vsyncpa [#allocation3], 0  ;;  %s903_s0 = inlined_call_operand.vmem [shape: f32[2,256], index: 0, kind: input, shape index: {}]   ;;  %s904_s1 = inlined_call_operand.vmem [shape: bf16[256,32], index: 1, kind: input, shape index: {}]   ;;  %s905_s2 = inlined_call_operand.vmem [shape: f32[1,32], index: 2, kind: input, shape index: {}]   ;;  %s906_s3 = inlined_call_operand.vmem [shape: f32[1,32], index: 3, kind: input, shape index: {}]   ;;  %s907_s4 = inlined_call_operand.vmem [shape: f32[1,32], index: 4, kind: input, shape index: {}]   ;;  %s908_s5 = inlined_call_operand.vmem [shape: bf16[32,16], index: 5, kind: input, shape index: {}]   ;;  %s909_s6 = inlined_call_operand.vmem [shape: f32[1,16], index: 6, kind: input, shape index: {}]   ;;  %s910_s7 = inlined_call_operand.vmem [shape: bf16[32,16], index: 7, kind: input, shape index: {}]   ;;  %s911_s8 = inlined_call_operand.vmem [shape: f32[1,16], index: 8, kind: input, shape index: {}]   ;;  %s912_s9 = inlined_call_operand.vmem [shape: f32[2,16], index: 9, kind: input, shape index: {}]   ;;  %s913_s10 = inlined_call_operand.hbm [shape: f32[2,16], index: 10, kind: output, shape index: {0}]   ;;  %s914_s11 = inlined_call_operand.vmem [shape: f32[2,1], index: 11, kind: output, shape index: {1}]   ;;  %s915_s12 = inlined_call_operand.hbm [shape: f32[2,16], index: 12, kind: output, shape index: {2}]   ;;  %s916_s13 = inlined_call_operand.hbm [shape: f32[2,16], index: 13, kind: output, shape index: {3}]   ;;  %s917_s14 = inlined_call_operand.hbm [shape: f32[2,16], index: 14, kind: output, shape index: {4}]  }
   0x1   :  { %21 = vsyncpa [#allocation5], 0  ;;  %v562_v0 = vld [vmem:[%s904_s1 + $0x40] sm:$0xff]   ;;  %v564_v2 = vld [vmem:[%s904_s1 + $0x48] sm:$0xff]   ;;  %v52_v8 = vlaneseq  ;;  %v682_v16 = vmov 1983009808  }
   0x2   :  { %v563_v1 = vld [vmem:[%s904_s1] sm:$0xff]   ;;  %511 = vmatprep.subr.bf16.mxu0 %v562_v0  ;;  %v565_v3 = vld [vmem:[%s904_s1 + $0x8] sm:$0xff]   ;;  %v566_v4 = vld [vmem:[%s904_s1 + $0x50] sm:$0xff]   ;;  %v50_v17 = vunpack.c.l.s4 %v682_v16 }
   0x3   :  { %512 = vmatpush3.bf16.msra.mxu0 %v563_v1  ;;  %v567_v5 = vld [vmem:[%s904_s1 + $0x10] sm:$0xff]   ;;  %v568_v6 = vld [vmem:[%s904_s1 + $0x58] sm:$0xff]   ;;  %v570_v9 = vld [vmem:[%s904_s1 + $0x60] sm:$0xff]   ;;  %v53_v12 = vshrl.u32 %v52_v8, 7 }
   0x4   :  { %513 = vmatprep.subr.bf16.mxu0 %v564_v2  ;;  %v569_v7 = vld [vmem:[%s904_s1 + $0x18] sm:$0xff]   ;;  %v571_v10 = vld [vmem:[%s904_s1 + $0x20] sm:$0xff]   ;;  %v572_v11 = vld [vmem:[%s904_s1 + $0x68] sm:$0xff]   ;;  %v51_v18 = vunpack.c.0.s8 %v50_v17 }
   0x5   :  { %v44_v13 = vld [vmem:[%s903_s0] sm:$0xf]  ;;  %v573_v14 = vld [vmem:[%s904_s1 + $0x28] sm:$0xff]   ;;  %v574_v19 = vld [vmem:[%s904_s1 + $0x70] sm:$0xff]  }
   0x6   :  { %vm45_vm0 = vcmp.ge.f32.partialorder %v44_v13, 0.0  ;;  %v46_v15 = vmul.f32 0.01, %v44_v13 }
   0x7   :  { %514 = vmatpush3.bf16.msra.mxu0 %v565_v3 }
   0x8   :  { %515 = vmatprep.subr.bf16.mxu0 %v566_v4  ;;  %v47_v20 = vsel %vm45_vm0, %v44_v13, %v46_v15 }
   0xb   :  { %516 = vmatpush3.bf16.msra.mxu0 %v567_v5 }
   0xc   :  { %517 = vmatprep.subr.bf16.mxu0 %v568_v6 }
   0xf   :  { %518 = vmatpush3.bf16.msra.mxu0 %v569_v7 }
  0x10   :  { %519 = vmatprep.subr.bf16.mxu0 %v570_v9 }
  0x13   :  { %520 = vmatpush3.bf16.msra.mxu0 %v571_v10 }
  0x14   :  { %521 = vmatprep.subr.bf16.mxu0 %v572_v11 }
  0x15   :  { %22 = vsyncpa [#allocation8], 0  ;;  %v54_v21 = vsub.s32 %v51_v18, %v53_v12  ;;  %v575_v22 = vld [vmem:[%s904_s1 + $0x30] sm:$0xff]   ;;  %v576_v24 = vld [vmem:[%s904_s1 + $0x78] sm:$0xff]   ;;  %vm239_vm2 = vcmask 254976   ;;  %v683_v45 = vmov 0.0  }
  0x16   :  { %v577_v26 = vld [vmem:[%s904_s1 + $0x38] sm:$0xff]   ;;  %v483_v30 = vld [vmem:[%s905_s2] ss:$0 sm:$0xff]  ;;  %539 = vmatprep.subr.bf16.mxu1 %v683_v45  ;;  %v579_v46 = vld [vmem:[%s908_s5 + $0x8] sm:$0xff]   ;;  %vm684_vm3 = vmmov 0   ;;  %vm294_vm4 = vcmask 261120  }
  0x17   :  { %522 = vmatpush3.bf16.msra.mxu0 %v573_v14  ;;  %v55_v23 = vrot.slane %v47_v20, %v54_v21  ;;  %v578_v44 = vld [vmem:[%s908_s5] sm:$0xff]   ;;  %543 = vmatprep.mubr.msk.bf16.mxu1 %vm684_vm3, %v683_v45  ;;  %v581_v58 = vld [vmem:[%s910_s7 + $0x8] sm:$0xff]   ;;  %s685_s0 = smov [#allocation4]   ;;  %vm414_vm5 = vcmask 123904  }
  0x18   :  { %523 = vmatprep.subr.bf16.mxu0 %v574_v19  ;;  %540 = vmatpush3.bf16.msra.mxu1 %v578_v44  ;;  %v500_v51 = vld [vmem:[%s906_s3] ss:$0 sm:$0xff]  ;;  %s442_s25 = sshll.u32 %s685_s0, 4  ;;  %s443_s25 = int_to_ptr.vmem [resolvable:$true] %s442_s25 }
  0x19   :  { %v56_v25 = vcombine.high %v55_v23, %v55_v23  ;;  %v59_v28 = vpack.c.bf16 %v55_v23, %v55_v23  ;;  %541 = vmatprep.subr.bf16.mxu1 %v683_v45  ;;  %v501_v53 = vld [vmem:[%s907_s4] ss:$0 sm:$0xff]  ;;  %p593_p1 = scmp.lt.s32.totalorder %s443_s25, %s443_s25 }
  0x1a   :  { %v580_v56 = vld [vmem:[%s910_s7] sm:$0xff]   ;;  %s588_s7 = scalar_lea.vmem %s443_s25, 32 }
  0x1b   :  { %524 = vmatpush3.bf16.msra.mxu0 %v575_v22  ;;  %v60_v27 = vpack.c.bf16 %v56_v25, %v56_v25  ;;  %v502_v59 = vld [vmem:[%s909_s6] ss:$0 sm:$0xff]  ;;  %p589_p0 = scmp.ne.s32.totalorder %s443_s25, %s588_s7  ;;  %p594_p2 = scmp.lt.s32.totalorder %s588_s7, %s588_s7 }
  0x1c   :  { %525 = vmatprep.subr.bf16.mxu0 %v576_v24  ;;  %542 = vmatpush3.bf16.msra.mxu1 %v579_v46 }
  0x1d   :  { %228 = vmatprep.mubr.bf16.mxu0 %v60_v27  ;;  %547 = vmatprep.subr.bf16.mxu1 %v683_v45  ;;  %p595_p3 = por %p594_p2, %p593_p1 }
  0x1f   :  { %526 = vmatpush3.bf16.msra.mxu0 %v577_v26  ;;  %p596_p4 = pnand %p595_p3, %p589_p0 }
  0x22   :  { %229 = vmatmul.mubr.bf16.vlgmr.msra.gmra.mrb[0].mxu0 %v59_v28 }
  0xf5   :  { %v527_v29 = vpop.f32.mrb[0].mxu0 }
  0xf6   :  { %v528_v31 = vpop.f32.mrb[1].mxu0 }
  0xf7   :  { %v529_v32 = vadd.f32 %v528_v31, %v527_v29  ;;  %v530_v33 = vpop.f32.mrb[2].mxu0 }
  0xf8   :  { %v531_v34 = vpop.f32.mrb[3].mxu0 }
  0xf9   :  { %v231_v35 = vadd.f32 %v529_v32, %v483_v30 }
  0xfb   :  { %vm236_vm1 = vcmp.ge.f32.partialorder %v231_v35, 0.0  ;;  %v237_v36 = vmul.f32 0.01, %v231_v35 }
  0xfd   :  { %v238_v37 = vsel %vm236_vm1, %v231_v35, %v237_v36 }
  0xfe   :  { %v240_v38 = vsel %vm239_vm2, %v238_v37, 0.0 }
  0xff   :  { %241 = vadd.xlane.f32.xlu0 %v240_v38 }
 0x18c   :  { %v242_v39 = vpop.xlane.xlu0 %241 }
 0x18d   :  { %v244_v40 = vmul.f32 0.03125, %v242_v39 }
 0x18f   :  { %v245_v41 = vsub.f32 %v238_v37, %v244_v40 }
 0x191   :  { %v246_v42 = vmul.f32 %v245_v41, %v245_v41 }
 0x193   :  { %v247_v43 = vsel %vm239_vm2, %v246_v42, 0.0 }
 0x194   :  { %248 = vadd.xlane.f32.xlu0 %v247_v43 }
 0x221   :  { %v249_v47 = vpop.xlane.xlu0 %248 }
 0x222   :  { %v250_v48 = vmul.f32 0.03125, %v249_v47 }
 0x224   :  { %v251_v49 = vadd.f32 1e-05, %v250_v48 }
 0x226   :  { %582 = vrsqrt.f32 %v251_v49 }
 0x230   :  { %v583_v50 = vpop.eup %582 }
 0x231   :  { %v253_v52 = vmul.f32 %v583_v50, %v245_v41 }
 0x233   :  { %v261_v54 = vmul.f32 %v500_v51, %v253_v52 }
 0x235   :  { %v269_v55 = vadd.f32 %v501_v53, %v261_v54 }
 0x237   :  { %v270_v57 = vpack.c.bf16 %v269_v55, %v269_v55 }
 0x239   :  { %544 = vmatmul.mubr.msk.bf16.vlgmr.msra.gmra.mrb[0].mxu1 %vm294_vm4, %v270_v57 }
 0x23a   :  { %548 = vmatpush3.bf16.msra.mxu1 %v580_v56  ;;  %551 = vmatprep.mubr.msk.bf16.mxu1 %vm684_vm3, %v683_v45 }
 0x23b   :  { %549 = vmatprep.subr.bf16.mxu1 %v683_v45 }
 0x23e   :  { %550 = vmatpush3.bf16.msra.mxu1 %v581_v58 }
 0x241   :  { %552 = vmatmul.mubr.msk.bf16.vlgmr.msra.gmra.mrb[4].mxu1 %vm294_vm4, %v270_v57 }
 0x30c   :  { %v332_v60 = vpop.f32.mrb[0].mxu1 }
 0x30d   :  { %v333_v61 = vadd.f32 %v502_v59, %v332_v60  ;;  %v545_v62 = vpop.f32.mrb[1].mxu1 }
 0x30e   :  { %v335_v63 = vpop.f32.mrb[2].mxu1 }
 0x30f   :  { %v546_v0 = vpop.f32.mrb[3].mxu1  ;;  %421 = vst.msk [vmem:[#allocation4] sm:$0x3] %vm414_vm5, %v333_v61 }
 0x310   :  { %599 = shalt.err (!%p596_p4)
}
 0x311   :  { %s600_s27 = scalar_lea.hbm %s915_s12, 32 }
 0x312   :  { %p601_p5 = scmp.ne.s32.totalorder %s915_s12, %s600_s27  ;;  %p604_p6 = scmp.lt.u32.totalorder %s600_s27, %s915_s12 }
 0x314   :  { %p606_p7 = pnand %p604_p6, %p601_p5 }
 0x316   :  { %609 = shalt.err (!%p606_p7)
}
 0x317   :  { %445 = dma.vmem_to_hbm [thread:$0]  %s443_s25, 32, %s915_s12, [#allocation5]   ;;  %v506_v1 = vld [vmem:[%s911_s8] ss:$0 sm:$0xff]  ;;  %v395_v2 = vpop.f32.mrb[4].mxu1  ;;  %v404_v10 = vmul.f32 %v333_v61, %v333_v61 }
 0x318   :  { %v396_v3 = vadd.f32 %v506_v1, %v395_v2  ;;  %v553_v4 = vpop.f32.mrb[5].mxu1  ;;  %v411_v12 = vld [vmem:[%s912_s9] sm:$0x3]  ;;  %s686_s8 = smov [#allocation2]   ;;  %s687_s20 = smov [#allocation6]  }
 0x319   :  { %v398_v5 = vpop.f32.mrb[6].mxu1  ;;  %s430_s19 = sshll.u32 %s686_s8, 4  ;;  %s452_s21 = sshll.u32 %s687_s20, 4  ;;  %s431_s19 = int_to_ptr.vmem [resolvable:$true] %s430_s19  ;;  %s453_s21 = int_to_ptr.vmem [resolvable:$true] %s452_s21 }
 0x31a   :  { %v401_v6 = vmul.f32 0.5, %v396_v3  ;;  %v405_v7 = vmul.f32 1.442695, %v396_v3  ;;  %v554_v8 = vpop.f32.mrb[7].mxu1  ;;  %422 = vst.msk [vmem:[#allocation6] sm:$0x3] %vm414_vm5, %v396_v3  ;;  %p615_p9 = scmp.lt.s32.totalorder %s431_s19, %s431_s19 }
 0x31b   :  { %s610_s9 = scalar_lea.vmem %s431_s19, 32 }
 0x31c   :  { %v402_v9 = vmul.f32 1.442695, %v401_v6  ;;  %584 = vpow2.f32 %v405_v7  ;;  %p611_p8 = scmp.ne.s32.totalorder %s431_s19, %s610_s9  ;;  %p616_p10 = scmp.lt.s32.totalorder %s610_s9, %s610_s9 }
 0x31e   :  { %586 = vpow2.f32 %v402_v9  ;;  %p617_p11 = por %p616_p10, %p615_p9 }
 0x320   :  { %p618_p12 = pnand %p617_p11, %p611_p8 }
 0x326   :  { %v585_v11 = vpop.eup %584 }
 0x327   :  { %v407_v13 = vadd.f32 %v585_v11, %v404_v10 }
 0x328   :  { %v587_v14 = vpop.eup %586 }
 0x329   :  { %v510_v15 = vadd.f32 -1.0, %v407_v13  ;;  %423 = vst.msk [vmem:[#allocation7] sm:$0x3] %vm414_vm5, %v587_v14  ;;  %v412_v16 = vmul.f32 %v587_v14, %v411_v12 }
 0x32b   :  { %v409_v17 = vsub.f32 %v510_v15, %v396_v3  ;;  %v413_v18 = vadd.f32 %v412_v16, %v333_v61 }
 0x32d   :  { %v410_v19 = vmul.f32 0.5, %v409_v17  ;;  %415 = vst.msk [vmem:[#allocation2] sm:$0x3] %vm414_vm5, %v413_v18 }
 0x32f   :  { %v416_v20 = vsel %vm414_vm5, %v410_v19, 0.0 }
 0x330   :  { %417 = vadd.xlane.f32.xlu1 %v416_v20 }
 0x331   :  { %621 = shalt.err (!%p618_p12)
}
 0x332   :  { %s622_s23 = scalar_lea.hbm %s913_s10, 32 }
 0x333   :  { %p623_p13 = scmp.ne.s32.totalorder %s913_s10, %s622_s23  ;;  %p626_p0 = scmp.lt.u32.totalorder %s622_s23, %s913_s10 }
 0x335   :  { %p628_p1 = pnand %p626_p0, %p623_p13 }
 0x337   :  { %631 = shalt.err (!%p628_p1)
}
 0x338   :  { %433 = dma.vmem_to_hbm [thread:$0]  %s431_s19, 32, %s913_s10, [#allocation3]  }
 0x339   :  { %s632_s26 = scalar_lea.vmem %s453_s21, 32  ;;  %p637_p3 = scmp.lt.s32.totalorder %s453_s21, %s453_s21 }
 0x33a   :  { %p633_p2 = scmp.ne.s32.totalorder %s453_s21, %s632_s26  ;;  %p638_p4 = scmp.lt.s32.totalorder %s632_s26, %s632_s26 }
 0x33c   :  { %p639_p5 = por %p638_p4, %p637_p3 }
 0x33e   :  { %p640_p6 = pnand %p639_p5, %p633_p2 }
 0x340   :  { %643 = shalt.err (!%p640_p6)
}
 0x341   :  { %s644_s28 = scalar_lea.hbm %s916_s13, 32 }
 0x342   :  { %p645_p7 = scmp.ne.s32.totalorder %s916_s13, %s644_s28  ;;  %p648_p8 = scmp.lt.u32.totalorder %s644_s28, %s916_s13 }
 0x344   :  { %p650_p9 = pnand %p648_p8, %p645_p7 }
 0x346   :  { %653 = shalt.err (!%p650_p9)
}
 0x347   :  { %455 = dma.vmem_to_hbm [thread:$0]  %s453_s21, 32, %s916_s13, [#allocation5]  }
 0x348   :  { %s688_s2 = smov [#allocation7]  }
 0x349   :  { %s462_s17 = sshll.u32 %s688_s2, 4  ;;  %s463_s17 = int_to_ptr.vmem [resolvable:$true] %s462_s17 }
 0x34a   :  { %s654_s18 = scalar_lea.vmem %s463_s17, 32  ;;  %p659_p11 = scmp.lt.s32.totalorder %s463_s17, %s463_s17 }
 0x34b   :  { %p655_p10 = scmp.ne.s32.totalorder %s463_s17, %s654_s18  ;;  %p660_p12 = scmp.lt.s32.totalorder %s654_s18, %s654_s18 }
 0x34d   :  { %p661_p13 = por %p660_p12, %p659_p11 }
 0x34f   :  { %p662_p0 = pnand %p661_p13, %p655_p10 }
 0x351   :  { %665 = shalt.err (!%p662_p0)
}
 0x352   :  { %s666_s19 = scalar_lea.hbm %s917_s14, 32 }
 0x353   :  { %p667_p1 = scmp.ne.s32.totalorder %s917_s14, %s666_s19  ;;  %p670_p2 = scmp.lt.u32.totalorder %s666_s19, %s917_s14 }
 0x355   :  { %p672_p3 = pnand %p670_p2, %p667_p1 }
 0x357   :  { %675 = shalt.err (!%p672_p3)
}
 0x358   :  { %465 = dma.vmem_to_hbm [thread:$0]  %s463_s17, 32, %s917_s14, [#allocation8]   ;;  %vm419_vm6 = vcmask 1024  }
 0x3bd   :  { %v418_v21 = vpop.xlane.xlu1 %417 }
 0x3be   :  { %420 = vst.msk [vmem:[%s914_s11] sm:$0x3] %vm419_vm6, %v418_v21 }
 0x3bf   :  { %676 = dma.done.wait [#allocation3], 32  }
 0x3c0   :  { %677 = vsyncadd [#allocation3], 4294967264 }
 0x3c1   :  { %678 = dma.done.wait [#allocation5], 64  }
 0x3c2   :  { %679 = vsyncadd [#allocation5], 4294967232 }
 0x3c3   :  { %680 = dma.done.wait [#allocation8], 32  }
 0x3c4   :  { %681 = vsyncadd [#allocation8], 4294967264 }
 0x3c5   :  { %480 = vsyncpa [#allocation3], 1 }
 0x3c6   :  { %481 = vsyncpa [#allocation5], 1 }
 0x3c7   :  { %482 = vsyncpa [#allocation8], 1 }

// kernel: _lambda_.6
= control target key start
LH: loop header
LB: loop body
LE: loop exit
PB: predicated region body
PF: predicated region fallthrough
CT: control target
= control target key end

     0   :  { %s4770_s21 = smov 0   ;;  %s6014_s0 = inlined_call_operand.vmem [shape: f32[2,132,8], index: 0, kind: input, shape index: {}]   ;;  %s6015_s1 = inlined_call_operand.vmem [shape: f32[100,1], index: 1, kind: input, shape index: {}]   ;;  %s6016_s2 = inlined_call_operand.vmem [shape: bf16[9,8,8], index: 2, kind: input, shape index: {}]   ;;  %s6017_s3 = inlined_call_operand.vmem [shape: f32[1,8], index: 3, kind: input, shape index: {}]   ;;  %s6018_s4 = inlined_call_operand.vmem [shape: bf16[9,8,8], index: 4, kind: input, shape index: {}]   ;;  %s6019_s5 = inlined_call_operand.vmem [shape: f32[1,8], index: 5, kind: input, shape index: {}]   ;;  %s6020_s6 = inlined_call_operand.vmem [shape: f32[2,132,8], index: 6, kind: output, shape index: {}]  }
   0x1 LB: > { %s3873_s22 = sadd.s32 4294967295, %s4730_s21   ;;  %p3877_p0 = scmp.ge.s32.totalorder %s4730_s21, 1  ;;  %s4730_s21 = sphi %s4770_s21, %s16_s21  }
   0x2   : > { %p212_p1 = scmp.lt.s32.totalorder %s4730_s21, 3 }
   0x4   : > { %p213_p2 = pnand %p3877_p0, %p212_p1 }
   0x5   : > { %v3880_v0 = vld [vmem:[%s6016_s2 + $0x4] sm:$0xf] (!%p213_p2)  ;;  %vm474_vm0 = vcmask (!%p213_p2), 1043456   ;;  %v391_v1 = vld [vmem:[%s6016_s2] sm:$0xf] (!%p213_p2)  ;;  %v4732_v2 = vmov (!%p213_p2), 0.0  }
   0x6   : > { %216 = sbr.rel (%p213_p2) target bundleno = 989 (0x3dd), region = 44  ;;  %4170 = vmatprep.subr.bf16.mxu0 (!%p213_p2), %v4732_v2  ;;  %v476_v3 = vsel (!%p213_p2), %vm474_vm0, %v3880_v0, 0  ;;  %4200 = vmatprep.subr.bf16.mxu1 (!%p213_p2), %v4732_v2  ;;  %v588_v4 = vsel (!%p213_p2), %vm474_vm0, %v391_v1, 0  ;;  %p4790_p3 = scmp.lt.s32.totalorder (!%p213_p2), %s3873_s22, 1  ;;  %vm266_vm1 = vcmask (!%p213_p2), 64512   ;;  %vm4733_vm2 = vmmov (!%p213_p2), 0  }
   0x7   : > { %4171 = vmatpush3.bf16.msra.mxu0 (!%p213_p2), %v476_v3  ;;  %4201 = vmatpush3.bf16.msra.mxu1 (!%p213_p2), %v588_v4  ;;  %267 = vst.msk [vmem:[#allocation2] sm:$0xff] (!%p213_p2), %vm266_vm1, %v4732_v2  ;;  %268 = vst.msk [vmem:[#allocation2 + $0x8] sm:$0xff] (!%p213_p2), %vm266_vm1, %v4732_v2  ;;  %v3895_v20 = vld [vmem:[%s6016_s2 + $0x8] sm:$0xf] (!%p213_p2)  ;;  %v3903_v21 = vld [vmem:[%s6016_s2 + $0xc] sm:$0xf] (!%p213_p2) }
   0x8   : > { %269 = vst.msk [vmem:[#allocation2 + $0x10] sm:$0xff] (!%p213_p2), %vm266_vm1, %v4732_v2  ;;  %270 = vst.msk [vmem:[#allocation2 + $0x18] sm:$0xff] (!%p213_p2), %vm266_vm1, %v4732_v2  ;;  %4172 = vmatprep.mubr.msk.bf16.mxu0 (!%p213_p2), %vm4733_vm2, %v4732_v2  ;;  %4202 = vmatprep.mubr.msk.bf16.mxu1 (!%p213_p2), %vm4733_vm2, %v4732_v2  ;;  %v761_v30 = vsel (!%p213_p2), %vm474_vm0, %v3895_v20, 0  ;;  %v947_v31 = vsel (!%p213_p2), %vm474_vm0, %v3903_v21, 0 }
   0x9   : > { %271 = vst.msk [vmem:[#allocation2 + $0x20] sm:$0xff] (!%p213_p2), %vm266_vm1, %v4732_v2  ;;  %272 = vst.msk [vmem:[#allocation2 + $0x28] sm:$0xff] (!%p213_p2), %vm266_vm1, %v4732_v2  ;;  %4230 = vmatprep.subr.bf16.mxu0 (!%p213_p2), %v4732_v2  ;;  %4260 = vmatprep.subr.bf16.mxu1 (!%p213_p2), %v4732_v2 }
   0xa   : > { %273 = vst.msk [vmem:[#allocation2 + $0x30] sm:$0xff] (!%p213_p2), %vm266_vm1, %v4732_v2  ;;  %274 = vst.msk [vmem:[#allocation2 + $0x38] sm:$0xff] (!%p213_p2), %vm266_vm1, %v4732_v2 }
   0xb   : > { %275 = vst.msk [vmem:[#allocation2 + $0x40] sm:$0xff] (!%p213_p2), %vm266_vm1, %v4732_v2  ;;  %276 = vst.msk [vmem:[#allocation2 + $0x48] sm:$0xff] (!%p213_p2), %vm266_vm1, %v4732_v2 }
   0xc   : > { %277 = vst.msk [vmem:[#allocation2 + $0x50] sm:$0xff] (!%p213_p2), %vm266_vm1, %v4732_v2  ;;  %278 = vst.msk [vmem:[#allocation2 + $0x58] sm:$0xff] (!%p213_p2), %vm266_vm1, %v4732_v2 }
   0xd   : > { %279 = vst.msk [vmem:[#allocation2 + $0x60] sm:$0xff] %vm266_vm1, %v4732_v2  ;;  %280 = vst.msk [vmem:[#allocation2 + $0x68] sm:$0xff] %vm266_vm1, %v4732_v2  ;;  %s6023_s22 = smov (!%p4790_p3, %s3873_s22), 1 }
   0xe   : > { %281 = vst.msk [vmem:[#allocation2 + $0x70] sm:$0xff] %vm266_vm1, %v4732_v2  ;;  %282 = vst.msk [vmem:[#allocation2 + $0x78] sm:$0xff] %vm266_vm1, %v4732_v2  ;;  %s4710_s28 = smul.u32 136, %s6023_s22 }
  0x10   : > { %s4844_s7 = scalar_lea.vmem %s6014_s0, %s4710_s28  ;;  %s4887_s14 = scalar_lea.vmem %s6020_s6, %s4710_s28 }
  0x11   : > { %v285_v5 = vld [vmem:[%s4844_s7] sm:$0xff]  ;;  %v286_v6 = vld [vmem:[%s4844_s7 + $0x8] sm:$0xff]  ;;  %v287_v7 = vld [vmem:[%s4844_s7 + $0x10] sm:$0xff] }
  0x12   : > { %302 = vst.msk [vmem:[#allocation2] sm:$0xff] %vm266_vm1, %v285_v5  ;;  %303 = vst.msk [vmem:[#allocation2 + $0x8] sm:$0xff] %vm266_vm1, %v286_v6  ;;  %v288_v8 = vld [vmem:[%s4844_s7 + $0x18] sm:$0xff]  ;;  %v289_v9 = vld [vmem:[%s4844_s7 + $0x20] sm:$0xff] }
  0x13   : > { %304 = vst.msk [vmem:[#allocation2 + $0x10] sm:$0xff] %vm266_vm1, %v287_v7  ;;  %v290_v10 = vld [vmem:[%s4844_s7 + $0x28] sm:$0xff]  ;;  %305 = vst.msk [vmem:[#allocation2 + $0x18] sm:$0xff] %vm266_vm1, %v288_v8  ;;  %v291_v11 = vld [vmem:[%s4844_s7 + $0x30] sm:$0xff] }
  0x14   : > { %306 = vst.msk [vmem:[#allocation2 + $0x20] sm:$0xff] %vm266_vm1, %v289_v9  ;;  %307 = vst.msk [vmem:[#allocation2 + $0x28] sm:$0xff] %vm266_vm1, %v290_v10  ;;  %v292_v12 = vld [vmem:[%s4844_s7 + $0x38] sm:$0xff]  ;;  %v293_v13 = vld [vmem:[%s4844_s7 + $0x40] sm:$0xff] }
  0x15   : > { %308 = vst.msk [vmem:[#allocation2 + $0x30] sm:$0xff] %vm266_vm1, %v291_v11  ;;  %309 = vst.msk [vmem:[#allocation2 + $0x38] sm:$0xff] %vm266_vm1, %v292_v12  ;;  %v294_v14 = vld [vmem:[%s4844_s7 + $0x48] sm:$0xff]  ;;  %v295_v15 = vld [vmem:[%s4844_s7 + $0x50] sm:$0xff] }
  0x16   : > { %310 = vst.msk [vmem:[#allocation2 + $0x40] sm:$0xff] %vm266_vm1, %v293_v13  ;;  %v296_v16 = vld [vmem:[%s4844_s7 + $0x58] sm:$0xff]  ;;  %311 = vst.msk [vmem:[#allocation2 + $0x48] sm:$0xff] %vm266_vm1, %v294_v14  ;;  %v297_v17 = vld [vmem:[%s4844_s7 + $0x60] sm:$0xff] }
  0x17   : > { %312 = vst.msk [vmem:[#allocation2 + $0x50] sm:$0xff] %vm266_vm1, %v295_v15  ;;  %313 = vst.msk [vmem:[#allocation2 + $0x58] sm:$0xff] %vm266_vm1, %v296_v16  ;;  %v298_v18 = vld [vmem:[%s4844_s7 + $0x68] sm:$0xff]  ;;  %v299_v19 = vld [vmem:[%s4844_s7 + $0x70] sm:$0xff] }
  0x18   : > { %314 = vst.msk [vmem:[#allocation2 + $0x60] sm:$0xff] %vm266_vm1, %v297_v17  ;;  %315 = vst.msk [vmem:[#allocation2 + $0x68] sm:$0xff] %vm266_vm1, %v298_v18 }
  0x19   : > { %316 = vst.msk [vmem:[#allocation2 + $0x70] sm:$0xff] %vm266_vm1, %v299_v19  ;;  %v392_v22 = vld [vmem:[#allocation2 + $0x6] sm:$0xff] }
  0x1a   : > { %v393_v23 = vld [vmem:[#allocation2 + $0xe] sm:$0xff]  ;;  %v3784_v24 = vld [vmem:[#allocation2] sm:$0xff]  ;;  %vm405_vm3 = vcmp.ge.f32.partialorder %v392_v22, 0.0  ;;  %v418_v25 = vmul.f32 0.01, %v392_v22  ;;  %v394_v34 = vld [vmem:[#allocation2 + $0x16] sm:$0xff] }
  0x1b   : > { %vm406_vm4 = vcmp.ge.f32.partialorder %v393_v23, 0.0  ;;  %v419_v26 = vmul.f32 0.01, %v393_v23  ;;  %3801 = vst.msk [vmem:[%s4887_s14] sm:$0xff] %vm266_vm1, %v3784_v24  ;;  %v3785_v27 = vld [vmem:[#allocation2 + $0x8] sm:$0xff]  ;;  %v395_v35 = vld [vmem:[#allocation2 + $0x1e] sm:$0xff] }
  0x1c   : > { %v332_v28 = vld [vmem:[#allocation2 + $0x5] sm:$0xff]  ;;  %v333_v29 = vld [vmem:[#allocation2 + $0xd] sm:$0xff]  ;;  %v431_v32 = vsel %vm405_vm3, %v392_v22, %v418_v25  ;;  %3802 = vst.msk [vmem:[%s4887_s14 + $0x8] sm:$0xff] %vm266_vm1, %v3785_v27  ;;  %v334_v36 = vld [vmem:[#allocation2 + $0x15] sm:$0xff]  ;;  %vm407_vm7 = vcmp.ge.f32.partialorder %v394_v34, 0.0  ;;  %vm408_vm8 = vcmp.ge.f32.partialorder %v395_v35, 0.0 }
  0x1d   : > { %v432_v33 = vsel %vm406_vm4, %v393_v23, %v419_v26  ;;  %vm345_vm5 = vcmp.ge.f32.partialorder %v332_v28, 0.0  ;;  %vm346_vm6 = vcmp.ge.f32.partialorder %v333_v29, 0.0  ;;  %v358_v38 = vmul.f32 0.01, %v332_v28  ;;  %v335_v40 = vld [vmem:[#allocation2 + $0x1d] sm:$0xff]  ;;  %v396_v50 = vld [vmem:[#allocation2 + $0x26] sm:$0xff] }
  0x1e   : > { %v444_v37 = vpack.c.bf16 %v432_v33, %v431_v32  ;;  %v359_v39 = vmul.f32 0.01, %v333_v29  ;;  %v420_v41 = vmul.f32 0.01, %v394_v34  ;;  %v421_v42 = vmul.f32 0.01, %v395_v35 }
  0x1f   : > { %vm347_vm9 = vcmp.ge.f32.partialorder %v334_v36, 0.0  ;;  %v371_v43 = vsel %vm345_vm5, %v332_v28, %v358_v38  ;;  %vm348_vm10 = vcmp.ge.f32.partialorder %v335_v40, 0.0  ;;  %v360_v45 = vmul.f32 0.01, %v334_v36  ;;  %v397_v51 = vld [vmem:[#allocation2 + $0x2e] sm:$0xff]  ;;  %v336_v57 = vld [vmem:[#allocation2 + $0x25] sm:$0xff] }
  0x20   : > { %4173 = vmatmul.mubr.msk.bf16.vlgmr.msra.gmra.mrb[0].mxu0 %vm266_vm1, %v444_v37  ;;  %v372_v44 = vsel %vm346_vm6, %v333_v29, %v359_v39  ;;  %v433_v47 = vsel %vm407_vm7, %v394_v34, %v420_v41  ;;  %v434_v48 = vsel %vm408_vm8, %v395_v35, %v421_v42  ;;  %v361_v49 = vmul.f32 0.01, %v335_v40  ;;  %v337_v58 = vld [vmem:[#allocation2 + $0x2d] sm:$0xff]  ;;  %v398_v0 = vld [vmem:[#allocation2 + $0x36] sm:$0xff]  ;;  %v399_v1 = vld [vmem:[#allocation2 + $0x3e] sm:$0xff] }
  0x21   : > { %v384_v46 = vpack.c.bf16 %v372_v44, %v371_v43  ;;  %4231 = vmatpush3.bf16.msra.mxu0 %v761_v30  ;;  %4176 = vmatprep.mubr.msk.bf16.mxu0 %vm4733_vm2, %v4732_v2  ;;  %v445_v52 = vpack.c.bf16 %v434_v48, %v433_v47  ;;  %v373_v53 = vsel %vm347_vm9, %v334_v36, %v360_v45  ;;  %v422_v55 = vmul.f32 0.01, %v396_v50  ;;  %v338_v8 = vld [vmem:[#allocation2 + $0x35] sm:$0xff]  ;;  %v339_v9 = vld [vmem:[#allocation2 + $0x3d] sm:$0xff]  ;;  %v400_v15 = vld [vmem:[#allocation2 + $0x46] sm:$0xff] }
  0x22   : > { %4290 = vmatprep.subr.bf16.mxu0 %v4732_v2  ;;  %v374_v54 = vsel %vm348_vm10, %v335_v40, %v361_v49  ;;  %v423_v56 = vmul.f32 0.01, %v397_v51  ;;  %vm409_vm11 = vcmp.ge.f32.partialorder %v396_v50, 0.0  ;;  %vm410_vm12 = vcmp.ge.f32.partialorder %v397_v51, 0.0  ;;  %v401_v16 = vld [vmem:[#allocation2 + $0x4e] sm:$0xff]  ;;  %v340_v22 = vld [vmem:[#allocation2 + $0x45] sm:$0xff] }
  0x23   : > { %4203 = vmatmul.mubr.msk.bf16.vlgmr.msra.gmra.mrb[0].mxu1 %vm266_vm1, %v384_v46  ;;  %v385_v59 = vpack.c.bf16 %v374_v54, %v373_v53  ;;  %v362_v60 = vmul.f32 0.01, %v336_v57  ;;  %v363_v61 = vmul.f32 0.01, %v337_v58  ;;  %v435_v62 = vsel %vm409_vm11, %v396_v50, %v422_v55  ;;  %v341_v23 = vld [vmem:[#allocation2 + $0x4d] sm:$0xff]  ;;  %v402_v29 = vld [vmem:[#allocation2 + $0x56] sm:$0xff] }
  0x24   : > { %4206 = vmatprep.mubr.msk.bf16.mxu1 %vm4733_vm2, %v4732_v2  ;;  %4261 = vmatpush3.bf16.msra.mxu1 %v947_v31  ;;  %v436_v63 = vsel %vm410_vm12, %v397_v51, %v423_v56  ;;  %vm349_vm13 = vcmp.ge.f32.partialorder %v336_v57, 0.0  ;;  %vm350_vm14 = vcmp.ge.f32.partialorder %v337_v58, 0.0  ;;  %v424_v6 = vmul.f32 0.01, %v398_v0  ;;  %v403_v30 = vld [vmem:[#allocation2 + $0x5e] sm:$0xff]  ;;  %v342_v36 = vld [vmem:[#allocation2 + $0x55] sm:$0xff] }
  0x25   : > { %4320 = vmatprep.subr.bf16.mxu1 %v4732_v2  ;;  %v446_v3 = vpack.c.bf16 %v436_v63, %v435_v62  ;;  %v375_v4 = vsel %vm349_vm13, %v336_v57, %v362_v60  ;;  %v376_v5 = vsel %vm350_vm14, %v337_v58, %v363_v61  ;;  %v425_v7 = vmul.f32 0.01, %v399_v1  ;;  %v343_v37 = vld [vmem:[#allocation2 + $0x5d] sm:$0xff]  ;;  %v404_v43 = vld [vmem:[#allocation2 + $0x66] sm:$0xf]  ;;  %v679_v53 = vld [vmem:[#allocation2 + $0xf] sm:$0xff] }
  0x26   : > { %vm411_vm15 = vcmp.ge.f32.partialorder %v398_v0, 0.0  ;;  %vm412_vm3 = vcmp.ge.f32.partialorder %v399_v1, 0.0  ;;  %v386_v10 = vpack.c.bf16 %v376_v5, %v375_v4  ;;  %v364_v11 = vmul.f32 0.01, %v338_v8  ;;  %v344_v48 = vld [vmem:[#allocation2 + $0x65] sm:$0xf] }
  0x27   : > { %v365_v12 = vmul.f32 0.01, %v339_v9  ;;  %v437_v13 = vsel %vm411_vm15, %v398_v0, %v424_v6  ;;  %v438_v14 = vsel %vm412_vm3, %v399_v1, %v425_v7  ;;  %vm351_vm4 = vcmp.ge.f32.partialorder %v338_v8, 0.0  ;;  %v865_v58 = vld [vmem:[#allocation2 + $0x17] sm:$0xff]  ;;  %v681_v63 = vld [vmem:[#allocation2 + $0x1f] sm:$0xff]  ;;  %v867_v5 = vld [vmem:[#allocation2 + $0x27] sm:$0xff] }
  0x28   : > { %4177 = vmatmul.mubr.msk.bf16.gmra.mrb[4].mxu0 %vm266_vm1, %v445_v52  ;;  %vm352_vm5 = vcmp.ge.f32.partialorder %v339_v9, 0.0  ;;  %v447_v17 = vpack.c.bf16 %v438_v14, %v437_v13  ;;  %v377_v18 = vsel %vm351_vm4, %v338_v8, %v364_v11  ;;  %v426_v20 = vmul.f32 0.01, %v400_v15  ;;  %v678_v52 = vld [vmem:[#allocation2 + $0x7] sm:$0xff]  ;;  %v3911_v0 = vld [vmem:[%s6016_s2 + $0x10] sm:$0xf] }
  0x29   : > { %4180 = vmatprep.mubr.msk.bf16.mxu0 %vm4733_vm2, %v4732_v2  ;;  %v378_v19 = vsel %vm352_vm5, %v339_v9, %v365_v12  ;;  %v427_v21 = vmul.f32 0.01, %v401_v16  ;;  %vm413_vm6 = vcmp.ge.f32.partialorder %v400_v15, 0.0  ;;  %vm414_vm7 = vcmp.ge.f32.partialorder %v401_v16, 0.0  ;;  %v3919_v7 = vld [vmem:[%s6016_s2 + $0x14] sm:$0xf] }
  0x2a   : > { %v387_v24 = vpack.c.bf16 %v378_v19, %v377_v18  ;;  %v366_v25 = vmul.f32 0.01, %v340_v22  ;;  %v367_v26 = vmul.f32 0.01, %v341_v23  ;;  %v439_v27 = vsel %vm413_vm6, %v400_v15, %v426_v20  ;;  %v683_v12 = vld [vmem:[#allocation2 + $0x2f] sm:$0xff]  ;;  %v685_v20 = vld [vmem:[#allocation2 + $0x3f] sm:$0xff] }
  0x2b   : > { %4207 = vmatmul.mubr.msk.bf16.gmra.mrb[4].mxu1 %vm266_vm1, %v385_v59  ;;  %v440_v28 = vsel %vm414_vm7, %v401_v16, %v427_v21  ;;  %vm353_vm8 = vcmp.ge.f32.partialorder %v340_v22, 0.0  ;;  %vm354_vm9 = vcmp.ge.f32.partialorder %v341_v23, 0.0  ;;  %v428_v34 = vmul.f32 0.01, %v402_v29  ;;  %v869_v16 = vld [vmem:[#allocation2 + $0x37] sm:$0xff] }
  0x2c   : > { %4210 = vmatprep.mubr.msk.bf16.mxu1 %vm4733_vm2, %v4732_v2  ;;  %v448_v31 = vpack.c.bf16 %v440_v28, %v439_v27  ;;  %v379_v32 = vsel %vm353_vm8, %v340_v22, %v366_v25  ;;  %v380_v33 = vsel %vm354_vm9, %v341_v23, %v367_v26  ;;  %v429_v35 = vmul.f32 0.01, %v403_v30  ;;  %v300_v25 = vld [vmem:[%s4844_s7 + $0x78] sm:$0xff] }
  0x2d   : > { %vm415_vm10 = vcmp.ge.f32.partialorder %v402_v29, 0.0  ;;  %vm416_vm11 = vcmp.ge.f32.partialorder %v403_v30, 0.0  ;;  %v388_v38 = vpack.c.bf16 %v380_v33, %v379_v32  ;;  %v368_v39 = vmul.f32 0.01, %v342_v36  ;;  %317 = vst.msk [vmem:[#allocation2 + $0x78] sm:$0xff] %vm266_vm1, %v300_v25  ;;  %v873_v33 = vld [vmem:[#allocation2 + $0x57] sm:$0xff] }
  0x2e   : > { %v369_v40 = vmul.f32 0.01, %v343_v37  ;;  %v441_v41 = vsel %vm415_vm10, %v402_v29, %v428_v34  ;;  %v442_v42 = vsel %vm416_vm11, %v403_v30, %v429_v35  ;;  %vm355_vm12 = vcmp.ge.f32.partialorder %v342_v36, 0.0  ;;  %v687_v29 = vld [vmem:[#allocation2 + $0x4f] sm:$0xff] }
  0x2f   : > { %vm356_vm13 = vcmp.ge.f32.partialorder %v343_v37, 0.0  ;;  %v449_v44 = vpack.c.bf16 %v442_v42, %v441_v41  ;;  %v381_v45 = vsel %vm355_vm12, %v342_v36, %v368_v39  ;;  %v430_v47 = vmul.f32 0.01, %v404_v43  ;;  %v875_v42 = vld [vmem:[#allocation2 + $0x67] sm:$0xff] }
  0x30   : > { %4181 = vmatmul.mubr.msk.bf16.gmra.mrb[8].mxu0 %vm266_vm1, %v446_v3  ;;  %v382_v46 = vsel %vm356_vm13, %v343_v37, %v369_v40  ;;  %vm417_vm14 = vcmp.ge.f32.partialorder %v404_v43, 0.0  ;;  %v370_v50 = vmul.f32 0.01, %v344_v48  ;;  %vm357_vm15 = vcmp.ge.f32.partialorder %v344_v48, 0.0 }
  0x31   : > { %4184 = vmatprep.mubr.msk.bf16.mxu0 %vm4733_vm2, %v4732_v2  ;;  %v389_v49 = vpack.c.bf16 %v382_v46, %v381_v45  ;;  %v443_v51 = vsel %vm417_vm14, %v404_v43, %v430_v47  ;;  %v704_v56 = vmul.f32 0.01, %v678_v52  ;;  %v705_v57 = vmul.f32 0.01, %v679_v53  ;;  %v690_v46 = vld [vmem:[#allocation2 + $0x67] sm:$0xf] }
  0x32   : > { %v450_v54 = vpack.c.bf16 %v443_v51, %v443_v51  ;;  %v383_v55 = vsel %vm357_vm15, %v344_v48, %v370_v50  ;;  %vm691_vm3 = vcmp.ge.f32.partialorder %v678_v52, 0.0  ;;  %vm692_vm4 = vcmp.ge.f32.partialorder %v679_v53, 0.0  ;;  %v876_v50 = vld [vmem:[#allocation2 + $0x6f] sm:$0xf] }
  0x33   : > { %4211 = vmatmul.mubr.msk.bf16.gmra.mrb[8].mxu1 %vm266_vm1, %v386_v10  ;;  %v390_v59 = vpack.c.bf16 %v383_v55, %v383_v55  ;;  %v891_v60 = vmul.f32 0.01, %v865_v58  ;;  %v717_v61 = vsel %vm691_vm3, %v678_v52, %v704_v56  ;;  %v718_v62 = vsel %vm692_vm4, %v679_v53, %v705_v57  ;;  %v4989_v55 = vld [vmem:[#allocation2 + $0x18] sm:$0xff] }
  0x34   : > { %4214 = vmatprep.mubr.msk.bf16.mxu1 %vm4733_vm2, %v4732_v2  ;;  %vm878_vm5 = vcmp.ge.f32.partialorder %v865_v58, 0.0  ;;  %v730_v1 = vpack.c.bf16 %v718_v62, %v717_v61  ;;  %v707_v4 = vmul.f32 0.01, %v681_v63  ;;  %v1120_v6 = vsel %vm474_vm0, %v3911_v0, 0  ;;  %v3799_v36 = vld [vmem:[#allocation2 + $0x78] sm:$0xff] }
  0x35   : > { %v904_v3 = vsel %vm878_vm5, %v865_v58, %v891_v60  ;;  %vm694_vm6 = vcmp.ge.f32.partialorder %v681_v63, 0.0  ;;  %v893_v9 = vmul.f32 0.01, %v867_v5  ;;  %vm880_vm7 = vcmp.ge.f32.partialorder %v867_v5, 0.0  ;;  %3816 = vst.msk [vmem:[%s4887_s14 + $0x78] sm:$0xff] %vm266_vm1, %v3799_v36  ;;  %v1223_v60 = vld [vmem:[#allocation2 + $0x11] sm:$0xff] }
  0x36   : > { %v916_v8 = vpack.c.bf16 %v904_v3, %v718_v62  ;;  %v720_v10 = vsel %vm694_vm6, %v681_v63, %v707_v4  ;;  %v1306_v11 = vsel %vm474_vm0, %v3919_v7, 0  ;;  %v709_v15 = vmul.f32 0.01, %v683_v12  ;;  %v1224_v61 = vld [vmem:[#allocation2 + $0x19] sm:$0xff] }
  0x37   : > { %v731_v13 = vpack.c.bf16 %v720_v10, %v904_v3  ;;  %v906_v14 = vsel %vm880_vm7, %v867_v5, %v893_v9  ;;  %vm696_vm8 = vcmp.ge.f32.partialorder %v683_v12, 0.0  ;;  %v895_v18 = vmul.f32 0.01, %v869_v16  ;;  %v5003_v4 = vld [vmem:[#allocation2 + $0x20] sm:$0xff]  ;;  %v5005_v5 = vld [vmem:[#allocation2 + $0x28] sm:$0xff] }
  0x38   : > { %4185 = vmatmul.mubr.msk.bf16.gmra.mrb[12].mxu0 %vm266_vm1, %v447_v17  ;;  %v917_v17 = vpack.c.bf16 %v906_v14, %v720_v10  ;;  %v722_v19 = vsel %vm696_vm8, %v683_v12, %v709_v15  ;;  %vm882_vm9 = vcmp.ge.f32.partialorder %v869_v16, 0.0  ;;  %v711_v23 = vmul.f32 0.01, %v685_v20  ;;  %v1225_v12 = vld [vmem:[#allocation2 + $0x21] sm:$0xff]  ;;  %v3935_v15 = vld [vmem:[%s6016_s2 + $0x1c] sm:$0xf] }
  0x39   : > { %4188 = vmatprep.mubr.msk.bf16.mxu0 %vm4733_vm2, %v4732_v2  ;;  %v732_v21 = vpack.c.bf16 %v722_v19, %v906_v14  ;;  %v908_v22 = vsel %vm882_vm9, %v869_v16, %v895_v18  ;;  %vm698_vm10 = vcmp.ge.f32.partialorder %v685_v20, 0.0  ;;  %v713_v32 = vmul.f32 0.01, %v687_v29  ;;  %v5054_v36 = vld [vmem:[#allocation2 + $0x40] sm:$0xff] }
  0x3a   : > { %v918_v26 = vpack.c.bf16 %v908_v22, %v722_v19  ;;  %v724_v28 = vsel %vm698_vm10, %v685_v20, %v711_v23  ;;  %vm700_vm12 = vcmp.ge.f32.partialorder %v687_v29, 0.0  ;;  %v899_v35 = vmul.f32 0.01, %v873_v33  ;;  %v5032_v23 = vld [vmem:[#allocation2 + $0x38] sm:$0xff] }
  0x3b   : > { %4215 = vmatmul.mubr.msk.bf16.gmra.mrb[12].mxu1 %vm266_vm1, %v387_v24  ;;  %v871_v24 = vld [vmem:[#allocation2 + $0x47] sm:$0xff]  ;;  %v733_v30 = vpack.c.bf16 %v724_v28, %v908_v22  ;;  %v726_v37 = vsel %vm700_vm12, %v687_v29, %v713_v32  ;;  %vm886_vm13 = vcmp.ge.f32.partialorder %v873_v33, 0.0  ;;  %vm888_vm15 = vcmp.ge.f32.partialorder %v875_v42, 0.0  ;;  %v5030_v22 = vld [vmem:[#allocation2 + $0x30] sm:$0xff] }
  0x3c   : > { %4218 = vmatprep.mubr.msk.bf16.mxu1 %vm4733_vm2, %v4732_v2  ;;  %v897_v27 = vmul.f32 0.01, %v871_v24  ;;  %vm884_vm11 = vcmp.ge.f32.partialorder %v871_v24, 0.0  ;;  %v912_v40 = vsel %vm886_vm13, %v873_v33, %v899_v35  ;;  %vm703_vm3 = vcmp.ge.f32.partialorder %v690_v46, 0.0  ;;  %v1227_v29 = vld [vmem:[#allocation2 + $0x31] sm:$0xff] }
  0x3d   : > { %v920_v43 = vpack.c.bf16 %v912_v40, %v726_v37  ;;  %v902_v52 = vmul.f32 0.01, %v876_v50  ;;  %vm889_vm4 = vcmp.ge.f32.partialorder %v876_v50, 0.0  ;;  %vm1051_vm6 = vcmp.ge.f32.partialorder %v4989_v55, 0.0 }
  0x3e   : > { %v1249_v63 = vmul.f32 0.01, %v1223_v60  ;;  %v1250_v0 = vmul.f32 0.01, %v1224_v61  ;;  %vm1236_vm7 = vcmp.ge.f32.partialorder %v1223_v60, 0.0  ;;  %vm1237_vm8 = vcmp.ge.f32.partialorder %v1224_v61, 0.0 }
  0x3f   : > { %v915_v57 = vsel %vm889_vm4, %v876_v50, %v902_v52  ;;  %v1065_v10 = vmul.f32 0.01, %v5003_v4  ;;  %vm1052_vm9 = vcmp.ge.f32.partialorder %v5003_v4, 0.0  ;;  %vm1053_vm10 = vcmp.ge.f32.partialorder %v5005_v5, 0.0  ;;  %v5076_v50 = vld [vmem:[#allocation2 + $0x50] sm:$0xff] }
  0x40   : > { %4189 = vmatmul.mubr.msk.bf16.gmra.mrb[16].mxu0 %vm266_vm1, %v448_v31  ;;  %v910_v31 = vsel %vm884_vm11, %v871_v24, %v897_v27  ;;  %v922_v62 = vpack.c.bf16 %v915_v57, %v915_v57  ;;  %v5013_v9 = vsel %vm1237_vm8, %v1224_v61, %v1250_v0  ;;  %v1251_v18 = vmul.f32 0.01, %v1225_v12 }
  0x41   : > { %4192 = vmatprep.mubr.msk.bf16.mxu0 %vm4733_vm2, %v4732_v2  ;;  %v919_v34 = vpack.c.bf16 %v910_v31, %v724_v28  ;;  %v734_v39 = vpack.c.bf16 %v726_v37, %v910_v31  ;;  %vm1238_vm11 = vcmp.ge.f32.partialorder %v1225_v12, 0.0  ;;  %v1067_v27 = vmul.f32 0.01, %v5030_v22  ;;  %v5056_v37 = vld [vmem:[#allocation2 + $0x48] sm:$0xff] }
  0x42   : > { %v5038_v25 = vsel %vm1238_vm11, %v1225_v12, %v1251_v18  ;;  %v1068_v28 = vmul.f32 0.01, %v5032_v23  ;;  %vm1054_vm13 = vcmp.ge.f32.partialorder %v5030_v22, 0.0  ;;  %v1253_v32 = vmul.f32 0.01, %v1227_v29 }
  0x43   : > { %4219 = vmatmul.mubr.msk.bf16.gmra.mrb[16].mxu1 %vm266_vm1, %v388_v38  ;;  %v689_v38 = vld [vmem:[#allocation2 + $0x5f] sm:$0xff]  ;;  %vm1056_vm4 = vcmp.ge.f32.partialorder %v5054_v36, 0.0  ;;  %v1071_v57 = vmul.f32 0.01, %v5076_v50  ;;  %vm1058_vm8 = vcmp.ge.f32.partialorder %v5076_v50, 0.0 }
  0x44   : > { %4222 = vmatprep.mubr.msk.bf16.mxu1 %vm4733_vm2, %v4732_v2  ;;  %v715_v41 = vmul.f32 0.01, %v689_v38  ;;  %vm702_vm14 = vcmp.ge.f32.partialorder %v689_v38, 0.0 }
  0x45   : > { %v1084_v0 = vsel %vm1058_vm8, %v5076_v50, %v1071_v57  ;;  %v1597_v57 = vld [vmem:[#allocation2 + $0x2a] sm:$0xff] }
  0x46   : > { %v728_v45 = vsel %vm702_vm14, %v689_v38, %v715_v41  ;;  %vm1055_vm14 = vcmp.ge.f32.partialorder %v5032_v23, 0.0  ;;  %v1069_v41 = vmul.f32 0.01, %v5054_v36 }
  0x47   : > { %v735_v47 = vpack.c.bf16 %v728_v45, %v912_v40  ;;  %v1081_v35 = vsel %vm1055_vm14, %v5032_v23, %v1068_v28 }
  0x48   : > { %4193 = vmatmul.mubr.msk.bf16.gmra.mrb[20].mxu0 %vm266_vm1, %v449_v44  ;;  %v901_v44 = vmul.f32 0.01, %v875_v42 }
  0x49   : > { %4196 = vmatprep.mubr.msk.bf16.mxu0 %vm4733_vm2, %v4732_v2 }
  0x4a   : > { %v914_v48 = vsel %vm888_vm15, %v875_v42, %v901_v44  ;;  %vm1240_vm15 = vcmp.ge.f32.partialorder %v1227_v29, 0.0  ;;  %v1070_v42 = vmul.f32 0.01, %v5056_v37  ;;  %v1230_v44 = vld [vmem:[#allocation2 + $0x49] sm:$0xff] }
  0x4b   : > { %4223 = vmatmul.mubr.msk.bf16.gmra.mrb[20].mxu1 %vm266_vm1, %v389_v49  ;;  %v716_v49 = vmul.f32 0.01, %v690_v46  ;;  %v921_v51 = vpack.c.bf16 %v914_v48, %v728_v45  ;;  %v1082_v48 = vsel %vm1056_vm4, %v5054_v36, %v1069_v41 }
  0x4c   : > { %4226 = vmatprep.mubr.msk.bf16.mxu1 %vm4733_vm2, %v4732_v2 }
  0x4d   : > { %v729_v53 = vsel %vm703_vm3, %v690_v46, %v716_v49 }
  0x4e   : > { %v736_v56 = vpack.c.bf16 %v729_v53, %v729_v53 }
  0x50   : > { %4197 = vmatmul.mubr.msk.bf16.gmra.mrb[24].mxu0 %vm266_vm1, %v450_v54  ;;  %v4987_v54 = vld [vmem:[#allocation2 + $0x10] sm:$0xff] }
  0x51   : > { %4232 = vmatprep.mubr.msk.bf16.mxu0 %vm4733_vm2, %v4732_v2  ;;  %v1063_v58 = vmul.f32 0.01, %v4987_v54  ;;  %vm1050_vm5 = vcmp.ge.f32.partialorder %v4987_v54, 0.0 }
  0x53   : > { %4227 = vmatmul.mubr.msk.bf16.gmra.mrb[24].mxu1 %vm266_vm1, %v390_v59  ;;  %v1064_v59 = vmul.f32 0.01, %v4989_v55 }
  0x54   : > { %4262 = vmatprep.mubr.msk.bf16.mxu1 %vm4733_vm2, %v4732_v2 }
  0x55   : > { %v1077_v3 = vsel %vm1051_vm6, %v4989_v55, %v1064_v59  ;;  %v1231_v59 = vld [vmem:[#allocation2 + $0x51] sm:$0xff] }
  0x58   : > { %4233 = vmatmul.mubr.msk.bf16.vlgmr.msra.gmra.mrb[28].mxu0 %vm266_vm1, %v730_v1  ;;  %v1076_v1 = vsel %vm1050_vm5, %v4987_v54, %v1063_v58  ;;  %vm1057_vm5 = vcmp.ge.f32.partialorder %v5056_v37, 0.0 }
  0x59   : > { %4291 = vmatpush3.bf16.msra.mxu0 %v1120_v6  ;;  %4236 = vmatprep.mubr.msk.bf16.mxu0 %vm4733_vm2, %v4732_v2  ;;  %v3927_v6 = vld [vmem:[%s6016_s2 + $0x18] sm:$0xf]  ;;  %v1089_v7 = vpack.c.bf16 %v1077_v3, %v1076_v1  ;;  %v1083_v49 = vsel %vm1057_vm5, %v5056_v37, %v1070_v42  ;;  %v5098_v3 = vld [vmem:[#allocation2 + $0x60] sm:$0xff] }
  0x5a   : > { %4350 = vmatprep.subr.bf16.mxu0 %v4732_v2  ;;  %v1492_v14 = vsel %vm474_vm0, %v3927_v6, 0  ;;  %v1092_v52 = vpack.c.bf16 %v1083_v49, %v1082_v48  ;;  %v5100_v6 = vld [vmem:[#allocation2 + $0x68] sm:$0xff] }
  0x5b   : > { %4263 = vmatmul.mubr.msk.bf16.vlgmr.msra.gmra.mrb[28].mxu1 %vm266_vm1, %v916_v8  ;;  %v1262_v8 = vsel %vm1236_vm7, %v1223_v60, %v1249_v63  ;;  %vm1243_vm7 = vcmp.ge.f32.partialorder %v1230_v44, 0.0  ;;  %v1232_v60 = vld [vmem:[#allocation2 + $0x59] sm:$0xff]  ;;  %v1074_v12 = vmul.f32 0.01, %v5100_v6 }
  0x5c   : > { %4266 = vmatprep.mubr.msk.bf16.mxu1 %vm4733_vm2, %v4732_v2  ;;  %4321 = vmatpush3.bf16.msra.mxu1 %v1306_v11  ;;  %v1066_v11 = vmul.f32 0.01, %v5005_v5  ;;  %v1275_v16 = vpack.c.bf16 %v5013_v9, %v1262_v8  ;;  %v1258_v63 = vmul.f32 0.01, %v1232_v60  ;;  %vm1245_vm11 = vcmp.ge.f32.partialorder %v1232_v60, 0.0 }
  0x5d   : > { %4380 = vmatprep.subr.bf16.mxu1 %v4732_v2 }
  0x5e   : > { %v1079_v20 = vsel %vm1053_vm10, %v5005_v5, %v1066_v11  ;;  %vm1244_vm10 = vcmp.ge.f32.partialorder %v1231_v59, 0.0  ;;  %v1073_v11 = vmul.f32 0.01, %v5098_v3 }
  0x60   : > { %4237 = vmatmul.mubr.msk.bf16.gmra.mrb[32].mxu0 %vm266_vm1, %v731_v13  ;;  %v1226_v13 = vld [vmem:[#allocation2 + $0x29] sm:$0xff] }
  0x61   : > { %4240 = vmatprep.mubr.msk.bf16.mxu0 %vm4733_vm2, %v4732_v2  ;;  %v1252_v19 = vmul.f32 0.01, %v1226_v13  ;;  %vm1239_vm12 = vcmp.ge.f32.partialorder %v1226_v13, 0.0 }
  0x63   : > { %4267 = vmatmul.mubr.msk.bf16.gmra.mrb[32].mxu1 %vm266_vm1, %v917_v17  ;;  %v1078_v17 = vsel %vm1052_vm9, %v5003_v4, %v1065_v10  ;;  %v5107_v10 = vsel %vm1245_vm11, %v1232_v60, %v1258_v63 }
  0x64   : > { %4270 = vmatprep.mubr.msk.bf16.mxu1 %vm4733_vm2, %v4732_v2  ;;  %v1090_v24 = vpack.c.bf16 %v1079_v20, %v1078_v17  ;;  %v5120_v20 = vld [vmem:[#allocation2 + $0x70] sm:$0xf] }
  0x65   : > { %v1075_v28 = vmul.f32 0.01, %v5120_v20 }
  0x68   : > { %4241 = vmatmul.mubr.msk.bf16.gmra.mrb[36].mxu0 %vm266_vm1, %v732_v21  ;;  %v1678_v21 = vsel %vm474_vm0, %v3935_v15, 0 }
  0x69   : > { %4244 = vmatprep.mubr.msk.bf16.mxu0 %vm4733_vm2, %v4732_v2 }
  0x6b   : > { %4271 = vmatmul.mubr.msk.bf16.gmra.mrb[36].mxu1 %vm266_vm1, %v918_v26  ;;  %v5040_v26 = vsel %vm1239_vm12, %v1226_v13, %v1252_v19  ;;  %v1233_v13 = vld [vmem:[#allocation2 + $0x61] sm:$0xff]  ;;  %vm1060_vm12 = vcmp.ge.f32.partialorder %v5098_v3, 0.0 }
  0x6c   : > { %4274 = vmatprep.mubr.msk.bf16.mxu1 %vm4733_vm2, %v4732_v2  ;;  %v1276_v31 = vpack.c.bf16 %v5040_v26, %v5038_v25  ;;  %v1086_v18 = vsel %vm1060_vm12, %v5098_v3, %v1073_v11  ;;  %vm1246_vm14 = vcmp.ge.f32.partialorder %v1233_v13, 0.0  ;;  %v1599_v11 = vld [vmem:[#allocation2 + $0x3a] sm:$0xff] }
  0x70   : > { %4245 = vmatmul.mubr.msk.bf16.gmra.mrb[40].mxu0 %vm266_vm1, %v733_v30  ;;  %v1228_v30 = vld [vmem:[#allocation2 + $0x39] sm:$0xff] }
  0x71   : > { %4248 = vmatprep.mubr.msk.bf16.mxu0 %vm4733_vm2, %v4732_v2  ;;  %v1254_v33 = vmul.f32 0.01, %v1228_v30  ;;  %vm1241_vm3 = vcmp.ge.f32.partialorder %v1228_v30, 0.0 }
  0x73   : > { %4275 = vmatmul.mubr.msk.bf16.gmra.mrb[40].mxu1 %vm266_vm1, %v919_v34  ;;  %v1080_v34 = vsel %vm1054_vm13, %v5030_v22, %v1067_v27  ;;  %v5063_v40 = vsel %vm1241_vm3, %v1228_v30, %v1254_v33  ;;  %vm1061_vm13 = vcmp.ge.f32.partialorder %v5100_v6, 0.0  ;;  %vm1062_vm3 = vcmp.ge.f32.partialorder %v5120_v20, 0.0 }
  0x74   : > { %4278 = vmatprep.mubr.msk.bf16.mxu1 %vm4733_vm2, %v4732_v2  ;;  %v1091_v38 = vpack.c.bf16 %v1081_v35, %v1080_v34  ;;  %v1087_v19 = vsel %vm1061_vm13, %v5100_v6, %v1074_v12  ;;  %v1595_v35 = vld [vmem:[#allocation2 + $0x1a] sm:$0xff]  ;;  %v1600_v12 = vld [vmem:[#allocation2 + $0x42] sm:$0xff] }
  0x75   : > { %v1621_v42 = vmul.f32 0.01, %v1595_v35  ;;  %vm1608_vm5 = vcmp.ge.f32.partialorder %v1595_v35, 0.0 }
  0x77   : > { %v1634_v48 = vsel %vm1608_vm5, %v1595_v35, %v1621_v42  ;;  %v1604_v42 = vld [vmem:[#allocation2 + $0x62] sm:$0xff] }
  0x78   : > { %4249 = vmatmul.mubr.msk.bf16.gmra.mrb[44].mxu0 %vm266_vm1, %v734_v39  ;;  %v5061_v39 = vsel %vm1240_vm15, %v1227_v29, %v1253_v32  ;;  %v1235_v29 = vld [vmem:[#allocation2 + $0x71] sm:$0xf]  ;;  %v1088_v32 = vsel %vm1062_vm3, %v5120_v20, %v1075_v28 }
  0x79   : > { %4252 = vmatprep.mubr.msk.bf16.mxu0 %vm4733_vm2, %v4732_v2  ;;  %v1277_v45 = vpack.c.bf16 %v5063_v40, %v5061_v39  ;;  %vm1248_vm4 = vcmp.ge.f32.partialorder %v1235_v29, 0.0  ;;  %v1095_v33 = vpack.c.bf16 %v1088_v32, %v1088_v32  ;;  %v1601_v28 = vld [vmem:[#allocation2 + $0x4a] sm:$0xff]  ;;  %v265_v32 = vld [vmem:[%s6015_s1 + $0x60] sm:$0xf] }
  0x7a   : > { %vm1614_vm11 = vcmp.ge.f32.partialorder %v1601_v28, 0.0 }
  0x7b   : > { %4279 = vmatmul.mubr.msk.bf16.gmra.mrb[44].mxu1 %vm266_vm1, %v920_v43  ;;  %v1229_v43 = vld [vmem:[#allocation2 + $0x41] sm:$0xff] }
  0x7c   : > { %4282 = vmatprep.mubr.msk.bf16.mxu1 %vm4733_vm2, %v4732_v2  ;;  %v1255_v46 = vmul.f32 0.01, %v1229_v43  ;;  %vm1242_vm6 = vcmp.ge.f32.partialorder %v1229_v43, 0.0 }
  0x7e   : > { %v5083_v53 = vsel %vm1242_vm6, %v1229_v43, %v1255_v46  ;;  %v3943_v46 = vld [vmem:[%s6016_s2 + $0x20] sm:$0xf] }
  0x80   : > { %4253 = vmatmul.mubr.msk.bf16.gmra.mrb[48].mxu0 %vm266_vm1, %v735_v47  ;;  %v1256_v47 = vmul.f32 0.01, %v1230_v44 }
  0x81   : > { %4256 = vmatprep.mubr.msk.bf16.mxu0 %vm4733_vm2, %v4732_v2 }
  0x83   : > { %4283 = vmatmul.mubr.msk.bf16.gmra.mrb[48].mxu1 %vm266_vm1, %v921_v51  ;;  %v5078_v51 = vld [vmem:[#allocation2 + $0x58] sm:$0xff] }
  0x84   : > { %4286 = vmatprep.mubr.msk.bf16.mxu1 %vm4733_vm2, %v4732_v2  ;;  %v1072_v58 = vmul.f32 0.01, %v5078_v51  ;;  %vm1059_vm9 = vcmp.ge.f32.partialorder %v5078_v51, 0.0 }
  0x86   : > { %v1085_v1 = vsel %vm1059_vm9, %v5078_v51, %v1072_v58  ;;  %v1598_v58 = vld [vmem:[#allocation2 + $0x32] sm:$0xff]  ;;  %vm1612_vm9 = vcmp.ge.f32.partialorder %v1599_v11, 0.0 }
  0x87   : > { %vm1611_vm8 = vcmp.ge.f32.partialorder %v1598_v58, 0.0 }
  0x88   : > { %4257 = vmatmul.mubr.msk.bf16.gmra.mrb[52].mxu0 %vm266_vm1, %v736_v56  ;;  %v5085_v56 = vsel %vm1243_vm7, %v1230_v44, %v1256_v47  ;;  %v4734_v44 = vmov 0   ;;  %v1461_v47 = vpack.c.bf16 %v5038_v25, %v5013_v9  ;;  %vm1610_vm7 = vcmp.ge.f32.partialorder %v1597_v57, 0.0  ;;  %v257_v9 = vld [vmem:[%s6015_s1 + $0x20] sm:$0xff] }
  0x89   : > { %4292 = vmatprep.mubr.msk.bf16.mxu0 %vm4733_vm2, %v4732_v2  ;;  %v1278_v61 = vpack.c.bf16 %v5085_v56, %v5083_v53  ;;  %4722 = vset.pattern.permute.xlu0 %v4734_v44  ;;  %v1462_v25 = vpack.c.bf16 %v5061_v39, %v5040_v26  ;;  %v1625_v26 = vmul.f32 0.01, %v1599_v11  ;;  %v1626_v39 = vmul.f32 0.01, %v1600_v12 }
  0x8a   : > { %4723 = vset.pattern.permute.xlu1 %v4734_v44  ;;  %v264_v44 = vld [vmem:[%s6015_s1 + $0x58] sm:$0xff] }
  0x8b   : > { %4287 = vmatmul.mubr.msk.bf16.gmra.mrb[52].mxu1 %vm266_vm1, %v922_v62  ;;  %v1257_v62 = vmul.f32 0.01, %v1231_v59 }
  0x8c   : > { %4322 = vmatprep.mubr.msk.bf16.mxu1 %vm4733_vm2, %v4732_v2 }
  0x8d   : > { %v5105_v8 = vsel %vm1244_vm10, %v1231_v59, %v1257_v62  ;;  %v1864_v59 = vsel %vm474_vm0, %v3943_v46, 0  ;;  %v1624_v62 = vmul.f32 0.01, %v1598_v58  ;;  %vm1613_vm10 = vcmp.ge.f32.partialorder %v1600_v12, 0.0 }
  0x8e   : > { %v1279_v15 = vpack.c.bf16 %v5107_v10, %v5105_v8 }
  0x90   : > { %4293 = vmatmul.mubr.msk.bf16.vlgmr.msra.gmra.mrb[56].mxu0 %vm266_vm1, %v1089_v7  ;;  %v1093_v7 = vpack.c.bf16 %v1085_v1, %v1084_v0  ;;  %v1637_v0 = vsel %vm1611_vm8, %v1598_v58, %v1624_v62  ;;  %v255_v1 = vld [vmem:[%s6015_s1 + $0x10] sm:$0xff] }
  0x91   : > { %4351 = vmatpush3.bf16.msra.mxu0 %v1492_v14  ;;  %4296 = vmatprep.mubr.msk.bf16.mxu0 %vm4733_vm2, %v4732_v2  ;;  %v1234_v14 = vld [vmem:[#allocation2 + $0x69] sm:$0xff] }
  0x92   : > { %4410 = vmatprep.subr.bf16.mxu0 %v4732_v2  ;;  %v1260_v17 = vmul.f32 0.01, %v1234_v14  ;;  %vm1247_vm15 = vcmp.ge.f32.partialorder %v1234_v14, 0.0  ;;  %1999 = vperm.xlu1 %4723, %v255_v1  }
  0x93   : > { %4323 = vmatmul.mubr.msk.bf16.vlgmr.msra.gmra.mrb[56].mxu1 %vm266_vm1, %v1275_v16  ;;  %v1259_v16 = vmul.f32 0.01, %v1233_v13 }
  0x94   : > { %4326 = vmatprep.mubr.msk.bf16.mxu1 %vm4733_vm2, %v4732_v2  ;;  %4381 = vmatpush3.bf16.msra.mxu1 %v1678_v21  ;;  %v1094_v21 = vpack.c.bf16 %v1087_v19, %v1086_v18  ;;  %v5127_v27 = vsel %vm1247_vm15, %v1234_v14, %v1260_v17  ;;  %v256_v14 = vld [vmem:[%s6015_s1 + $0x18] sm:$0xff]  ;;  %v1638_v17 = vsel %vm1612_vm9, %v1599_v11, %v1625_v26  ;;  %v258_v19 = vld [vmem:[%s6015_s1 + $0x28] sm:$0xff] }
  0x95   : > { %4440 = vmatprep.subr.bf16.mxu1 %v4732_v2  ;;  %v1639_v18 = vsel %vm1613_vm10, %v1600_v12, %v1626_v39  ;;  %v1781_v11 = vld [vmem:[#allocation2 + $0x1b] sm:$0xff]  ;;  %v1782_v12 = vld [vmem:[#allocation2 + $0x23] sm:$0xff] }
  0x96   : > { %2004 = vperm.xlu1 %4723, %v256_v14   ;;  %vm1795_vm8 = vcmp.ge.f32.partialorder %v1782_v12, 0.0 }
  0x98   : > { %4297 = vmatmul.mubr.msk.bf16.gmra.mrb[60].mxu0 %vm266_vm1, %v1090_v24  ;;  %v5125_v24 = vsel %vm1246_vm14, %v1233_v13, %v1259_v16  ;;  %v1463_v16 = vpack.c.bf16 %v5083_v53, %v5063_v40  ;;  %v1627_v40 = vmul.f32 0.01, %v1601_v28  ;;  %vm1617_vm14 = vcmp.ge.f32.partialorder %v1604_v42, 0.0 }
  0x99   : > { %4300 = vmatprep.mubr.msk.bf16.mxu0 %vm4733_vm2, %v4732_v2  ;;  %v1280_v30 = vpack.c.bf16 %v5127_v27, %v5125_v24  ;;  %v1465_v46 = vpack.c.bf16 %v5125_v24, %v5107_v10  ;;  %v1421_v10 = vld [vmem:[#allocation2 + $0x79] sm:$0xf] }
  0x9a   : > { %2014 = vperm.xlu1 %4723, %v258_v19   ;;  %vm1434_vm5 = vcmp.ge.f32.partialorder %v1421_v10, 0.0 }
  0x9b   : > { %4327 = vmatmul.mubr.msk.bf16.gmra.mrb[60].mxu1 %vm266_vm1, %v1276_v31  ;;  %v1261_v31 = vmul.f32 0.01, %v1235_v29 }
  0x9c   : > { %4330 = vmatprep.mubr.msk.bf16.mxu1 %vm4733_vm2, %v4732_v2 }
  0x9d   : > { %v1274_v34 = vsel %vm1248_vm4, %v1235_v29, %v1261_v31  ;;  %v1602_v29 = vld [vmem:[#allocation2 + $0x52] sm:$0xff] }
  0x9e   : > { %v1281_v41 = vpack.c.bf16 %v1274_v34, %v1274_v34  ;;  %v1628_v53 = vmul.f32 0.01, %v1602_v29  ;;  %vm1615_vm12 = vcmp.ge.f32.partialorder %v1602_v29, 0.0  ;;  %v260_v31 = vld [vmem:[%s6015_s1 + $0x38] sm:$0xff]  ;;  %v1640_v34 = vsel %vm1614_vm11, %v1601_v28, %v1627_v40 }
  0x9f   : > { %2024 = vperm.xlu1 %4723, %v260_v31  }
  0xa0   : > { %4301 = vmatmul.mubr.msk.bf16.gmra.mrb[64].mxu0 %vm266_vm1, %v1091_v38  ;;  %v1596_v38 = vld [vmem:[#allocation2 + $0x22] sm:$0xff]  ;;  %v1641_v35 = vsel %vm1615_vm12, %v1602_v29, %v1628_v53 }
  0xa1   : > { %4304 = vmatprep.mubr.msk.bf16.mxu0 %vm4733_vm2, %v4732_v2  ;;  %v1622_v43 = vmul.f32 0.01, %v1596_v38  ;;  %vm1609_vm6 = vcmp.ge.f32.partialorder %v1596_v38, 0.0 }
  0xa3   : > { %4331 = vmatmul.mubr.msk.bf16.gmra.mrb[64].mxu1 %vm266_vm1, %v1277_v45  ;;  %v253_v45 = vld [vmem:[%s6015_s1] sm:$0xff]  ;;  %v1635_v49 = vsel %vm1609_vm6, %v1596_v38, %v1622_v43  ;;  %v262_v38 = vld [vmem:[%s6015_s1 + $0x48] sm:$0xff]  ;;  %v1650_v43 = vpack.c.bf16 %v1641_v35, %v1640_v34 }
  0xa4   : > { %4334 = vmatprep.mubr.msk.bf16.mxu1 %vm4733_vm2, %v4732_v2  ;;  %1989 = vperm.xlu0 %4722, %v253_v45   ;;  %v1647_v60 = vpack.c.bf16 %v1635_v49, %v1634_v48  ;;  %v1420_v45 = vld [vmem:[#allocation2 + $0x71] sm:$0xff] }
  0xa5   : > { %2034 = vperm.xlu1 %4723, %v262_v38   ;;  %v1446_v49 = vmul.f32 0.01, %v1420_v45  ;;  %vm1433_vm15 = vcmp.ge.f32.partialorder %v1420_v45, 0.0 }
  0xa8   : > { %4305 = vmatmul.mubr.msk.bf16.gmra.mrb[68].mxu0 %vm266_vm1, %v1092_v52  ;;  %v254_v52 = vld [vmem:[%s6015_s1 + $0x8] sm:$0xff] }
  0xa9   : > { %4308 = vmatprep.mubr.msk.bf16.mxu0 %vm4733_vm2, %v4732_v2  ;;  %1994 = vperm.xlu0 %4722, %v254_v52   ;;  %v1605_v52 = vld [vmem:[#allocation2 + $0x6a] sm:$0xff] }
  0xaa   : > { %2044 = vperm.xlu1 %4723, %v264_v44   ;;  %vm1618_vm3 = vcmp.ge.f32.partialorder %v1605_v52, 0.0 }
  0xab   : > { %4335 = vmatmul.mubr.msk.bf16.gmra.mrb[68].mxu1 %vm266_vm1, %v1278_v61  ;;  %v1623_v61 = vmul.f32 0.01, %v1597_v57 }
  0xac   : > { %4338 = vmatprep.mubr.msk.bf16.mxu1 %vm4733_vm2, %v4732_v2 }
  0xad   : > { %2009 = vperm.xlu0 %4722, %v257_v9   ;;  %v1636_v63 = vsel %vm1610_vm7, %v1597_v57, %v1623_v61  ;;  %v1606_v57 = vld [vmem:[#allocation2 + $0x72] sm:$0xff]  ;;  %v1459_v61 = vsel %vm1433_vm15, %v1420_v45, %v1446_v49  ;;  %vm1794_vm7 = vcmp.ge.f32.partialorder %v1781_v11, 0.0 }
  0xae   : > { %v1648_v13 = vpack.c.bf16 %v1637_v0, %v1636_v63  ;;  %vm1619_vm4 = vcmp.ge.f32.partialorder %v1606_v57, 0.0  ;;  %v1466_v24 = vpack.c.bf16 %v1459_v61, %v5127_v27  ;;  %v1607_v63 = vld [vmem:[#allocation2 + $0x7a] sm:$0xf] }
  0xaf   : > { %v1633_v1 = vmul.f32 0.01, %v1607_v63  ;;  %vm1620_vm6 = vcmp.ge.f32.partialorder %v1607_v63, 0.0 }
  0xb0   : > { %4309 = vmatmul.mubr.msk.bf16.gmra.mrb[72].mxu0 %vm266_vm1, %v1093_v7  ;;  %v259_v7 = vld [vmem:[%s6015_s1 + $0x30] sm:$0xff] }
  0xb1   : > { %4312 = vmatprep.mubr.msk.bf16.mxu0 %vm4733_vm2, %v4732_v2  ;;  %2019 = vperm.xlu0 %4722, %v259_v7   ;;  %v1646_v39 = vsel %vm1620_vm6, %v1607_v63, %v1633_v1 }
  0xb2   : > { %v1653_v28 = vpack.c.bf16 %v1646_v39, %v1646_v39 }
  0xb3   : > { %4339 = vmatmul.mubr.msk.bf16.gmra.mrb[72].mxu1 %vm266_vm1, %v1279_v15  ;;  %v261_v15 = vld [vmem:[%s6015_s1 + $0x40] sm:$0xff] }
  0xb4   : > { %4342 = vmatprep.mubr.msk.bf16.mxu1 %vm4733_vm2, %v4732_v2 }
  0xb5   : > { %2029 = vperm.xlu0 %4722, %v261_v15   ;;  %v1807_v15 = vmul.f32 0.01, %v1781_v11 }
  0xb7   : > { %v1820_v53 = vsel %vm1794_vm7, %v1781_v11, %v1807_v15  ;;  %vm283_vm7 = vcmask 60416  }
  0xb8   : > { %4313 = vmatmul.mubr.msk.bf16.gmra.mrb[76].mxu0 %vm266_vm1, %v1094_v21  ;;  %v263_v21 = vld [vmem:[%s6015_s1 + $0x50] sm:$0xff]  ;;  %284 = vst.msk [vmem:[#allocation2 + $0x80] sm:$0xf] %vm283_vm7, %v4732_v2 }
  0xb9   : > { %4316 = vmatprep.mubr.msk.bf16.mxu0 %vm4733_vm2, %v4732_v2  ;;  %2039 = vperm.xlu0 %4722, %v263_v21  }
  0xbb   : > { %4343 = vmatmul.mubr.msk.bf16.gmra.mrb[76].mxu1 %vm266_vm1, %v1280_v30  ;;  %v1649_v30 = vpack.c.bf16 %v1639_v18, %v1638_v17 }
  0xbc   : > { %4346 = vmatprep.mubr.msk.bf16.mxu1 %vm4733_vm2, %v4732_v2 }
  0xbd   : > { %2049 = vperm.xlu0 %4722, %v265_v32   ;;  %v1783_v32 = vld [vmem:[#allocation2 + $0x2b] sm:$0xff] }
  0xbe   : > { %vm1796_vm9 = vcmp.ge.f32.partialorder %v1783_v32, 0.0 }
  0xc0   : > { %4317 = vmatmul.mubr.msk.bf16.gmra.mrb[80].mxu0 %vm266_vm1, %v1095_v33  ;;  %v1464_v33 = vpack.c.bf16 %v5105_v8, %v5085_v56  ;;  %v1630_v8 = vmul.f32 0.01, %v1604_v42 }
  0xc1   : > { %4352 = vmatprep.mubr.msk.bf16.mxu0 %vm4733_vm2, %v4732_v2 }
  0xc2   : > { %v1643_v48 = vsel %vm1617_vm14, %v1604_v42, %v1630_v8  ;;  %v1809_v42 = vmul.f32 0.01, %v1783_v32 }
  0xc3   : > { %4347 = vmatmul.mubr.msk.bf16.gmra.mrb[80].mxu1 %vm266_vm1, %v1281_v41  ;;  %v1603_v41 = vld [vmem:[#allocation2 + $0x5a] sm:$0xff] }
  0xc4   : > { %4382 = vmatprep.mubr.msk.bf16.mxu1 %vm4733_vm2, %v4732_v2  ;;  %v1629_v56 = vmul.f32 0.01, %v1603_v41  ;;  %vm1616_vm13 = vcmp.ge.f32.partialorder %v1603_v41, 0.0  ;;  %v1822_v49 = vsel %vm1796_vm9, %v1783_v32, %v1809_v42 }
  0xc8   : > { %4353 = vmatmul.mubr.msk.bf16.vlgmr.msra.gmra.mrb[84].mxu0 %vm266_vm1, %v1461_v47  ;;  %v1642_v47 = vsel %vm1616_vm13, %v1603_v41, %v1629_v56 }
  0xc9   : > { %4411 = vmatpush3.bf16.msra.mxu0 %v1864_v59  ;;  %4356 = vmatprep.mubr.msk.bf16.mxu0 %vm4733_vm2, %v4732_v2  ;;  %v1651_v58 = vpack.c.bf16 %v1643_v48, %v1642_v47  ;;  %v1631_v59 = vmul.f32 0.01, %v1605_v52 }
  0xca   : > { %4470 = vmatprep.subr.bf16.mxu0 %v4732_v2 }
  0xcb   : > { %4383 = vmatmul.mubr.msk.bf16.vlgmr.msra.gmra.mrb[84].mxu1 %vm266_vm1, %v1647_v60  ;;  %v1632_v60 = vmul.f32 0.01, %v1606_v57  ;;  %v1644_v62 = vsel %vm1618_vm3, %v1605_v52, %v1631_v59 }
  0xcc   : > { %4386 = vmatprep.mubr.msk.bf16.mxu1 %vm4733_vm2, %v4732_v2 }
  0xcd   : > { %v1645_v9 = vsel %vm1619_vm4, %v1606_v57, %v1632_v60  ;;  %v1785_v57 = vld [vmem:[#allocation2 + $0x3b] sm:$0xff] }
  0xce   : > { %v1652_v0 = vpack.c.bf16 %v1645_v9, %v1644_v62  ;;  %vm1798_vm11 = vcmp.ge.f32.partialorder %v1785_v57, 0.0 }
  0xd0   : > { %4357 = vmatmul.mubr.msk.bf16.gmra.mrb[88].mxu0 %vm266_vm1, %v1462_v25  ;;  %v1447_v25 = vmul.f32 0.01, %v1421_v10 }
  0xd1   : > { %4360 = vmatprep.mubr.msk.bf16.mxu0 %vm4733_vm2, %v4732_v2 }
  0xd2   : > { %v1460_v7 = vsel %vm1434_vm5, %v1421_v10, %v1447_v25 }
  0xd3   : > { %4387 = vmatmul.mubr.msk.bf16.gmra.mrb[88].mxu1 %vm266_vm1, %v1648_v13  ;;  %v1467_v26 = vpack.c.bf16 %v1460_v7, %v1460_v7 }
  0xd4   : > { %4390 = vmatprep.mubr.msk.bf16.mxu1 %vm4733_vm2, %v4732_v2 }
  0xd8   : > { %4361 = vmatmul.mubr.msk.bf16.gmra.mrb[92].mxu0 %vm266_vm1, %v1463_v16  ;;  %v1808_v16 = vmul.f32 0.01, %v1782_v12 }
  0xd9   : > { %4364 = vmatprep.mubr.msk.bf16.mxu0 %vm4733_vm2, %v4732_v2 }
  0xda   : > { %v1821_v31 = vsel %vm1795_vm8, %v1782_v12, %v1808_v16 }
  0xdb   : > { %4391 = vmatmul.mubr.msk.bf16.gmra.mrb[92].mxu1 %vm266_vm1, %v1649_v30  ;;  %v1833_v38 = vpack.c.bf16 %v1821_v31, %v1820_v53 }
  0xdc   : > { %4394 = vmatprep.mubr.msk.bf16.mxu1 %vm4733_vm2, %v4732_v2 }
  0xe0   : > { %4365 = vmatmul.mubr.msk.bf16.gmra.mrb[96].mxu0 %vm266_vm1, %v1464_v33  ;;  %v1784_v33 = vld [vmem:[#allocation2 + $0x33] sm:$0xff] }
  0xe1   : > { %4368 = vmatprep.mubr.msk.bf16.mxu0 %vm4733_vm2, %v4732_v2  ;;  %vm1797_vm10 = vcmp.ge.f32.partialorder %v1784_v33, 0.0 }
  0xe3   : > { %4395 = vmatmul.mubr.msk.bf16.gmra.mrb[96].mxu1 %vm266_vm1, %v1650_v43  ;;  %v1810_v43 = vmul.f32 0.01, %v1784_v33 }
  0xe4   : > { %4398 = vmatprep.mubr.msk.bf16.mxu1 %vm4733_vm2, %v4732_v2 }
  0xe5   : > { %v1823_v52 = vsel %vm1797_vm10, %v1784_v33, %v1810_v43 }
  0xe6   : > { %v1834_v61 = vpack.c.bf16 %v1823_v52, %v1822_v49 }
  0xe8   : > { %4369 = vmatmul.mubr.msk.bf16.gmra.mrb[100].mxu0 %vm266_vm1, %v1465_v46 }
  0xe9   : > { %4372 = vmatprep.mubr.msk.bf16.mxu0 %vm4733_vm2, %v4732_v2 }
  0xeb   : > { %4399 = vmatmul.mubr.msk.bf16.gmra.mrb[100].mxu1 %vm266_vm1, %v1651_v58  ;;  %v1786_v58 = vld [vmem:[#allocation2 + $0x43] sm:$0xff] }
  0xec   : > { %4402 = vmatprep.mubr.msk.bf16.mxu1 %vm4733_vm2, %v4732_v2  ;;  %v1812_v62 = vmul.f32 0.01, %v1786_v58  ;;  %vm1799_vm12 = vcmp.ge.f32.partialorder %v1786_v58, 0.0 }
  0xf0   : > { %4373 = vmatmul.mubr.msk.bf16.gmra.mrb[104].mxu0 %vm266_vm1, %v1466_v24  ;;  %v1811_v24 = vmul.f32 0.01, %v1785_v57 }
  0xf1   : > { %4376 = vmatprep.mubr.msk.bf16.mxu0 %vm4733_vm2, %v4732_v2 }
  0xf2   : > { %v1824_v12 = vsel %vm1798_vm11, %v1785_v57, %v1811_v24  ;;  %v1792_v24 = vld [vmem:[#allocation2 + $0x73] sm:$0xff] }
  0xf3   : > { %4403 = vmatmul.mubr.msk.bf16.gmra.mrb[104].mxu1 %vm266_vm1, %v1652_v0  ;;  %v512_v27 = vpop.f32.mrb[0].mxu0  ;;  %vm1805_vm5 = vcmp.ge.f32.partialorder %v1792_v24, 0.0 }
  0xf4   : > { %v4174_v13 = vpop.f32.mrb[1].mxu0  ;;  %4406 = vmatprep.mubr.msk.bf16.mxu1 %vm4733_vm2, %v4732_v2 }
  0xf5   : > { %v515_v14 = vpop.f32.mrb[2].mxu0  ;;  %v1787_v13 = vld [vmem:[#allocation2 + $0x4b] sm:$0xff] }
  0xf6   : > { %v624_v17 = vpop.f32.mrb[0].mxu1  ;;  %v4175_v18 = vpop.f32.mrb[3].mxu0  ;;  %vm1800_vm13 = vcmp.ge.f32.partialorder %v1787_v13, 0.0 }
  0xf7   : > { %v5237_v19 = vadd.f32 %v624_v17, %v512_v27  ;;  %v4204_v21 = vpop.f32.mrb[1].mxu1  ;;  %v1825_v27 = vsel %vm1799_vm12, %v1786_v58, %v1812_v62  ;;  %v1813_v17 = vmul.f32 0.01, %v1787_v13 }
  0xf8   : > { %v627_v29 = vpop.f32.mrb[2].mxu1  ;;  %4377 = vmatmul.mubr.msk.bf16.gmra.mrb[108].mxu0 %vm266_vm1, %v1467_v26  ;;  %v1788_v26 = vld [vmem:[#allocation2 + $0x53] sm:$0xff]  ;;  %v1835_v15 = vpack.c.bf16 %v1825_v27, %v1824_v12 }
  0xf9   : > { %v5240_v30 = vadd.f32 %v627_v29, %v515_v14  ;;  %v4205_v40 = vpop.f32.mrb[3].mxu1  ;;  %4412 = vmatprep.mubr.msk.bf16.mxu0 %vm4733_vm2, %v4732_v2  ;;  %v1814_v18 = vmul.f32 0.01, %v1788_v26  ;;  %vm1801_vm14 = vcmp.ge.f32.partialorder %v1788_v26, 0.0  ;;  %v1826_v33 = vsel %vm1800_vm13, %v1787_v13, %v1813_v17 }
  0xfb   : > { %4407 = vmatmul.mubr.msk.bf16.gmra.mrb[108].mxu1 %vm266_vm1, %v1653_v28  ;;  %v520_v34 = vpop.f32.mrb[4].mxu0 }
  0xfc   : > { %v4178_v35 = vpop.f32.mrb[5].mxu0  ;;  %4442 = vmatprep.mubr.msk.bf16.mxu1 %vm4733_vm2, %v4732_v2 }
  0xfd   : > { %v523_v41 = vpop.f32.mrb[6].mxu0  ;;  %v1789_v35 = vld [vmem:[#allocation2 + $0x5b] sm:$0xff] }
  0xfe   : > { %v632_v44 = vpop.f32.mrb[4].mxu1  ;;  %v4179_v56 = vpop.f32.mrb[7].mxu0  ;;  %vm1802_vm15 = vcmp.ge.f32.partialorder %v1789_v35, 0.0 }
  0xff   : > { %v5247_v8 = vadd.f32 %v632_v44, %v520_v34  ;;  %v4208_v45 = vpop.f32.mrb[5].mxu1  ;;  %v1827_v34 = vsel %vm1801_vm14, %v1788_v26, %v1814_v18  ;;  %v1815_v56 = vmul.f32 0.01, %v1789_v35  ;;  %v1793_v18 = vld [vmem:[#allocation2 + $0x7b] sm:$0xf] }
 0x100   : > { %v635_v46 = vpop.f32.mrb[6].mxu1  ;;  %4413 = vmatmul.mubr.msk.bf16.vlgmr.msra.gmra.mrb[112].mxu0 %vm266_vm1, %v1833_v38  ;;  %v1790_v38 = vld [vmem:[#allocation2 + $0x63] sm:$0xff]  ;;  %v1836_v43 = vpack.c.bf16 %v1827_v34, %v1826_v33  ;;  %vm1806_vm6 = vcmp.ge.f32.partialorder %v1793_v18, 0.0 }
 0x101   : > { %v5250_v47 = vadd.f32 %v635_v46, %v523_v41  ;;  %v4209_v48 = vpop.f32.mrb[7].mxu1  ;;  %4416 = vmatprep.mubr.msk.bf16.mxu0 %vm4733_vm2, %v4732_v2  ;;  %v1816_v45 = vmul.f32 0.01, %v1790_v38  ;;  %vm1803_vm3 = vcmp.ge.f32.partialorder %v1790_v38, 0.0 }
 0x103   : > { %v528_v59 = vpop.f32.mrb[8].mxu0 }
 0x104   : > { %v4182_v60 = vpop.f32.mrb[9].mxu0 }
 0x105   : > { %v531_v10 = vpop.f32.mrb[10].mxu0  ;;  %v1828_v60 = vsel %vm1802_vm15, %v1789_v35, %v1815_v56 }
 0x106   : > { %v640_v9 = vpop.f32.mrb[8].mxu1  ;;  %v4183_v25 = vpop.f32.mrb[11].mxu0 }
 0x107   : > { %v5254_v63 = vadd.f32 %v640_v9, %v528_v59  ;;  %v4212_v0 = vpop.f32.mrb[9].mxu1 }
 0x108   : > { %v643_v1 = vpop.f32.mrb[10].mxu1  ;;  %4417 = vmatmul.mubr.msk.bf16.gmra.mrb[116].mxu0 %vm266_vm1, %v1834_v61  ;;  %v1829_v61 = vsel %vm1803_vm3, %v1790_v38, %v1816_v45 }
 0x109   : > { %v5257_v7 = vadd.f32 %v643_v1, %v531_v10  ;;  %v4213_v11 = vpop.f32.mrb[11].mxu1  ;;  %4420 = vmatprep.mubr.msk.bf16.mxu0 %vm4733_vm2, %v4732_v2  ;;  %v1791_v10 = vld [vmem:[#allocation2 + $0x6b] sm:$0xff]  ;;  %v1837_v25 = vpack.c.bf16 %v1829_v61, %v1828_v60 }
 0x10a   : > { %v1817_v1 = vmul.f32 0.01, %v1791_v10  ;;  %v1818_v11 = vmul.f32 0.01, %v1792_v24  ;;  %vm1804_vm4 = vcmp.ge.f32.partialorder %v1791_v10, 0.0 }
 0x10b   : > { %v536_v39 = vpop.f32.mrb[12].mxu0 }
 0x10c   : > { %v4186_v14 = vpop.f32.mrb[13].mxu0  ;;  %v1831_v17 = vsel %vm1805_vm5, %v1792_v24, %v1818_v11 }
 0x10d   : > { %v539_v16 = vpop.f32.mrb[14].mxu0 }
 0x10e   : > { %v648_v21 = vpop.f32.mrb[12].mxu1  ;;  %v4187_v28 = vpop.f32.mrb[15].mxu0 }
 0x10f   : > { %v5261_v29 = vadd.f32 %v648_v21, %v536_v39  ;;  %v4216_v40 = vpop.f32.mrb[13].mxu1 }
 0x110   : > { %v651_v53 = vpop.f32.mrb[14].mxu1  ;;  %4421 = vmatmul.mubr.msk.bf16.gmra.mrb[120].mxu0 %vm266_vm1, %v1835_v15 }
 0x111   : > { %v5264_v31 = vadd.f32 %v651_v53, %v539_v16  ;;  %v4217_v32 = vpop.f32.mrb[15].mxu1  ;;  %4424 = vmatprep.mubr.msk.bf16.mxu0 %vm4733_vm2, %v4732_v2  ;;  %v1830_v16 = vsel %vm1804_vm4, %v1791_v10, %v1817_v1 }
 0x112   : > { %v1838_v40 = vpack.c.bf16 %v1831_v17, %v1830_v16  ;;  %v1819_v32 = vmul.f32 0.01, %v1793_v18 }
 0x113   : > { %v544_v41 = vpop.f32.mrb[16].mxu0 }
 0x114   : > { %v4190_v42 = vpop.f32.mrb[17].mxu0 }
 0x115   : > { %v547_v44 = vpop.f32.mrb[18].mxu0 }
 0x116   : > { %v656_v46 = vpop.f32.mrb[16].mxu1  ;;  %v4191_v48 = vpop.f32.mrb[19].mxu0 }
 0x117   : > { %v5268_v49 = vadd.f32 %v656_v46, %v544_v41  ;;  %v4220_v52 = vpop.f32.mrb[17].mxu1 }
 0x118   : > { %v659_v57 = vpop.f32.mrb[18].mxu1  ;;  %4425 = vmatmul.mubr.msk.bf16.gmra.mrb[124].mxu0 %vm266_vm1, %v1836_v43  ;;  %v1832_v43 = vsel %vm1806_vm6, %v1793_v18, %v1819_v32 }
 0x119   : > { %v5271_v58 = vadd.f32 %v659_v57, %v547_v44  ;;  %v4221_v59 = vpop.f32.mrb[19].mxu1  ;;  %4428 = vmatprep.mubr.msk.bf16.mxu0 %vm4733_vm2, %v4732_v2  ;;  %v1839_v46 = vpack.c.bf16 %v1832_v43, %v1832_v43 }
 0x11b   : > { %v552_v62 = vpop.f32.mrb[20].mxu0 }
 0x11c   : > { %v4194_v9 = vpop.f32.mrb[21].mxu0 }
 0x11d   : > { %v555_v0 = vpop.f32.mrb[22].mxu0 }
 0x11e   : > { %v664_v12 = vpop.f32.mrb[20].mxu1  ;;  %v4195_v27 = vpop.f32.mrb[23].mxu0 }
 0x11f   : > { %v5275_v13 = vadd.f32 %v664_v12, %v552_v62  ;;  %v4224_v26 = vpop.f32.mrb[21].mxu1 }
 0x120   : > { %v667_v39 = vpop.f32.mrb[22].mxu1  ;;  %4429 = vmatmul.mubr.msk.bf16.gmra.mrb[128].mxu0 %vm266_vm1, %v1837_v25 }
 0x121   : > { %v5278_v14 = vadd.f32 %v667_v39, %v555_v0  ;;  %v4225_v15 = vpop.f32.mrb[23].mxu1  ;;  %4432 = vmatprep.mubr.msk.bf16.mxu0 %vm4733_vm2, %v4732_v2 }
 0x123   : > { %v560_v21 = vpop.f32.mrb[24].mxu0 }
 0x124   : > { %v4198_v28 = vpop.f32.mrb[25].mxu0 }
 0x125   : > { %v563_v53 = vpop.f32.mrb[26].mxu0 }
 0x126   : > { %v672_v33 = vpop.f32.mrb[24].mxu1  ;;  %v4199_v34 = vpop.f32.mrb[27].mxu0 }
 0x127   : > { %v5282_v35 = vadd.f32 %v672_v33, %v560_v21  ;;  %v4228_v38 = vpop.f32.mrb[25].mxu1 }
 0x128   : > { %4433 = vmatmul.mubr.msk.bf16.gmra.mrb[132].mxu0 %vm266_vm1, %v1838_v40  ;;  %v675_v41 = vpop.f32.mrb[26].mxu1 }
 0x129   : > { %v4229_v42 = vpop.f32.mrb[27].mxu1  ;;  %4436 = vmatprep.mubr.msk.bf16.mxu0 %vm4733_vm2, %v4732_v2 }
 0x12b   : > { %v797_v44 = vpop.f32.mrb[28].mxu0 }
 0x12c   : > { %v851_v56 = vadd.f32 %v797_v44, %v5237_v19  ;;  %v4234_v45 = vpop.f32.mrb[29].mxu0  ;;  %v3952_v19 = vld [vmem:[%s6018_s4 + $0x4] sm:$0xf] }
 0x12d   : > { %v800_v48 = vpop.f32.mrb[30].mxu0 }
 0x12e   : > { %v852_v52 = vadd.f32 %v800_v48, %v5240_v30  ;;  %v983_v57 = vpop.f32.mrb[28].mxu1  ;;  %v4235_v59 = vpop.f32.mrb[31].mxu0  ;;  %v2221_v30 = vsel %vm474_vm0, %v3952_v19, 0 }
 0x12f   : > { %v5289_v60 = vadd.f32 %v983_v57, %v851_v56  ;;  %v4264_v61 = vpop.f32.mrb[29].mxu1  ;;  %4441 = vmatpush3.bf16.msra.mxu1 %v2221_v30 }
 0x130   : > { %v986_v10 = vpop.f32.mrb[30].mxu1  ;;  %4437 = vmatmul.mubr.msk.bf16.gmra.mrb[136].mxu0 %vm266_vm1, %v1839_v46  ;;  %4500 = vmatprep.subr.bf16.mxu1 %v4732_v2 }
 0x131   : > { %v5292_v24 = vadd.f32 %v986_v10, %v852_v52  ;;  %v4265_v62 = vpop.f32.mrb[31].mxu1  ;;  %4472 = vmatprep.mubr.msk.bf16.mxu0 %vm4733_vm2, %v4732_v2 }
 0x133   : > { %v805_v9 = vpop.f32.mrb[32].mxu0 }
 0x134   : > { %v853_v25 = vadd.f32 %v805_v9, %v5247_v8  ;;  %v4238_v0 = vpop.f32.mrb[33].mxu0 }
 0x135   : > { %v808_v1 = vpop.f32.mrb[34].mxu0 }
 0x136   : > { %v854_v11 = vadd.f32 %v808_v1, %v5250_v47  ;;  %v991_v12 = vpop.f32.mrb[32].mxu1  ;;  %v4239_v27 = vpop.f32.mrb[35].mxu0 }
 0x137   : > { %v5303_v26 = vadd.f32 %v991_v12, %v853_v25  ;;  %v4268_v39 = vpop.f32.mrb[33].mxu1 }
 0x138   : > { %v994_v15 = vpop.f32.mrb[34].mxu1 }
 0x139   : > { %v5305_v16 = vadd.f32 %v994_v15, %v854_v11  ;;  %v4269_v17 = vpop.f32.mrb[35].mxu1 }
 0x13b   : > { %v813_v18 = vpop.f32.mrb[36].mxu0 }
 0x13c   : > { %v855_v21 = vadd.f32 %v813_v18, %v5254_v63  ;;  %v4242_v28 = vpop.f32.mrb[37].mxu0 }
 0x13d   : > { %v816_v8 = vpop.f32.mrb[38].mxu0 }
 0x13e   : > { %v856_v40 = vadd.f32 %v816_v8, %v5257_v7  ;;  %v999_v53 = vpop.f32.mrb[36].mxu1  ;;  %v4243_v32 = vpop.f32.mrb[39].mxu0 }
 0x13f   : > { %v5309_v33 = vadd.f32 %v999_v53, %v855_v21  ;;  %v4272_v47 = vpop.f32.mrb[37].mxu1 }
 0x140   : > { %v1002_v34 = vpop.f32.mrb[38].mxu1 }
 0x141   : > { %v5311_v38 = vadd.f32 %v1002_v34, %v856_v40  ;;  %v4273_v41 = vpop.f32.mrb[39].mxu1 }
 0x143   : > { %v821_v42 = vpop.f32.mrb[40].mxu0 }
 0x144   : > { %v857_v43 = vadd.f32 %v821_v42, %v5261_v29  ;;  %v4246_v44 = vpop.f32.mrb[41].mxu0 }
 0x145   : > { %v824_v56 = vpop.f32.mrb[42].mxu0 }
 0x146   : > { %v858_v63 = vadd.f32 %v824_v56, %v5264_v31  ;;  %v1007_v45 = vpop.f32.mrb[40].mxu1  ;;  %v4247_v46 = vpop.f32.mrb[43].mxu0 }
 0x147   : > { %v5315_v48 = vadd.f32 %v1007_v45, %v857_v43  ;;  %v4276_v7 = vpop.f32.mrb[41].mxu1 }
 0x148   : > { %v1010_v52 = vpop.f32.mrb[42].mxu1  ;;  %v2137_v7 = vld [vmem:[%s6018_s4] sm:$0xf] }
 0x149   : > { %v5317_v57 = vadd.f32 %v1010_v52, %v858_v63  ;;  %v4277_v59 = vpop.f32.mrb[43].mxu1 }
 0x14b   : > { %v829_v61 = vpop.f32.mrb[44].mxu0 }
 0x14c   : > { %v859_v10 = vadd.f32 %v829_v61, %v5268_v49  ;;  %v4250_v62 = vpop.f32.mrb[45].mxu0  ;;  %v2333_v61 = vsel %vm474_vm0, %v2137_v7, 0 }
 0x14d   : > { %v832_v19 = vpop.f32.mrb[46].mxu0  ;;  %4471 = vmatpush3.bf16.msra.mxu0 %v2333_v61 }
 0x14e   : > { %v860_v29 = vadd.f32 %v832_v19, %v5271_v58  ;;  %v1015_v30 = vpop.f32.mrb[44].mxu1  ;;  %v4251_v9 = vpop.f32.mrb[47].mxu0  ;;  %4530 = vmatprep.subr.bf16.mxu0 %v4732_v2 }
 0x14f   : > { %v5321_v25 = vadd.f32 %v1015_v30, %v859_v10  ;;  %v4280_v31 = vpop.f32.mrb[45].mxu1 }
 0x150   : > { %v1018_v0 = vpop.f32.mrb[46].mxu1 }
 0x151   : > { %v5323_v1 = vadd.f32 %v1018_v0, %v860_v29  ;;  %v4281_v11 = vpop.f32.mrb[47].mxu1 }
 0x153   : > { %v837_v12 = vpop.f32.mrb[48].mxu0 }
 0x154   : > { %v861_v27 = vadd.f32 %v837_v12, %v5275_v13  ;;  %v4254_v39 = vpop.f32.mrb[49].mxu0 }
 0x155   : > { %v840_v15 = vpop.f32.mrb[50].mxu0 }
 0x156   : > { %v862_v49 = vadd.f32 %v840_v15, %v5278_v14  ;;  %v1023_v17 = vpop.f32.mrb[48].mxu1  ;;  %v4255_v18 = vpop.f32.mrb[51].mxu0 }
 0x157   : > { %v5327_v21 = vadd.f32 %v1023_v17, %v861_v27  ;;  %v4284_v58 = vpop.f32.mrb[49].mxu1 }
 0x158   : > { %v1026_v28 = vpop.f32.mrb[50].mxu1 }
 0x159   : > { %v5329_v8 = vadd.f32 %v1026_v28, %v862_v49  ;;  %v4285_v40 = vpop.f32.mrb[51].mxu1 }
 0x15b   : > { %v845_v53 = vpop.f32.mrb[52].mxu0 }
 0x15c   : > { %v863_v32 = vadd.f32 %v845_v53, %v5282_v35  ;;  %v4258_v47 = vpop.f32.mrb[53].mxu0 }
 0x15d   : > { %v848_v34 = vpop.f32.mrb[54].mxu0 }
 0x15e   : > { %v1031_v41 = vpop.f32.mrb[52].mxu1  ;;  %v4259_v13 = vpop.f32.mrb[55].mxu0 }
 0x15f   : > { %v5332_v42 = vadd.f32 %v1031_v41, %v863_v32  ;;  %v4288_v43 = vpop.f32.mrb[53].mxu1 }
 0x160   : > { %v1034_v14 = vpop.f32.mrb[54].mxu1 }
 0x161   : > { %v4289_v44 = vpop.f32.mrb[55].mxu1 }
 0x163   : > { %v1156_v56 = vpop.f32.mrb[56].mxu0 }
 0x164   : > { %v1210_v63 = vadd.f32 %v1156_v56, %v5289_v60  ;;  %v4294_v45 = vpop.f32.mrb[57].mxu0 }
 0x165   : > { %v1159_v46 = vpop.f32.mrb[58].mxu0 }
 0x166   : > { %v1211_v35 = vadd.f32 %v1159_v46, %v5292_v24  ;;  %v1342_v52 = vpop.f32.mrb[56].mxu1  ;;  %v4295_v59 = vpop.f32.mrb[59].mxu0 }
 0x167   : > { %v5340_v10 = vadd.f32 %v1342_v52, %v1210_v63  ;;  %v4324_v62 = vpop.f32.mrb[57].mxu1 }
 0x168   : > { %v1345_v19 = vpop.f32.mrb[58].mxu1 }
 0x169   : > { %v5343_v60 = vadd.f32 %v1345_v19, %v1211_v35  ;;  %v4325_v29 = vpop.f32.mrb[59].mxu1 }
 0x16b   : > { %v1164_v30 = vpop.f32.mrb[60].mxu0 }
 0x16c   : > { %v1212_v9 = vadd.f32 %v1164_v30, %v5303_v26  ;;  %v4298_v31 = vpop.f32.mrb[61].mxu0 }
 0x16d   : > { %v1167_v0 = vpop.f32.mrb[62].mxu0 }
 0x16e   : > { %v1213_v24 = vadd.f32 %v1167_v0, %v5305_v16  ;;  %v1350_v11 = vpop.f32.mrb[60].mxu1  ;;  %v4299_v12 = vpop.f32.mrb[63].mxu0 }
 0x16f   : > { %v5347_v27 = vadd.f32 %v1350_v11, %v1212_v9  ;;  %v4328_v39 = vpop.f32.mrb[61].mxu1 }
 0x170   : > { %v1353_v15 = vpop.f32.mrb[62].mxu1 }
 0x171   : > { %v5349_v49 = vadd.f32 %v1353_v15, %v1213_v24  ;;  %v4329_v17 = vpop.f32.mrb[63].mxu1 }
 0x173   : > { %v1172_v18 = vpop.f32.mrb[64].mxu0 }
 0x174   : > { %v1214_v58 = vadd.f32 %v1172_v18, %v5309_v33  ;;  %v4302_v28 = vpop.f32.mrb[65].mxu0 }
 0x175   : > { %v1175_v40 = vpop.f32.mrb[66].mxu0 }
 0x176   : > { %v1215_v26 = vadd.f32 %v1175_v40, %v5311_v38  ;;  %v1358_v53 = vpop.f32.mrb[64].mxu1  ;;  %v4303_v32 = vpop.f32.mrb[67].mxu0 }
 0x177   : > { %v5353_v47 = vadd.f32 %v1358_v53, %v1214_v58  ;;  %v4332_v16 = vpop.f32.mrb[65].mxu1 }
 0x178   : > { %v1361_v34 = vpop.f32.mrb[66].mxu1 }
 0x179   : > { %v5355_v41 = vadd.f32 %v1361_v34, %v1215_v26  ;;  %v4333_v13 = vpop.f32.mrb[67].mxu1 }
 0x17b   : > { %v1180_v43 = vpop.f32.mrb[68].mxu0 }
 0x17c   : > { %v1216_v14 = vadd.f32 %v1180_v43, %v5315_v48  ;;  %v4306_v44 = vpop.f32.mrb[69].mxu0 }
 0x17d   : > { %v1183_v56 = vpop.f32.mrb[70].mxu0 }
 0x17e   : > { %v1217_v33 = vadd.f32 %v1183_v56, %v5317_v57  ;;  %v1366_v63 = vpop.f32.mrb[68].mxu1  ;;  %v4307_v45 = vpop.f32.mrb[71].mxu0 }
 0x17f   : > { %v5359_v46 = vadd.f32 %v1366_v63, %v1216_v14  ;;  %v4336_v38 = vpop.f32.mrb[69].mxu1 }
 0x180   : > { %v1369_v7 = vpop.f32.mrb[70].mxu1 }
 0x181   : > { %v5361_v35 = vadd.f32 %v1369_v7, %v1217_v33  ;;  %v4337_v52 = vpop.f32.mrb[71].mxu1 }
 0x183   : > { %v1188_v59 = vpop.f32.mrb[72].mxu0 }
 0x184   : > { %v1218_v61 = vadd.f32 %v1188_v59, %v5321_v25  ;;  %v4310_v62 = vpop.f32.mrb[73].mxu0 }
 0x185   : > { %v1191_v19 = vpop.f32.mrb[74].mxu0 }
 0x186   : > { %v1219_v48 = vadd.f32 %v1191_v19, %v5323_v1  ;;  %v1374_v29 = vpop.f32.mrb[72].mxu1  ;;  %v4311_v30 = vpop.f32.mrb[75].mxu0 }
 0x187   : > { %v5365_v9 = vadd.f32 %v1374_v29, %v1218_v61  ;;  %v4340_v57 = vpop.f32.mrb[73].mxu1 }
 0x188   : > { %v1377_v31 = vpop.f32.mrb[74].mxu1 }
 0x189   : > { %v5367_v0 = vadd.f32 %v1377_v31, %v1219_v48  ;;  %v4341_v24 = vpop.f32.mrb[75].mxu1 }
 0x18b   : > { %v1196_v11 = vpop.f32.mrb[76].mxu0 }
 0x18c   : > { %v1220_v12 = vadd.f32 %v1196_v11, %v5327_v21  ;;  %v4314_v39 = vpop.f32.mrb[77].mxu0 }
 0x18d   : > { %v1199_v15 = vpop.f32.mrb[78].mxu0 }
 0x18e   : > { %v1221_v25 = vadd.f32 %v1199_v15, %v5329_v8  ;;  %v1382_v17 = vpop.f32.mrb[76].mxu1  ;;  %v4315_v18 = vpop.f32.mrb[79].mxu0 }
 0x18f   : > { %v5371_v58 = vadd.f32 %v1382_v17, %v1220_v12  ;;  %v4344_v1 = vpop.f32.mrb[77].mxu1 }
 0x190   : > { %v1385_v28 = vpop.f32.mrb[78].mxu1 }
 0x191   : > { %v5375_v40 = vadd.f32 %v1385_v28, %v1221_v25  ;;  %v4345_v26 = vpop.f32.mrb[79].mxu1 }
 0x193   : > { %v1204_v53 = vpop.f32.mrb[80].mxu0 }
 0x194   : > { %v1222_v21 = vadd.f32 %v1204_v53, %v5332_v42  ;;  %v4318_v32 = vpop.f32.mrb[81].mxu0 }
 0x195   : > { %v1207_v16 = vpop.f32.mrb[82].mxu0 }
 0x196   : > { %v1390_v34 = vpop.f32.mrb[80].mxu1  ;;  %v4319_v8 = vpop.f32.mrb[83].mxu0 }
 0x197   : > { %v5378_v13 = vadd.f32 %v1390_v34, %v1222_v21  ;;  %v4348_v43 = vpop.f32.mrb[81].mxu1 }
 0x198   : > { %v1393_v14 = vpop.f32.mrb[82].mxu1 }
 0x199   : > { %v4349_v44 = vpop.f32.mrb[83].mxu1 }
 0x19b   : > { %v1528_v56 = vpop.f32.mrb[84].mxu0 }
 0x19c   : > { %v1582_v33 = vadd.f32 %v1528_v56, %v5340_v10  ;;  %v4354_v63 = vpop.f32.mrb[85].mxu0 }
 0x19d   : > { %v1531_v45 = vpop.f32.mrb[86].mxu0 }
 0x19e   : > { %v1583_v38 = vadd.f32 %v1531_v45, %v5343_v60  ;;  %v1714_v7 = vpop.f32.mrb[84].mxu1  ;;  %v4355_v52 = vpop.f32.mrb[87].mxu0 }
 0x19f   : > { %v5382_v59 = vadd.f32 %v1714_v7, %v1582_v33  ;;  %v4384_v42 = vpop.f32.mrb[85].mxu1 }
 0x1a0   : > { %v1717_v61 = vpop.f32.mrb[86].mxu1 }
 0x1a1   : > { %v5384_v62 = vadd.f32 %v1717_v61, %v1583_v38  ;;  %v4385_v19 = vpop.f32.mrb[87].mxu1 }
 0x1a3   : > { %v1536_v48 = vpop.f32.mrb[88].mxu0 }
 0x1a4   : > { %v1584_v29 = vadd.f32 %v1536_v48, %v5347_v27  ;;  %v4358_v30 = vpop.f32.mrb[89].mxu0 }
 0x1a5   : > { %v1539_v57 = vpop.f32.mrb[90].mxu0 }
 0x1a6   : > { %v1585_v10 = vadd.f32 %v1539_v57, %v5349_v49  ;;  %v1722_v31 = vpop.f32.mrb[88].mxu1  ;;  %v4359_v24 = vpop.f32.mrb[91].mxu0 }
 0x1a7   : > { %v5388_v11 = vadd.f32 %v1722_v31, %v1584_v29  ;;  %v4388_v60 = vpop.f32.mrb[89].mxu1 }
 0x1a8   : > { %v1725_v12 = vpop.f32.mrb[90].mxu1 }
 0x1a9   : > { %v5390_v39 = vadd.f32 %v1725_v12, %v1585_v10  ;;  %v4389_v15 = vpop.f32.mrb[91].mxu1 }
 0x1ab   : > { %v1544_v25 = vpop.f32.mrb[92].mxu0 }
 0x1ac   : > { %v1586_v17 = vadd.f32 %v1544_v25, %v5353_v47  ;;  %v4362_v18 = vpop.f32.mrb[93].mxu0 }
 0x1ad   : > { %v1547_v1 = vpop.f32.mrb[94].mxu0 }
 0x1ae   : > { %v1587_v27 = vadd.f32 %v1547_v1, %v5355_v41  ;;  %v1730_v28 = vpop.f32.mrb[92].mxu1  ;;  %v4363_v26 = vpop.f32.mrb[95].mxu0 }
 0x1af   : > { %v5394_v53 = vadd.f32 %v1730_v28, %v1586_v17  ;;  %v4392_v49 = vpop.f32.mrb[93].mxu1 }
 0x1b0   : > { %v1733_v21 = vpop.f32.mrb[94].mxu1 }
 0x1b1   : > { %v5396_v32 = vadd.f32 %v1733_v21, %v1587_v27  ;;  %v4393_v16 = vpop.f32.mrb[95].mxu1 }
 0x1b3   : > { %v1552_v34 = vpop.f32.mrb[96].mxu0 }
 0x1b4   : > { %v1588_v8 = vadd.f32 %v1552_v34, %v5359_v46  ;;  %v4366_v43 = vpop.f32.mrb[97].mxu0 }
 0x1b5   : > { %v1555_v14 = vpop.f32.mrb[98].mxu0 }
 0x1b6   : > { %v1589_v47 = vadd.f32 %v1555_v14, %v5361_v35  ;;  %v1738_v44 = vpop.f32.mrb[96].mxu1  ;;  %v4367_v56 = vpop.f32.mrb[99].mxu0 }
 0x1b7   : > { %v5400_v33 = vadd.f32 %v1738_v44, %v1588_v8  ;;  %v4396_v41 = vpop.f32.mrb[97].mxu1  ;;  %v301_v8 = vld [vmem:[%s4844_s7 + $0x80] sm:$0xf] }
 0x1b8   : > { %v1741_v63 = vpop.f32.mrb[98].mxu1  ;;  %318 = vst.msk [vmem:[#allocation2 + $0x80] sm:$0xf] %vm283_vm7, %v301_v8 }
 0x1b9   : > { %v5402_v45 = vadd.f32 %v1741_v63, %v1589_v47  ;;  %v4397_v38 = vpop.f32.mrb[99].mxu1  ;;  %v5421_v47 = vpop.permute.xlu0 %1989 }
 0x1bb   : > { %v1560_v7 = vpop.f32.mrb[100].mxu0 }
 0x1bc   : > { %v1590_v52 = vadd.f32 %v1560_v7, %v5365_v9  ;;  %v4370_v42 = vpop.f32.mrb[101].mxu0 }
 0x1bd   : > { %v1563_v61 = vpop.f32.mrb[102].mxu0 }
 0x1be   : > { %v1591_v46 = vadd.f32 %v1563_v61, %v5367_v0  ;;  %v1746_v19 = vpop.f32.mrb[100].mxu1  ;;  %v4371_v48 = vpop.f32.mrb[103].mxu0 }
 0x1bf   : > { %v5406_v29 = vadd.f32 %v1746_v19, %v1590_v52  ;;  %v4400_v35 = vpop.f32.mrb[101].mxu1  ;;  %v3800_v42 = vld [vmem:[#allocation2 + $0x80] sm:$0xf]  ;;  %v5435_v19 = vpop.permute.xlu0 %1994  ;;  %v2138_v48 = vld [vmem:[#allocation2 + $0x6] sm:$0xff] }
 0x1c0   : > { %v1749_v30 = vpop.f32.mrb[102].mxu1  ;;  %3817 = vst.msk [vmem:[%s4887_s14 + $0x80] sm:$0xf] %vm283_vm7, %v3800_v42  ;;  %v5439_v35 = vpop.permute.xlu1 %1999  ;;  %vm2151_vm8 = vcmp.ge.f32.partialorder %v2138_v48, 0.0 }
 0x1c1   : > { %v5408_v57 = vadd.f32 %v1749_v30, %v1591_v46  ;;  %v4401_v10 = vpop.f32.mrb[103].mxu1 }
 0x1c3   : > { %v1568_v31 = vpop.f32.mrb[104].mxu0 }
 0x1c4   : > { %v1592_v24 = vadd.f32 %v1568_v31, %v5371_v58  ;;  %v4374_v60 = vpop.f32.mrb[105].mxu0  ;;  %v2078_v31 = vld [vmem:[#allocation2 + $0x5] sm:$0xff] }
 0x1c5   : > { %v1571_v12 = vpop.f32.mrb[106].mxu0  ;;  %v2164_v60 = vmul.f32 0.01, %v2138_v48  ;;  %vm2091_vm9 = vcmp.ge.f32.partialorder %v2078_v31, 0.0 }
 0x1c6   : > { %v1593_v9 = vadd.f32 %v1571_v12, %v5375_v40  ;;  %v1754_v15 = vpop.f32.mrb[104].mxu1  ;;  %v4375_v25 = vpop.f32.mrb[107].mxu0 }
 0x1c7   : > { %v5412_v0 = vadd.f32 %v1754_v15, %v1592_v24  ;;  %v4404_v17 = vpop.f32.mrb[105].mxu1  ;;  %v2104_v25 = vmul.f32 0.01, %v2078_v31 }
 0x1c8   : > { %v1757_v18 = vpop.f32.mrb[106].mxu1 }
 0x1c9   : > { %v5414_v1 = vadd.f32 %v1757_v18, %v1593_v9  ;;  %v4405_v27 = vpop.f32.mrb[107].mxu1  ;;  %v2117_v8 = vsel %vm2091_vm9, %v2078_v31, %v2104_v25 }
 0x1ca   : > { %v5447_v27 = vpop.permute.xlu1 %2004 }
 0x1cb   : > { %v1576_v28 = vpop.f32.mrb[108].mxu0 }
 0x1cc   : > { %v1594_v26 = vadd.f32 %v1576_v28, %v5378_v13  ;;  %v4378_v49 = vpop.f32.mrb[109].mxu0  ;;  %v5426_v13 = vld [vmem:[%s6017_s3] ss:$0 sm:$0xff] }
 0x1cd   : > { %v1579_v21 = vpop.f32.mrb[110].mxu0 }
 0x1ce   : > { %v1762_v58 = vpop.f32.mrb[108].mxu1  ;;  %v4379_v16 = vpop.f32.mrb[111].mxu0 }
 0x1cf   : > { %v5417_v34 = vadd.f32 %v1762_v58, %v1594_v26  ;;  %v4408_v40 = vpop.f32.mrb[109].mxu1  ;;  %v5469_v31 = vpop.permute.xlu1 %2014 }
 0x1d0   : > { %v1765_v43 = vpop.f32.mrb[110].mxu1 }
 0x1d1   : > { %v4409_v14 = vpop.f32.mrb[111].mxu1 }
 0x1d3   : > { %v1900_v44 = vpop.f32.mrb[112].mxu0 }
 0x1d4   : > { %v1954_v56 = vadd.f32 %v1900_v44, %v5382_v59  ;;  %v4414_v41 = vpop.f32.mrb[113].mxu0  ;;  %v3975_v44 = vld [vmem:[%s6018_s4 + $0xc] sm:$0xf] }
 0x1d5   : > { %v1903_v63 = vpop.f32.mrb[114].mxu0 }
 0x1d6   : > { %v1974_v38 = vadd.f32 %v5426_v13, %v1954_v56  ;;  %v1955_v7 = vadd.f32 %v1903_v63, %v5384_v62  ;;  %v4415_v52 = vpop.f32.mrb[115].mxu0 }
 0x1d8   : > { %v2052_v61 = vmul.f32 %v5421_v47, %v1974_v38  ;;  %v1975_v46 = vadd.f32 %v5426_v13, %v1955_v7 }
 0x1da   : > { %2065 = vst.msk [vmem:[#allocation2 + $0x10] sm:$0xff] %vm266_vm1, %v2052_v61  ;;  %v2053_v59 = vmul.f32 %v5435_v19, %v1975_v46 }
 0x1db   : > { %v1908_v30 = vpop.f32.mrb[116].mxu0 }
 0x1dc   : > { %2066 = vst.msk [vmem:[#allocation2 + $0x18] sm:$0xff] %vm266_vm1, %v2053_v59  ;;  %v1956_v62 = vadd.f32 %v1908_v30, %v5388_v11  ;;  %v4418_v10 = vpop.f32.mrb[117].mxu0  ;;  %v2177_v11 = vsel %vm2151_vm8, %v2138_v48, %v2164_v60  ;;  %v2692_v48 = vsel %vm474_vm0, %v3975_v44, 0 }
 0x1dd   : > { %v1911_v24 = vpop.f32.mrb[118].mxu0 }
 0x1de   : > { %v1976_v12 = vadd.f32 %v5426_v13, %v1956_v62  ;;  %v1957_v9 = vadd.f32 %v1911_v24, %v5390_v39  ;;  %v4419_v15 = vpop.f32.mrb[119].mxu0  ;;  %v3967_v39 = vld [vmem:[%s6018_s4 + $0x8] sm:$0xf] }
 0x1df   : > { %v2506_v38 = vsel %vm474_vm0, %v3967_v39, 0 }
 0x1e0   : > { %v2054_v17 = vmul.f32 %v5439_v35, %v1976_v12  ;;  %v1977_v18 = vadd.f32 %v5426_v13, %v1957_v9 }
 0x1e1   : > { %v2139_v28 = vld [vmem:[#allocation2 + $0xe] sm:$0xff] }
 0x1e2   : > { %v2079_v26 = vld [vmem:[#allocation2 + $0xd] sm:$0xff]  ;;  %2067 = vst.msk [vmem:[#allocation2 + $0x20] sm:$0xff] %vm266_vm1, %v2054_v17  ;;  %v2055_v49 = vmul.f32 %v5447_v27, %v1977_v18  ;;  %vm2152_vm10 = vcmp.ge.f32.partialorder %v2139_v28, 0.0  ;;  %v2165_v21 = vmul.f32 0.01, %v2139_v28 }
 0x1e3   : > { %vm2092_vm11 = vcmp.ge.f32.partialorder %v2079_v26, 0.0  ;;  %v1916_v58 = vpop.f32.mrb[120].mxu0  ;;  %v2105_v16 = vmul.f32 0.01, %v2079_v26  ;;  %v2140_v7 = vld [vmem:[#allocation2 + $0x16] sm:$0xff] }
 0x1e4   : > { %2068 = vst.msk [vmem:[#allocation2 + $0x28] sm:$0xff] %vm266_vm1, %v2055_v49  ;;  %v1958_v40 = vadd.f32 %v1916_v58, %v5394_v53  ;;  %v4422_v43 = vpop.f32.mrb[121].mxu0  ;;  %v2178_v14 = vsel %vm2152_vm10, %v2139_v28, %v2165_v21  ;;  %v2080_v59 = vld [vmem:[#allocation2 + $0x15] sm:$0xff]  ;;  %v5462_v53 = vpop.permute.xlu0 %2009  ;;  %v2166_v10 = vmul.f32 0.01, %v2140_v7  ;;  %vm2153_vm12 = vcmp.ge.f32.partialorder %v2140_v7, 0.0 }
 0x1e5   : > { %v1919_v56 = vpop.f32.mrb[122].mxu0  ;;  %v2190_v41 = vpack.c.bf16 %v2178_v14, %v2177_v11  ;;  %v2118_v63 = vsel %vm2092_vm11, %v2079_v26, %v2105_v16  ;;  %vm2093_vm13 = vcmp.ge.f32.partialorder %v2080_v59, 0.0  ;;  %v2106_v60 = vmul.f32 0.01, %v2080_v59 }
 0x1e6   : > { %v1978_v52 = vadd.f32 %v5426_v13, %v1958_v40  ;;  %v1959_v42 = vadd.f32 %v1919_v56, %v5396_v32  ;;  %v4423_v61 = vpop.f32.mrb[123].mxu0  ;;  %v2130_v46 = vpack.c.bf16 %v2118_v63, %v2117_v8  ;;  %v2179_v28 = vsel %vm2153_vm12, %v2140_v7, %v2166_v10  ;;  %v5493_v63 = vpop.permute.xlu1 %2024 }
 0x1e7   : > { %4443 = vmatmul.mubr.msk.bf16.vlgmr.msra.gmra.mrb[112].mxu1 %vm266_vm1, %v2190_v41  ;;  %v2119_v21 = vsel %vm2093_vm13, %v2080_v59, %v2106_v60 }
 0x1e8   : > { %v2056_v30 = vmul.f32 %v5462_v53, %v1978_v52  ;;  %v1979_v62 = vadd.f32 %v5426_v13, %v1959_v42  ;;  %4473 = vmatmul.mubr.msk.bf16.vlgmr.msra.gmra.mrb[140].mxu0 %vm266_vm1, %v2130_v46  ;;  %4501 = vmatpush3.bf16.msra.mxu1 %v2506_v38  ;;  %v5485_v44 = vpop.permute.xlu0 %2019 }
 0x1e9   : > { %4446 = vmatprep.mubr.msk.bf16.mxu1 %vm4733_vm2, %v4732_v2  ;;  %4476 = vmatprep.mubr.msk.bf16.mxu0 %vm4733_vm2, %v4732_v2  ;;  %v2141_v32 = vld [vmem:[#allocation2 + $0x1e] sm:$0xff] }
 0x1ea   : > { %v2081_v24 = vld [vmem:[#allocation2 + $0x1d] sm:$0xff]  ;;  %2069 = vst.msk [vmem:[#allocation2 + $0x30] sm:$0xff] %vm266_vm1, %v2056_v30  ;;  %v2057_v12 = vmul.f32 %v5469_v31, %v1979_v62  ;;  %vm2154_vm14 = vcmp.ge.f32.partialorder %v2141_v32, 0.0  ;;  %v2167_v9 = vmul.f32 0.01, %v2141_v32  ;;  %4531 = vmatpush3.bf16.msra.mxu0 %v2692_v48  ;;  %4560 = vmatprep.subr.bf16.mxu1 %v4732_v2 }
 0x1eb   : > { %vm2094_vm15 = vcmp.ge.f32.partialorder %v2081_v24, 0.0  ;;  %v1924_v15 = vpop.f32.mrb[124].mxu0  ;;  %v2107_v25 = vmul.f32 0.01, %v2081_v24  ;;  %4590 = vmatprep.subr.bf16.mxu0 %v4732_v2  ;;  %v2142_v58 = vld [vmem:[#allocation2 + $0x26] sm:$0xff] }
 0x1ec   : > { %2070 = vst.msk [vmem:[#allocation2 + $0x38] sm:$0xff] %vm266_vm1, %v2057_v12  ;;  %v1960_v17 = vadd.f32 %v1924_v15, %v5400_v33  ;;  %v4426_v18 = vpop.f32.mrb[125].mxu0  ;;  %v2180_v11 = vsel %vm2154_vm14, %v2141_v32, %v2167_v9  ;;  %v2082_v14 = vld [vmem:[#allocation2 + $0x25] sm:$0xff]  ;;  %v2168_v41 = vmul.f32 0.01, %v2142_v58  ;;  %vm2155_vm3 = vcmp.ge.f32.partialorder %v2142_v58, 0.0 }
 0x1ed   : > { %v1927_v26 = vpop.f32.mrb[126].mxu0  ;;  %v2191_v49 = vpack.c.bf16 %v2180_v11, %v2179_v28  ;;  %v2120_v39 = vsel %vm2094_vm15, %v2081_v24, %v2107_v25  ;;  %vm2095_vm4 = vcmp.ge.f32.partialorder %v2082_v14, 0.0  ;;  %v2108_v7 = vmul.f32 0.01, %v2082_v14  ;;  %v5504_v28 = vpop.permute.xlu0 %2029 }
 0x1ee   : > { %v1980_v16 = vadd.f32 %v5426_v13, %v1960_v17  ;;  %v1961_v8 = vadd.f32 %v1927_v26, %v5402_v45  ;;  %v4427_v40 = vpop.f32.mrb[127].mxu0  ;;  %v2131_v43 = vpack.c.bf16 %v2120_v39, %v2119_v21  ;;  %v2181_v30 = vsel %vm2155_vm3, %v2142_v58, %v2168_v41 }
 0x1ef   : > { %4447 = vmatmul.mubr.msk.bf16.gmra.mrb[116].mxu1 %vm266_vm1, %v2191_v49  ;;  %v2121_v24 = vsel %vm2095_vm4, %v2082_v14, %v2108_v7  ;;  %v5512_v49 = vpop.permute.xlu1 %2034 }
 0x1f0   : > { %v2058_v33 = vmul.f32 %v5485_v44, %v1980_v16  ;;  %v1981_v56 = vadd.f32 %v5426_v13, %v1961_v8  ;;  %4477 = vmatmul.mubr.msk.bf16.gmra.mrb[144].mxu0 %vm266_vm1, %v2131_v43  ;;  %4450 = vmatprep.mubr.msk.bf16.mxu1 %vm4733_vm2, %v4732_v2 }
 0x1f1   : > { %4480 = vmatprep.mubr.msk.bf16.mxu0 %vm4733_vm2, %v4732_v2  ;;  %v2143_v45 = vld [vmem:[#allocation2 + $0x2e] sm:$0xff] }
 0x1f2   : > { %v2083_v38 = vld [vmem:[#allocation2 + $0x2d] sm:$0xff]  ;;  %2071 = vst.msk [vmem:[#allocation2 + $0x40] sm:$0xff] %vm266_vm1, %v2058_v33  ;;  %v2059_v52 = vmul.f32 %v5493_v63, %v1981_v56  ;;  %vm2156_vm5 = vcmp.ge.f32.partialorder %v2143_v45, 0.0  ;;  %v2169_v42 = vmul.f32 0.01, %v2143_v45 }
 0x1f3   : > { %vm2096_vm6 = vcmp.ge.f32.partialorder %v2083_v38, 0.0  ;;  %v1932_v61 = vpop.f32.mrb[128].mxu0  ;;  %v2109_v46 = vmul.f32 0.01, %v2083_v38  ;;  %v2144_v12 = vld [vmem:[#allocation2 + $0x36] sm:$0xff] }
 0x1f4   : > { %2072 = vst.msk [vmem:[#allocation2 + $0x48] sm:$0xff] %vm266_vm1, %v2059_v52  ;;  %v1962_v59 = vadd.f32 %v1932_v61, %v5406_v29  ;;  %v4430_v48 = vpop.f32.mrb[129].mxu0  ;;  %v2182_v62 = vsel %vm2156_vm5, %v2143_v45, %v2169_v42  ;;  %v2084_v18 = vld [vmem:[#allocation2 + $0x35] sm:$0xff]  ;;  %v2170_v26 = vmul.f32 0.01, %v2144_v12  ;;  %vm2157_vm8 = vcmp.ge.f32.partialorder %v2144_v12, 0.0 }
 0x1f5   : > { %v1935_v10 = vpop.f32.mrb[130].mxu0  ;;  %v2192_v32 = vpack.c.bf16 %v2182_v62, %v2181_v30  ;;  %v2122_v60 = vsel %vm2096_vm6, %v2083_v38, %v2109_v46  ;;  %vm2097_vm9 = vcmp.ge.f32.partialorder %v2084_v18, 0.0  ;;  %v2110_v39 = vmul.f32 0.01, %v2084_v18  ;;  %v5523_v30 = vpop.permute.xlu0 %2039 }
 0x1f6   : > { %v1982_v9 = vadd.f32 %v5426_v13, %v1962_v59  ;;  %v1963_v15 = vadd.f32 %v1935_v10, %v5408_v57  ;;  %v4431_v25 = vpop.f32.mrb[131].mxu0  ;;  %v2132_v17 = vpack.c.bf16 %v2122_v60, %v2121_v24  ;;  %v2183_v33 = vsel %vm2157_vm8, %v2144_v12, %v2170_v26 }
 0x1f7   : > { %4451 = vmatmul.mubr.msk.bf16.gmra.mrb[120].mxu1 %vm266_vm1, %v2192_v32  ;;  %v2123_v38 = vsel %vm2097_vm9, %v2084_v18, %v2110_v39  ;;  %v5531_v32 = vpop.permute.xlu1 %2044 }
 0x1f8   : > { %v2060_v29 = vmul.f32 %v5504_v28, %v1982_v9  ;;  %v1983_v11 = vadd.f32 %v5426_v13, %v1963_v15  ;;  %4481 = vmatmul.mubr.msk.bf16.gmra.mrb[148].mxu0 %vm266_vm1, %v2132_v17  ;;  %4454 = vmatprep.mubr.msk.bf16.mxu1 %vm4733_vm2, %v4732_v2 }
 0x1f9   : > { %4484 = vmatprep.mubr.msk.bf16.mxu0 %vm4733_vm2, %v4732_v2  ;;  %v2145_v57 = vld [vmem:[#allocation2 + $0x3e] sm:$0xff] }
 0x1fa   : > { %v2085_v21 = vld [vmem:[#allocation2 + $0x3d] sm:$0xff]  ;;  %2073 = vst.msk [vmem:[#allocation2 + $0x50] sm:$0xff] %vm266_vm1, %v2060_v29  ;;  %v2061_v58 = vmul.f32 %v5512_v49, %v1983_v11  ;;  %vm2158_vm10 = vcmp.ge.f32.partialorder %v2145_v57, 0.0  ;;  %v2171_v16 = vmul.f32 0.01, %v2145_v57 }
 0x1fb   : > { %vm2098_vm11 = vcmp.ge.f32.partialorder %v2085_v21, 0.0  ;;  %v1940_v8 = vpop.f32.mrb[132].mxu0  ;;  %v2111_v40 = vmul.f32 0.01, %v2085_v21  ;;  %v2146_v52 = vld [vmem:[#allocation2 + $0x46] sm:$0xff] }
 0x1fc   : > { %2074 = vst.msk [vmem:[#allocation2 + $0x58] sm:$0xff] %vm266_vm1, %v2061_v58  ;;  %v1964_v43 = vadd.f32 %v1940_v8, %v5412_v0  ;;  %v4434_v14 = vpop.f32.mrb[133].mxu0  ;;  %v2184_v56 = vsel %vm2158_vm10, %v2145_v57, %v2171_v16  ;;  %v2086_v48 = vld [vmem:[#allocation2 + $0x45] sm:$0xff]  ;;  %v2172_v10 = vmul.f32 0.01, %v2146_v52  ;;  %vm2159_vm12 = vcmp.ge.f32.partialorder %v2146_v52, 0.0 }
 0x1fd   : > { %v1943_v41 = vpop.f32.mrb[134].mxu0  ;;  %v2193_v45 = vpack.c.bf16 %v2184_v56, %v2183_v33  ;;  %v2124_v7 = vsel %vm2098_vm11, %v2085_v21, %v2111_v40  ;;  %vm2099_vm13 = vcmp.ge.f32.partialorder %v2086_v48, 0.0  ;;  %v2112_v60 = vmul.f32 0.01, %v2086_v48  ;;  %v5540_v14 = vpop.permute.xlu0 %2049 }
 0x1fe   : > { %v1984_v42 = vadd.f32 %v5426_v13, %v1964_v43  ;;  %v1965_v61 = vadd.f32 %v1943_v41, %v5414_v1  ;;  %v4435_v46 = vpop.f32.mrb[135].mxu0  ;;  %v2133_v59 = vpack.c.bf16 %v2124_v7, %v2123_v38  ;;  %v2185_v18 = vsel %vm2159_vm12, %v2146_v52, %v2172_v10 }
 0x1ff   : > { %4455 = vmatmul.mubr.msk.bf16.gmra.mrb[124].mxu1 %vm266_vm1, %v2193_v45  ;;  %v2125_v57 = vsel %vm2099_vm13, %v2086_v48, %v2112_v60  ;;  %v2423_v60 = vld [vmem:[#allocation2 + $0x7] sm:$0xff] }
 0x200   : > { %v2062_v0 = vmul.f32 %v5523_v30, %v1984_v42  ;;  %v1985_v62 = vadd.f32 %v5426_v13, %v1965_v61  ;;  %4485 = vmatmul.mubr.msk.bf16.gmra.mrb[152].mxu0 %vm266_vm1, %v2133_v59  ;;  %4458 = vmatprep.mubr.msk.bf16.mxu1 %vm4733_vm2, %v4732_v2  ;;  %vm2436_vm10 = vcmp.ge.f32.partialorder %v2423_v60, 0.0 }
 0x201   : > { %4488 = vmatprep.mubr.msk.bf16.mxu0 %vm4733_vm2, %v4732_v2  ;;  %v2147_v1 = vld [vmem:[#allocation2 + $0x4e] sm:$0xff] }
 0x202   : > { %v2087_v24 = vld [vmem:[#allocation2 + $0x4d] sm:$0xff]  ;;  %2075 = vst.msk [vmem:[#allocation2 + $0x60] sm:$0xff] %vm266_vm1, %v2062_v0  ;;  %v2063_v12 = vmul.f32 %v5531_v32, %v1985_v62  ;;  %vm2160_vm14 = vcmp.ge.f32.partialorder %v2147_v1, 0.0  ;;  %v2173_v9 = vmul.f32 0.01, %v2147_v1 }
 0x203   : > { %vm2100_vm15 = vcmp.ge.f32.partialorder %v2087_v24, 0.0  ;;  %v1948_v15 = vpop.f32.mrb[136].mxu0  ;;  %v2113_v25 = vmul.f32 0.01, %v2087_v24  ;;  %v2148_v39 = vld [vmem:[#allocation2 + $0x56] sm:$0xff] }
 0x204   : > { %2076 = vst.msk [vmem:[#allocation2 + $0x68] sm:$0xff] %vm266_vm1, %v2063_v12  ;;  %v1966_v17 = vadd.f32 %v1948_v15, %v5417_v34  ;;  %v2186_v29 = vsel %vm2160_vm14, %v2147_v1, %v2173_v9  ;;  %v4438_v11 = vpop.f32.mrb[137].mxu0  ;;  %v2088_v58 = vld [vmem:[#allocation2 + $0x55] sm:$0xff]  ;;  %v2174_v34 = vmul.f32 0.01, %v2148_v39  ;;  %vm2161_vm3 = vcmp.ge.f32.partialorder %v2148_v39, 0.0 }
 0x205   : > { %v2194_v26 = vpack.c.bf16 %v2186_v29, %v2185_v18  ;;  %v2126_v21 = vsel %vm2100_vm15, %v2087_v24, %v2113_v25  ;;  %v1951_v16 = vpop.f32.mrb[138].mxu0  ;;  %v2114_v56 = vmul.f32 0.01, %v2088_v58  ;;  %vm2101_vm4 = vcmp.ge.f32.partialorder %v2088_v58, 0.0  ;;  %v2424_v12 = vld [vmem:[#allocation2 + $0xf] sm:$0xff]  ;;  %v2610_v9 = vld [vmem:[#allocation2 + $0x17] sm:$0xff] }
 0x206   : > { %v1986_v8 = vadd.f32 %v5426_v13, %v1966_v17  ;;  %v2134_v40 = vpack.c.bf16 %v2126_v21, %v2125_v57  ;;  %v4439_v43 = vpop.f32.mrb[139].mxu0  ;;  %v2187_v52 = vsel %vm2161_vm3, %v2148_v39, %v2174_v34  ;;  %v2449_v17 = vmul.f32 0.01, %v2423_v60  ;;  %v3983_v57 = vld [vmem:[%s6018_s4 + $0x10] sm:$0xf]  ;;  %v2426_v39 = vld [vmem:[#allocation2 + $0x1f] sm:$0xff] }
 0x207   : > { %4459 = vmatmul.mubr.msk.bf16.gmra.mrb[128].mxu1 %vm266_vm1, %v2194_v26  ;;  %v2127_v61 = vsel %vm2101_vm4, %v2088_v58, %v2114_v56  ;;  %v2450_v18 = vmul.f32 0.01, %v2424_v12  ;;  %vm2437_vm11 = vcmp.ge.f32.partialorder %v2424_v12, 0.0  ;;  %v2636_v29 = vmul.f32 0.01, %v2610_v9  ;;  %v2612_v58 = vld [vmem:[#allocation2 + $0x27] sm:$0xff] }
 0x208   : > { %v2064_v33 = vmul.f32 %v5540_v14, %v1986_v8  ;;  %4489 = vmatmul.mubr.msk.bf16.gmra.mrb[156].mxu0 %vm266_vm1, %v2134_v40  ;;  %4462 = vmatprep.mubr.msk.bf16.mxu1 %vm4733_vm2, %v4732_v2  ;;  %vm2623_vm12 = vcmp.ge.f32.partialorder %v2610_v9, 0.0  ;;  %v2462_v11 = vsel %vm2436_vm10, %v2423_v60, %v2449_v17  ;;  %v3991_v16 = vld [vmem:[%s6018_s4 + $0x14] sm:$0xf]  ;;  %v2878_v40 = vsel %vm474_vm0, %v3983_v57, 0 }
 0x209   : > { %4492 = vmatprep.mubr.msk.bf16.mxu0 %vm4733_vm2, %v4732_v2  ;;  %v2149_v41 = vld [vmem:[#allocation2 + $0x5e] sm:$0xff]  ;;  %v2463_v26 = vsel %vm2437_vm11, %v2424_v12, %v2450_v18  ;;  %v2649_v21 = vsel %vm2623_vm12, %v2610_v9, %v2636_v29  ;;  %vm2439_vm13 = vcmp.ge.f32.partialorder %v2426_v39, 0.0  ;;  %v2638_v34 = vmul.f32 0.01, %v2612_v58  ;;  %v2432_v9 = vld [vmem:[#allocation2 + $0x4f] sm:$0xff] }
 0x20a   : > { %v2089_v13 = vld [vmem:[#allocation2 + $0x5d] sm:$0xff]  ;;  %vm2162_vm5 = vcmp.ge.f32.partialorder %v2149_v41, 0.0  ;;  %v2175_v45 = vmul.f32 0.01, %v2149_v41  ;;  %2077 = vst.msk [vmem:[#allocation2 + $0x70] sm:$0xf] %vm283_vm7, %v2064_v33  ;;  %v2475_v8 = vpack.c.bf16 %v2463_v26, %v2462_v11  ;;  %v2661_v43 = vpack.c.bf16 %v2649_v21, %v2463_v26 }
 0x20b   : > { %vm2102_vm6 = vcmp.ge.f32.partialorder %v2089_v13, 0.0  ;;  %v2115_v38 = vmul.f32 0.01, %v2089_v13  ;;  %v2150_v7 = vld [vmem:[#allocation2 + $0x66] sm:$0xf]  ;;  %v3064_v56 = vsel %vm474_vm0, %v3991_v16, 0 }
 0x20c   : > { %v2188_v42 = vsel %vm2162_vm5, %v2149_v41, %v2175_v45  ;;  %v2090_v59 = vld [vmem:[#allocation2 + $0x65] sm:$0xf]  ;;  %v2176_v62 = vmul.f32 0.01, %v2150_v7  ;;  %vm2163_vm8 = vcmp.ge.f32.partialorder %v2150_v7, 0.0  ;;  %vm2625_vm14 = vcmp.ge.f32.partialorder %v2612_v58, 0.0 }
 0x20d   : > { %v2128_v46 = vsel %vm2102_vm6, %v2089_v13, %v2115_v38  ;;  %v2195_v48 = vpack.c.bf16 %v2188_v42, %v2187_v52  ;;  %v2116_v10 = vmul.f32 0.01, %v2090_v59  ;;  %vm2103_vm9 = vcmp.ge.f32.partialorder %v2090_v59, 0.0  ;;  %v2428_v45 = vld [vmem:[#allocation2 + $0x2f] sm:$0xff]  ;;  %v2614_v38 = vld [vmem:[#allocation2 + $0x37] sm:$0xff]  ;;  %v2434_v57 = vld [vmem:[#allocation2 + $0x5f] sm:$0xff] }
 0x20e   : > { %v2135_v0 = vpack.c.bf16 %v2128_v46, %v2127_v61  ;;  %v2189_v1 = vsel %vm2163_vm8, %v2150_v7, %v2176_v62  ;;  %v2452_v33 = vmul.f32 0.01, %v2426_v39  ;;  %v2651_v13 = vsel %vm2625_vm14, %v2612_v58, %v2638_v34 }
 0x20f   : > { %4463 = vmatmul.mubr.msk.bf16.gmra.mrb[132].mxu1 %vm266_vm1, %v2195_v48  ;;  %v2129_v24 = vsel %vm2103_vm9, %v2090_v59, %v2116_v10  ;;  %v2196_v15 = vpack.c.bf16 %v2189_v1, %v2189_v1  ;;  %v2454_v42 = vmul.f32 0.01, %v2428_v45  ;;  %vm2441_vm15 = vcmp.ge.f32.partialorder %v2428_v45, 0.0  ;;  %v2430_v48 = vld [vmem:[#allocation2 + $0x3f] sm:$0xff] }
 0x210   : > { %4493 = vmatmul.mubr.msk.bf16.gmra.mrb[160].mxu0 %vm266_vm1, %v2135_v0  ;;  %4466 = vmatprep.mubr.msk.bf16.mxu1 %vm4733_vm2, %v4732_v2  ;;  %v2136_v25 = vpack.c.bf16 %v2129_v24, %v2129_v24  ;;  %v2465_v41 = vsel %vm2439_vm13, %v2426_v39, %v2452_v33  ;;  %v2640_v61 = vmul.f32 0.01, %v2614_v38  ;;  %vm2627_vm3 = vcmp.ge.f32.partialorder %v2614_v38, 0.0  ;;  %v2616_v0 = vld [vmem:[#allocation2 + $0x47] sm:$0xff] }
 0x211   : > { %4496 = vmatprep.mubr.msk.bf16.mxu0 %vm4733_vm2, %v4732_v2  ;;  %v2476_v7 = vpack.c.bf16 %v2465_v41, %v2649_v21  ;;  %v2662_v52 = vpack.c.bf16 %v2651_v13, %v2465_v41  ;;  %v2467_v46 = vsel %vm2441_vm15, %v2428_v45, %v2454_v42  ;;  %v2456_v1 = vmul.f32 0.01, %v2430_v48  ;;  %v2620_v21 = vld [vmem:[#allocation2 + $0x67] sm:$0xff]  ;;  %v2621_v34 = vld [vmem:[#allocation2 + $0x6f] sm:$0xf]  ;;  %v2982_v42 = vld [vmem:[#allocation2 + $0x19] sm:$0xff] }
 0x212   : > { %v2653_v59 = vsel %vm2627_vm3, %v2614_v38, %v2640_v61  ;;  %v2477_v62 = vpack.c.bf16 %v2467_v46, %v2651_v13  ;;  %vm2443_vm4 = vcmp.ge.f32.partialorder %v2430_v48, 0.0  ;;  %v2642_v24 = vmul.f32 0.01, %v2616_v0  ;;  %v2435_v33 = vld [vmem:[#allocation2 + $0x67] sm:$0xf] }
 0x213   : > { %v2663_v10 = vpack.c.bf16 %v2653_v59, %v2467_v46  ;;  %vm2629_vm5 = vcmp.ge.f32.partialorder %v2616_v0, 0.0  ;;  %v2469_v60 = vsel %vm2443_vm4, %v2430_v48, %v2456_v1  ;;  %v2458_v18 = vmul.f32 0.01, %v2432_v9  ;;  %v2795_v46 = vld [vmem:[#allocation2 + $0x10] sm:$0xff] }
 0x214   : > { %v2655_v12 = vsel %vm2629_vm5, %v2616_v0, %v2642_v24  ;;  %vm2445_vm6 = vcmp.ge.f32.partialorder %v2432_v9, 0.0  ;;  %v2460_v16 = vmul.f32 0.01, %v2434_v57  ;;  %vm2447_vm9 = vcmp.ge.f32.partialorder %v2434_v57, 0.0  ;;  %v2981_v0 = vld [vmem:[#allocation2 + $0x11] sm:$0xff] }
 0x215   : > { %v2664_v17 = vpack.c.bf16 %v2655_v12, %v2469_v60  ;;  %v2471_v11 = vsel %vm2445_vm6, %v2432_v9, %v2458_v18  ;;  %vm2633_vm10 = vcmp.ge.f32.partialorder %v2620_v21, 0.0  ;;  %v2461_v13 = vmul.f32 0.01, %v2435_v33  ;;  %v2798_v9 = vld [vmem:[#allocation2 + $0x28] sm:$0xff] }
 0x216   : > { %v2479_v39 = vpack.c.bf16 %v2471_v11, %v2655_v12  ;;  %vm2448_vm11 = vcmp.ge.f32.partialorder %v2435_v33, 0.0  ;;  %v2647_v45 = vmul.f32 0.01, %v2621_v34  ;;  %vm2634_vm12 = vcmp.ge.f32.partialorder %v2621_v34, 0.0 }
 0x217   : > { %4467 = vmatmul.mubr.msk.bf16.gmra.mrb[136].mxu1 %vm266_vm1, %v2196_v15  ;;  %v2618_v15 = vld [vmem:[#allocation2 + $0x57] sm:$0xff]  ;;  %v2474_v38 = vsel %vm2448_vm11, %v2435_v33, %v2461_v13  ;;  %vm2995_vm14 = vcmp.ge.f32.partialorder %v2982_v42, 0.0  ;;  %vm2808_vm15 = vcmp.ge.f32.partialorder %v2795_v46, 0.0  ;;  %v3007_v1 = vmul.f32 0.01, %v2981_v0 }
 0x218   : > { %4497 = vmatmul.mubr.msk.bf16.gmra.mrb[164].mxu0 %vm266_vm1, %v2136_v25  ;;  %4502 = vmatprep.mubr.msk.bf16.mxu1 %vm4733_vm2, %v4732_v2  ;;  %v2478_v25 = vpack.c.bf16 %v2469_v60, %v2653_v59  ;;  %v2644_v29 = vmul.f32 0.01, %v2618_v15  ;;  %vm2631_vm8 = vcmp.ge.f32.partialorder %v2618_v15, 0.0  ;;  %v2481_v61 = vpack.c.bf16 %v2474_v38, %v2474_v38  ;;  %v3999_v60 = vld [vmem:[%s6018_s4 + $0x18] sm:$0xf]  ;;  %v2799_v38 = vld [vmem:[#allocation2 + $0x30] sm:$0xff] }
 0x219   : > { %4532 = vmatprep.mubr.msk.bf16.mxu0 %vm4733_vm2, %v4732_v2  ;;  %vm2994_vm3 = vcmp.ge.f32.partialorder %v2981_v0, 0.0  ;;  %vm2811_vm4 = vcmp.ge.f32.partialorder %v2798_v9, 0.0  ;;  %vm2812_vm11 = vcmp.ge.f32.partialorder %v2799_v38, 0.0 }
 0x21a   : > { %v2657_v26 = vsel %vm2631_vm8, %v2618_v15, %v2644_v29  ;;  %v3020_v29 = vsel %vm2994_vm3, %v2981_v0, %v3007_v1  ;;  %v2988_v1 = vld [vmem:[#allocation2 + $0x49] sm:$0xff] }
 0x21b   : > { %v2665_v58 = vpack.c.bf16 %v2657_v26, %v2471_v11  ;;  %v3250_v11 = vsel %vm474_vm0, %v3999_v60, 0 }
 0x21f   : > { %4503 = vmatmul.mubr.msk.bf16.vlgmr.msra.gmra.mrb[140].mxu1 %vm266_vm1, %v2475_v8  ;;  %v2646_v8 = vmul.f32 0.01, %v2620_v21 }
 0x220   : > { %4533 = vmatmul.mubr.msk.bf16.vlgmr.msra.gmra.mrb[168].mxu0 %vm266_vm1, %v2661_v43  ;;  %4561 = vmatpush3.bf16.msra.mxu1 %v2878_v40  ;;  %v2473_v40 = vsel %vm2447_vm9, %v2434_v57, %v2460_v16 }
 0x221   : > { %4506 = vmatprep.mubr.msk.bf16.mxu1 %vm4733_vm2, %v4732_v2  ;;  %4536 = vmatprep.mubr.msk.bf16.mxu0 %vm4733_vm2, %v4732_v2  ;;  %v2659_v43 = vsel %vm2633_vm10, %v2620_v21, %v2646_v8  ;;  %v2824_v21 = vmul.f32 0.01, %v2798_v9 }
 0x222   : > { %4591 = vmatpush3.bf16.msra.mxu0 %v3064_v56  ;;  %4620 = vmatprep.subr.bf16.mxu1 %v4732_v2  ;;  %v2480_v56 = vpack.c.bf16 %v2473_v40, %v2657_v26  ;;  %v2666_v41 = vpack.c.bf16 %v2659_v43, %v2473_v40  ;;  %v2797_v26 = vld [vmem:[#allocation2 + $0x20] sm:$0xff] }
 0x223   : > { %4650 = vmatprep.subr.bf16.mxu0 %v4732_v2  ;;  %v2823_v8 = vmul.f32 0.01, %v2797_v26  ;;  %vm2810_vm6 = vcmp.ge.f32.partialorder %v2797_v26, 0.0  ;;  %v2837_v43 = vsel %vm2811_vm4, %v2798_v9, %v2824_v21  ;;  %v2801_v9 = vld [vmem:[#allocation2 + $0x40] sm:$0xff]  ;;  %v2804_v21 = vld [vmem:[#allocation2 + $0x58] sm:$0xff] }
 0x224   : > { %vm2817_vm4 = vcmp.ge.f32.partialorder %v2804_v21, 0.0 }
 0x227   : > { %4507 = vmatmul.mubr.msk.bf16.gmra.mrb[144].mxu1 %vm266_vm1, %v2476_v7  ;;  %v2660_v7 = vsel %vm2634_vm12, %v2621_v34, %v2647_v45  ;;  %v2800_v34 = vld [vmem:[#allocation2 + $0x38] sm:$0xff] }
 0x228   : > { %4537 = vmatmul.mubr.msk.bf16.gmra.mrb[172].mxu0 %vm266_vm1, %v2662_v52  ;;  %4510 = vmatprep.mubr.msk.bf16.mxu1 %vm4733_vm2, %v4732_v2  ;;  %v2796_v52 = vld [vmem:[#allocation2 + $0x18] sm:$0xff]  ;;  %v2667_v59 = vpack.c.bf16 %v2660_v7, %v2660_v7  ;;  %vm2813_vm9 = vcmp.ge.f32.partialorder %v2800_v34, 0.0 }
 0x229   : > { %4540 = vmatprep.mubr.msk.bf16.mxu0 %vm4733_vm2, %v4732_v2  ;;  %v2822_v48 = vmul.f32 0.01, %v2796_v52  ;;  %vm2809_vm13 = vcmp.ge.f32.partialorder %v2796_v52, 0.0 }
 0x22b   : > { %v2835_v24 = vsel %vm2809_vm13, %v2796_v52, %v2822_v48  ;;  %v2826_v52 = vmul.f32 0.01, %v2800_v34 }
 0x22d   : > { %v2839_v48 = vsel %vm2813_vm9, %v2800_v34, %v2826_v52  ;;  %v2830_v34 = vmul.f32 0.01, %v2804_v21 }
 0x22f   : > { %4511 = vmatmul.mubr.msk.bf16.gmra.mrb[148].mxu1 %vm266_vm1, %v2477_v62  ;;  %v3008_v62 = vmul.f32 0.01, %v2982_v42 }
 0x230   : > { %4541 = vmatmul.mubr.msk.bf16.gmra.mrb[176].mxu0 %vm266_vm1, %v2663_v10  ;;  %4514 = vmatprep.mubr.msk.bf16.mxu1 %vm4733_vm2, %v4732_v2  ;;  %v2821_v10 = vmul.f32 0.01, %v2795_v46 }
 0x231   : > { %4544 = vmatprep.mubr.msk.bf16.mxu0 %vm4733_vm2, %v4732_v2  ;;  %v5617_v12 = vsel %vm2995_vm14, %v2982_v42, %v3008_v62  ;;  %v2985_v42 = vld [vmem:[#allocation2 + $0x31] sm:$0xff]  ;;  %v2802_v62 = vld [vmem:[#allocation2 + $0x48] sm:$0xff]  ;;  %vm3001_vm14 = vcmp.ge.f32.partialorder %v2988_v1, 0.0 }
 0x232   : > { %v2834_v15 = vsel %vm2808_vm15, %v2795_v46, %v2821_v10  ;;  %v3033_v57 = vpack.c.bf16 %v5617_v12, %v3020_v29  ;;  %v2825_v46 = vmul.f32 0.01, %v2799_v38  ;;  %vm2998_vm12 = vcmp.ge.f32.partialorder %v2985_v42, 0.0 }
 0x233   : > { %v2847_v18 = vpack.c.bf16 %v2835_v24, %v2834_v15  ;;  %vm2815_vm13 = vcmp.ge.f32.partialorder %v2802_v62, 0.0  ;;  %v2827_v29 = vmul.f32 0.01, %v2801_v9  ;;  %vm2814_vm15 = vcmp.ge.f32.partialorder %v2801_v9, 0.0 }
 0x234   : > { %v2838_v10 = vsel %vm2812_vm11, %v2799_v38, %v2825_v46  ;;  %v2992_v46 = vld [vmem:[#allocation2 + $0x69] sm:$0xff] }
 0x235   : > { %v2849_v24 = vpack.c.bf16 %v2839_v48, %v2838_v10 }
 0x237   : > { %4515 = vmatmul.mubr.msk.bf16.gmra.mrb[152].mxu1 %vm266_vm1, %v2478_v25  ;;  %v2984_v25 = vld [vmem:[#allocation2 + $0x29] sm:$0xff] }
 0x238   : > { %4545 = vmatmul.mubr.msk.bf16.gmra.mrb[180].mxu0 %vm266_vm1, %v2664_v17  ;;  %4518 = vmatprep.mubr.msk.bf16.mxu1 %vm4733_vm2, %v4732_v2  ;;  %v4007_v17 = vld [vmem:[%s6018_s4 + $0x1c] sm:$0xf]  ;;  %vm2997_vm5 = vcmp.ge.f32.partialorder %v2984_v25, 0.0 }
 0x239   : > { %4548 = vmatprep.mubr.msk.bf16.mxu0 %vm4733_vm2, %v4732_v2  ;;  %v3436_v16 = vsel %vm474_vm0, %v4007_v17, 0  ;;  %v2987_v17 = vld [vmem:[#allocation2 + $0x41] sm:$0xff] }
 0x23a   : > { %vm3000_vm3 = vcmp.ge.f32.partialorder %v2987_v17, 0.0 }
 0x23f   : > { %4519 = vmatmul.mubr.msk.bf16.gmra.mrb[156].mxu1 %vm266_vm1, %v2479_v39  ;;  %v2983_v39 = vld [vmem:[#allocation2 + $0x21] sm:$0xff] }
 0x240   : > { %4549 = vmatmul.mubr.msk.bf16.gmra.mrb[184].mxu0 %vm266_vm1, %v2665_v58  ;;  %4522 = vmatprep.mubr.msk.bf16.mxu1 %vm4733_vm2, %v4732_v2  ;;  %v3010_v58 = vmul.f32 0.01, %v2984_v25  ;;  %v3009_v40 = vmul.f32 0.01, %v2983_v39  ;;  %vm2996_vm8 = vcmp.ge.f32.partialorder %v2983_v39, 0.0 }
 0x241   : > { %4552 = vmatprep.mubr.msk.bf16.mxu0 %vm4733_vm2, %v4732_v2 }
 0x242   : > { %v5632_v33 = vsel %vm2997_vm5, %v2984_v25, %v3010_v58  ;;  %v5634_v45 = vsel %vm2996_vm8, %v2983_v39, %v3009_v40  ;;  %v2828_v25 = vmul.f32 0.01, %v2802_v62  ;;  %v2840_v39 = vsel %vm2814_vm15, %v2801_v9, %v2827_v29  ;;  %v2990_v58 = vld [vmem:[#allocation2 + $0x59] sm:$0xff]  ;;  %v2803_v40 = vld [vmem:[#allocation2 + $0x50] sm:$0xff] }
 0x243   : > { %v3034_v7 = vpack.c.bf16 %v5632_v33, %v5634_v45  ;;  %vm3003_vm5 = vcmp.ge.f32.partialorder %v2990_v58, 0.0  ;;  %v3018_v9 = vmul.f32 0.01, %v2992_v46  ;;  %v2807_v29 = vld [vmem:[#allocation2 + $0x70] sm:$0xf] }
 0x247   : > { %4523 = vmatmul.mubr.msk.bf16.gmra.mrb[160].mxu1 %vm266_vm1, %v2480_v56  ;;  %v2836_v56 = vsel %vm2810_vm6, %v2797_v26, %v2823_v8  ;;  %v2841_v26 = vsel %vm2815_vm13, %v2802_v62, %v2828_v25  ;;  %vm2816_vm6 = vcmp.ge.f32.partialorder %v2803_v40, 0.0  ;;  %v2805_v62 = vld [vmem:[#allocation2 + $0x60] sm:$0xff]  ;;  %vm2820_vm13 = vcmp.ge.f32.partialorder %v2807_v29, 0.0 }
 0x248   : > { %4553 = vmatmul.mubr.msk.bf16.gmra.mrb[188].mxu0 %vm266_vm1, %v2666_v41  ;;  %4526 = vmatprep.mubr.msk.bf16.mxu1 %vm4733_vm2, %v4732_v2  ;;  %v2986_v41 = vld [vmem:[#allocation2 + $0x39] sm:$0xff]  ;;  %v2848_v13 = vpack.c.bf16 %v2837_v43, %v2836_v56  ;;  %v2989_v56 = vld [vmem:[#allocation2 + $0x51] sm:$0xff]  ;;  %vm2818_vm11 = vcmp.ge.f32.partialorder %v2805_v62, 0.0 }
 0x249   : > { %4556 = vmatprep.mubr.msk.bf16.mxu0 %vm4733_vm2, %v4732_v2  ;;  %vm2999_vm10 = vcmp.ge.f32.partialorder %v2986_v41, 0.0  ;;  %v3015_v38 = vmul.f32 0.01, %v2989_v56  ;;  %vm3002_vm8 = vcmp.ge.f32.partialorder %v2989_v56, 0.0 }
 0x24b   : > { %v5670_v48 = vsel %vm3002_vm8, %v2989_v56, %v3015_v38  ;;  %v3354_v56 = vld [vmem:[#allocation2 + $0x22] sm:$0xff]  ;;  %v3353_v38 = vld [vmem:[#allocation2 + $0x1a] sm:$0xff] }
 0x24c   : > { %vm3367_vm15 = vcmp.ge.f32.partialorder %v3354_v56, 0.0 }
 0x24f   : > { %4527 = vmatmul.mubr.msk.bf16.gmra.mrb[164].mxu1 %vm266_vm1, %v2481_v61  ;;  %v3012_v61 = vmul.f32 0.01, %v2986_v41 }
 0x250   : > { %4557 = vmatmul.mubr.msk.bf16.gmra.mrb[192].mxu0 %vm266_vm1, %v2667_v59  ;;  %4562 = vmatprep.mubr.msk.bf16.mxu1 %vm4733_vm2, %v4732_v2  ;;  %v3011_v59 = vmul.f32 0.01, %v2985_v42 }
 0x251   : > { %4592 = vmatprep.mubr.msk.bf16.mxu0 %vm4733_vm2, %v4732_v2  ;;  %v5644_v0 = vsel %vm2999_vm10, %v2986_v41, %v3012_v61  ;;  %v3016_v41 = vmul.f32 0.01, %v2990_v58  ;;  %vm3005_vm10 = vcmp.ge.f32.partialorder %v2992_v46, 0.0 }
 0x252   : > { %v5646_v60 = vsel %vm2998_vm12, %v2985_v42, %v3011_v59  ;;  %v2806_v42 = vld [vmem:[#allocation2 + $0x68] sm:$0xff] }
 0x253   : > { %v3035_v15 = vpack.c.bf16 %v5644_v0, %v5646_v60  ;;  %v5668_v52 = vsel %vm3003_vm5, %v2990_v58, %v3016_v41  ;;  %vm2819_vm9 = vcmp.ge.f32.partialorder %v2806_v42, 0.0 }
 0x254   : > { %v3037_v10 = vpack.c.bf16 %v5668_v52, %v5670_v48 }
 0x257   : > { %4563 = vmatmul.mubr.msk.bf16.vlgmr.msra.gmra.mrb[168].mxu1 %vm266_vm1, %v2847_v18  ;;  %v3014_v18 = vmul.f32 0.01, %v2988_v1 }
 0x258   : > { %4593 = vmatmul.mubr.msk.bf16.vlgmr.msra.gmra.mrb[196].mxu0 %vm266_vm1, %v3033_v57  ;;  %4621 = vmatpush3.bf16.msra.mxu1 %v3250_v11  ;;  %v3013_v11 = vmul.f32 0.01, %v2987_v17 }
 0x259   : > { %4566 = vmatprep.mubr.msk.bf16.mxu1 %vm4733_vm2, %v4732_v2  ;;  %4596 = vmatprep.mubr.msk.bf16.mxu0 %vm4733_vm2, %v4732_v2  ;;  %v5656_v57 = vsel %vm3001_vm14, %v2988_v1, %v3014_v18  ;;  %v2832_v1 = vmul.f32 0.01, %v2806_v42  ;;  %v5680_v18 = vsel %vm3005_vm10, %v2992_v46, %v3018_v9  ;;  %v3355_v9 = vld [vmem:[#allocation2 + $0x2a] sm:$0xff] }
 0x25a   : > { %4651 = vmatpush3.bf16.msra.mxu0 %v3436_v16  ;;  %4680 = vmatprep.subr.bf16.mxu1 %v4732_v2  ;;  %v2850_v16 = vpack.c.bf16 %v2841_v26, %v2840_v39  ;;  %v5658_v8 = vsel %vm3000_vm3, %v2987_v17, %v3013_v11  ;;  %v2993_v26 = vld [vmem:[#allocation2 + $0x71] sm:$0xf]  ;;  %vm3366_vm3 = vcmp.ge.f32.partialorder %v3353_v38, 0.0  ;;  %vm3368_vm5 = vcmp.ge.f32.partialorder %v3355_v9, 0.0 }
 0x25b   : > { %v3036_v43 = vpack.c.bf16 %v5656_v57, %v5658_v8  ;;  %v2845_v17 = vsel %vm2819_vm9, %v2806_v42, %v2832_v1  ;;  %vm3006_vm14 = vcmp.ge.f32.partialorder %v2993_v26, 0.0  ;;  %v3379_v42 = vmul.f32 0.01, %v3353_v38 }
 0x25f   : > { %4567 = vmatmul.mubr.msk.bf16.gmra.mrb[172].mxu1 %vm266_vm1, %v2848_v13  ;;  %v2829_v13 = vmul.f32 0.01, %v2803_v40 }
 0x260   : > { %4597 = vmatmul.mubr.msk.bf16.gmra.mrb[200].mxu0 %vm266_vm1, %v3034_v7  ;;  %4570 = vmatprep.mubr.msk.bf16.mxu1 %vm4733_vm2, %v4732_v2  ;;  %v2843_v7 = vsel %vm2817_vm4, %v2804_v21, %v2830_v34 }
 0x261   : > { %4600 = vmatprep.mubr.msk.bf16.mxu0 %vm4733_vm2, %v4732_v2  ;;  %v2842_v61 = vsel %vm2816_vm6, %v2803_v40, %v2829_v13  ;;  %v3019_v40 = vmul.f32 0.01, %v2993_v26 }
 0x262   : > { %v2851_v59 = vpack.c.bf16 %v2843_v7, %v2842_v61  ;;  %v3380_v7 = vmul.f32 0.01, %v3354_v56  ;;  %v4015_v61 = vld [vmem:[%s6018_s4 + $0x20] sm:$0xf] }
 0x263   : > { %v3032_v34 = vsel %vm3006_vm14, %v2993_v26, %v3019_v40  ;;  %v3622_v1 = vsel %vm474_vm0, %v4015_v61, 0  ;;  %v3357_v26 = vld [vmem:[#allocation2 + $0x3a] sm:$0xff]  ;;  %v3360_v40 = vld [vmem:[#allocation2 + $0x52] sm:$0xff] }
 0x264   : > { %v3039_v13 = vpack.c.bf16 %v3032_v34, %v3032_v34  ;;  %v3393_v46 = vsel %vm3367_vm15, %v3354_v56, %v3380_v7  ;;  %vm3370_vm6 = vcmp.ge.f32.partialorder %v3357_v26, 0.0  ;;  %v3359_v34 = vld [vmem:[#allocation2 + $0x4a] sm:$0xff]  ;;  %v3386_v56 = vmul.f32 0.01, %v3360_v40 }
 0x265   : > { %vm3373_vm8 = vcmp.ge.f32.partialorder %v3360_v40, 0.0  ;;  %vm3372_vm9 = vcmp.ge.f32.partialorder %v3359_v34, 0.0 }
 0x267   : > { %4571 = vmatmul.mubr.msk.bf16.gmra.mrb[176].mxu1 %vm266_vm1, %v2849_v24  ;;  %v2991_v24 = vld [vmem:[#allocation2 + $0x61] sm:$0xff] }
 0x268   : > { %4601 = vmatmul.mubr.msk.bf16.gmra.mrb[204].mxu0 %vm266_vm1, %v3035_v15  ;;  %4574 = vmatprep.mubr.msk.bf16.mxu1 %vm4733_vm2, %v4732_v2  ;;  %v2831_v15 = vmul.f32 0.01, %v2805_v62  ;;  %v3017_v25 = vmul.f32 0.01, %v2991_v24  ;;  %vm3004_vm12 = vcmp.ge.f32.partialorder %v2991_v24, 0.0 }
 0x269   : > { %4604 = vmatprep.mubr.msk.bf16.mxu0 %vm4733_vm2, %v4732_v2 }
 0x26a   : > { %v2844_v11 = vsel %vm2818_vm11, %v2805_v62, %v2831_v15  ;;  %v5682_v39 = vsel %vm3004_vm12, %v2991_v24, %v3017_v25  ;;  %v3219_v62 = vpack.c.bf16 %v5634_v45, %v5617_v12  ;;  %v3381_v25 = vmul.f32 0.01, %v3355_v9  ;;  %v3358_v45 = vld [vmem:[#allocation2 + $0x42] sm:$0xff] }
 0x26b   : > { %v2852_v21 = vpack.c.bf16 %v2845_v17, %v2844_v11  ;;  %v3038_v58 = vpack.c.bf16 %v5680_v18, %v5682_v39  ;;  %v3220_v17 = vpack.c.bf16 %v5646_v60, %v5632_v33  ;;  %vm3371_vm0 = vcmp.ge.f32.partialorder %v3358_v45, 0.0 }
 0x26c   : > { %v3221_v33 = vpack.c.bf16 %v5658_v8, %v5644_v0  ;;  %v3222_v0 = vpack.c.bf16 %v5670_v48, %v5656_v57  ;;  %v3363_v57 = vld [vmem:[#allocation2 + $0x6a] sm:$0xff]  ;;  %v3364_v48 = vld [vmem:[#allocation2 + $0x72] sm:$0xff] }
 0x26d   : > { %vm3377_vm14 = vcmp.ge.f32.partialorder %v3364_v48, 0.0 }
 0x26f   : > { %4575 = vmatmul.mubr.msk.bf16.gmra.mrb[180].mxu1 %vm266_vm1, %v2850_v16  ;;  %v2833_v16 = vmul.f32 0.01, %v2807_v29 }
 0x270   : > { %4605 = vmatmul.mubr.msk.bf16.gmra.mrb[208].mxu0 %vm266_vm1, %v3036_v43  ;;  %4578 = vmatprep.mubr.msk.bf16.mxu1 %vm4733_vm2, %v4732_v2 }
 0x271   : > { %4608 = vmatprep.mubr.msk.bf16.mxu0 %vm4733_vm2, %v4732_v2  ;;  %v2846_v43 = vsel %vm2820_vm13, %v2807_v29, %v2833_v16  ;;  %v3394_v29 = vsel %vm3368_vm5, %v3355_v9, %v3381_v25  ;;  %v3390_v25 = vmul.f32 0.01, %v3364_v48  ;;  %vm3376_vm13 = vcmp.ge.f32.partialorder %v3363_v57, 0.0 }
 0x272   : > { %v2853_v41 = vpack.c.bf16 %v2846_v43, %v2846_v43 }
 0x277   : > { %4579 = vmatmul.mubr.msk.bf16.gmra.mrb[184].mxu1 %vm266_vm1, %v2851_v59  ;;  %v3356_v59 = vld [vmem:[#allocation2 + $0x32] sm:$0xff] }
 0x278   : > { %4609 = vmatmul.mubr.msk.bf16.gmra.mrb[212].mxu0 %vm266_vm1, %v3037_v10  ;;  %4582 = vmatprep.mubr.msk.bf16.mxu1 %vm4733_vm2, %v4732_v2  ;;  %v3392_v10 = vsel %vm3366_vm3, %v3353_v38, %v3379_v42  ;;  %v3382_v15 = vmul.f32 0.01, %v3356_v59  ;;  %vm3369_vm4 = vcmp.ge.f32.partialorder %v3356_v59, 0.0  ;;  %v3362_v38 = vld [vmem:[#allocation2 + $0x62] sm:$0xff]  ;;  %v3361_v42 = vld [vmem:[#allocation2 + $0x5a] sm:$0xff] }
 0x279   : > { %4612 = vmatprep.mubr.msk.bf16.mxu0 %vm4733_vm2, %v4732_v2  ;;  %v3405_v24 = vpack.c.bf16 %v3393_v46, %v3392_v10  ;;  %v3388_v61 = vmul.f32 0.01, %v3362_v38  ;;  %vm3375_vm10 = vcmp.ge.f32.partialorder %v3362_v38, 0.0  ;;  %v3387_v46 = vmul.f32 0.01, %v3361_v42 }
 0x27a   : > { %v3395_v12 = vsel %vm3369_vm4, %v3356_v59, %v3382_v15  ;;  %vm3374_vm11 = vcmp.ge.f32.partialorder %v3361_v42, 0.0  ;;  %v3223_v10 = vpack.c.bf16 %v5682_v39, %v5668_v52  ;;  %v3389_v15 = vmul.f32 0.01, %v3363_v57  ;;  %v3365_v39 = vld [vmem:[#allocation2 + $0x7a] sm:$0xf] }
 0x27b   : > { %v3406_v11 = vpack.c.bf16 %v3395_v12, %v3394_v29  ;;  %v3401_v59 = vsel %vm3375_vm10, %v3362_v38, %v3388_v61  ;;  %v3179_v12 = vld [vmem:[#allocation2 + $0x79] sm:$0xf]  ;;  %vm3378_vm3 = vcmp.ge.f32.partialorder %v3365_v39, 0.0 }
 0x27c   : > { %v3205_v29 = vmul.f32 0.01, %v3179_v12  ;;  %vm3192_vm15 = vcmp.ge.f32.partialorder %v3179_v12, 0.0 }
 0x27f   : > { %4583 = vmatmul.mubr.msk.bf16.gmra.mrb[188].mxu1 %vm266_vm1, %v2852_v21  ;;  %v3384_v21 = vmul.f32 0.01, %v3358_v45 }
 0x280   : > { %4613 = vmatmul.mubr.msk.bf16.gmra.mrb[216].mxu0 %vm266_vm1, %v3038_v58  ;;  %4586 = vmatprep.mubr.msk.bf16.mxu1 %vm4733_vm2, %v4732_v2  ;;  %v3383_v58 = vmul.f32 0.01, %v3357_v26 }
 0x281   : > { %4616 = vmatprep.mubr.msk.bf16.mxu0 %vm4733_vm2, %v4732_v2  ;;  %v3397_v16 = vsel %vm3371_vm0, %v3358_v45, %v3384_v21  ;;  %v3402_v45 = vsel %vm3376_vm13, %v3363_v57, %v3389_v15 }
 0x282   : > { %v3396_v60 = vsel %vm3370_vm6, %v3357_v26, %v3383_v58  ;;  %v3391_v26 = vmul.f32 0.01, %v3365_v39  ;;  %v3218_v58 = vsel %vm3192_vm15, %v3179_v12, %v3205_v29 }
 0x283   : > { %v3407_v43 = vpack.c.bf16 %v3397_v16, %v3396_v60 }
 0x284   : > { %v3404_v16 = vsel %vm3378_vm3, %v3365_v39, %v3391_v26  ;;  %v3541_v39 = vld [vmem:[#allocation2 + $0x2b] sm:$0xff] }
 0x285   : > { %vm3554_vm6 = vcmp.ge.f32.partialorder %v3541_v39, 0.0 }
 0x287   : > { %4587 = vmatmul.mubr.msk.bf16.gmra.mrb[192].mxu1 %vm266_vm1, %v2853_v41  ;;  %v3385_v41 = vmul.f32 0.01, %v3359_v34 }
 0x288   : > { %4617 = vmatmul.mubr.msk.bf16.gmra.mrb[220].mxu0 %vm266_vm1, %v3039_v13  ;;  %4622 = vmatprep.mubr.msk.bf16.mxu1 %vm4733_vm2, %v4732_v2  ;;  %v3399_v13 = vsel %vm3373_vm8, %v3360_v40, %v3386_v56 }
 0x289   : > { %4652 = vmatprep.mubr.msk.bf16.mxu0 %vm4733_vm2, %v4732_v2  ;;  %v3398_v8 = vsel %vm3372_vm9, %v3359_v34, %v3385_v41 }
 0x28a   : > { %v3408_v7 = vpack.c.bf16 %v3399_v13, %v3398_v8  ;;  %v3411_v13 = vpack.c.bf16 %v3404_v16, %v3404_v16  ;;  %v3539_v8 = vld [vmem:[#allocation2 + $0x1b] sm:$0xff] }
 0x28b   : > { %vm3552_vm5 = vcmp.ge.f32.partialorder %v3539_v8, 0.0 }
 0x28f   : > { %4623 = vmatmul.mubr.msk.bf16.vlgmr.msra.gmra.mrb[196].mxu1 %vm266_vm1, %v3219_v62  ;;  %v3178_v62 = vld [vmem:[#allocation2 + $0x71] sm:$0xff] }
 0x290   : > { %4653 = vmatmul.mubr.msk.bf16.vlgmr.msra.gmra.mrb[224].mxu0 %vm266_vm1, %v3405_v24  ;;  %4681 = vmatpush3.bf16.msra.mxu1 %v3622_v1  ;;  %v3400_v1 = vsel %vm3374_vm11, %v3361_v42, %v3387_v46  ;;  %v3204_v9 = vmul.f32 0.01, %v3178_v62  ;;  %vm3191_vm12 = vcmp.ge.f32.partialorder %v3178_v62, 0.0  ;;  %v3565_v46 = vmul.f32 0.01, %v3539_v8 }
 0x291   : > { %4626 = vmatprep.mubr.msk.bf16.mxu1 %vm4733_vm2, %v4732_v2  ;;  %4656 = vmatprep.mubr.msk.bf16.mxu0 %vm4733_vm2, %v4732_v2  ;;  %v3409_v24 = vpack.c.bf16 %v3401_v59, %v3400_v1 }
 0x292   : > { %v3217_v52 = vsel %vm3191_vm12, %v3178_v62, %v3204_v9  ;;  %v3578_v15 = vsel %vm3552_vm5, %v3539_v8, %v3565_v46 }
 0x297   : > { %4627 = vmatmul.mubr.msk.bf16.gmra.mrb[200].mxu1 %vm266_vm1, %v3220_v17  ;;  %v3403_v17 = vsel %vm3377_vm14, %v3364_v48, %v3390_v25 }
 0x298   : > { %4657 = vmatmul.mubr.msk.bf16.gmra.mrb[228].mxu0 %vm266_vm1, %v3406_v11  ;;  %4630 = vmatprep.mubr.msk.bf16.mxu1 %vm4733_vm2, %v4732_v2  ;;  %v3224_v11 = vpack.c.bf16 %v3217_v52, %v5680_v18  ;;  %v3410_v21 = vpack.c.bf16 %v3403_v17, %v3402_v45  ;;  %v3225_v18 = vpack.c.bf16 %v3218_v58, %v3218_v58 }
 0x299   : > { %4660 = vmatprep.mubr.msk.bf16.mxu0 %vm4733_vm2, %v4732_v2 }
 0x29f   : > { %4631 = vmatmul.mubr.msk.bf16.gmra.mrb[204].mxu1 %vm266_vm1, %v3221_v33 }
 0x2a0   : > { %4661 = vmatmul.mubr.msk.bf16.gmra.mrb[232].mxu0 %vm266_vm1, %v3407_v43  ;;  %4634 = vmatprep.mubr.msk.bf16.mxu1 %vm4733_vm2, %v4732_v2  ;;  %v3540_v43 = vld [vmem:[#allocation2 + $0x23] sm:$0xff] }
 0x2a1   : > { %4664 = vmatprep.mubr.msk.bf16.mxu0 %vm4733_vm2, %v4732_v2  ;;  %v3566_v61 = vmul.f32 0.01, %v3540_v43  ;;  %vm3553_vm4 = vcmp.ge.f32.partialorder %v3540_v43, 0.0 }
 0x2a3   : > { %v3579_v62 = vsel %vm3553_vm4, %v3540_v43, %v3566_v61 }
 0x2a4   : > { %v3591_v52 = vpack.c.bf16 %v3579_v62, %v3578_v15 }
 0x2a7   : > { %4635 = vmatmul.mubr.msk.bf16.gmra.mrb[208].mxu1 %vm266_vm1, %v3222_v0 }
 0x2a8   : > { %4665 = vmatmul.mubr.msk.bf16.gmra.mrb[236].mxu0 %vm266_vm1, %v3408_v7  ;;  %4638 = vmatprep.mubr.msk.bf16.mxu1 %vm4733_vm2, %v4732_v2 }
 0x2a9   : > { %4668 = vmatprep.mubr.msk.bf16.mxu0 %vm4733_vm2, %v4732_v2 }
 0x2af   : > { %4639 = vmatmul.mubr.msk.bf16.gmra.mrb[212].mxu1 %vm266_vm1, %v3223_v10  ;;  %v3542_v10 = vld [vmem:[#allocation2 + $0x33] sm:$0xff] }
 0x2b0   : > { %4669 = vmatmul.mubr.msk.bf16.gmra.mrb[240].mxu0 %vm266_vm1, %v3409_v24  ;;  %4642 = vmatprep.mubr.msk.bf16.mxu1 %vm4733_vm2, %v4732_v2  ;;  %v3568_v29 = vmul.f32 0.01, %v3542_v10  ;;  %vm3555_vm0 = vcmp.ge.f32.partialorder %v3542_v10, 0.0 }
 0x2b1   : > { %4672 = vmatprep.mubr.msk.bf16.mxu0 %vm4733_vm2, %v4732_v2 }
 0x2b7   : > { %4643 = vmatmul.mubr.msk.bf16.gmra.mrb[216].mxu1 %vm266_vm1, %v3224_v11  ;;  %v3567_v11 = vmul.f32 0.01, %v3541_v39 }
 0x2b8   : > { %4673 = vmatmul.mubr.msk.bf16.gmra.mrb[244].mxu0 %vm266_vm1, %v3410_v21  ;;  %4646 = vmatprep.mubr.msk.bf16.mxu1 %vm4733_vm2, %v4732_v2  ;;  %v3581_v21 = vsel %vm3555_vm0, %v3542_v10, %v3568_v29 }
 0x2b9   : > { %4676 = vmatprep.mubr.msk.bf16.mxu0 %vm4733_vm2, %v4732_v2  ;;  %v3580_v43 = vsel %vm3554_vm6, %v3541_v39, %v3567_v11  ;;  %v3545_v39 = vld [vmem:[#allocation2 + $0x4b] sm:$0xff] }
 0x2ba   : > { %v2257_v40 = vpop.f32.mrb[112].mxu1  ;;  %vm3558_vm11 = vcmp.ge.f32.partialorder %v3545_v39, 0.0 }
 0x2bb   : > { %v2369_v33 = vpop.f32.mrb[140].mxu0  ;;  %v4444_v60 = vpop.f32.mrb[113].mxu1 }
 0x2bc   : > { %v5749_v34 = vadd.f32 %v2369_v33, %v2257_v40  ;;  %v4474_v56 = vpop.f32.mrb[141].mxu0  ;;  %v2260_v41 = vpop.f32.mrb[114].mxu1  ;;  %v3544_v40 = vld [vmem:[#allocation2 + $0x43] sm:$0xff] }
 0x2bd   : > { %v2372_v38 = vpop.f32.mrb[142].mxu0  ;;  %v4445_v0 = vpop.f32.mrb[115].mxu1  ;;  %vm3557_vm8 = vcmp.ge.f32.partialorder %v3544_v40, 0.0 }
 0x2be   : > { %v5751_v7 = vadd.f32 %v2372_v38, %v2260_v41  ;;  %v4475_v42 = vpop.f32.mrb[143].mxu0  ;;  %v3543_v38 = vld [vmem:[#allocation2 + $0x3b] sm:$0xff] }
 0x2bf   : > { %4647 = vmatmul.mubr.msk.bf16.gmra.mrb[220].mxu1 %vm266_vm1, %v3225_v18  ;;  %v3570_v42 = vmul.f32 0.01, %v3544_v40  ;;  %v3569_v61 = vmul.f32 0.01, %v3543_v38  ;;  %vm3556_vm9 = vcmp.ge.f32.partialorder %v3543_v38, 0.0 }
 0x2c0   : > { %4677 = vmatmul.mubr.msk.bf16.gmra.mrb[248].mxu0 %vm266_vm1, %v3411_v13  ;;  %4682 = vmatprep.mubr.msk.bf16.mxu1 %vm4733_vm2, %v4732_v2  ;;  %v3592_v13 = vpack.c.bf16 %v3581_v21, %v3580_v43 }
 0x2c1   : > { %v3582_v15 = vsel %vm3556_vm9, %v3543_v38, %v3569_v61 }
 0x2c2   : > { %v2265_v59 = vpop.f32.mrb[116].mxu1 }
 0x2c3   : > { %v2377_v57 = vpop.f32.mrb[144].mxu0  ;;  %v4448_v48 = vpop.f32.mrb[117].mxu1 }
 0x2c4   : > { %v5757_v1 = vadd.f32 %v2377_v57, %v2265_v59  ;;  %v4478_v24 = vpop.f32.mrb[145].mxu0  ;;  %v2268_v9 = vpop.f32.mrb[118].mxu1  ;;  %v3583_v59 = vsel %vm3557_vm8, %v3544_v40, %v3570_v42  ;;  %v3546_v48 = vld [vmem:[#allocation2 + $0x53] sm:$0xff]  ;;  %v3547_v42 = vld [vmem:[#allocation2 + $0x5b] sm:$0xff] }
 0x2c5   : > { %v2380_v25 = vpop.f32.mrb[146].mxu0  ;;  %v4449_v12 = vpop.f32.mrb[119].mxu1  ;;  %v3572_v11 = vmul.f32 0.01, %v3546_v48  ;;  %vm3559_vm10 = vcmp.ge.f32.partialorder %v3546_v48, 0.0  ;;  %vm3560_vm13 = vcmp.ge.f32.partialorder %v3547_v42, 0.0 }
 0x2c6   : > { %v5759_v45 = vadd.f32 %v2380_v25, %v2268_v9  ;;  %v4479_v17 = vpop.f32.mrb[147].mxu0 }
 0x2c7   : > { %4683 = vmatmul.mubr.msk.bf16.vlgmr.msra.gmra.mrb[224].mxu1 %vm266_vm1, %v3591_v52  ;;  %v3593_v52 = vpack.c.bf16 %v3583_v59, %v3582_v15  ;;  %v3549_v15 = vld [vmem:[#allocation2 + $0x6b] sm:$0xff] }
 0x2c8   : > { %4686 = vmatprep.mubr.msk.bf16.mxu1 %vm4733_vm2, %v4732_v2  ;;  %vm3562_vm14 = vcmp.ge.f32.partialorder %v3549_v15, 0.0 }
 0x2ca   : > { %v2273_v26 = vpop.f32.mrb[120].mxu1 }
 0x2cb   : > { %v2385_v58 = vpop.f32.mrb[148].mxu0  ;;  %v4452_v16 = vpop.f32.mrb[121].mxu1 }
 0x2cc   : > { %v5764_v33 = vadd.f32 %v2385_v58, %v2273_v26  ;;  %v4482_v60 = vpop.f32.mrb[149].mxu0  ;;  %v2276_v18 = vpop.f32.mrb[122].mxu1  ;;  %v3571_v26 = vmul.f32 0.01, %v3545_v39  ;;  %v3585_v58 = vsel %vm3559_vm10, %v3546_v48, %v3572_v11 }
 0x2cd   : > { %v2388_v56 = vpop.f32.mrb[150].mxu0  ;;  %v4453_v41 = vpop.f32.mrb[123].mxu1  ;;  %v3548_v60 = vld [vmem:[#allocation2 + $0x63] sm:$0xff] }
 0x2ce   : > { %v5766_v0 = vadd.f32 %v2388_v56, %v2276_v18  ;;  %v4483_v8 = vpop.f32.mrb[151].mxu0  ;;  %v3584_v41 = vsel %vm3558_vm11, %v3545_v39, %v3571_v26  ;;  %v3574_v59 = vmul.f32 0.01, %v3548_v60  ;;  %vm3561_vm12 = vcmp.ge.f32.partialorder %v3548_v60, 0.0 }
 0x2cf   : > { %4687 = vmatmul.mubr.msk.bf16.gmra.mrb[228].mxu1 %vm266_vm1, %v3592_v13  ;;  %v3594_v8 = vpack.c.bf16 %v3585_v58, %v3584_v41 }
 0x2d0   : > { %4690 = vmatprep.mubr.msk.bf16.mxu1 %vm4733_vm2, %v4732_v2  ;;  %v3587_v48 = vsel %vm3561_vm12, %v3548_v60, %v3574_v59  ;;  %v3551_v60 = vld [vmem:[#allocation2 + $0x7b] sm:$0xf] }
 0x2d1   : > { %vm3564_vm3 = vcmp.ge.f32.partialorder %v3551_v60, 0.0 }
 0x2d2   : > { %v2281_v46 = vpop.f32.mrb[124].mxu1 }
 0x2d3   : > { %v2393_v62 = vpop.f32.mrb[152].mxu0  ;;  %v4456_v57 = vpop.f32.mrb[125].mxu1 }
 0x2d4   : > { %v5771_v10 = vadd.f32 %v2393_v62, %v2281_v46  ;;  %v4486_v24 = vpop.f32.mrb[153].mxu0  ;;  %v2284_v9 = vpop.f32.mrb[126].mxu1  ;;  %v3573_v62 = vmul.f32 0.01, %v3547_v42 }
 0x2d5   : > { %v2396_v25 = vpop.f32.mrb[154].mxu0  ;;  %v4457_v12 = vpop.f32.mrb[127].mxu1 }
 0x2d6   : > { %v5773_v17 = vadd.f32 %v2396_v25, %v2284_v9  ;;  %v4487_v29 = vpop.f32.mrb[155].mxu0  ;;  %v3550_v25 = vld [vmem:[#allocation2 + $0x73] sm:$0xff] }
 0x2d7   : > { %4691 = vmatmul.mubr.msk.bf16.gmra.mrb[232].mxu1 %vm266_vm1, %v3593_v52  ;;  %v3586_v29 = vsel %vm3560_vm13, %v3547_v42, %v3573_v62  ;;  %vm3563_vm15 = vcmp.ge.f32.partialorder %v3550_v25, 0.0  ;;  %v3577_v62 = vmul.f32 0.01, %v3551_v60 }
 0x2d8   : > { %4694 = vmatprep.mubr.msk.bf16.mxu1 %vm4733_vm2, %v4732_v2 }
 0x2da   : > { %v2289_v21 = vpop.f32.mrb[128].mxu1 }
 0x2db   : > { %v2401_v16 = vpop.f32.mrb[156].mxu0  ;;  %v4460_v40 = vpop.f32.mrb[129].mxu1 }
 0x2dc   : > { %v5778_v18 = vadd.f32 %v2401_v16, %v2289_v21  ;;  %v4490_v43 = vpop.f32.mrb[157].mxu0  ;;  %v2292_v56 = vpop.f32.mrb[130].mxu1  ;;  %v3595_v21 = vpack.c.bf16 %v3587_v48, %v3586_v29  ;;  %v3575_v40 = vmul.f32 0.01, %v3549_v15 }
 0x2dd   : > { %v2404_v13 = vpop.f32.mrb[158].mxu0  ;;  %v4461_v38 = vpop.f32.mrb[131].mxu1  ;;  %v3576_v43 = vmul.f32 0.01, %v3550_v25 }
 0x2de   : > { %v5780_v61 = vadd.f32 %v2404_v13, %v2292_v56  ;;  %v4491_v46 = vpop.f32.mrb[159].mxu0  ;;  %v3588_v41 = vsel %vm3562_vm14, %v3549_v15, %v3575_v40 }
 0x2df   : > { %4695 = vmatmul.mubr.msk.bf16.gmra.mrb[236].mxu1 %vm266_vm1, %v3594_v8  ;;  %v3589_v13 = vsel %vm3563_vm15, %v3550_v25, %v3576_v43 }
 0x2e0   : > { %4698 = vmatprep.mubr.msk.bf16.mxu1 %vm4733_vm2, %v4732_v2 }
 0x2e2   : > { %v2297_v57 = vpop.f32.mrb[132].mxu1 }
 0x2e3   : > { %v2409_v24 = vpop.f32.mrb[160].mxu0  ;;  %v4464_v9 = vpop.f32.mrb[133].mxu1 }
 0x2e4   : > { %v5785_v12 = vadd.f32 %v2409_v24, %v2297_v57  ;;  %v4494_v52 = vpop.f32.mrb[161].mxu0  ;;  %v2300_v39 = vpop.f32.mrb[134].mxu1  ;;  %v3596_v24 = vpack.c.bf16 %v3589_v13, %v3588_v41 }
 0x2e5   : > { %v2412_v11 = vpop.f32.mrb[162].mxu0  ;;  %v4465_v26 = vpop.f32.mrb[135].mxu1  ;;  %v3590_v52 = vsel %vm3564_vm3, %v3551_v60, %v3577_v62 }
 0x2e6   : > { %v5787_v58 = vadd.f32 %v2412_v11, %v2300_v39  ;;  %v4495_v16 = vpop.f32.mrb[163].mxu0  ;;  %v3597_v11 = vpack.c.bf16 %v3590_v52, %v3590_v52 }
 0x2e7   : > { %4699 = vmatmul.mubr.msk.bf16.gmra.mrb[240].mxu1 %vm266_vm1, %v3595_v21 }
 0x2e8   : > { %4702 = vmatprep.mubr.msk.bf16.mxu1 %vm4733_vm2, %v4732_v2 }
 0x2ea   : > { %v2305_v56 = vpop.f32.mrb[136].mxu1 }
 0x2eb   : > { %v2417_v38 = vpop.f32.mrb[164].mxu0  ;;  %v4468_v8 = vpop.f32.mrb[137].mxu1 }
 0x2ec   : > { %v5792_v42 = vadd.f32 %v2417_v38, %v2305_v56  ;;  %v4498_v46 = vpop.f32.mrb[165].mxu0  ;;  %v2308_v59 = vpop.f32.mrb[138].mxu1 }
 0x2ed   : > { %v2420_v57 = vpop.f32.mrb[166].mxu0  ;;  %v4469_v48 = vpop.f32.mrb[139].mxu1 }
 0x2ee   : > { %v4499_v9 = vpop.f32.mrb[167].mxu0 }
 0x2ef   : > { %4703 = vmatmul.mubr.msk.bf16.gmra.mrb[244].mxu1 %vm266_vm1, %v3596_v24 }
 0x2f0   : > { %4706 = vmatprep.mubr.msk.bf16.mxu1 %vm4733_vm2, %v4732_v2 }
 0x2f2   : > { %v2542_v15 = vpop.f32.mrb[140].mxu1 }
 0x2f3   : > { %v2596_v25 = vadd.f32 %v2542_v15, %v5749_v34  ;;  %v2728_v39 = vpop.f32.mrb[168].mxu0  ;;  %v4504_v29 = vpop.f32.mrb[141].mxu1 }
 0x2f4   : > { %v4534_v26 = vpop.f32.mrb[169].mxu0  ;;  %v2545_v21 = vpop.f32.mrb[142].mxu1 }
 0x2f5   : > { %v5798_v16 = vadd.f32 %v2728_v39, %v2596_v25  ;;  %v2597_v40 = vadd.f32 %v2545_v21, %v5751_v7  ;;  %v2731_v43 = vpop.f32.mrb[170].mxu0  ;;  %v4505_v56 = vpop.f32.mrb[143].mxu1 }
 0x2f6   : > { %v4535_v41 = vpop.f32.mrb[171].mxu0 }
 0x2f7   : > { %v5801_v13 = vadd.f32 %v2731_v43, %v2597_v40  ;;  %4707 = vmatmul.mubr.msk.bf16.gmra.mrb[248].mxu1 %vm266_vm1, %v3597_v11 }
 0x2fa   : > { %v2550_v2 = vpop.f32.mrb[144].mxu1 }
 0x2fb   : > { %v2598_v60 = vadd.f32 %v2550_v2, %v5757_v1  ;;  %v2736_v34 = vpop.f32.mrb[172].mxu0  ;;  %v4508_v38 = vpop.f32.mrb[145].mxu1 }
 0x2fc   : > { %v4538_v8 = vpop.f32.mrb[173].mxu0  ;;  %v2553_v46 = vpop.f32.mrb[146].mxu1 }
 0x2fd   : > { %v5805_v59 = vadd.f32 %v2736_v34, %v2598_v60  ;;  %v2599_v62 = vadd.f32 %v2553_v46, %v5759_v45  ;;  %v2739_v57 = vpop.f32.mrb[174].mxu0  ;;  %v4509_v7 = vpop.f32.mrb[147].mxu1 }
 0x2fe   : > { %v4539_v48 = vpop.f32.mrb[175].mxu0 }
 0x2ff   : > { %v5808_v24 = vadd.f32 %v2739_v57, %v2599_v62 }
 0x302   : > { %v2558_v9 = vpop.f32.mrb[148].mxu1 }
 0x303   : > { %v2600_v52 = vadd.f32 %v2558_v9, %v5764_v33  ;;  %v2744_v15 = vpop.f32.mrb[176].mxu0  ;;  %v4512_v25 = vpop.f32.mrb[149].mxu1 }
 0x304   : > { %v4542_v39 = vpop.f32.mrb[177].mxu0  ;;  %v2561_v1 = vpop.f32.mrb[150].mxu1 }
 0x305   : > { %v5811_v29 = vadd.f32 %v2744_v15, %v2600_v52  ;;  %v2601_v11 = vadd.f32 %v2561_v1, %v5766_v0  ;;  %v2747_v26 = vpop.f32.mrb[178].mxu0  ;;  %v4513_v21 = vpop.f32.mrb[151].mxu1 }
 0x306   : > { %v4543_v40 = vpop.f32.mrb[179].mxu0 }
 0x307   : > { %v5814_v45 = vadd.f32 %v2747_v26, %v2601_v11 }
 0x30a   : > { %v2566_v43 = vpop.f32.mrb[152].mxu1 }
 0x30b   : > { %v2602_v56 = vadd.f32 %v2566_v43, %v5771_v10  ;;  %v2752_v41 = vpop.f32.mrb[180].mxu0  ;;  %v4516_v2 = vpop.f32.mrb[153].mxu1 }
 0x30c   : > { %v4546_v60 = vpop.f32.mrb[181].mxu0  ;;  %v2569_v33 = vpop.f32.mrb[154].mxu1 }
 0x30d   : > { %v5817_v34 = vadd.f32 %v2752_v41, %v2602_v56  ;;  %v2603_v38 = vadd.f32 %v2569_v33, %v5773_v17  ;;  %v2755_v8 = vpop.f32.mrb[182].mxu0  ;;  %v4517_v46 = vpop.f32.mrb[155].mxu1 }
 0x30e   : > { %v4547_v62 = vpop.f32.mrb[183].mxu0 }
 0x30f   : > { %v5820_v0 = vadd.f32 %v2755_v8, %v2603_v38 }
 0x312   : > { %v2574_v57 = vpop.f32.mrb[156].mxu1 }
 0x313   : > { %v2604_v7 = vadd.f32 %v2574_v57, %v5778_v18  ;;  %v2760_v48 = vpop.f32.mrb[184].mxu0  ;;  %v4520_v9 = vpop.f32.mrb[157].mxu1 }
 0x314   : > { %v4550_v52 = vpop.f32.mrb[185].mxu0  ;;  %v2577_v10 = vpop.f32.mrb[158].mxu1 }
 0x315   : > { %v5823_v15 = vadd.f32 %v2760_v48, %v2604_v7  ;;  %v2605_v25 = vadd.f32 %v2577_v10, %v5780_v61  ;;  %v2763_v39 = vpop.f32.mrb[186].mxu0  ;;  %v4521_v1 = vpop.f32.mrb[159].mxu1 }
 0x316   : > { %v4551_v11 = vpop.f32.mrb[187].mxu0 }
 0x317   : > { %v5826_v17 = vadd.f32 %v2763_v39, %v2605_v25 }
 0x31a   : > { %v2582_v26 = vpop.f32.mrb[160].mxu1 }
 0x31b   : > { %v2606_v21 = vadd.f32 %v2582_v26, %v5785_v12  ;;  %v2768_v40 = vpop.f32.mrb[188].mxu0  ;;  %v4524_v43 = vpop.f32.mrb[161].mxu1 }
 0x31c   : > { %v4554_v56 = vpop.f32.mrb[189].mxu0  ;;  %v2585_v18 = vpop.f32.mrb[162].mxu1 }
 0x31d   : > { %v5829_v41 = vadd.f32 %v2768_v40, %v2606_v21  ;;  %v2607_v2 = vadd.f32 %v2585_v18, %v5787_v58  ;;  %v2771_v60 = vpop.f32.mrb[190].mxu0  ;;  %v4525_v33 = vpop.f32.mrb[163].mxu1 }
 0x31e   : > { %v4555_v38 = vpop.f32.mrb[191].mxu0 }
 0x31f   : > { %v5832_v61 = vadd.f32 %v2771_v60, %v2607_v2 }
 0x322   : > { %v2590_v8 = vpop.f32.mrb[164].mxu1 }
 0x323   : > { %v2608_v46 = vadd.f32 %v2590_v8, %v5792_v42  ;;  %v2776_v62 = vpop.f32.mrb[192].mxu0  ;;  %v4528_v57 = vpop.f32.mrb[165].mxu1 }
 0x324   : > { %v4558_v7 = vpop.f32.mrb[193].mxu0  ;;  %v2593_v12 = vpop.f32.mrb[166].mxu1 }
 0x325   : > { %v5835_v48 = vadd.f32 %v2776_v62, %v2608_v46  ;;  %v2779_v9 = vpop.f32.mrb[194].mxu0  ;;  %v4529_v52 = vpop.f32.mrb[167].mxu1 }
 0x326   : > { %v4559_v10 = vpop.f32.mrb[195].mxu0 }
 0x32a   : > { %v2914_v25 = vpop.f32.mrb[168].mxu1 }
 0x32b   : > { %v2968_v58 = vadd.f32 %v2914_v25, %v5798_v16  ;;  %v3100_v39 = vpop.f32.mrb[196].mxu0  ;;  %v4564_v1 = vpop.f32.mrb[169].mxu1 }
 0x32c   : > { %v4594_v11 = vpop.f32.mrb[197].mxu0  ;;  %v2917_v26 = vpop.f32.mrb[170].mxu1 }
 0x32d   : > { %v5838_v21 = vadd.f32 %v3100_v39, %v2968_v58  ;;  %v2969_v42 = vadd.f32 %v2917_v26, %v5801_v13  ;;  %v3103_v40 = vpop.f32.mrb[198].mxu0  ;;  %v4565_v43 = vpop.f32.mrb[171].mxu1 }
 0x32e   : > { %v4595_v56 = vpop.f32.mrb[199].mxu0 }
 0x32f   : > { %v5841_v18 = vadd.f32 %v3103_v40, %v2969_v42 }
 0x332   : > { %v2922_v2 = vpop.f32.mrb[172].mxu1 }
 0x333   : > { %v2970_v60 = vadd.f32 %v2922_v2, %v5805_v59  ;;  %v3108_v33 = vpop.f32.mrb[200].mxu0  ;;  %v4568_v38 = vpop.f32.mrb[173].mxu1 }
 0x334   : > { %v4598_v8 = vpop.f32.mrb[201].mxu0  ;;  %v2925_v16 = vpop.f32.mrb[174].mxu1 }
 0x335   : > { %v5844_v46 = vadd.f32 %v3108_v33, %v2970_v60  ;;  %v2971_v62 = vadd.f32 %v2925_v16, %v5808_v24  ;;  %v3111_v57 = vpop.f32.mrb[202].mxu0  ;;  %v4569_v7 = vpop.f32.mrb[175].mxu1 }
 0x336   : > { %v4599_v12 = vpop.f32.mrb[203].mxu0 }
 0x337   : > { %v5847_v13 = vadd.f32 %v3111_v57, %v2971_v62 }
 0x33a   : > { %v2930_v9 = vpop.f32.mrb[176].mxu1 }
 0x33b   : > { %v2972_v52 = vadd.f32 %v2930_v9, %v5811_v29  ;;  %v3116_v10 = vpop.f32.mrb[204].mxu0  ;;  %v4572_v25 = vpop.f32.mrb[177].mxu1 }
 0x33c   : > { %v4602_v58 = vpop.f32.mrb[205].mxu0  ;;  %v2933_v59 = vpop.f32.mrb[178].mxu1 }
 0x33d   : > { %v5850_v39 = vadd.f32 %v3116_v10, %v2972_v52  ;;  %v2973_v1 = vadd.f32 %v2933_v59, %v5814_v45  ;;  %v3119_v11 = vpop.f32.mrb[206].mxu0  ;;  %v4573_v26 = vpop.f32.mrb[179].mxu1 }
 0x33e   : > { %v4603_v42 = vpop.f32.mrb[207].mxu0 }
 0x33f   : > { %v5853_v24 = vadd.f32 %v3119_v11, %v2973_v1 }
 0x342   : > { %v2938_v40 = vpop.f32.mrb[180].mxu1 }
 0x343   : > { %v2974_v43 = vadd.f32 %v2938_v40, %v5817_v34  ;;  %v3124_v56 = vpop.f32.mrb[208].mxu0  ;;  %v4576_v2 = vpop.f32.mrb[181].mxu1 }
 0x344   : > { %v4606_v60 = vpop.f32.mrb[209].mxu0  ;;  %v2941_v29 = vpop.f32.mrb[182].mxu1 }
 0x345   : > { %v5856_v33 = vadd.f32 %v3124_v56, %v2974_v43  ;;  %v2975_v38 = vadd.f32 %v2941_v29, %v5820_v0  ;;  %v3127_v8 = vpop.f32.mrb[210].mxu0  ;;  %v4577_v16 = vpop.f32.mrb[183].mxu1 }
 0x346   : > { %v4607_v62 = vpop.f32.mrb[211].mxu0 }
 0x347   : > { %v5859_v45 = vadd.f32 %v3127_v8, %v2975_v38 }
 0x34a   : > { %v2946_v57 = vpop.f32.mrb[184].mxu1 }
 0x34b   : > { %v2976_v7 = vadd.f32 %v2946_v57, %v5823_v15  ;;  %v3132_v12 = vpop.f32.mrb[212].mxu0  ;;  %v4580_v9 = vpop.f32.mrb[185].mxu1 }
 0x34c   : > { %v4610_v52 = vpop.f32.mrb[213].mxu0  ;;  %v2949_v34 = vpop.f32.mrb[186].mxu1 }
 0x34d   : > { %v5862_v10 = vadd.f32 %v3132_v12, %v2976_v7  ;;  %v2977_v25 = vadd.f32 %v2949_v34, %v5826_v17  ;;  %v3135_v58 = vpop.f32.mrb[214].mxu0  ;;  %v4581_v59 = vpop.f32.mrb[187].mxu1 }
 0x34e   : > { %v4611_v1 = vpop.f32.mrb[215].mxu0 }
 0x34f   : > { %v5865_v0 = vadd.f32 %v3135_v58, %v2977_v25 }
 0x352   : > { %v2954_v11 = vpop.f32.mrb[188].mxu1 }
 0x353   : > { %v2978_v26 = vadd.f32 %v2954_v11, %v5829_v41  ;;  %v3140_v42 = vpop.f32.mrb[216].mxu0  ;;  %v4584_v40 = vpop.f32.mrb[189].mxu1 }
 0x354   : > { %v4614_v43 = vpop.f32.mrb[217].mxu0  ;;  %v2957_v15 = vpop.f32.mrb[190].mxu1 }
 0x355   : > { %v5868_v56 = vadd.f32 %v3140_v42, %v2978_v26  ;;  %v2979_v2 = vadd.f32 %v2957_v15, %v5832_v61  ;;  %v3143_v60 = vpop.f32.mrb[218].mxu0  ;;  %v4585_v29 = vpop.f32.mrb[191].mxu1 }
 0x356   : > { %v4615_v38 = vpop.f32.mrb[219].mxu0 }
 0x357   : > { %v5871_v17 = vadd.f32 %v3143_v60, %v2979_v2 }
 0x35a   : > { %v2962_v8 = vpop.f32.mrb[192].mxu1 }
 0x35b   : > { %v2980_v16 = vadd.f32 %v2962_v8, %v5835_v48  ;;  %v3148_v62 = vpop.f32.mrb[220].mxu0  ;;  %v4588_v57 = vpop.f32.mrb[193].mxu1 }
 0x35c   : > { %v4618_v7 = vpop.f32.mrb[221].mxu0  ;;  %v2965_v41 = vpop.f32.mrb[194].mxu1 }
 0x35d   : > { %v5874_v12 = vadd.f32 %v3148_v62, %v2980_v16  ;;  %v3151_v9 = vpop.f32.mrb[222].mxu0  ;;  %v4589_v52 = vpop.f32.mrb[195].mxu1 }
 0x35e   : > { %v4619_v34 = vpop.f32.mrb[223].mxu0 }
 0x362   : > { %v3286_v25 = vpop.f32.mrb[196].mxu1 }
 0x363   : > { %v3340_v61 = vadd.f32 %v3286_v25, %v5838_v21  ;;  %v3472_v58 = vpop.f32.mrb[224].mxu0  ;;  %v4624_v59 = vpop.f32.mrb[197].mxu1 }
 0x364   : > { %v4654_v1 = vpop.f32.mrb[225].mxu0  ;;  %v3289_v11 = vpop.f32.mrb[198].mxu1 }
 0x365   : > { %v5877_v26 = vadd.f32 %v3472_v58, %v3340_v61  ;;  %v3341_v48 = vadd.f32 %v3289_v11, %v5841_v18  ;;  %v3475_v42 = vpop.f32.mrb[226].mxu0  ;;  %v4625_v40 = vpop.f32.mrb[199].mxu1 }
 0x366   : > { %v4655_v43 = vpop.f32.mrb[227].mxu0 }
 0x367   : > { %v5880_v15 = vadd.f32 %v3475_v42, %v3341_v48 }
 0x36a   : > { %v3294_v2 = vpop.f32.mrb[200].mxu1 }
 0x36b   : > { %v3342_v60 = vadd.f32 %v3294_v2, %v5844_v46  ;;  %v3480_v29 = vpop.f32.mrb[228].mxu0  ;;  %v4628_v38 = vpop.f32.mrb[201].mxu1 }
 0x36c   : > { %v4658_v8 = vpop.f32.mrb[229].mxu0  ;;  %v3297_v21 = vpop.f32.mrb[202].mxu1 }
 0x36d   : > { %v5883_v16 = vadd.f32 %v3480_v29, %v3342_v60  ;;  %v3343_v62 = vadd.f32 %v3297_v21, %v5847_v13  ;;  %v3483_v57 = vpop.f32.mrb[230].mxu0  ;;  %v4629_v7 = vpop.f32.mrb[203].mxu1 }
 0x36e   : > { %v4659_v41 = vpop.f32.mrb[231].mxu0 }
 0x36f   : > { %v5886_v18 = vadd.f32 %v3483_v57, %v3343_v62 }
 0x372   : > { %v3302_v9 = vpop.f32.mrb[204].mxu1 }
 0x373   : > { %v3344_v52 = vadd.f32 %v3302_v9, %v5850_v39  ;;  %v3488_v34 = vpop.f32.mrb[232].mxu0  ;;  %v4632_v25 = vpop.f32.mrb[205].mxu1 }
 0x374   : > { %v4662_v61 = vpop.f32.mrb[233].mxu0  ;;  %v3305_v46 = vpop.f32.mrb[206].mxu1 }
 0x375   : > { %v5889_v58 = vadd.f32 %v3488_v34, %v3344_v52  ;;  %v3345_v59 = vadd.f32 %v3305_v46, %v5853_v24  ;;  %v3491_v1 = vpop.f32.mrb[234].mxu0  ;;  %v4633_v11 = vpop.f32.mrb[207].mxu1 }
 0x376   : > { %v4663_v48 = vpop.f32.mrb[235].mxu0 }
 0x377   : > { %v5892_v13 = vadd.f32 %v3491_v1, %v3345_v59 }
 0x37a   : > { %v3310_v42 = vpop.f32.mrb[208].mxu1 }
 0x37b   : > { %v3346_v40 = vadd.f32 %v3310_v42, %v5856_v33  ;;  %v3496_v43 = vpop.f32.mrb[236].mxu0  ;;  %v4636_v2 = vpop.f32.mrb[209].mxu1 }
 0x37c   : > { %v4666_v60 = vpop.f32.mrb[237].mxu0  ;;  %v3313_v39 = vpop.f32.mrb[210].mxu1 }
 0x37d   : > { %v5895_v29 = vadd.f32 %v3496_v43, %v3346_v40  ;;  %v3347_v38 = vadd.f32 %v3313_v39, %v5859_v45  ;;  %v3499_v8 = vpop.f32.mrb[238].mxu0  ;;  %v4637_v21 = vpop.f32.mrb[211].mxu1 }
 0x37e   : > { %v4667_v62 = vpop.f32.mrb[239].mxu0 }
 0x37f   : > { %v5898_v24 = vadd.f32 %v3499_v8, %v3347_v38 }
 0x382   : > { %v3318_v57 = vpop.f32.mrb[212].mxu1 }
 0x383   : > { %v3348_v7 = vadd.f32 %v3318_v57, %v5862_v10  ;;  %v3504_v41 = vpop.f32.mrb[240].mxu0  ;;  %v4640_v9 = vpop.f32.mrb[213].mxu1 }
 0x384   : > { %v4670_v52 = vpop.f32.mrb[241].mxu0  ;;  %v3321_v33 = vpop.f32.mrb[214].mxu1 }
 0x385   : > { %v5901_v34 = vadd.f32 %v3504_v41, %v3348_v7  ;;  %v3349_v25 = vadd.f32 %v3321_v33, %v5865_v0  ;;  %v3507_v61 = vpop.f32.mrb[242].mxu0  ;;  %v4641_v46 = vpop.f32.mrb[215].mxu1 }
 0x386   : > { %v4671_v59 = vpop.f32.mrb[243].mxu0 }
 0x387   : > { %v5904_v45 = vadd.f32 %v3507_v61, %v3349_v25 }
 0x38a   : > { %v3326_v1 = vpop.f32.mrb[216].mxu1 }
 0x38b   : > { %v3350_v11 = vadd.f32 %v3326_v1, %v5868_v56  ;;  %v3512_v48 = vpop.f32.mrb[244].mxu0  ;;  %v4644_v42 = vpop.f32.mrb[217].mxu1 }
 0x38c   : > { %v4674_v40 = vpop.f32.mrb[245].mxu0  ;;  %v3329_v10 = vpop.f32.mrb[218].mxu1 }
 0x38d   : > { %v5907_v43 = vadd.f32 %v3512_v48, %v3350_v11  ;;  %v3351_v2 = vadd.f32 %v3329_v10, %v5871_v17  ;;  %v3515_v60 = vpop.f32.mrb[246].mxu0  ;;  %v4645_v39 = vpop.f32.mrb[219].mxu1  ;;  %v5918_v17 = vld [vmem:[%s6019_s5] ss:$0 sm:$0xff] }
 0x38e   : > { %v4675_v38 = vpop.f32.mrb[247].mxu0 }
 0x38f   : > { %v5910_v0 = vadd.f32 %v3515_v60, %v3351_v2 }
 0x392   : > { %v3334_v8 = vpop.f32.mrb[220].mxu1 }
 0x393   : > { %v3352_v21 = vadd.f32 %v3334_v8, %v5874_v12  ;;  %v4648_v62 = vpop.f32.mrb[221].mxu1  ;;  %v3520_v57 = vpop.f32.mrb[248].mxu0 }
 0x394   : > { %v3337_v7 = vpop.f32.mrb[222].mxu1  ;;  %v4678_v56 = vpop.f32.mrb[249].mxu0 }
 0x395   : > { %v5913_v41 = vadd.f32 %v3520_v57, %v3352_v21  ;;  %v4649_v9 = vpop.f32.mrb[223].mxu1  ;;  %v3523_v52 = vpop.f32.mrb[250].mxu0 }
 0x396   : > { %v4679_v33 = vpop.f32.mrb[251].mxu0 }
 0x39a   : > { %v3658_v25 = vpop.f32.mrb[224].mxu1 }
 0x39b   : > { %v3712_v61 = vadd.f32 %v3658_v25, %v5877_v26  ;;  %v4684_v46 = vpop.f32.mrb[225].mxu1 }
 0x39c   : > { %v3661_v59 = vpop.f32.mrb[226].mxu1 }
 0x39d   : > { %v3732_v12 = vadd.f32 %v5918_v17, %v3712_v61  ;;  %v3713_v1 = vadd.f32 %v3661_v59, %v5880_v15  ;;  %v4685_v11 = vpop.f32.mrb[227].mxu1 }
 0x39f   : > { %v3745_v48 = vmul.f32 %v3732_v12, %v5421_v47  ;;  %v3733_v42 = vadd.f32 %v5918_v17, %v3713_v1 }
 0x3a1   : > { %v3758_v40 = vadd.f32 %v3745_v48, %v4987_v54  ;;  %v3746_v10 = vmul.f32 %v3733_v42, %v5435_v19 }
 0x3a2   : > { %v3666_v2 = vpop.f32.mrb[228].mxu1 }
 0x3a3   : > { %3771 = vst.msk [vmem:[#allocation2 + $0x10] sm:$0xff] %vm266_vm1, %v3758_v40  ;;  %v3759_v26 = vadd.f32 %v3746_v10, %v4989_v55  ;;  %v3714_v60 = vadd.f32 %v3666_v2, %v5883_v16  ;;  %v4688_v39 = vpop.f32.mrb[229].mxu1 }
 0x3a4   : > { %v3669_v38 = vpop.f32.mrb[230].mxu1 }
 0x3a5   : > { %3772 = vst.msk [vmem:[#allocation2 + $0x18] sm:$0xff] %vm266_vm1, %v3759_v26  ;;  %v3734_v47 = vadd.f32 %v5918_v17, %v3714_v60  ;;  %v3715_v15 = vadd.f32 %v3669_v38, %v5886_v18  ;;  %v4689_v54 = vpop.f32.mrb[231].mxu1 }
 0x3a7   : > { %v3747_v19 = vmul.f32 %v3734_v47, %v5439_v35  ;;  %v3735_v8 = vadd.f32 %v5918_v17, %v3715_v15 }
 0x3a9   : > { %v3760_v21 = vadd.f32 %v3747_v19, %v5003_v4  ;;  %v3748_v55 = vmul.f32 %v3735_v8, %v5447_v27 }
 0x3aa   : > { %v3786_v62 = vld [vmem:[#allocation2 + $0x10] sm:$0xff]  ;;  %v3674_v16 = vpop.f32.mrb[232].mxu1 }
 0x3ab   : > { %3803 = vst.msk [vmem:[%s4887_s14 + $0x10] sm:$0xff] %vm266_vm1, %v3786_v62  ;;  %3773 = vst.msk [vmem:[#allocation2 + $0x20] sm:$0xff] %vm266_vm1, %v3760_v21  ;;  %v3761_v57 = vadd.f32 %v3748_v55, %v5005_v5  ;;  %v3716_v18 = vadd.f32 %v3674_v16, %v5889_v58  ;;  %v4692_v7 = vpop.f32.mrb[233].mxu1 }
 0x3ac   : > { %v3787_v56 = vld [vmem:[#allocation2 + $0x18] sm:$0xff]  ;;  %v3677_v35 = vpop.f32.mrb[234].mxu1 }
 0x3ad   : > { %3804 = vst.msk [vmem:[%s4887_s14 + $0x18] sm:$0xff] %vm266_vm1, %v3787_v56  ;;  %3774 = vst.msk [vmem:[#allocation2 + $0x28] sm:$0xff] %vm266_vm1, %v3761_v57  ;;  %v3736_v4 = vadd.f32 %v5918_v17, %v3716_v18  ;;  %v3717_v27 = vadd.f32 %v3677_v35, %v5892_v13  ;;  %v4693_v9 = vpop.f32.mrb[235].mxu1 }
 0x3af   : > { %v3749_v52 = vmul.f32 %v3736_v4, %v5462_v53  ;;  %v3737_v5 = vadd.f32 %v5918_v17, %v3717_v27 }
 0x3b1   : > { %v3762_v33 = vadd.f32 %v3749_v52, %v5030_v22  ;;  %v3750_v58 = vmul.f32 %v3737_v5, %v5469_v31 }
 0x3b2   : > { %v3788_v25 = vld [vmem:[#allocation2 + $0x20] sm:$0xff]  ;;  %v3682_v61 = vpop.f32.mrb[236].mxu1 }
 0x3b3   : > { %3805 = vst.msk [vmem:[%s4887_s14 + $0x20] sm:$0xff] %vm266_vm1, %v3788_v25  ;;  %3775 = vst.msk [vmem:[#allocation2 + $0x30] sm:$0xff] %vm266_vm1, %v3762_v33  ;;  %v3763_v46 = vadd.f32 %v3750_v58, %v5032_v23  ;;  %v3718_v13 = vadd.f32 %v3682_v61, %v5895_v29  ;;  %v4696_v59 = vpop.f32.mrb[237].mxu1 }
 0x3b4   : > { %v3789_v12 = vld [vmem:[#allocation2 + $0x28] sm:$0xff]  ;;  %v3685_v53 = vpop.f32.mrb[238].mxu1 }
 0x3b5   : > { %3806 = vst.msk [vmem:[%s4887_s14 + $0x28] sm:$0xff] %vm266_vm1, %v3789_v12  ;;  %3776 = vst.msk [vmem:[#allocation2 + $0x38] sm:$0xff] %vm266_vm1, %v3763_v46  ;;  %v3738_v22 = vadd.f32 %v5918_v17, %v3718_v13  ;;  %v3719_v31 = vadd.f32 %v3685_v53, %v5898_v24  ;;  %v4697_v1 = vpop.f32.mrb[239].mxu1 }
 0x3b7   : > { %v3751_v11 = vmul.f32 %v3738_v22, %v5485_v44  ;;  %v3739_v23 = vadd.f32 %v5918_v17, %v3719_v31 }
 0x3b9   : > { %v3764_v48 = vadd.f32 %v3751_v11, %v5054_v36  ;;  %v3752_v29 = vmul.f32 %v3739_v23, %v5493_v63 }
 0x3ba   : > { %v3790_v42 = vld [vmem:[#allocation2 + $0x30] sm:$0xff]  ;;  %v3690_v40 = vpop.f32.mrb[240].mxu1 }
 0x3bb   : > { %3807 = vst.msk [vmem:[%s4887_s14 + $0x30] sm:$0xff] %vm266_vm1, %v3790_v42  ;;  %3777 = vst.msk [vmem:[#allocation2 + $0x40] sm:$0xff] %vm266_vm1, %v3764_v48  ;;  %v3765_v10 = vadd.f32 %v3752_v29, %v5056_v37  ;;  %v3720_v24 = vadd.f32 %v3690_v40, %v5901_v34  ;;  %v4700_v2 = vpop.f32.mrb[241].mxu1 }
 0x3bc   : > { %v3791_v26 = vld [vmem:[#allocation2 + $0x38] sm:$0xff]  ;;  %v3693_v44 = vpop.f32.mrb[242].mxu1 }
 0x3bd   : > { %3808 = vst.msk [vmem:[%s4887_s14 + $0x38] sm:$0xff] %vm266_vm1, %v3791_v26  ;;  %3778 = vst.msk [vmem:[#allocation2 + $0x48] sm:$0xff] %vm266_vm1, %v3765_v10  ;;  %v3740_v36 = vadd.f32 %v5918_v17, %v3720_v24  ;;  %v3721_v63 = vadd.f32 %v3693_v44, %v5904_v45  ;;  %v4701_v60 = vpop.f32.mrb[243].mxu1 }
 0x3bf   : > { %v3753_v39 = vmul.f32 %v3740_v36, %v5504_v28  ;;  %v3741_v37 = vadd.f32 %v5918_v17, %v3721_v63 }
 0x3c1   : > { %v3766_v38 = vadd.f32 %v3753_v39, %v5076_v50  ;;  %v3754_v34 = vmul.f32 %v3741_v37, %v5512_v49 }
 0x3c2   : > { %v3792_v47 = vld [vmem:[#allocation2 + $0x40] sm:$0xff]  ;;  %v3698_v15 = vpop.f32.mrb[244].mxu1 }
 0x3c3   : > { %3809 = vst.msk [vmem:[%s4887_s14 + $0x40] sm:$0xff] %vm266_vm1, %v3792_v47  ;;  %3779 = vst.msk [vmem:[#allocation2 + $0x50] sm:$0xff] %vm266_vm1, %v3766_v38  ;;  %v3767_v54 = vadd.f32 %v3754_v34, %v5078_v51  ;;  %v3722_v45 = vadd.f32 %v3698_v15, %v5907_v43  ;;  %v4704_v19 = vpop.f32.mrb[245].mxu1 }
 0x3c4   : > { %v3793_v8 = vld [vmem:[#allocation2 + $0x48] sm:$0xff]  ;;  %v3701_v28 = vpop.f32.mrb[246].mxu1 }
 0x3c5   : > { %3810 = vst.msk [vmem:[%s4887_s14 + $0x48] sm:$0xff] %vm266_vm1, %v3793_v8  ;;  %3780 = vst.msk [vmem:[#allocation2 + $0x58] sm:$0xff] %vm266_vm1, %v3767_v54  ;;  %v3742_v50 = vadd.f32 %v5918_v17, %v3722_v45  ;;  %v3723_v49 = vadd.f32 %v3701_v28, %v5910_v0  ;;  %v4705_v21 = vpop.f32.mrb[247].mxu1 }
 0x3c7   : > { %v3755_v55 = vmul.f32 %v3742_v50, %v5523_v30  ;;  %v3743_v51 = vadd.f32 %v5918_v17, %v3723_v49 }
 0x3c9   : > { %v3768_v62 = vadd.f32 %v3755_v55, %v5098_v3  ;;  %v3756_v43 = vmul.f32 %v3743_v51, %v5531_v32 }
 0x3ca   : > { %v3794_v16 = vld [vmem:[#allocation2 + $0x50] sm:$0xff]  ;;  %v3706_v57 = vpop.f32.mrb[248].mxu1 }
 0x3cb   : > { %3811 = vst.msk [vmem:[%s4887_s14 + $0x50] sm:$0xff] %vm266_vm1, %v3794_v16  ;;  %3781 = vst.msk [vmem:[#allocation2 + $0x60] sm:$0xff] %vm266_vm1, %v3768_v62  ;;  %v3769_v18 = vadd.f32 %v3756_v43, %v5100_v6  ;;  %v3724_v0 = vadd.f32 %v3706_v57, %v5913_v41  ;;  %v4708_v30 = vpop.f32.mrb[249].mxu1 }
 0x3cc   : > { %v3795_v7 = vld [vmem:[#allocation2 + $0x58] sm:$0xff]  ;;  %v3709_v56 = vpop.f32.mrb[250].mxu1 }
 0x3cd   : > { %3812 = vst.msk [vmem:[%s4887_s14 + $0x58] sm:$0xff] %vm266_vm1, %v3795_v7  ;;  %3782 = vst.msk [vmem:[#allocation2 + $0x68] sm:$0xff] %vm266_vm1, %v3769_v18  ;;  %v3744_v3 = vadd.f32 %v5918_v17, %v3724_v0  ;;  %v4709_v32 = vpop.f32.mrb[251].mxu1 }
 0x3cf   : > { %v3757_v35 = vmul.f32 %v3744_v3, %v5540_v14 }
 0x3d1   : > { %v3770_v4 = vadd.f32 %v3757_v35, %v5120_v20 }
 0x3d2   : > { %v3796_v27 = vld [vmem:[#allocation2 + $0x60] sm:$0xff] }
 0x3d3   : > { %3813 = vst.msk [vmem:[%s4887_s14 + $0x60] sm:$0xff] %vm266_vm1, %v3796_v27 }
 0x3d4   : > { %3783 = vst.msk [vmem:[#allocation2 + $0x70] sm:$0xf] %vm283_vm7, %v3770_v4  ;;  %v3797_v6 = vld [vmem:[#allocation2 + $0x68] sm:$0xff] }
 0x3d5   : > { %3814 = vst.msk [vmem:[%s4887_s14 + $0x68] sm:$0xff] %vm266_vm1, %v3797_v6 }
 0x3db   : > { %v3798_v41 = vld [vmem:[#allocation2 + $0x70] sm:$0xff] }
 0x3dc   : > { %3815 = vst.msk [vmem:[%s4887_s14 + $0x70] sm:$0xff] %vm266_vm1, %v3798_v41 }
 0x3dd PF: > { %s16_s21 = sadd.s32 1, %s4730_s21  }
 0x3de   : > { %p13_p4 = scmp.ge.s32.totalorder %s16_s21, 4  }
 0x3e0   :  { %15 = sbr.rel (!%p13_p4) target bundleno = 1 (0x1), region = 90 }

</bundles_post_ra>
